<compile_context>
chip_gen: v5e
topology: v5e:2x2
jax: 0.10.0
libtpu: 0.0.40
codegen_flags: <defaults>
</compile_context>

<pallas_src>
import jax
import jax.numpy as jnp
from jax.experimental import pallas as pl
from jax.experimental.pallas import tpu as pltpu


# Per-buffer VMEM budget. 2 arrays (in + out) x 2 (double buffering) = 4 live buffers
# -> ~16 MiB working set, comfortably under every generation's scoped VMEM limit.
_PER_BUFFER_BYTES = 4 * 1024 * 1024
_MAX_TILE_ROWS = 1024  # measured: bigger tiles buy ~1%, not worth the VMEM pressure


def _sq_plus_double_kernel(x_ref, o_ref):
    v = x_ref[...]
    # x**2 + 2*x == x * (x + 2): one add + one mul per vreg (weak-typed 2 keeps dtype)
    o_ref[...] = v * (v + 2)


def _sublane_multiple(dtype) -> int:
    """Row granularity: 8 for 32-bit, 16 for 16-bit, 32 for 8-bit dtypes."""
    itemsize = jnp.dtype(dtype).itemsize
    return max(8, 32 // itemsize)


def sq_plus_double(x: jax.Array) -> jax.Array:
    """Pallas TPU implementation of PtModule.forward: x**2 + 2*x elementwise."""
    assert x.ndim == 2, "module semantics require a 2-D input [batch, features]"
    B, F = x.shape
    dtype = x.dtype
    itemsize = jnp.dtype(dtype).itemsize
    sublane = _sublane_multiple(dtype)
    row_bytes = F * itemsize

    # Tallest full-width row tile whose buffer stays under the per-buffer budget.
    tile_r = (_PER_BUFFER_BYTES // max(row_bytes, 1)) // sublane * sublane
    tile_r = min(tile_r, _MAX_TILE_ROWS)

    # Tiny inputs (e.g. the module's 8x128 default) or anything that fits a single
    # block: a fused XLA elementwise pass beats the pallas_call fixed cost.
    if B * F * itemsize <= _PER_BUFFER_BYTES or tile_r >= B:
        return x * (x + 2)

    vmem_params = pltpu.CompilerParams(
        dimension_semantics=None,  # filled below
        vmem_limit_bytes=32 * 1024 * 1024,
    )

    if tile_r >= sublane:
        # 1-D grid over rows; full-width contiguous blocks. Last block is partial and
        # Pallas masks it -- only the boundary tile pays the masked-store cost.
        grid = (pl.cdiv(B, tile_r),)
        in_specs = [pl.BlockSpec((tile_r, F), lambda i: (i, 0))]
        out_specs = pl.BlockSpec((tile_r, F), lambda i: (i, 0))
        dims = ("parallel",)
    else:
        # Rows too wide for even a sublane-height full-width block: tile columns too.
        tile_r = min(sublane, B)
        tile_c = (_PER_BUFFER_BYTES // max(tile_r * itemsize, 1)) // 128 * 128
        tile_c = max(128, min(tile_c, F))
        grid = (pl.cdiv(B, tile_r), pl.cdiv(F, tile_c))
        in_specs = [pl.BlockSpec((tile_r, tile_c), lambda i, j: (i, j))]
        out_specs = pl.BlockSpec((tile_r, tile_c), lambda i, j: (i, j))
        dims = ("parallel", "parallel")

    return pl.pallas_call(
        _sq_plus_double_kernel,
        out_shape=jax.ShapeDtypeStruct((B, F), dtype),
        grid=grid,
        in_specs=in_specs,
        out_specs=out_specs,
        compiler_params=pltpu.CompilerParams(
            dimension_semantics=dims,
            vmem_limit_bytes=vmem_params.vmem_limit_bytes,
        ),
    )(x)


if __name__ == "__main__":
    key = jax.random.PRNGKey(0)

    # Small shape consistent with the module: batch=8, features=128.
    # This takes the short-circuit (fused jnp) path by design.
    x = jax.random.normal(key, (8, 128), dtype=jnp.float32)
    out = sq_plus_double(x)
    jax.block_until_ready(out)
    ref = x * x + 2.0 * x
    assert out.shape == ref.shape and out.dtype == ref.dtype
    assert jnp.allclose(out, ref, atol=1e-6), "mismatch vs reference (small path)"

    # Larger ragged shape: exercises the tiled Pallas path (row grid > 1, masked
    # boundary block, no padding / slicing anywhere).
    x2 = jax.random.normal(jax.random.PRNGKey(1), (1000, 3000), dtype=jnp.float32)
    out2 = sq_plus_double(x2)
    jax.block_until_ready(out2)
    ref2 = x2 * x2 + 2.0 * x2
    assert out2.shape == ref2.shape
    assert jnp.allclose(out2, ref2, atol=1e-6), "mismatch vs reference (tiled path)"

    # bf16 path: exercises the dtype-aware 16-row sublane granularity.
    x3 = jax.random.normal(jax.random.PRNGKey(2), (4096, 1024), dtype=jnp.bfloat16)
    out3 = sq_plus_double(x3)
    jax.block_until_ready(out3)
    ref3 = (x3.astype(jnp.float32) * (x3.astype(jnp.float32) + 2.0)).astype(jnp.bfloat16)
    assert out3.shape == ref3.shape and out3.dtype == ref3.dtype
    assert jnp.allclose(
        out3.astype(jnp.float32), ref3.astype(jnp.float32), atol=1e-2, rtol=1e-2
    ), "mismatch vs reference (bf16 path)"

    print("KERNEL_OK")
</pallas_src>

<mosaic_0001>
module attributes {stable_mosaic.version = 11 : i64} {
  func.func @_sq_plus_double_kernel(%arg0: i32, %arg1: memref<344x3000xf32, #tpu.memory_space<vmem>>, %arg2: memref<344x3000xf32, #tpu.memory_space<vmem>>) attributes {dimension_semantics = [#tpu.dimension_semantics<parallel>], iteration_bounds = array<i64: 3>, scalar_prefetch = 0 : i64, scratch_operands = 0 : i64, tpu.core_type = #tpu.core_type<tc>, window_params = [{transform_indices = @transform_0, window_bounds = array<i64: 344, 3000>}, {transform_indices = @transform_1, window_bounds = array<i64: 344, 3000>}]} {
    %c0 = arith.constant 0 : index
    %c0_0 = arith.constant 0 : index
    %0 = vector.load %arg1[%c0, %c0_0] : memref<344x3000xf32, #tpu.memory_space<vmem>>, vector<344x3000xf32>
    %cst = arith.constant 2.000000e+00 : f32
    %1 = vector.broadcast %cst : f32 to vector<344x3000xf32>
    %2 = arith.addf %0, %1 : vector<344x3000xf32>
    %3 = arith.mulf %0, %2 : vector<344x3000xf32>
    %c0_1 = arith.constant 0 : index
    %c0_2 = arith.constant 0 : index
    %4 = vector.load %arg2[%c0_1, %c0_2] : memref<344x3000xf32, #tpu.memory_space<vmem>>, vector<344x3000xf32>
    tpu.vector_store %arg2[%c0_1, %c0_2], %3 {strides = array<i32>} : memref<344x3000xf32, #tpu.memory_space<vmem>>, vector<344x3000xf32>,
    return
  }
  func.func @transform_0(%arg0: i32) -> (i32, i32) {
    %c0_i32 = arith.constant 0 : i32
    %c0_i32_0 = arith.constant 0 : i32
    return %arg0, %c0_i32 : i32, i32
  }
  func.func @transform_1(%arg0: i32) -> (i32, i32) {
    %c0_i32 = arith.constant 0 : i32
    %c0_i32_0 = arith.constant 0 : i32
    return %arg0, %c0_i32 : i32, i32
  }
}

</mosaic_0001>

<bundles_post_ra>
// kernel: tpu_custom_call.1
= control target key start
LH: loop header
LB: loop body
LE: loop exit
PB: predicated region body
PF: predicated region fallthrough
CT: control target
= control target key end

     0   :  { %6 = vsyncpa [#allocation3], 0  ;;  %s6860_s0 = inlined_call_operand.hbm [shape: f32[1000,3000], index: 0, kind: input, shape index: {}]   ;;  %s6861_s1 = inlined_call_operand.hbm [shape: f32[1000,3000], index: 1, kind: output, shape index: {}]  }
   0x1   :  { %8 = vsyncpa [#allocation3 + $0x1], 0 }
   0x2   :  { %9 = vsyncpa [#allocation4], 0 }
   0x3   :  { %11 = vsyncpa [#allocation4 + $0x1], 0  ;;  %s4584_s6 = smov 0   ;;  %s4586_s7 = smov 0  }
   0x4   :  { %s4588_s8 = smov 0   ;;  %s4590_s9 = smov 0  }
   0x5 LB: > { %s4605_s10 = sadd.s32 4294967295, %s4566_s9   ;;  %s4385_s11 = sadd.s32 4294967294, %s4566_s9   ;;  %s4566_s9 = sphi %s4590_s9, %s6870_s9   ;;  %s4562_s8 = sphi %s4588_s8, %s6869_s8   ;;  %s4558_s7 = sphi %s4586_s7, %s6868_s7   ;;  %s4554_s6 = sphi %s4584_s6, %s6867_s6  }
   0x6   : > { %s4609_s12 = sadd.s32 1, %s4566_s9   ;;  %s24_s13 = sadd.s32 1, %s4562_s8 }
   0x7   : > { %s21_s14 = ssub.s32 %s4566_s9, %s4609_s12  ;;  %p31_p0 = scmp.ne.s32.totalorder %s4562_s8, %s4558_s7 }
   0x8   : > { %p22_p1 = scmp.eq.s32.totalorder %s21_s14, 0  ;;  %p32_p2 = scmp.eq.s32.totalorder %s4566_s9, 0 }
   0x9   : > { %p37_p3 = scmp.ne.s32.totalorder %s4558_s7, %s4554_s6  ;;  %p38_p4 = scmp.eq.s32.totalorder %s4605_s10, 0 }
   0xa   : > { %s4621_s15 = scalar_select %p22_p1, %s4562_s8, %s24_s13  }
   0xb   : > { %p33_p5 = por %p32_p2, %p31_p0  ;;  %p4623_p6 = por %p38_p4, %p37_p3 }
   0xc   : > { %p61_p7 = scmp.eq.s32.totalorder %s4605_s10, 2  ;;  %p67_p8 = scmp.eq.s32.totalorder %s4385_s11, 2 }
   0xd   : > { %p4387_p11 = scmp.ge.s32.totalorder %s4566_s9, 3 }
   0xe   : > { %p4628_p9 = por %p61_p7, %p31_p0  ;;  %p4632_p10 = por %p67_p8, %p37_p3 }
   0xf   : > { %83 = sbr.rel (%p4387_p11) target bundleno = 62 (0x3e), region = 16 }
  0x14   : > { %86 = sbr.rel (!%p33_p5) target bundleno = 62 (0x3e), region = 20  ;;  %s87_s19 = sand.u32 (%p33_p5), 1, %s4562_s8  }
  0x15   : > { %s92_s20 = smul.u32 (%p33_p5), 43, %s4566_s9  ;;  %s4639_s26 = scalar_lea.sflag (%p33_p5), [#allocation3], %s87_s19 }
  0x16   : > { %s4401_s21 = smul.u32 (%p33_p5), 8256, %s87_s19 }
  0x17   : > { %s93_s22 = ssub.s32 (%p33_p5), 125, %s92_s20 }
  0x18   : > { %p94_p12 = scmp.lt.s32.totalorder (%p33_p5), %s93_s22, 43  ;;  %s91_s27 = scalar_lea.vmem (%p33_p5), [#allocation2], %s4401_s21 }
  0x1a   : > { %s6872_s22 = smov (!%p94_p12, %s93_s22), 43 }
  0x1b   : > { %s4389_s23 = smul.u32 192, %s6872_s22 }
  0x1d   : > { %s98_s24 = ssub.s32 8256, %s4389_s23 }
  0x1e   : > { %s99_s25 = sshll.u32 %s98_s24, 4 }
  0x1f   : > { %100 = vsyncadd %s4639_s26, %s99_s25  ;;  %p4642_p13 = scmp.ne.s32.totalorder %s4389_s23, 0  ;;  %s4411_s29 = smul.u32 8256, %s4566_s9 }
  0x20   : > { %s4647_s30 = sshll.u32 %s91_s27, 4  ;;  %s4649_s2 = smul.u32 3072, %s6872_s22  ;;  %s109_s30 = int_to_ptr.vmem [resolvable:$true] %s4647_s30 }
  0x21   : > { %s104_s5 = scalar_lea.hbm %s6860_s0, %s4411_s29  ;;  %s4461_s24 = scalar_lea.hbm %s6860_s0, 24000 }
  0x22   : > { %s106_s11 = sshll.u32 %s104_s5, 4  ;;  %s4452_s14 = sshrl.u32 %s4649_s2, 4  ;;  %s4655_s11 = int_to_ptr.hbm [resolvable:$true] %s106_s11 }
  0x23   : > { %s4450_s13 = sshra.s32 %s4655_s11, 4  ;;  %s4488_s19 = sshll.u32 %s4452_s14, 4  ;;  %s4451_s13 = int_to_ptr.hbm [resolvable:$true] %s4450_s13 }
  0x24   : > { %p4454_p0 = scmp.ne.s32.totalorder %s4488_s19, %s4649_s2  ;;  %s4455_s20 = sadd.s32 1, %s4452_s14 }
  0x25   : > { %p4462_p4 = scmp.lt.s32.totalorder %s4451_s13, %s6860_s0 }
  0x26   : > { %s6874_s20 = smov (!%p4454_p0, %s4455_s20), %s4452_s14 }
  0x27   : > { %s4457_s21 = scalar_lea.hbm %s4451_s13, %s6874_s20 }
  0x28   : > { %p4458_p1 = scmp.ne.s32.totalorder %s4451_s13, %s4457_s21  ;;  %p4463_p5 = scmp.lt.s32.totalorder %s4461_s24, %s4457_s21 }
  0x2a   : > { %p4459_p2 = pnand %p4458_p1, %p4642_p13  ;;  %p4464_p7 = por %p4463_p5, %p4462_p4 }
  0x2c   : > { %p4460_p3 = pneg %p4459_p2 }
  0x2e   : > { %p4465_p8 = pnand %p4464_p7, %p4460_p3 }
  0x30   : > { %4468 = shalt.err (!%p4465_p8)
}
  0x31   : > { %s4469_s29 = sshra.s32 %s109_s30, 4  ;;  %s4568_s4 = smov [#allocation2]   ;;  %s4470_s29 = int_to_ptr.vmem [resolvable:$true] %s4469_s29 }
  0x32   : > { %s4476_s3 = scalar_lea.vmem %s4470_s29, %s6874_s20  ;;  %s4480_s5 = scalar_lea.vmem %s4568_s4, 16512 }
  0x33   : > { %p4477_p11 = scmp.ne.s32.totalorder %s4470_s29, %s4476_s3  ;;  %p4482_p1 = scmp.lt.s32.totalorder %s4480_s5, %s4476_s3 }
  0x35   : > { %p4478_p12 = pnand %p4477_p11, %p4642_p13 }
  0x37   : > { %p4479_p0 = pneg %p4478_p12 }
  0x39   : > { %p4484_p2 = pnand %p4482_p1, %p4479_p0 }
  0x3b   : > { %4487 = shalt.err (!%p4484_p2)
}
  0x3c   : > { %s4569_s13 = smov 3072   ;;  %s4570_s14 = smov 192  }
  0x3d   : > { %114 = dma.hbm_to_vmem [thread:$0]  (%p4642_p13), %s4655_s11, %s4649_s2, %s109_s30, %s4639_s26, %s4569_s13, %s4569_s13, %s4570_s14  }
  0x3e PF: > { %p4393_p3 = scmp.ge.s32.totalorder %s4566_s9, 1  ;;  %p116_p4 = scmp.lt.s32.totalorder %s4566_s9, 4 }
  0x40   : > { %p117_p5 = pnand %p4393_p3, %p116_p4 }
  0x41   : > { %s4682_s19 = sand.u32 (!%p117_p5), 1, %s4558_s7  }
  0x42   : > { %120 = sbr.rel (%p117_p5) target bundleno = 1145 (0x479), region = 24  ;;  %s123_s21 = scalar_lea.sflag (!%p117_p5), [#allocation3], %s4682_s19 }
  0x43   : > { %s4403_s20 = smul.u32 (!%p117_p5), 8256, %s4682_s19 }
  0x45   : > { %s4686_s22 = scalar_lea.vmem (!%p117_p5), [#allocation2], %s4403_s20 }
  0x47   : > { %4545 = dma.done.wait (%p4623_p6), %s123_s21, 132096  }
  0x48   : > { %4547 = vsyncadd (%p4623_p6), %s123_s21, 4294835200  ;;  %v158_v0 = vld [vmem:[%s4686_s22] sm:$0xff]  ;;  %v159_v1 = vld [vmem:[%s4686_s22 + $0x8] sm:$0xff]  ;;  %s4703_s16 = scalar_lea.vmem [#allocation5], %s4403_s20  ;;  %vm3277_vm0 = vcmask 457728   ;;  %s4288_s26 = scalar_lea.sflag [#allocation4], %s4682_s19 }
  0x49   : > { %v160_v2 = vld [vmem:[%s4686_s22 + $0x10] sm:$0xff]  ;;  %v1190_v3 = vadd.f32 2.0, %v158_v0  ;;  %v1191_v4 = vadd.f32 2.0, %v159_v1  ;;  %v161_v6 = vld [vmem:[%s4686_s22 + $0x18] sm:$0xff]  ;;  %v162_v7 = vld [vmem:[%s4686_s22 + $0x20] sm:$0xff]  ;;  %s4295_s28 = smul.u32 (%p4628_p9), 43, %s4605_s10 }
  0x4a   : > { %v1192_v5 = vadd.f32 2.0, %v160_v2  ;;  %v163_v8 = vld [vmem:[%s4686_s22 + $0x28] sm:$0xff]  ;;  %v1193_v9 = vadd.f32 2.0, %v161_v6  ;;  %v1194_v10 = vadd.f32 2.0, %v162_v7  ;;  %v164_v12 = vld [vmem:[%s4686_s22 + $0x30] sm:$0xff]  ;;  %v165_v13 = vld [vmem:[%s4686_s22 + $0x38] sm:$0xff] }
  0x4b   : > { %v1195_v11 = vadd.f32 2.0, %v163_v8  ;;  %v166_v14 = vld [vmem:[%s4686_s22 + $0x40] sm:$0xff]  ;;  %v2222_v15 = vmul.f32 %v1190_v3, %v158_v0  ;;  %v2223_v16 = vmul.f32 %v1191_v4, %v159_v1  ;;  %v1196_v18 = vadd.f32 2.0, %v164_v12  ;;  %v167_v19 = vld [vmem:[%s4686_s22 + $0x48] sm:$0xff]  ;;  %v168_v22 = vld [vmem:[%s4686_s22 + $0x50] sm:$0xff]  ;;  %s4296_s30 = ssub.s32 (%p4628_p9), 125, %s4295_s28 }
  0x4c   : > { %v2224_v17 = vmul.f32 %v1192_v5, %v160_v2  ;;  %v2225_v20 = vmul.f32 %v1193_v9, %v161_v6  ;;  %v1197_v21 = vadd.f32 2.0, %v165_v13  ;;  %v2226_v23 = vmul.f32 %v1194_v10, %v162_v7  ;;  %v169_v25 = vld [vmem:[%s4686_s22 + $0x58] sm:$0xff]  ;;  %v170_v28 = vld [vmem:[%s4686_s22 + $0x60] sm:$0xff]  ;;  %v171_v31 = vld [vmem:[%s4686_s22 + $0x68] sm:$0xff]  ;;  %p4297_p6 = scmp.lt.s32.totalorder (%p4628_p9), %s4296_s30, 43 }
  0x4d   : > { %3254 = vst [vmem:[%s4703_s16] sm:$0xff] %v2222_v15  ;;  %v1198_v24 = vadd.f32 2.0, %v166_v14  ;;  %v2227_v26 = vmul.f32 %v1195_v11, %v163_v8  ;;  %v1199_v27 = vadd.f32 2.0, %v167_v19  ;;  %v2228_v29 = vmul.f32 %v1196_v18, %v164_v12  ;;  %v172_v34 = vld [vmem:[%s4686_s22 + $0x70] sm:$0xff]  ;;  %v173_v37 = vld [vmem:[%s4686_s22 + $0x78] sm:$0xff]  ;;  %v174_v40 = vld [vmem:[%s4686_s22 + $0x80] sm:$0xff] }
  0x4e   : > { %3255 = vst [vmem:[%s4703_s16 + $0x8] sm:$0xff] %v2223_v16  ;;  %v1200_v30 = vadd.f32 2.0, %v168_v22  ;;  %v2229_v32 = vmul.f32 %v1197_v21, %v165_v13  ;;  %v1201_v33 = vadd.f32 2.0, %v169_v25  ;;  %v1202_v36 = vadd.f32 2.0, %v170_v28  ;;  %v175_v43 = vld [vmem:[%s4686_s22 + $0x88] sm:$0xff]  ;;  %v176_v46 = vld [vmem:[%s4686_s22 + $0x90] sm:$0xff] }
  0x4f   : > { %3256 = vst [vmem:[%s4703_s16 + $0x10] sm:$0xff] %v2224_v17  ;;  %v2230_v35 = vmul.f32 %v1198_v24, %v166_v14  ;;  %v2231_v38 = vmul.f32 %v1199_v27, %v167_v19  ;;  %v1203_v39 = vadd.f32 2.0, %v171_v31  ;;  %v1204_v42 = vadd.f32 2.0, %v172_v34  ;;  %v177_v49 = vld [vmem:[%s4686_s22 + $0x98] sm:$0xff]  ;;  %v178_v52 = vld [vmem:[%s4686_s22 + $0xa0] sm:$0xff]  ;;  %v179_v55 = vld [vmem:[%s4686_s22 + $0xa8] sm:$0xff] }
  0x50   : > { %3257 = vst [vmem:[%s4703_s16 + $0x18] sm:$0xff] %v2225_v20  ;;  %v2232_v41 = vmul.f32 %v1200_v30, %v168_v22  ;;  %v2233_v44 = vmul.f32 %v1201_v33, %v169_v25  ;;  %v1205_v45 = vadd.f32 2.0, %v173_v37  ;;  %v2234_v47 = vmul.f32 %v1202_v36, %v170_v28  ;;  %v180_v58 = vld [vmem:[%s4686_s22 + $0xb0] sm:$0xff]  ;;  %v181_v61 = vld [vmem:[%s4686_s22 + $0xb8] sm:$0xff]  ;;  %v182_v0 = vld [vmem:[%s4686_s22 + $0xc0] sm:$0xff] }
  0x51   : > { %3258 = vst [vmem:[%s4703_s16 + $0x20] sm:$0xff] %v2226_v23  ;;  %v1206_v48 = vadd.f32 2.0, %v174_v40  ;;  %v2235_v50 = vmul.f32 %v1203_v39, %v171_v31  ;;  %v1207_v51 = vadd.f32 2.0, %v175_v43  ;;  %v2236_v53 = vmul.f32 %v1204_v42, %v172_v34  ;;  %v183_v3 = vld [vmem:[%s4686_s22 + $0xc8] sm:$0xff]  ;;  %v184_v6 = vld [vmem:[%s4686_s22 + $0xd0] sm:$0xff]  ;;  %v185_v9 = vld [vmem:[%s4686_s22 + $0xd8] sm:$0xff] }
  0x52   : > { %3259 = vst [vmem:[%s4703_s16 + $0x28] sm:$0xff] %v2227_v26  ;;  %v1208_v54 = vadd.f32 2.0, %v176_v46  ;;  %v2237_v56 = vmul.f32 %v1205_v45, %v173_v37  ;;  %v1209_v57 = vadd.f32 2.0, %v177_v49  ;;  %v1210_v60 = vadd.f32 2.0, %v178_v52  ;;  %v186_v12 = vld [vmem:[%s4686_s22 + $0xe0] sm:$0xff]  ;;  %v187_v15 = vld [vmem:[%s4686_s22 + $0xe8] sm:$0xff] }
  0x53   : > { %3260 = vst [vmem:[%s4703_s16 + $0x30] sm:$0xff] %v2228_v29  ;;  %v2238_v59 = vmul.f32 %v1206_v48, %v174_v40  ;;  %v2239_v62 = vmul.f32 %v1207_v51, %v175_v43  ;;  %v1211_v63 = vadd.f32 2.0, %v179_v55  ;;  %v1212_v2 = vadd.f32 2.0, %v180_v58  ;;  %v188_v18 = vld [vmem:[%s4686_s22 + $0xf0] sm:$0xff]  ;;  %v189_v21 = vld [vmem:[%s4686_s22 + $0xf8] sm:$0xff]  ;;  %v190_v24 = vld [vmem:[%s4686_s22 + $0x100] sm:$0xff] }
  0x54   : > { %3261 = vst [vmem:[%s4703_s16 + $0x38] sm:$0xff] %v2229_v32  ;;  %v2240_v1 = vmul.f32 %v1208_v54, %v176_v46  ;;  %v2241_v4 = vmul.f32 %v1209_v57, %v177_v49  ;;  %v1213_v5 = vadd.f32 2.0, %v181_v61  ;;  %v2242_v7 = vmul.f32 %v1210_v60, %v178_v52  ;;  %v191_v27 = vld [vmem:[%s4686_s22 + $0x108] sm:$0xff]  ;;  %v192_v30 = vld [vmem:[%s4686_s22 + $0x110] sm:$0xff]  ;;  %v193_v33 = vld [vmem:[%s4686_s22 + $0x118] sm:$0xff] }
  0x55   : > { %3262 = vst [vmem:[%s4703_s16 + $0x40] sm:$0xff] %v2230_v35  ;;  %v1214_v8 = vadd.f32 2.0, %v182_v0  ;;  %v2243_v10 = vmul.f32 %v1211_v63, %v179_v55  ;;  %v1215_v11 = vadd.f32 2.0, %v183_v3  ;;  %v2244_v13 = vmul.f32 %v1212_v2, %v180_v58  ;;  %v194_v36 = vld [vmem:[%s4686_s22 + $0x120] sm:$0xff]  ;;  %v195_v39 = vld [vmem:[%s4686_s22 + $0x128] sm:$0xff]  ;;  %v196_v42 = vld [vmem:[%s4686_s22 + $0x130] sm:$0xff] }
  0x56   : > { %3263 = vst [vmem:[%s4703_s16 + $0x48] sm:$0xff] %v2231_v38  ;;  %v1216_v14 = vadd.f32 2.0, %v184_v6  ;;  %v2245_v16 = vmul.f32 %v1213_v5, %v181_v61  ;;  %v1217_v17 = vadd.f32 2.0, %v185_v9  ;;  %v1218_v20 = vadd.f32 2.0, %v186_v12  ;;  %v197_v45 = vld [vmem:[%s4686_s22 + $0x138] sm:$0xff]  ;;  %v198_v48 = vld [vmem:[%s4686_s22 + $0x140] sm:$0xff] }
  0x57   : > { %3264 = vst [vmem:[%s4703_s16 + $0x50] sm:$0xff] %v2232_v41  ;;  %v2246_v19 = vmul.f32 %v1214_v8, %v182_v0  ;;  %v2247_v22 = vmul.f32 %v1215_v11, %v183_v3  ;;  %v1219_v23 = vadd.f32 2.0, %v187_v15  ;;  %v1220_v26 = vadd.f32 2.0, %v188_v18  ;;  %v199_v51 = vld [vmem:[%s4686_s22 + $0x148] sm:$0xff]  ;;  %v200_v54 = vld [vmem:[%s4686_s22 + $0x150] sm:$0xff]  ;;  %v201_v57 = vld [vmem:[%s4686_s22 + $0x158] sm:$0xff] }
  0x58   : > { %3265 = vst [vmem:[%s4703_s16 + $0x58] sm:$0xff] %v2233_v44  ;;  %v2248_v25 = vmul.f32 %v1216_v14, %v184_v6  ;;  %v2249_v28 = vmul.f32 %v1217_v17, %v185_v9  ;;  %v1221_v29 = vadd.f32 2.0, %v189_v21  ;;  %v2250_v31 = vmul.f32 %v1218_v20, %v186_v12  ;;  %v202_v60 = vld [vmem:[%s4686_s22 + $0x160] sm:$0xff]  ;;  %v203_v63 = vld [vmem:[%s4686_s22 + $0x168] sm:$0xff]  ;;  %v204_v2 = vld [vmem:[%s4686_s22 + $0x170] sm:$0xff] }
  0x59   : > { %3266 = vst [vmem:[%s4703_s16 + $0x60] sm:$0xff] %v2234_v47  ;;  %v1222_v32 = vadd.f32 2.0, %v190_v24  ;;  %v2251_v34 = vmul.f32 %v1219_v23, %v187_v15  ;;  %v1223_v35 = vadd.f32 2.0, %v191_v27  ;;  %v2252_v37 = vmul.f32 %v1220_v26, %v188_v18  ;;  %v205_v5 = vld [vmem:[%s4686_s22 + $0x178] sm:$0xff]  ;;  %v206_v8 = vld [vmem:[%s4686_s22 + $0x180] sm:$0xff]  ;;  %v207_v11 = vld [vmem:[%s4686_s22 + $0x188] sm:$0xff] }
  0x5a   : > { %3267 = vst [vmem:[%s4703_s16 + $0x68] sm:$0xff] %v2235_v50  ;;  %v1224_v38 = vadd.f32 2.0, %v192_v30  ;;  %v2253_v40 = vmul.f32 %v1221_v29, %v189_v21  ;;  %v1225_v41 = vadd.f32 2.0, %v193_v33  ;;  %v1226_v44 = vadd.f32 2.0, %v194_v36  ;;  %v208_v14 = vld [vmem:[%s4686_s22 + $0x190] sm:$0xff]  ;;  %v209_v17 = vld [vmem:[%s4686_s22 + $0x198] sm:$0xff] }
  0x5b   : > { %3268 = vst [vmem:[%s4703_s16 + $0x70] sm:$0xff] %v2236_v53  ;;  %v2254_v43 = vmul.f32 %v1222_v32, %v190_v24  ;;  %v2255_v46 = vmul.f32 %v1223_v35, %v191_v27  ;;  %v1227_v47 = vadd.f32 2.0, %v195_v39  ;;  %v1228_v50 = vadd.f32 2.0, %v196_v42  ;;  %v210_v20 = vld [vmem:[%s4686_s22 + $0x1a0] sm:$0xff]  ;;  %v211_v23 = vld [vmem:[%s4686_s22 + $0x1a8] sm:$0xff]  ;;  %v212_v26 = vld [vmem:[%s4686_s22 + $0x1b0] sm:$0xff] }
  0x5c   : > { %3269 = vst [vmem:[%s4703_s16 + $0x78] sm:$0xff] %v2237_v56  ;;  %v2256_v49 = vmul.f32 %v1224_v38, %v192_v30  ;;  %v2257_v52 = vmul.f32 %v1225_v41, %v193_v33  ;;  %v1229_v53 = vadd.f32 2.0, %v197_v45  ;;  %v2258_v55 = vmul.f32 %v1226_v44, %v194_v36  ;;  %v213_v29 = vld [vmem:[%s4686_s22 + $0x1b8] sm:$0xff]  ;;  %v214_v32 = vld [vmem:[%s4686_s22 + $0x1c0] sm:$0xff]  ;;  %v215_v35 = vld [vmem:[%s4686_s22 + $0x1c8] sm:$0xff] }
  0x5d   : > { %3270 = vst [vmem:[%s4703_s16 + $0x80] sm:$0xff] %v2238_v59  ;;  %v1230_v56 = vadd.f32 2.0, %v198_v48  ;;  %v2259_v58 = vmul.f32 %v1227_v47, %v195_v39  ;;  %v1231_v59 = vadd.f32 2.0, %v199_v51  ;;  %v2260_v61 = vmul.f32 %v1228_v50, %v196_v42  ;;  %v216_v38 = vld [vmem:[%s4686_s22 + $0x1d0] sm:$0xff]  ;;  %v217_v41 = vld [vmem:[%s4686_s22 + $0x1d8] sm:$0xff]  ;;  %v218_v44 = vld [vmem:[%s4686_s22 + $0x1e0] sm:$0xff] }
  0x5e   : > { %3271 = vst [vmem:[%s4703_s16 + $0x88] sm:$0xff] %v2239_v62  ;;  %v1232_v62 = vadd.f32 2.0, %v200_v54  ;;  %v2261_v0 = vmul.f32 %v1229_v53, %v197_v45  ;;  %v219_v47 = vld [vmem:[%s4686_s22 + $0x1e8] sm:$0xff]  ;;  %v220_v50 = vld [vmem:[%s4686_s22 + $0x1f0] sm:$0xff]  ;;  %v221_v53 = vld [vmem:[%s4686_s22 + $0x1f8] sm:$0xff] }
  0x5f   : > { %3272 = vst [vmem:[%s4703_s16 + $0x90] sm:$0xff] %v2240_v1  ;;  %v1233_v1 = vadd.f32 2.0, %v201_v57  ;;  %v2262_v3 = vmul.f32 %v1230_v56, %v198_v48  ;;  %v2263_v6 = vmul.f32 %v1231_v59, %v199_v51  ;;  %v222_v56 = vld [vmem:[%s4686_s22 + $0x200] sm:$0xff]  ;;  %v223_v59 = vld [vmem:[%s4686_s22 + $0x208] sm:$0xff] }
  0x60   : > { %3273 = vst [vmem:[%s4703_s16 + $0x98] sm:$0xff] %v2241_v4  ;;  %v1234_v4 = vadd.f32 2.0, %v202_v60  ;;  %v2264_v9 = vmul.f32 %v1232_v62, %v200_v54  ;;  %v224_v62 = vld [vmem:[%s4686_s22 + $0x210] sm:$0xff] }
  0x61   : > { %3274 = vst [vmem:[%s4703_s16 + $0xa0] sm:$0xff] %v2242_v7  ;;  %v1235_v7 = vadd.f32 2.0, %v203_v63  ;;  %v2265_v12 = vmul.f32 %v1233_v1, %v201_v57  ;;  %v225_v1 = vld [vmem:[%s4686_s22 + $0x218] sm:$0xff] }
  0x62   : > { %3275 = vst [vmem:[%s4703_s16 + $0xa8] sm:$0xff] %v2243_v10  ;;  %v1236_v10 = vadd.f32 2.0, %v204_v2  ;;  %v2266_v15 = vmul.f32 %v1234_v4, %v202_v60  ;;  %v226_v4 = vld [vmem:[%s4686_s22 + $0x220] sm:$0xff] }
  0x63   : > { %3276 = vst [vmem:[%s4703_s16 + $0xb0] sm:$0xff] %v2244_v13  ;;  %v1237_v13 = vadd.f32 2.0, %v205_v5  ;;  %v2267_v18 = vmul.f32 %v1235_v7, %v203_v63  ;;  %v227_v7 = vld [vmem:[%s4686_s22 + $0x228] sm:$0xff] }
  0x64   : > { %3278 = vst.msk [vmem:[%s4703_s16 + $0xb8] sm:$0xff] %vm3277_vm0, %v2245_v16  ;;  %v1238_v16 = vadd.f32 2.0, %v206_v8  ;;  %v2268_v21 = vmul.f32 %v1236_v10, %v204_v2  ;;  %v228_v10 = vld [vmem:[%s4686_s22 + $0x230] sm:$0xff] }
  0x65   : > { %3279 = vst [vmem:[%s4703_s16 + $0xc0] sm:$0xff] %v2246_v19  ;;  %v1239_v19 = vadd.f32 2.0, %v207_v11  ;;  %v2269_v24 = vmul.f32 %v1237_v13, %v205_v5  ;;  %v229_v13 = vld [vmem:[%s4686_s22 + $0x238] sm:$0xff] }
  0x66   : > { %3280 = vst [vmem:[%s4703_s16 + $0xc8] sm:$0xff] %v2247_v22  ;;  %v1240_v22 = vadd.f32 2.0, %v208_v14  ;;  %v2270_v27 = vmul.f32 %v1238_v16, %v206_v8  ;;  %v230_v16 = vld [vmem:[%s4686_s22 + $0x240] sm:$0xff] }
  0x67   : > { %3281 = vst [vmem:[%s4703_s16 + $0xd0] sm:$0xff] %v2248_v25  ;;  %v1241_v25 = vadd.f32 2.0, %v209_v17  ;;  %v2271_v30 = vmul.f32 %v1239_v19, %v207_v11  ;;  %v231_v19 = vld [vmem:[%s4686_s22 + $0x248] sm:$0xff] }
  0x68   : > { %3282 = vst [vmem:[%s4703_s16 + $0xd8] sm:$0xff] %v2249_v28  ;;  %v1242_v28 = vadd.f32 2.0, %v210_v20  ;;  %v2272_v33 = vmul.f32 %v1240_v22, %v208_v14  ;;  %v232_v22 = vld [vmem:[%s4686_s22 + $0x250] sm:$0xff] }
  0x69   : > { %3283 = vst [vmem:[%s4703_s16 + $0xe0] sm:$0xff] %v2250_v31  ;;  %v1243_v31 = vadd.f32 2.0, %v211_v23  ;;  %v2273_v36 = vmul.f32 %v1241_v25, %v209_v17  ;;  %v233_v25 = vld [vmem:[%s4686_s22 + $0x258] sm:$0xff] }
  0x6a   : > { %3284 = vst [vmem:[%s4703_s16 + $0xe8] sm:$0xff] %v2251_v34  ;;  %v1244_v34 = vadd.f32 2.0, %v212_v26  ;;  %v2274_v39 = vmul.f32 %v1242_v28, %v210_v20  ;;  %v234_v28 = vld [vmem:[%s4686_s22 + $0x260] sm:$0xff] }
  0x6b   : > { %3285 = vst [vmem:[%s4703_s16 + $0xf0] sm:$0xff] %v2252_v37  ;;  %v1245_v37 = vadd.f32 2.0, %v213_v29  ;;  %v2275_v42 = vmul.f32 %v1243_v31, %v211_v23  ;;  %v235_v31 = vld [vmem:[%s4686_s22 + $0x268] sm:$0xff] }
  0x6c   : > { %3286 = vst [vmem:[%s4703_s16 + $0xf8] sm:$0xff] %v2253_v40  ;;  %v1246_v40 = vadd.f32 2.0, %v214_v32  ;;  %v2276_v45 = vmul.f32 %v1244_v34, %v212_v26  ;;  %v236_v34 = vld [vmem:[%s4686_s22 + $0x270] sm:$0xff] }
  0x6d   : > { %3287 = vst [vmem:[%s4703_s16 + $0x100] sm:$0xff] %v2254_v43  ;;  %v1247_v43 = vadd.f32 2.0, %v215_v35  ;;  %v2277_v48 = vmul.f32 %v1245_v37, %v213_v29  ;;  %v237_v37 = vld [vmem:[%s4686_s22 + $0x278] sm:$0xff] }
  0x6e   : > { %3288 = vst [vmem:[%s4703_s16 + $0x108] sm:$0xff] %v2255_v46  ;;  %v1248_v46 = vadd.f32 2.0, %v216_v38  ;;  %v2278_v51 = vmul.f32 %v1246_v40, %v214_v32  ;;  %v238_v40 = vld [vmem:[%s4686_s22 + $0x280] sm:$0xff] }
  0x6f   : > { %3289 = vst [vmem:[%s4703_s16 + $0x110] sm:$0xff] %v2256_v49  ;;  %v1249_v49 = vadd.f32 2.0, %v217_v41  ;;  %v2279_v54 = vmul.f32 %v1247_v43, %v215_v35  ;;  %v239_v43 = vld [vmem:[%s4686_s22 + $0x288] sm:$0xff] }
  0x70   : > { %3290 = vst [vmem:[%s4703_s16 + $0x118] sm:$0xff] %v2257_v52  ;;  %v1250_v52 = vadd.f32 2.0, %v218_v44  ;;  %v2280_v57 = vmul.f32 %v1248_v46, %v216_v38  ;;  %v240_v46 = vld [vmem:[%s4686_s22 + $0x290] sm:$0xff] }
  0x71   : > { %3291 = vst [vmem:[%s4703_s16 + $0x120] sm:$0xff] %v2258_v55  ;;  %v1251_v55 = vadd.f32 2.0, %v219_v47  ;;  %v2281_v60 = vmul.f32 %v1249_v49, %v217_v41  ;;  %v241_v49 = vld [vmem:[%s4686_s22 + $0x298] sm:$0xff] }
  0x72   : > { %3292 = vst [vmem:[%s4703_s16 + $0x128] sm:$0xff] %v2259_v58  ;;  %v1252_v58 = vadd.f32 2.0, %v220_v50  ;;  %v2282_v63 = vmul.f32 %v1250_v52, %v218_v44  ;;  %v242_v52 = vld [vmem:[%s4686_s22 + $0x2a0] sm:$0xff] }
  0x73   : > { %3293 = vst [vmem:[%s4703_s16 + $0x130] sm:$0xff] %v2260_v61  ;;  %v1253_v61 = vadd.f32 2.0, %v221_v53  ;;  %v2283_v2 = vmul.f32 %v1251_v55, %v219_v47  ;;  %v243_v55 = vld [vmem:[%s4686_s22 + $0x2a8] sm:$0xff] }
  0x74   : > { %3294 = vst [vmem:[%s4703_s16 + $0x138] sm:$0xff] %v2261_v0  ;;  %v1254_v0 = vadd.f32 2.0, %v222_v56  ;;  %v2284_v5 = vmul.f32 %v1252_v58, %v220_v50  ;;  %v244_v58 = vld [vmem:[%s4686_s22 + $0x2b0] sm:$0xff] }
  0x75   : > { %3295 = vst [vmem:[%s4703_s16 + $0x140] sm:$0xff] %v2262_v3  ;;  %v1255_v3 = vadd.f32 2.0, %v223_v59  ;;  %v2285_v8 = vmul.f32 %v1253_v61, %v221_v53  ;;  %v245_v61 = vld [vmem:[%s4686_s22 + $0x2b8] sm:$0xff] }
  0x76   : > { %3296 = vst [vmem:[%s4703_s16 + $0x148] sm:$0xff] %v2263_v6  ;;  %v1256_v6 = vadd.f32 2.0, %v224_v62  ;;  %v2286_v11 = vmul.f32 %v1254_v0, %v222_v56  ;;  %v246_v0 = vld [vmem:[%s4686_s22 + $0x2c0] sm:$0xff] }
  0x77   : > { %3297 = vst [vmem:[%s4703_s16 + $0x150] sm:$0xff] %v2264_v9  ;;  %v1257_v9 = vadd.f32 2.0, %v225_v1  ;;  %v2287_v14 = vmul.f32 %v1255_v3, %v223_v59  ;;  %v247_v3 = vld [vmem:[%s4686_s22 + $0x2c8] sm:$0xff] }
  0x78   : > { %3298 = vst [vmem:[%s4703_s16 + $0x158] sm:$0xff] %v2265_v12  ;;  %v1258_v12 = vadd.f32 2.0, %v226_v4  ;;  %v2288_v17 = vmul.f32 %v1256_v6, %v224_v62  ;;  %v248_v6 = vld [vmem:[%s4686_s22 + $0x2d0] sm:$0xff] }
  0x79   : > { %3299 = vst [vmem:[%s4703_s16 + $0x160] sm:$0xff] %v2266_v15  ;;  %v1259_v15 = vadd.f32 2.0, %v227_v7  ;;  %v2289_v20 = vmul.f32 %v1257_v9, %v225_v1  ;;  %v249_v9 = vld [vmem:[%s4686_s22 + $0x2d8] sm:$0xff] }
  0x7a   : > { %3300 = vst [vmem:[%s4703_s16 + $0x168] sm:$0xff] %v2267_v18  ;;  %v1260_v18 = vadd.f32 2.0, %v228_v10  ;;  %v2290_v23 = vmul.f32 %v1258_v12, %v226_v4  ;;  %v250_v12 = vld [vmem:[%s4686_s22 + $0x2e0] sm:$0xff] }
  0x7b   : > { %3301 = vst [vmem:[%s4703_s16 + $0x170] sm:$0xff] %v2268_v21  ;;  %v1261_v21 = vadd.f32 2.0, %v229_v13  ;;  %v2291_v26 = vmul.f32 %v1259_v15, %v227_v7  ;;  %v251_v15 = vld [vmem:[%s4686_s22 + $0x2e8] sm:$0xff] }
  0x7c   : > { %3302 = vst.msk [vmem:[%s4703_s16 + $0x178] sm:$0xff] %vm3277_vm0, %v2269_v24  ;;  %v1262_v24 = vadd.f32 2.0, %v230_v16  ;;  %v2292_v29 = vmul.f32 %v1260_v18, %v228_v10  ;;  %v252_v18 = vld [vmem:[%s4686_s22 + $0x2f0] sm:$0xff] }
  0x7d   : > { %3303 = vst [vmem:[%s4703_s16 + $0x180] sm:$0xff] %v2270_v27  ;;  %v1263_v27 = vadd.f32 2.0, %v231_v19  ;;  %v2293_v32 = vmul.f32 %v1261_v21, %v229_v13  ;;  %v253_v21 = vld [vmem:[%s4686_s22 + $0x2f8] sm:$0xff] }
  0x7e   : > { %3304 = vst [vmem:[%s4703_s16 + $0x188] sm:$0xff] %v2271_v30  ;;  %v1264_v30 = vadd.f32 2.0, %v232_v22  ;;  %v2294_v35 = vmul.f32 %v1262_v24, %v230_v16  ;;  %v254_v24 = vld [vmem:[%s4686_s22 + $0x300] sm:$0xff] }
  0x7f   : > { %3305 = vst [vmem:[%s4703_s16 + $0x190] sm:$0xff] %v2272_v33  ;;  %v1265_v33 = vadd.f32 2.0, %v233_v25  ;;  %v2295_v38 = vmul.f32 %v1263_v27, %v231_v19  ;;  %v255_v27 = vld [vmem:[%s4686_s22 + $0x308] sm:$0xff] }
  0x80   : > { %3306 = vst [vmem:[%s4703_s16 + $0x198] sm:$0xff] %v2273_v36  ;;  %v1266_v36 = vadd.f32 2.0, %v234_v28  ;;  %v2296_v41 = vmul.f32 %v1264_v30, %v232_v22  ;;  %v256_v30 = vld [vmem:[%s4686_s22 + $0x310] sm:$0xff] }
  0x81   : > { %3307 = vst [vmem:[%s4703_s16 + $0x1a0] sm:$0xff] %v2274_v39  ;;  %v1267_v39 = vadd.f32 2.0, %v235_v31  ;;  %v2297_v44 = vmul.f32 %v1265_v33, %v233_v25  ;;  %v257_v33 = vld [vmem:[%s4686_s22 + $0x318] sm:$0xff] }
  0x82   : > { %3308 = vst [vmem:[%s4703_s16 + $0x1a8] sm:$0xff] %v2275_v42  ;;  %v1268_v42 = vadd.f32 2.0, %v236_v34  ;;  %v2298_v47 = vmul.f32 %v1266_v36, %v234_v28  ;;  %v258_v36 = vld [vmem:[%s4686_s22 + $0x320] sm:$0xff] }
  0x83   : > { %3309 = vst [vmem:[%s4703_s16 + $0x1b0] sm:$0xff] %v2276_v45  ;;  %v1269_v45 = vadd.f32 2.0, %v237_v37  ;;  %v2299_v50 = vmul.f32 %v1267_v39, %v235_v31  ;;  %v259_v39 = vld [vmem:[%s4686_s22 + $0x328] sm:$0xff] }
  0x84   : > { %3310 = vst [vmem:[%s4703_s16 + $0x1b8] sm:$0xff] %v2277_v48  ;;  %v1270_v48 = vadd.f32 2.0, %v238_v40  ;;  %v2300_v53 = vmul.f32 %v1268_v42, %v236_v34  ;;  %v260_v42 = vld [vmem:[%s4686_s22 + $0x330] sm:$0xff] }
  0x85   : > { %3311 = vst [vmem:[%s4703_s16 + $0x1c0] sm:$0xff] %v2278_v51  ;;  %v1271_v51 = vadd.f32 2.0, %v239_v43  ;;  %v2301_v56 = vmul.f32 %v1269_v45, %v237_v37  ;;  %v261_v45 = vld [vmem:[%s4686_s22 + $0x338] sm:$0xff] }
  0x86   : > { %3312 = vst [vmem:[%s4703_s16 + $0x1c8] sm:$0xff] %v2279_v54  ;;  %v1272_v54 = vadd.f32 2.0, %v240_v46  ;;  %v2302_v59 = vmul.f32 %v1270_v48, %v238_v40  ;;  %v262_v48 = vld [vmem:[%s4686_s22 + $0x340] sm:$0xff] }
  0x87   : > { %3313 = vst [vmem:[%s4703_s16 + $0x1d0] sm:$0xff] %v2280_v57  ;;  %v1273_v57 = vadd.f32 2.0, %v241_v49  ;;  %v2303_v62 = vmul.f32 %v1271_v51, %v239_v43  ;;  %v263_v51 = vld [vmem:[%s4686_s22 + $0x348] sm:$0xff] }
  0x88   : > { %3314 = vst [vmem:[%s4703_s16 + $0x1d8] sm:$0xff] %v2281_v60  ;;  %v1274_v60 = vadd.f32 2.0, %v242_v52  ;;  %v2304_v1 = vmul.f32 %v1272_v54, %v240_v46  ;;  %v264_v54 = vld [vmem:[%s4686_s22 + $0x350] sm:$0xff] }
  0x89   : > { %3315 = vst [vmem:[%s4703_s16 + $0x1e0] sm:$0xff] %v2282_v63  ;;  %v1275_v63 = vadd.f32 2.0, %v243_v55  ;;  %v2305_v4 = vmul.f32 %v1273_v57, %v241_v49  ;;  %v265_v57 = vld [vmem:[%s4686_s22 + $0x358] sm:$0xff] }
  0x8a   : > { %3316 = vst [vmem:[%s4703_s16 + $0x1e8] sm:$0xff] %v2283_v2  ;;  %v1276_v2 = vadd.f32 2.0, %v244_v58  ;;  %v2306_v7 = vmul.f32 %v1274_v60, %v242_v52  ;;  %v266_v60 = vld [vmem:[%s4686_s22 + $0x360] sm:$0xff] }
  0x8b   : > { %3317 = vst [vmem:[%s4703_s16 + $0x1f0] sm:$0xff] %v2284_v5  ;;  %v1277_v5 = vadd.f32 2.0, %v245_v61  ;;  %v2307_v10 = vmul.f32 %v1275_v63, %v243_v55  ;;  %v267_v63 = vld [vmem:[%s4686_s22 + $0x368] sm:$0xff] }
  0x8c   : > { %3318 = vst [vmem:[%s4703_s16 + $0x1f8] sm:$0xff] %v2285_v8  ;;  %v1278_v8 = vadd.f32 2.0, %v246_v0  ;;  %v2308_v13 = vmul.f32 %v1276_v2, %v244_v58  ;;  %v268_v2 = vld [vmem:[%s4686_s22 + $0x370] sm:$0xff] }
  0x8d   : > { %3319 = vst [vmem:[%s4703_s16 + $0x200] sm:$0xff] %v2286_v11  ;;  %v1279_v11 = vadd.f32 2.0, %v247_v3  ;;  %v2309_v16 = vmul.f32 %v1277_v5, %v245_v61  ;;  %v269_v5 = vld [vmem:[%s4686_s22 + $0x378] sm:$0xff] }
  0x8e   : > { %3320 = vst [vmem:[%s4703_s16 + $0x208] sm:$0xff] %v2287_v14  ;;  %v1280_v14 = vadd.f32 2.0, %v248_v6  ;;  %v2310_v19 = vmul.f32 %v1278_v8, %v246_v0  ;;  %v270_v8 = vld [vmem:[%s4686_s22 + $0x380] sm:$0xff] }
  0x8f   : > { %3321 = vst [vmem:[%s4703_s16 + $0x210] sm:$0xff] %v2288_v17  ;;  %v1281_v17 = vadd.f32 2.0, %v249_v9  ;;  %v2311_v22 = vmul.f32 %v1279_v11, %v247_v3  ;;  %v271_v11 = vld [vmem:[%s4686_s22 + $0x388] sm:$0xff] }
  0x90   : > { %3322 = vst [vmem:[%s4703_s16 + $0x218] sm:$0xff] %v2289_v20  ;;  %v1282_v20 = vadd.f32 2.0, %v250_v12  ;;  %v2312_v25 = vmul.f32 %v1280_v14, %v248_v6  ;;  %v272_v14 = vld [vmem:[%s4686_s22 + $0x390] sm:$0xff] }
  0x91   : > { %3323 = vst [vmem:[%s4703_s16 + $0x220] sm:$0xff] %v2290_v23  ;;  %v1283_v23 = vadd.f32 2.0, %v251_v15  ;;  %v2313_v28 = vmul.f32 %v1281_v17, %v249_v9  ;;  %v273_v17 = vld [vmem:[%s4686_s22 + $0x398] sm:$0xff] }
  0x92   : > { %3324 = vst [vmem:[%s4703_s16 + $0x228] sm:$0xff] %v2291_v26  ;;  %v1284_v26 = vadd.f32 2.0, %v252_v18  ;;  %v2314_v31 = vmul.f32 %v1282_v20, %v250_v12  ;;  %v274_v20 = vld [vmem:[%s4686_s22 + $0x3a0] sm:$0xff] }
  0x93   : > { %3325 = vst [vmem:[%s4703_s16 + $0x230] sm:$0xff] %v2292_v29  ;;  %v1285_v29 = vadd.f32 2.0, %v253_v21  ;;  %v2315_v34 = vmul.f32 %v1283_v23, %v251_v15  ;;  %v275_v23 = vld [vmem:[%s4686_s22 + $0x3a8] sm:$0xff] }
  0x94   : > { %3326 = vst.msk [vmem:[%s4703_s16 + $0x238] sm:$0xff] %vm3277_vm0, %v2293_v32  ;;  %v1286_v32 = vadd.f32 2.0, %v254_v24  ;;  %v2316_v37 = vmul.f32 %v1284_v26, %v252_v18  ;;  %v276_v26 = vld [vmem:[%s4686_s22 + $0x3b0] sm:$0xff] }
  0x95   : > { %3327 = vst [vmem:[%s4703_s16 + $0x240] sm:$0xff] %v2294_v35  ;;  %v1287_v35 = vadd.f32 2.0, %v255_v27  ;;  %v2317_v40 = vmul.f32 %v1285_v29, %v253_v21  ;;  %v277_v29 = vld [vmem:[%s4686_s22 + $0x3b8] sm:$0xff] }
  0x96   : > { %3328 = vst [vmem:[%s4703_s16 + $0x248] sm:$0xff] %v2295_v38  ;;  %v1288_v38 = vadd.f32 2.0, %v256_v30  ;;  %v2318_v43 = vmul.f32 %v1286_v32, %v254_v24  ;;  %v278_v32 = vld [vmem:[%s4686_s22 + $0x3c0] sm:$0xff] }
  0x97   : > { %3329 = vst [vmem:[%s4703_s16 + $0x250] sm:$0xff] %v2296_v41  ;;  %v1289_v41 = vadd.f32 2.0, %v257_v33  ;;  %v2319_v46 = vmul.f32 %v1287_v35, %v255_v27  ;;  %v279_v35 = vld [vmem:[%s4686_s22 + $0x3c8] sm:$0xff] }
  0x98   : > { %3330 = vst [vmem:[%s4703_s16 + $0x258] sm:$0xff] %v2297_v44  ;;  %v1290_v44 = vadd.f32 2.0, %v258_v36  ;;  %v2320_v49 = vmul.f32 %v1288_v38, %v256_v30  ;;  %v280_v38 = vld [vmem:[%s4686_s22 + $0x3d0] sm:$0xff] }
  0x99   : > { %3331 = vst [vmem:[%s4703_s16 + $0x260] sm:$0xff] %v2298_v47  ;;  %v1291_v47 = vadd.f32 2.0, %v259_v39  ;;  %v2321_v52 = vmul.f32 %v1289_v41, %v257_v33  ;;  %v281_v41 = vld [vmem:[%s4686_s22 + $0x3d8] sm:$0xff] }
  0x9a   : > { %3332 = vst [vmem:[%s4703_s16 + $0x268] sm:$0xff] %v2299_v50  ;;  %v1292_v50 = vadd.f32 2.0, %v260_v42  ;;  %v2322_v55 = vmul.f32 %v1290_v44, %v258_v36  ;;  %v282_v44 = vld [vmem:[%s4686_s22 + $0x3e0] sm:$0xff] }
  0x9b   : > { %3333 = vst [vmem:[%s4703_s16 + $0x270] sm:$0xff] %v2300_v53  ;;  %v1293_v53 = vadd.f32 2.0, %v261_v45  ;;  %v2323_v58 = vmul.f32 %v1291_v47, %v259_v39  ;;  %v283_v47 = vld [vmem:[%s4686_s22 + $0x3e8] sm:$0xff] }
  0x9c   : > { %3334 = vst [vmem:[%s4703_s16 + $0x278] sm:$0xff] %v2301_v56  ;;  %v1294_v56 = vadd.f32 2.0, %v262_v48  ;;  %v2324_v61 = vmul.f32 %v1292_v50, %v260_v42  ;;  %v284_v50 = vld [vmem:[%s4686_s22 + $0x3f0] sm:$0xff] }
  0x9d   : > { %3335 = vst [vmem:[%s4703_s16 + $0x280] sm:$0xff] %v2302_v59  ;;  %v1295_v59 = vadd.f32 2.0, %v263_v51  ;;  %v2325_v0 = vmul.f32 %v1293_v53, %v261_v45  ;;  %v285_v53 = vld [vmem:[%s4686_s22 + $0x3f8] sm:$0xff] }
  0x9e   : > { %3336 = vst [vmem:[%s4703_s16 + $0x288] sm:$0xff] %v2303_v62  ;;  %v1296_v62 = vadd.f32 2.0, %v264_v54  ;;  %v2326_v3 = vmul.f32 %v1294_v56, %v262_v48  ;;  %v286_v56 = vld [vmem:[%s4686_s22 + $0x400] sm:$0xff] }
  0x9f   : > { %3337 = vst [vmem:[%s4703_s16 + $0x290] sm:$0xff] %v2304_v1  ;;  %v1297_v1 = vadd.f32 2.0, %v265_v57  ;;  %v2327_v6 = vmul.f32 %v1295_v59, %v263_v51  ;;  %v287_v59 = vld [vmem:[%s4686_s22 + $0x408] sm:$0xff] }
  0xa0   : > { %3338 = vst [vmem:[%s4703_s16 + $0x298] sm:$0xff] %v2305_v4  ;;  %v1298_v4 = vadd.f32 2.0, %v266_v60  ;;  %v2328_v9 = vmul.f32 %v1296_v62, %v264_v54  ;;  %v288_v62 = vld [vmem:[%s4686_s22 + $0x410] sm:$0xff] }
  0xa1   : > { %3339 = vst [vmem:[%s4703_s16 + $0x2a0] sm:$0xff] %v2306_v7  ;;  %v1299_v7 = vadd.f32 2.0, %v267_v63  ;;  %v2329_v12 = vmul.f32 %v1297_v1, %v265_v57  ;;  %v289_v1 = vld [vmem:[%s4686_s22 + $0x418] sm:$0xff] }
  0xa2   : > { %3340 = vst [vmem:[%s4703_s16 + $0x2a8] sm:$0xff] %v2307_v10  ;;  %v1300_v10 = vadd.f32 2.0, %v268_v2  ;;  %v2330_v15 = vmul.f32 %v1298_v4, %v266_v60  ;;  %v290_v4 = vld [vmem:[%s4686_s22 + $0x420] sm:$0xff] }
  0xa3   : > { %3341 = vst [vmem:[%s4703_s16 + $0x2b0] sm:$0xff] %v2308_v13  ;;  %v1301_v13 = vadd.f32 2.0, %v269_v5  ;;  %v2331_v18 = vmul.f32 %v1299_v7, %v267_v63  ;;  %v291_v7 = vld [vmem:[%s4686_s22 + $0x428] sm:$0xff] }
  0xa4   : > { %3342 = vst [vmem:[%s4703_s16 + $0x2b8] sm:$0xff] %v2309_v16  ;;  %v1302_v16 = vadd.f32 2.0, %v270_v8  ;;  %v2332_v21 = vmul.f32 %v1300_v10, %v268_v2  ;;  %v292_v10 = vld [vmem:[%s4686_s22 + $0x430] sm:$0xff] }
  0xa5   : > { %3343 = vst [vmem:[%s4703_s16 + $0x2c0] sm:$0xff] %v2310_v19  ;;  %v1303_v19 = vadd.f32 2.0, %v271_v11  ;;  %v2333_v24 = vmul.f32 %v1301_v13, %v269_v5  ;;  %v293_v13 = vld [vmem:[%s4686_s22 + $0x438] sm:$0xff] }
  0xa6   : > { %3344 = vst [vmem:[%s4703_s16 + $0x2c8] sm:$0xff] %v2311_v22  ;;  %v1304_v22 = vadd.f32 2.0, %v272_v14  ;;  %v2334_v27 = vmul.f32 %v1302_v16, %v270_v8  ;;  %v294_v16 = vld [vmem:[%s4686_s22 + $0x440] sm:$0xff] }
  0xa7   : > { %3345 = vst [vmem:[%s4703_s16 + $0x2d0] sm:$0xff] %v2312_v25  ;;  %v1305_v25 = vadd.f32 2.0, %v273_v17  ;;  %v2335_v30 = vmul.f32 %v1303_v19, %v271_v11  ;;  %v295_v19 = vld [vmem:[%s4686_s22 + $0x448] sm:$0xff] }
  0xa8   : > { %3346 = vst [vmem:[%s4703_s16 + $0x2d8] sm:$0xff] %v2313_v28  ;;  %v1306_v28 = vadd.f32 2.0, %v274_v20  ;;  %v2336_v33 = vmul.f32 %v1304_v22, %v272_v14  ;;  %v296_v22 = vld [vmem:[%s4686_s22 + $0x450] sm:$0xff] }
  0xa9   : > { %3347 = vst [vmem:[%s4703_s16 + $0x2e0] sm:$0xff] %v2314_v31  ;;  %v1307_v31 = vadd.f32 2.0, %v275_v23  ;;  %v2337_v36 = vmul.f32 %v1305_v25, %v273_v17  ;;  %v297_v25 = vld [vmem:[%s4686_s22 + $0x458] sm:$0xff] }
  0xaa   : > { %3348 = vst [vmem:[%s4703_s16 + $0x2e8] sm:$0xff] %v2315_v34  ;;  %v1308_v34 = vadd.f32 2.0, %v276_v26  ;;  %v2338_v39 = vmul.f32 %v1306_v28, %v274_v20  ;;  %v298_v28 = vld [vmem:[%s4686_s22 + $0x460] sm:$0xff] }
  0xab   : > { %3349 = vst [vmem:[%s4703_s16 + $0x2f0] sm:$0xff] %v2316_v37  ;;  %v1309_v37 = vadd.f32 2.0, %v277_v29  ;;  %v2339_v42 = vmul.f32 %v1307_v31, %v275_v23  ;;  %v299_v31 = vld [vmem:[%s4686_s22 + $0x468] sm:$0xff] }
  0xac   : > { %3350 = vst.msk [vmem:[%s4703_s16 + $0x2f8] sm:$0xff] %vm3277_vm0, %v2317_v40  ;;  %v1310_v40 = vadd.f32 2.0, %v278_v32  ;;  %v2340_v45 = vmul.f32 %v1308_v34, %v276_v26  ;;  %v300_v34 = vld [vmem:[%s4686_s22 + $0x470] sm:$0xff] }
  0xad   : > { %3351 = vst [vmem:[%s4703_s16 + $0x300] sm:$0xff] %v2318_v43  ;;  %v1311_v43 = vadd.f32 2.0, %v279_v35  ;;  %v2341_v48 = vmul.f32 %v1309_v37, %v277_v29  ;;  %v301_v37 = vld [vmem:[%s4686_s22 + $0x478] sm:$0xff] }
  0xae   : > { %3352 = vst [vmem:[%s4703_s16 + $0x308] sm:$0xff] %v2319_v46  ;;  %v1312_v46 = vadd.f32 2.0, %v280_v38  ;;  %v2342_v51 = vmul.f32 %v1310_v40, %v278_v32  ;;  %v302_v40 = vld [vmem:[%s4686_s22 + $0x480] sm:$0xff] }
  0xaf   : > { %3353 = vst [vmem:[%s4703_s16 + $0x310] sm:$0xff] %v2320_v49  ;;  %v1313_v49 = vadd.f32 2.0, %v281_v41  ;;  %v2343_v54 = vmul.f32 %v1311_v43, %v279_v35  ;;  %v303_v43 = vld [vmem:[%s4686_s22 + $0x488] sm:$0xff] }
  0xb0   : > { %3354 = vst [vmem:[%s4703_s16 + $0x318] sm:$0xff] %v2321_v52  ;;  %v1314_v52 = vadd.f32 2.0, %v282_v44  ;;  %v2344_v57 = vmul.f32 %v1312_v46, %v280_v38  ;;  %v304_v46 = vld [vmem:[%s4686_s22 + $0x490] sm:$0xff] }
  0xb1   : > { %3355 = vst [vmem:[%s4703_s16 + $0x320] sm:$0xff] %v2322_v55  ;;  %v1315_v55 = vadd.f32 2.0, %v283_v47  ;;  %v2345_v60 = vmul.f32 %v1313_v49, %v281_v41  ;;  %v305_v49 = vld [vmem:[%s4686_s22 + $0x498] sm:$0xff] }
  0xb2   : > { %3356 = vst [vmem:[%s4703_s16 + $0x328] sm:$0xff] %v2323_v58  ;;  %v1316_v58 = vadd.f32 2.0, %v284_v50  ;;  %v2346_v63 = vmul.f32 %v1314_v52, %v282_v44  ;;  %v306_v52 = vld [vmem:[%s4686_s22 + $0x4a0] sm:$0xff] }
  0xb3   : > { %3357 = vst [vmem:[%s4703_s16 + $0x330] sm:$0xff] %v2324_v61  ;;  %v1317_v61 = vadd.f32 2.0, %v285_v53  ;;  %v2347_v2 = vmul.f32 %v1315_v55, %v283_v47  ;;  %v307_v55 = vld [vmem:[%s4686_s22 + $0x4a8] sm:$0xff] }
  0xb4   : > { %3358 = vst [vmem:[%s4703_s16 + $0x338] sm:$0xff] %v2325_v0  ;;  %v1318_v0 = vadd.f32 2.0, %v286_v56  ;;  %v2348_v5 = vmul.f32 %v1316_v58, %v284_v50  ;;  %v308_v58 = vld [vmem:[%s4686_s22 + $0x4b0] sm:$0xff] }
  0xb5   : > { %3359 = vst [vmem:[%s4703_s16 + $0x340] sm:$0xff] %v2326_v3  ;;  %v1319_v3 = vadd.f32 2.0, %v287_v59  ;;  %v2349_v8 = vmul.f32 %v1317_v61, %v285_v53  ;;  %v309_v61 = vld [vmem:[%s4686_s22 + $0x4b8] sm:$0xff] }
  0xb6   : > { %3360 = vst [vmem:[%s4703_s16 + $0x348] sm:$0xff] %v2327_v6  ;;  %v1320_v6 = vadd.f32 2.0, %v288_v62  ;;  %v2350_v11 = vmul.f32 %v1318_v0, %v286_v56  ;;  %v310_v0 = vld [vmem:[%s4686_s22 + $0x4c0] sm:$0xff] }
  0xb7   : > { %3361 = vst [vmem:[%s4703_s16 + $0x350] sm:$0xff] %v2328_v9  ;;  %v1321_v9 = vadd.f32 2.0, %v289_v1  ;;  %v2351_v14 = vmul.f32 %v1319_v3, %v287_v59  ;;  %v311_v3 = vld [vmem:[%s4686_s22 + $0x4c8] sm:$0xff] }
  0xb8   : > { %3362 = vst [vmem:[%s4703_s16 + $0x358] sm:$0xff] %v2329_v12  ;;  %v1322_v12 = vadd.f32 2.0, %v290_v4  ;;  %v2352_v17 = vmul.f32 %v1320_v6, %v288_v62  ;;  %v312_v6 = vld [vmem:[%s4686_s22 + $0x4d0] sm:$0xff] }
  0xb9   : > { %3363 = vst [vmem:[%s4703_s16 + $0x360] sm:$0xff] %v2330_v15  ;;  %v1323_v15 = vadd.f32 2.0, %v291_v7  ;;  %v2353_v20 = vmul.f32 %v1321_v9, %v289_v1  ;;  %v313_v9 = vld [vmem:[%s4686_s22 + $0x4d8] sm:$0xff] }
  0xba   : > { %3364 = vst [vmem:[%s4703_s16 + $0x368] sm:$0xff] %v2331_v18  ;;  %v1324_v18 = vadd.f32 2.0, %v292_v10  ;;  %v2354_v23 = vmul.f32 %v1322_v12, %v290_v4  ;;  %v314_v12 = vld [vmem:[%s4686_s22 + $0x4e0] sm:$0xff] }
  0xbb   : > { %3365 = vst [vmem:[%s4703_s16 + $0x370] sm:$0xff] %v2332_v21  ;;  %v1325_v21 = vadd.f32 2.0, %v293_v13  ;;  %v2355_v26 = vmul.f32 %v1323_v15, %v291_v7  ;;  %v315_v15 = vld [vmem:[%s4686_s22 + $0x4e8] sm:$0xff] }
  0xbc   : > { %3366 = vst [vmem:[%s4703_s16 + $0x378] sm:$0xff] %v2333_v24  ;;  %v1326_v24 = vadd.f32 2.0, %v294_v16  ;;  %v2356_v29 = vmul.f32 %v1324_v18, %v292_v10  ;;  %v316_v18 = vld [vmem:[%s4686_s22 + $0x4f0] sm:$0xff] }
  0xbd   : > { %3367 = vst [vmem:[%s4703_s16 + $0x380] sm:$0xff] %v2334_v27  ;;  %v1327_v27 = vadd.f32 2.0, %v295_v19  ;;  %v2357_v32 = vmul.f32 %v1325_v21, %v293_v13  ;;  %v317_v21 = vld [vmem:[%s4686_s22 + $0x4f8] sm:$0xff] }
  0xbe   : > { %3368 = vst [vmem:[%s4703_s16 + $0x388] sm:$0xff] %v2335_v30  ;;  %v1328_v30 = vadd.f32 2.0, %v296_v22  ;;  %v2358_v35 = vmul.f32 %v1326_v24, %v294_v16  ;;  %v318_v24 = vld [vmem:[%s4686_s22 + $0x500] sm:$0xff] }
  0xbf   : > { %3369 = vst [vmem:[%s4703_s16 + $0x390] sm:$0xff] %v2336_v33  ;;  %v1329_v33 = vadd.f32 2.0, %v297_v25  ;;  %v2359_v38 = vmul.f32 %v1327_v27, %v295_v19  ;;  %v319_v27 = vld [vmem:[%s4686_s22 + $0x508] sm:$0xff] }
  0xc0   : > { %3370 = vst [vmem:[%s4703_s16 + $0x398] sm:$0xff] %v2337_v36  ;;  %v1330_v36 = vadd.f32 2.0, %v298_v28  ;;  %v2360_v41 = vmul.f32 %v1328_v30, %v296_v22  ;;  %v320_v30 = vld [vmem:[%s4686_s22 + $0x510] sm:$0xff] }
  0xc1   : > { %3371 = vst [vmem:[%s4703_s16 + $0x3a0] sm:$0xff] %v2338_v39  ;;  %v1331_v39 = vadd.f32 2.0, %v299_v31  ;;  %v2361_v44 = vmul.f32 %v1329_v33, %v297_v25  ;;  %v321_v33 = vld [vmem:[%s4686_s22 + $0x518] sm:$0xff] }
  0xc2   : > { %3372 = vst [vmem:[%s4703_s16 + $0x3a8] sm:$0xff] %v2339_v42  ;;  %v1332_v42 = vadd.f32 2.0, %v300_v34  ;;  %v2362_v47 = vmul.f32 %v1330_v36, %v298_v28  ;;  %v322_v36 = vld [vmem:[%s4686_s22 + $0x520] sm:$0xff] }
  0xc3   : > { %3373 = vst [vmem:[%s4703_s16 + $0x3b0] sm:$0xff] %v2340_v45  ;;  %v1333_v45 = vadd.f32 2.0, %v301_v37  ;;  %v2363_v50 = vmul.f32 %v1331_v39, %v299_v31  ;;  %v323_v39 = vld [vmem:[%s4686_s22 + $0x528] sm:$0xff] }
  0xc4   : > { %3374 = vst.msk [vmem:[%s4703_s16 + $0x3b8] sm:$0xff] %vm3277_vm0, %v2341_v48  ;;  %v1334_v48 = vadd.f32 2.0, %v302_v40  ;;  %v2364_v53 = vmul.f32 %v1332_v42, %v300_v34  ;;  %v324_v42 = vld [vmem:[%s4686_s22 + $0x530] sm:$0xff] }
  0xc5   : > { %3375 = vst [vmem:[%s4703_s16 + $0x3c0] sm:$0xff] %v2342_v51  ;;  %v1335_v51 = vadd.f32 2.0, %v303_v43  ;;  %v2365_v56 = vmul.f32 %v1333_v45, %v301_v37  ;;  %v325_v45 = vld [vmem:[%s4686_s22 + $0x538] sm:$0xff] }
  0xc6   : > { %3376 = vst [vmem:[%s4703_s16 + $0x3c8] sm:$0xff] %v2343_v54  ;;  %v1336_v54 = vadd.f32 2.0, %v304_v46  ;;  %v2366_v59 = vmul.f32 %v1334_v48, %v302_v40  ;;  %v326_v48 = vld [vmem:[%s4686_s22 + $0x540] sm:$0xff] }
  0xc7   : > { %3377 = vst [vmem:[%s4703_s16 + $0x3d0] sm:$0xff] %v2344_v57  ;;  %v1337_v57 = vadd.f32 2.0, %v305_v49  ;;  %v2367_v62 = vmul.f32 %v1335_v51, %v303_v43  ;;  %v327_v51 = vld [vmem:[%s4686_s22 + $0x548] sm:$0xff] }
  0xc8   : > { %3378 = vst [vmem:[%s4703_s16 + $0x3d8] sm:$0xff] %v2345_v60  ;;  %v1338_v60 = vadd.f32 2.0, %v306_v52  ;;  %v2368_v1 = vmul.f32 %v1336_v54, %v304_v46  ;;  %v328_v54 = vld [vmem:[%s4686_s22 + $0x550] sm:$0xff] }
  0xc9   : > { %3379 = vst [vmem:[%s4703_s16 + $0x3e0] sm:$0xff] %v2346_v63  ;;  %v1339_v63 = vadd.f32 2.0, %v307_v55  ;;  %v2369_v4 = vmul.f32 %v1337_v57, %v305_v49  ;;  %v329_v57 = vld [vmem:[%s4686_s22 + $0x558] sm:$0xff] }
  0xca   : > { %3380 = vst [vmem:[%s4703_s16 + $0x3e8] sm:$0xff] %v2347_v2  ;;  %v1340_v2 = vadd.f32 2.0, %v308_v58  ;;  %v2370_v7 = vmul.f32 %v1338_v60, %v306_v52  ;;  %v330_v60 = vld [vmem:[%s4686_s22 + $0x560] sm:$0xff] }
  0xcb   : > { %3381 = vst [vmem:[%s4703_s16 + $0x3f0] sm:$0xff] %v2348_v5  ;;  %v1341_v5 = vadd.f32 2.0, %v309_v61  ;;  %v2371_v10 = vmul.f32 %v1339_v63, %v307_v55  ;;  %v331_v63 = vld [vmem:[%s4686_s22 + $0x568] sm:$0xff] }
  0xcc   : > { %3382 = vst [vmem:[%s4703_s16 + $0x3f8] sm:$0xff] %v2349_v8  ;;  %v1342_v8 = vadd.f32 2.0, %v310_v0  ;;  %v2372_v13 = vmul.f32 %v1340_v2, %v308_v58  ;;  %v332_v2 = vld [vmem:[%s4686_s22 + $0x570] sm:$0xff] }
  0xcd   : > { %3383 = vst [vmem:[%s4703_s16 + $0x400] sm:$0xff] %v2350_v11  ;;  %v1343_v11 = vadd.f32 2.0, %v311_v3  ;;  %v2373_v16 = vmul.f32 %v1341_v5, %v309_v61  ;;  %v333_v5 = vld [vmem:[%s4686_s22 + $0x578] sm:$0xff] }
  0xce   : > { %3384 = vst [vmem:[%s4703_s16 + $0x408] sm:$0xff] %v2351_v14  ;;  %v1344_v14 = vadd.f32 2.0, %v312_v6  ;;  %v2374_v19 = vmul.f32 %v1342_v8, %v310_v0  ;;  %v334_v8 = vld [vmem:[%s4686_s22 + $0x580] sm:$0xff] }
  0xcf   : > { %3385 = vst [vmem:[%s4703_s16 + $0x410] sm:$0xff] %v2352_v17  ;;  %v1345_v17 = vadd.f32 2.0, %v313_v9  ;;  %v2375_v22 = vmul.f32 %v1343_v11, %v311_v3  ;;  %v335_v11 = vld [vmem:[%s4686_s22 + $0x588] sm:$0xff] }
  0xd0   : > { %3386 = vst [vmem:[%s4703_s16 + $0x418] sm:$0xff] %v2353_v20  ;;  %v1346_v20 = vadd.f32 2.0, %v314_v12  ;;  %v2376_v25 = vmul.f32 %v1344_v14, %v312_v6  ;;  %v336_v14 = vld [vmem:[%s4686_s22 + $0x590] sm:$0xff] }
  0xd1   : > { %3387 = vst [vmem:[%s4703_s16 + $0x420] sm:$0xff] %v2354_v23  ;;  %v1347_v23 = vadd.f32 2.0, %v315_v15  ;;  %v2377_v28 = vmul.f32 %v1345_v17, %v313_v9  ;;  %v337_v17 = vld [vmem:[%s4686_s22 + $0x598] sm:$0xff] }
  0xd2   : > { %3388 = vst [vmem:[%s4703_s16 + $0x428] sm:$0xff] %v2355_v26  ;;  %v1348_v26 = vadd.f32 2.0, %v316_v18  ;;  %v2378_v31 = vmul.f32 %v1346_v20, %v314_v12  ;;  %v338_v20 = vld [vmem:[%s4686_s22 + $0x5a0] sm:$0xff] }
  0xd3   : > { %3389 = vst [vmem:[%s4703_s16 + $0x430] sm:$0xff] %v2356_v29  ;;  %v1349_v29 = vadd.f32 2.0, %v317_v21  ;;  %v2379_v34 = vmul.f32 %v1347_v23, %v315_v15  ;;  %v339_v23 = vld [vmem:[%s4686_s22 + $0x5a8] sm:$0xff] }
  0xd4   : > { %3390 = vst [vmem:[%s4703_s16 + $0x438] sm:$0xff] %v2357_v32  ;;  %v1350_v32 = vadd.f32 2.0, %v318_v24  ;;  %v2380_v37 = vmul.f32 %v1348_v26, %v316_v18  ;;  %v340_v26 = vld [vmem:[%s4686_s22 + $0x5b0] sm:$0xff] }
  0xd5   : > { %3391 = vst [vmem:[%s4703_s16 + $0x440] sm:$0xff] %v2358_v35  ;;  %v1351_v35 = vadd.f32 2.0, %v319_v27  ;;  %v2381_v40 = vmul.f32 %v1349_v29, %v317_v21  ;;  %v341_v29 = vld [vmem:[%s4686_s22 + $0x5b8] sm:$0xff] }
  0xd6   : > { %3392 = vst [vmem:[%s4703_s16 + $0x448] sm:$0xff] %v2359_v38  ;;  %v1352_v38 = vadd.f32 2.0, %v320_v30  ;;  %v2382_v43 = vmul.f32 %v1350_v32, %v318_v24  ;;  %v342_v32 = vld [vmem:[%s4686_s22 + $0x5c0] sm:$0xff] }
  0xd7   : > { %3393 = vst [vmem:[%s4703_s16 + $0x450] sm:$0xff] %v2360_v41  ;;  %v1353_v41 = vadd.f32 2.0, %v321_v33  ;;  %v2383_v46 = vmul.f32 %v1351_v35, %v319_v27  ;;  %v343_v35 = vld [vmem:[%s4686_s22 + $0x5c8] sm:$0xff] }
  0xd8   : > { %3394 = vst [vmem:[%s4703_s16 + $0x458] sm:$0xff] %v2361_v44  ;;  %v1354_v44 = vadd.f32 2.0, %v322_v36  ;;  %v2384_v49 = vmul.f32 %v1352_v38, %v320_v30  ;;  %v344_v38 = vld [vmem:[%s4686_s22 + $0x5d0] sm:$0xff] }
  0xd9   : > { %3395 = vst [vmem:[%s4703_s16 + $0x460] sm:$0xff] %v2362_v47  ;;  %v1355_v47 = vadd.f32 2.0, %v323_v39  ;;  %v2385_v52 = vmul.f32 %v1353_v41, %v321_v33  ;;  %v345_v41 = vld [vmem:[%s4686_s22 + $0x5d8] sm:$0xff] }
  0xda   : > { %3396 = vst [vmem:[%s4703_s16 + $0x468] sm:$0xff] %v2363_v50  ;;  %v1356_v50 = vadd.f32 2.0, %v324_v42  ;;  %v2386_v55 = vmul.f32 %v1354_v44, %v322_v36  ;;  %v346_v44 = vld [vmem:[%s4686_s22 + $0x5e0] sm:$0xff] }
  0xdb   : > { %3397 = vst [vmem:[%s4703_s16 + $0x470] sm:$0xff] %v2364_v53  ;;  %v1357_v53 = vadd.f32 2.0, %v325_v45  ;;  %v2387_v58 = vmul.f32 %v1355_v47, %v323_v39  ;;  %v347_v47 = vld [vmem:[%s4686_s22 + $0x5e8] sm:$0xff] }
  0xdc   : > { %3398 = vst.msk [vmem:[%s4703_s16 + $0x478] sm:$0xff] %vm3277_vm0, %v2365_v56  ;;  %v1358_v56 = vadd.f32 2.0, %v326_v48  ;;  %v2388_v61 = vmul.f32 %v1356_v50, %v324_v42  ;;  %v348_v50 = vld [vmem:[%s4686_s22 + $0x5f0] sm:$0xff] }
  0xdd   : > { %3399 = vst [vmem:[%s4703_s16 + $0x480] sm:$0xff] %v2366_v59  ;;  %v1359_v59 = vadd.f32 2.0, %v327_v51  ;;  %v2389_v0 = vmul.f32 %v1357_v53, %v325_v45  ;;  %v349_v53 = vld [vmem:[%s4686_s22 + $0x5f8] sm:$0xff] }
  0xde   : > { %3400 = vst [vmem:[%s4703_s16 + $0x488] sm:$0xff] %v2367_v62  ;;  %v1360_v62 = vadd.f32 2.0, %v328_v54  ;;  %v2390_v3 = vmul.f32 %v1358_v56, %v326_v48  ;;  %v350_v56 = vld [vmem:[%s4686_s22 + $0x600] sm:$0xff] }
  0xdf   : > { %3401 = vst [vmem:[%s4703_s16 + $0x490] sm:$0xff] %v2368_v1  ;;  %v1361_v1 = vadd.f32 2.0, %v329_v57  ;;  %v2391_v6 = vmul.f32 %v1359_v59, %v327_v51  ;;  %v351_v59 = vld [vmem:[%s4686_s22 + $0x608] sm:$0xff] }
  0xe0   : > { %3402 = vst [vmem:[%s4703_s16 + $0x498] sm:$0xff] %v2369_v4  ;;  %v1362_v4 = vadd.f32 2.0, %v330_v60  ;;  %v2392_v9 = vmul.f32 %v1360_v62, %v328_v54  ;;  %v352_v62 = vld [vmem:[%s4686_s22 + $0x610] sm:$0xff] }
  0xe1   : > { %3403 = vst [vmem:[%s4703_s16 + $0x4a0] sm:$0xff] %v2370_v7  ;;  %v1363_v7 = vadd.f32 2.0, %v331_v63  ;;  %v2393_v12 = vmul.f32 %v1361_v1, %v329_v57  ;;  %v353_v1 = vld [vmem:[%s4686_s22 + $0x618] sm:$0xff] }
  0xe2   : > { %3404 = vst [vmem:[%s4703_s16 + $0x4a8] sm:$0xff] %v2371_v10  ;;  %v1364_v10 = vadd.f32 2.0, %v332_v2  ;;  %v2394_v15 = vmul.f32 %v1362_v4, %v330_v60  ;;  %v354_v4 = vld [vmem:[%s4686_s22 + $0x620] sm:$0xff] }
  0xe3   : > { %3405 = vst [vmem:[%s4703_s16 + $0x4b0] sm:$0xff] %v2372_v13  ;;  %v1365_v13 = vadd.f32 2.0, %v333_v5  ;;  %v2395_v18 = vmul.f32 %v1363_v7, %v331_v63  ;;  %v355_v7 = vld [vmem:[%s4686_s22 + $0x628] sm:$0xff] }
  0xe4   : > { %3406 = vst [vmem:[%s4703_s16 + $0x4b8] sm:$0xff] %v2373_v16  ;;  %v1366_v16 = vadd.f32 2.0, %v334_v8  ;;  %v2396_v21 = vmul.f32 %v1364_v10, %v332_v2  ;;  %v356_v10 = vld [vmem:[%s4686_s22 + $0x630] sm:$0xff] }
  0xe5   : > { %3407 = vst [vmem:[%s4703_s16 + $0x4c0] sm:$0xff] %v2374_v19  ;;  %v1367_v19 = vadd.f32 2.0, %v335_v11  ;;  %v2397_v24 = vmul.f32 %v1365_v13, %v333_v5  ;;  %v357_v13 = vld [vmem:[%s4686_s22 + $0x638] sm:$0xff] }
  0xe6   : > { %3408 = vst [vmem:[%s4703_s16 + $0x4c8] sm:$0xff] %v2375_v22  ;;  %v1368_v22 = vadd.f32 2.0, %v336_v14  ;;  %v2398_v27 = vmul.f32 %v1366_v16, %v334_v8  ;;  %v358_v16 = vld [vmem:[%s4686_s22 + $0x640] sm:$0xff] }
  0xe7   : > { %3409 = vst [vmem:[%s4703_s16 + $0x4d0] sm:$0xff] %v2376_v25  ;;  %v1369_v25 = vadd.f32 2.0, %v337_v17  ;;  %v2399_v30 = vmul.f32 %v1367_v19, %v335_v11  ;;  %v359_v19 = vld [vmem:[%s4686_s22 + $0x648] sm:$0xff] }
  0xe8   : > { %3410 = vst [vmem:[%s4703_s16 + $0x4d8] sm:$0xff] %v2377_v28  ;;  %v1370_v28 = vadd.f32 2.0, %v338_v20  ;;  %v2400_v33 = vmul.f32 %v1368_v22, %v336_v14  ;;  %v360_v22 = vld [vmem:[%s4686_s22 + $0x650] sm:$0xff] }
  0xe9   : > { %3411 = vst [vmem:[%s4703_s16 + $0x4e0] sm:$0xff] %v2378_v31  ;;  %v1371_v31 = vadd.f32 2.0, %v339_v23  ;;  %v2401_v36 = vmul.f32 %v1369_v25, %v337_v17  ;;  %v361_v25 = vld [vmem:[%s4686_s22 + $0x658] sm:$0xff] }
  0xea   : > { %3412 = vst [vmem:[%s4703_s16 + $0x4e8] sm:$0xff] %v2379_v34  ;;  %v1372_v34 = vadd.f32 2.0, %v340_v26  ;;  %v2402_v39 = vmul.f32 %v1370_v28, %v338_v20  ;;  %v362_v28 = vld [vmem:[%s4686_s22 + $0x660] sm:$0xff] }
  0xeb   : > { %3413 = vst [vmem:[%s4703_s16 + $0x4f0] sm:$0xff] %v2380_v37  ;;  %v1373_v37 = vadd.f32 2.0, %v341_v29  ;;  %v2403_v42 = vmul.f32 %v1371_v31, %v339_v23  ;;  %v363_v31 = vld [vmem:[%s4686_s22 + $0x668] sm:$0xff] }
  0xec   : > { %3414 = vst [vmem:[%s4703_s16 + $0x4f8] sm:$0xff] %v2381_v40  ;;  %v1374_v40 = vadd.f32 2.0, %v342_v32  ;;  %v2404_v45 = vmul.f32 %v1372_v34, %v340_v26  ;;  %v364_v34 = vld [vmem:[%s4686_s22 + $0x670] sm:$0xff] }
  0xed   : > { %3415 = vst [vmem:[%s4703_s16 + $0x500] sm:$0xff] %v2382_v43  ;;  %v1375_v43 = vadd.f32 2.0, %v343_v35  ;;  %v2405_v48 = vmul.f32 %v1373_v37, %v341_v29  ;;  %v365_v37 = vld [vmem:[%s4686_s22 + $0x678] sm:$0xff] }
  0xee   : > { %3416 = vst [vmem:[%s4703_s16 + $0x508] sm:$0xff] %v2383_v46  ;;  %v1376_v46 = vadd.f32 2.0, %v344_v38  ;;  %v2406_v51 = vmul.f32 %v1374_v40, %v342_v32  ;;  %v366_v40 = vld [vmem:[%s4686_s22 + $0x680] sm:$0xff] }
  0xef   : > { %3417 = vst [vmem:[%s4703_s16 + $0x510] sm:$0xff] %v2384_v49  ;;  %v1377_v49 = vadd.f32 2.0, %v345_v41  ;;  %v2407_v54 = vmul.f32 %v1375_v43, %v343_v35  ;;  %v367_v43 = vld [vmem:[%s4686_s22 + $0x688] sm:$0xff] }
  0xf0   : > { %3418 = vst [vmem:[%s4703_s16 + $0x518] sm:$0xff] %v2385_v52  ;;  %v1378_v52 = vadd.f32 2.0, %v346_v44  ;;  %v2408_v57 = vmul.f32 %v1376_v46, %v344_v38  ;;  %v368_v46 = vld [vmem:[%s4686_s22 + $0x690] sm:$0xff] }
  0xf1   : > { %3419 = vst [vmem:[%s4703_s16 + $0x520] sm:$0xff] %v2386_v55  ;;  %v1379_v55 = vadd.f32 2.0, %v347_v47  ;;  %v2409_v60 = vmul.f32 %v1377_v49, %v345_v41  ;;  %v369_v49 = vld [vmem:[%s4686_s22 + $0x698] sm:$0xff] }
  0xf2   : > { %3420 = vst [vmem:[%s4703_s16 + $0x528] sm:$0xff] %v2387_v58  ;;  %v1380_v58 = vadd.f32 2.0, %v348_v50  ;;  %v2410_v63 = vmul.f32 %v1378_v52, %v346_v44  ;;  %v370_v52 = vld [vmem:[%s4686_s22 + $0x6a0] sm:$0xff] }
  0xf3   : > { %3421 = vst [vmem:[%s4703_s16 + $0x530] sm:$0xff] %v2388_v61  ;;  %v1381_v61 = vadd.f32 2.0, %v349_v53  ;;  %v2411_v2 = vmul.f32 %v1379_v55, %v347_v47  ;;  %v371_v55 = vld [vmem:[%s4686_s22 + $0x6a8] sm:$0xff] }
  0xf4   : > { %3422 = vst.msk [vmem:[%s4703_s16 + $0x538] sm:$0xff] %vm3277_vm0, %v2389_v0  ;;  %v1382_v0 = vadd.f32 2.0, %v350_v56  ;;  %v2412_v5 = vmul.f32 %v1380_v58, %v348_v50  ;;  %v372_v58 = vld [vmem:[%s4686_s22 + $0x6b0] sm:$0xff] }
  0xf5   : > { %3423 = vst [vmem:[%s4703_s16 + $0x540] sm:$0xff] %v2390_v3  ;;  %v1383_v3 = vadd.f32 2.0, %v351_v59  ;;  %v2413_v8 = vmul.f32 %v1381_v61, %v349_v53  ;;  %v373_v61 = vld [vmem:[%s4686_s22 + $0x6b8] sm:$0xff] }
  0xf6   : > { %3424 = vst [vmem:[%s4703_s16 + $0x548] sm:$0xff] %v2391_v6  ;;  %v1384_v6 = vadd.f32 2.0, %v352_v62  ;;  %v2414_v11 = vmul.f32 %v1382_v0, %v350_v56  ;;  %v374_v0 = vld [vmem:[%s4686_s22 + $0x6c0] sm:$0xff] }
  0xf7   : > { %3425 = vst [vmem:[%s4703_s16 + $0x550] sm:$0xff] %v2392_v9  ;;  %v1385_v9 = vadd.f32 2.0, %v353_v1  ;;  %v2415_v14 = vmul.f32 %v1383_v3, %v351_v59  ;;  %v375_v3 = vld [vmem:[%s4686_s22 + $0x6c8] sm:$0xff] }
  0xf8   : > { %3426 = vst [vmem:[%s4703_s16 + $0x558] sm:$0xff] %v2393_v12  ;;  %v1386_v12 = vadd.f32 2.0, %v354_v4  ;;  %v2416_v17 = vmul.f32 %v1384_v6, %v352_v62  ;;  %v376_v6 = vld [vmem:[%s4686_s22 + $0x6d0] sm:$0xff] }
  0xf9   : > { %3427 = vst [vmem:[%s4703_s16 + $0x560] sm:$0xff] %v2394_v15  ;;  %v1387_v15 = vadd.f32 2.0, %v355_v7  ;;  %v2417_v20 = vmul.f32 %v1385_v9, %v353_v1  ;;  %v377_v9 = vld [vmem:[%s4686_s22 + $0x6d8] sm:$0xff] }
  0xfa   : > { %3428 = vst [vmem:[%s4703_s16 + $0x568] sm:$0xff] %v2395_v18  ;;  %v1388_v18 = vadd.f32 2.0, %v356_v10  ;;  %v2418_v23 = vmul.f32 %v1386_v12, %v354_v4  ;;  %v378_v12 = vld [vmem:[%s4686_s22 + $0x6e0] sm:$0xff] }
  0xfb   : > { %3429 = vst [vmem:[%s4703_s16 + $0x570] sm:$0xff] %v2396_v21  ;;  %v1389_v21 = vadd.f32 2.0, %v357_v13  ;;  %v2419_v26 = vmul.f32 %v1387_v15, %v355_v7  ;;  %v379_v15 = vld [vmem:[%s4686_s22 + $0x6e8] sm:$0xff] }
  0xfc   : > { %3430 = vst [vmem:[%s4703_s16 + $0x578] sm:$0xff] %v2397_v24  ;;  %v1390_v24 = vadd.f32 2.0, %v358_v16  ;;  %v2420_v29 = vmul.f32 %v1388_v18, %v356_v10  ;;  %v380_v18 = vld [vmem:[%s4686_s22 + $0x6f0] sm:$0xff] }
  0xfd   : > { %3431 = vst [vmem:[%s4703_s16 + $0x580] sm:$0xff] %v2398_v27  ;;  %v1391_v27 = vadd.f32 2.0, %v359_v19  ;;  %v2421_v32 = vmul.f32 %v1389_v21, %v357_v13  ;;  %v381_v21 = vld [vmem:[%s4686_s22 + $0x6f8] sm:$0xff] }
  0xfe   : > { %3432 = vst [vmem:[%s4703_s16 + $0x588] sm:$0xff] %v2399_v30  ;;  %v1392_v30 = vadd.f32 2.0, %v360_v22  ;;  %v2422_v35 = vmul.f32 %v1390_v24, %v358_v16  ;;  %v382_v24 = vld [vmem:[%s4686_s22 + $0x700] sm:$0xff] }
  0xff   : > { %3433 = vst [vmem:[%s4703_s16 + $0x590] sm:$0xff] %v2400_v33  ;;  %v1393_v33 = vadd.f32 2.0, %v361_v25  ;;  %v2423_v38 = vmul.f32 %v1391_v27, %v359_v19  ;;  %v383_v27 = vld [vmem:[%s4686_s22 + $0x708] sm:$0xff] }
 0x100   : > { %3434 = vst [vmem:[%s4703_s16 + $0x598] sm:$0xff] %v2401_v36  ;;  %v1394_v36 = vadd.f32 2.0, %v362_v28  ;;  %v2424_v41 = vmul.f32 %v1392_v30, %v360_v22  ;;  %v384_v30 = vld [vmem:[%s4686_s22 + $0x710] sm:$0xff] }
 0x101   : > { %3435 = vst [vmem:[%s4703_s16 + $0x5a0] sm:$0xff] %v2402_v39  ;;  %v1395_v39 = vadd.f32 2.0, %v363_v31  ;;  %v2425_v44 = vmul.f32 %v1393_v33, %v361_v25  ;;  %v385_v33 = vld [vmem:[%s4686_s22 + $0x718] sm:$0xff] }
 0x102   : > { %3436 = vst [vmem:[%s4703_s16 + $0x5a8] sm:$0xff] %v2403_v42  ;;  %v1396_v42 = vadd.f32 2.0, %v364_v34  ;;  %v2426_v47 = vmul.f32 %v1394_v36, %v362_v28  ;;  %v386_v36 = vld [vmem:[%s4686_s22 + $0x720] sm:$0xff] }
 0x103   : > { %3437 = vst [vmem:[%s4703_s16 + $0x5b0] sm:$0xff] %v2404_v45  ;;  %v1397_v45 = vadd.f32 2.0, %v365_v37  ;;  %v2427_v50 = vmul.f32 %v1395_v39, %v363_v31  ;;  %v387_v39 = vld [vmem:[%s4686_s22 + $0x728] sm:$0xff] }
 0x104   : > { %3438 = vst [vmem:[%s4703_s16 + $0x5b8] sm:$0xff] %v2405_v48  ;;  %v1398_v48 = vadd.f32 2.0, %v366_v40  ;;  %v2428_v53 = vmul.f32 %v1396_v42, %v364_v34  ;;  %v388_v42 = vld [vmem:[%s4686_s22 + $0x730] sm:$0xff] }
 0x105   : > { %3439 = vst [vmem:[%s4703_s16 + $0x5c0] sm:$0xff] %v2406_v51  ;;  %v1399_v51 = vadd.f32 2.0, %v367_v43  ;;  %v2429_v56 = vmul.f32 %v1397_v45, %v365_v37  ;;  %v389_v45 = vld [vmem:[%s4686_s22 + $0x738] sm:$0xff] }
 0x106   : > { %3440 = vst [vmem:[%s4703_s16 + $0x5c8] sm:$0xff] %v2407_v54  ;;  %v1400_v54 = vadd.f32 2.0, %v368_v46  ;;  %v2430_v59 = vmul.f32 %v1398_v48, %v366_v40  ;;  %v390_v48 = vld [vmem:[%s4686_s22 + $0x740] sm:$0xff] }
 0x107   : > { %3441 = vst [vmem:[%s4703_s16 + $0x5d0] sm:$0xff] %v2408_v57  ;;  %v1401_v57 = vadd.f32 2.0, %v369_v49  ;;  %v2431_v62 = vmul.f32 %v1399_v51, %v367_v43  ;;  %v391_v51 = vld [vmem:[%s4686_s22 + $0x748] sm:$0xff] }
 0x108   : > { %3442 = vst [vmem:[%s4703_s16 + $0x5d8] sm:$0xff] %v2409_v60  ;;  %v1402_v60 = vadd.f32 2.0, %v370_v52  ;;  %v2432_v1 = vmul.f32 %v1400_v54, %v368_v46  ;;  %v392_v54 = vld [vmem:[%s4686_s22 + $0x750] sm:$0xff] }
 0x109   : > { %3443 = vst [vmem:[%s4703_s16 + $0x5e0] sm:$0xff] %v2410_v63  ;;  %v1403_v63 = vadd.f32 2.0, %v371_v55  ;;  %v2433_v4 = vmul.f32 %v1401_v57, %v369_v49  ;;  %v393_v57 = vld [vmem:[%s4686_s22 + $0x758] sm:$0xff] }
 0x10a   : > { %3444 = vst [vmem:[%s4703_s16 + $0x5e8] sm:$0xff] %v2411_v2  ;;  %v1404_v2 = vadd.f32 2.0, %v372_v58  ;;  %v2434_v7 = vmul.f32 %v1402_v60, %v370_v52  ;;  %v394_v60 = vld [vmem:[%s4686_s22 + $0x760] sm:$0xff] }
 0x10b   : > { %3445 = vst [vmem:[%s4703_s16 + $0x5f0] sm:$0xff] %v2412_v5  ;;  %v1405_v5 = vadd.f32 2.0, %v373_v61  ;;  %v2435_v10 = vmul.f32 %v1403_v63, %v371_v55  ;;  %v395_v63 = vld [vmem:[%s4686_s22 + $0x768] sm:$0xff] }
 0x10c   : > { %3446 = vst.msk [vmem:[%s4703_s16 + $0x5f8] sm:$0xff] %vm3277_vm0, %v2413_v8  ;;  %v1406_v8 = vadd.f32 2.0, %v374_v0  ;;  %v2436_v13 = vmul.f32 %v1404_v2, %v372_v58  ;;  %v396_v2 = vld [vmem:[%s4686_s22 + $0x770] sm:$0xff] }
 0x10d   : > { %3447 = vst [vmem:[%s4703_s16 + $0x600] sm:$0xff] %v2414_v11  ;;  %v1407_v11 = vadd.f32 2.0, %v375_v3  ;;  %v2437_v16 = vmul.f32 %v1405_v5, %v373_v61  ;;  %v397_v5 = vld [vmem:[%s4686_s22 + $0x778] sm:$0xff] }
 0x10e   : > { %3448 = vst [vmem:[%s4703_s16 + $0x608] sm:$0xff] %v2415_v14  ;;  %v1408_v14 = vadd.f32 2.0, %v376_v6  ;;  %v2438_v19 = vmul.f32 %v1406_v8, %v374_v0  ;;  %v398_v8 = vld [vmem:[%s4686_s22 + $0x780] sm:$0xff] }
 0x10f   : > { %3449 = vst [vmem:[%s4703_s16 + $0x610] sm:$0xff] %v2416_v17  ;;  %v1409_v17 = vadd.f32 2.0, %v377_v9  ;;  %v2439_v22 = vmul.f32 %v1407_v11, %v375_v3  ;;  %v399_v11 = vld [vmem:[%s4686_s22 + $0x788] sm:$0xff] }
 0x110   : > { %3450 = vst [vmem:[%s4703_s16 + $0x618] sm:$0xff] %v2417_v20  ;;  %v1410_v20 = vadd.f32 2.0, %v378_v12  ;;  %v2440_v25 = vmul.f32 %v1408_v14, %v376_v6  ;;  %v400_v14 = vld [vmem:[%s4686_s22 + $0x790] sm:$0xff] }
 0x111   : > { %3451 = vst [vmem:[%s4703_s16 + $0x620] sm:$0xff] %v2418_v23  ;;  %v1411_v23 = vadd.f32 2.0, %v379_v15  ;;  %v2441_v28 = vmul.f32 %v1409_v17, %v377_v9  ;;  %v401_v17 = vld [vmem:[%s4686_s22 + $0x798] sm:$0xff] }
 0x112   : > { %3452 = vst [vmem:[%s4703_s16 + $0x628] sm:$0xff] %v2419_v26  ;;  %v1412_v26 = vadd.f32 2.0, %v380_v18  ;;  %v2442_v31 = vmul.f32 %v1410_v20, %v378_v12  ;;  %v402_v20 = vld [vmem:[%s4686_s22 + $0x7a0] sm:$0xff] }
 0x113   : > { %3453 = vst [vmem:[%s4703_s16 + $0x630] sm:$0xff] %v2420_v29  ;;  %v1413_v29 = vadd.f32 2.0, %v381_v21  ;;  %v2443_v34 = vmul.f32 %v1411_v23, %v379_v15  ;;  %v403_v23 = vld [vmem:[%s4686_s22 + $0x7a8] sm:$0xff] }
 0x114   : > { %3454 = vst [vmem:[%s4703_s16 + $0x638] sm:$0xff] %v2421_v32  ;;  %v1414_v32 = vadd.f32 2.0, %v382_v24  ;;  %v2444_v37 = vmul.f32 %v1412_v26, %v380_v18  ;;  %v404_v26 = vld [vmem:[%s4686_s22 + $0x7b0] sm:$0xff] }
 0x115   : > { %3455 = vst [vmem:[%s4703_s16 + $0x640] sm:$0xff] %v2422_v35  ;;  %v1415_v35 = vadd.f32 2.0, %v383_v27  ;;  %v2445_v40 = vmul.f32 %v1413_v29, %v381_v21  ;;  %v405_v29 = vld [vmem:[%s4686_s22 + $0x7b8] sm:$0xff] }
 0x116   : > { %3456 = vst [vmem:[%s4703_s16 + $0x648] sm:$0xff] %v2423_v38  ;;  %v1416_v38 = vadd.f32 2.0, %v384_v30  ;;  %v2446_v43 = vmul.f32 %v1414_v32, %v382_v24  ;;  %v406_v32 = vld [vmem:[%s4686_s22 + $0x7c0] sm:$0xff] }
 0x117   : > { %3457 = vst [vmem:[%s4703_s16 + $0x650] sm:$0xff] %v2424_v41  ;;  %v1417_v41 = vadd.f32 2.0, %v385_v33  ;;  %v2447_v46 = vmul.f32 %v1415_v35, %v383_v27  ;;  %v407_v35 = vld [vmem:[%s4686_s22 + $0x7c8] sm:$0xff] }
 0x118   : > { %3458 = vst [vmem:[%s4703_s16 + $0x658] sm:$0xff] %v2425_v44  ;;  %v1418_v44 = vadd.f32 2.0, %v386_v36  ;;  %v2448_v49 = vmul.f32 %v1416_v38, %v384_v30  ;;  %v408_v38 = vld [vmem:[%s4686_s22 + $0x7d0] sm:$0xff] }
 0x119   : > { %3459 = vst [vmem:[%s4703_s16 + $0x660] sm:$0xff] %v2426_v47  ;;  %v1419_v47 = vadd.f32 2.0, %v387_v39  ;;  %v2449_v52 = vmul.f32 %v1417_v41, %v385_v33  ;;  %v409_v41 = vld [vmem:[%s4686_s22 + $0x7d8] sm:$0xff] }
 0x11a   : > { %3460 = vst [vmem:[%s4703_s16 + $0x668] sm:$0xff] %v2427_v50  ;;  %v1420_v50 = vadd.f32 2.0, %v388_v42  ;;  %v2450_v55 = vmul.f32 %v1418_v44, %v386_v36  ;;  %v410_v44 = vld [vmem:[%s4686_s22 + $0x7e0] sm:$0xff] }
 0x11b   : > { %3461 = vst [vmem:[%s4703_s16 + $0x670] sm:$0xff] %v2428_v53  ;;  %v1421_v53 = vadd.f32 2.0, %v389_v45  ;;  %v2451_v58 = vmul.f32 %v1419_v47, %v387_v39  ;;  %v411_v47 = vld [vmem:[%s4686_s22 + $0x7e8] sm:$0xff] }
 0x11c   : > { %3462 = vst [vmem:[%s4703_s16 + $0x678] sm:$0xff] %v2429_v56  ;;  %v1422_v56 = vadd.f32 2.0, %v390_v48  ;;  %v2452_v61 = vmul.f32 %v1420_v50, %v388_v42  ;;  %v412_v50 = vld [vmem:[%s4686_s22 + $0x7f0] sm:$0xff] }
 0x11d   : > { %3463 = vst [vmem:[%s4703_s16 + $0x680] sm:$0xff] %v2430_v59  ;;  %v1423_v59 = vadd.f32 2.0, %v391_v51  ;;  %v2453_v0 = vmul.f32 %v1421_v53, %v389_v45  ;;  %v413_v53 = vld [vmem:[%s4686_s22 + $0x7f8] sm:$0xff] }
 0x11e   : > { %3464 = vst [vmem:[%s4703_s16 + $0x688] sm:$0xff] %v2431_v62  ;;  %v1424_v62 = vadd.f32 2.0, %v392_v54  ;;  %v2454_v3 = vmul.f32 %v1422_v56, %v390_v48  ;;  %v414_v56 = vld [vmem:[%s4686_s22 + $0x800] sm:$0xff] }
 0x11f   : > { %3465 = vst [vmem:[%s4703_s16 + $0x690] sm:$0xff] %v2432_v1  ;;  %v1425_v1 = vadd.f32 2.0, %v393_v57  ;;  %v2455_v6 = vmul.f32 %v1423_v59, %v391_v51  ;;  %v415_v59 = vld [vmem:[%s4686_s22 + $0x808] sm:$0xff] }
 0x120   : > { %3466 = vst [vmem:[%s4703_s16 + $0x698] sm:$0xff] %v2433_v4  ;;  %v1426_v4 = vadd.f32 2.0, %v394_v60  ;;  %v2456_v9 = vmul.f32 %v1424_v62, %v392_v54  ;;  %v416_v62 = vld [vmem:[%s4686_s22 + $0x810] sm:$0xff] }
 0x121   : > { %3467 = vst [vmem:[%s4703_s16 + $0x6a0] sm:$0xff] %v2434_v7  ;;  %v1427_v7 = vadd.f32 2.0, %v395_v63  ;;  %v2457_v12 = vmul.f32 %v1425_v1, %v393_v57  ;;  %v417_v1 = vld [vmem:[%s4686_s22 + $0x818] sm:$0xff] }
 0x122   : > { %3468 = vst [vmem:[%s4703_s16 + $0x6a8] sm:$0xff] %v2435_v10  ;;  %v1428_v10 = vadd.f32 2.0, %v396_v2  ;;  %v2458_v15 = vmul.f32 %v1426_v4, %v394_v60  ;;  %v418_v4 = vld [vmem:[%s4686_s22 + $0x820] sm:$0xff] }
 0x123   : > { %3469 = vst [vmem:[%s4703_s16 + $0x6b0] sm:$0xff] %v2436_v13  ;;  %v1429_v13 = vadd.f32 2.0, %v397_v5  ;;  %v2459_v18 = vmul.f32 %v1427_v7, %v395_v63  ;;  %v419_v7 = vld [vmem:[%s4686_s22 + $0x828] sm:$0xff] }
 0x124   : > { %3470 = vst.msk [vmem:[%s4703_s16 + $0x6b8] sm:$0xff] %vm3277_vm0, %v2437_v16  ;;  %v1430_v16 = vadd.f32 2.0, %v398_v8  ;;  %v2460_v21 = vmul.f32 %v1428_v10, %v396_v2  ;;  %v420_v10 = vld [vmem:[%s4686_s22 + $0x830] sm:$0xff] }
 0x125   : > { %3471 = vst [vmem:[%s4703_s16 + $0x6c0] sm:$0xff] %v2438_v19  ;;  %v1431_v19 = vadd.f32 2.0, %v399_v11  ;;  %v2461_v24 = vmul.f32 %v1429_v13, %v397_v5  ;;  %v421_v13 = vld [vmem:[%s4686_s22 + $0x838] sm:$0xff] }
 0x126   : > { %3472 = vst [vmem:[%s4703_s16 + $0x6c8] sm:$0xff] %v2439_v22  ;;  %v1432_v22 = vadd.f32 2.0, %v400_v14  ;;  %v2462_v27 = vmul.f32 %v1430_v16, %v398_v8  ;;  %v422_v16 = vld [vmem:[%s4686_s22 + $0x840] sm:$0xff] }
 0x127   : > { %3473 = vst [vmem:[%s4703_s16 + $0x6d0] sm:$0xff] %v2440_v25  ;;  %v1433_v25 = vadd.f32 2.0, %v401_v17  ;;  %v2463_v30 = vmul.f32 %v1431_v19, %v399_v11  ;;  %v423_v19 = vld [vmem:[%s4686_s22 + $0x848] sm:$0xff] }
 0x128   : > { %3474 = vst [vmem:[%s4703_s16 + $0x6d8] sm:$0xff] %v2441_v28  ;;  %v1434_v28 = vadd.f32 2.0, %v402_v20  ;;  %v2464_v33 = vmul.f32 %v1432_v22, %v400_v14  ;;  %v424_v22 = vld [vmem:[%s4686_s22 + $0x850] sm:$0xff] }
 0x129   : > { %3475 = vst [vmem:[%s4703_s16 + $0x6e0] sm:$0xff] %v2442_v31  ;;  %v1435_v31 = vadd.f32 2.0, %v403_v23  ;;  %v2465_v36 = vmul.f32 %v1433_v25, %v401_v17  ;;  %v425_v25 = vld [vmem:[%s4686_s22 + $0x858] sm:$0xff] }
 0x12a   : > { %3476 = vst [vmem:[%s4703_s16 + $0x6e8] sm:$0xff] %v2443_v34  ;;  %v1436_v34 = vadd.f32 2.0, %v404_v26  ;;  %v2466_v39 = vmul.f32 %v1434_v28, %v402_v20  ;;  %v426_v28 = vld [vmem:[%s4686_s22 + $0x860] sm:$0xff] }
 0x12b   : > { %3477 = vst [vmem:[%s4703_s16 + $0x6f0] sm:$0xff] %v2444_v37  ;;  %v1437_v37 = vadd.f32 2.0, %v405_v29  ;;  %v2467_v42 = vmul.f32 %v1435_v31, %v403_v23  ;;  %v427_v31 = vld [vmem:[%s4686_s22 + $0x868] sm:$0xff] }
 0x12c   : > { %3478 = vst [vmem:[%s4703_s16 + $0x6f8] sm:$0xff] %v2445_v40  ;;  %v1438_v40 = vadd.f32 2.0, %v406_v32  ;;  %v2468_v45 = vmul.f32 %v1436_v34, %v404_v26  ;;  %v428_v34 = vld [vmem:[%s4686_s22 + $0x870] sm:$0xff] }
 0x12d   : > { %3479 = vst [vmem:[%s4703_s16 + $0x700] sm:$0xff] %v2446_v43  ;;  %v1439_v43 = vadd.f32 2.0, %v407_v35  ;;  %v2469_v48 = vmul.f32 %v1437_v37, %v405_v29  ;;  %v429_v37 = vld [vmem:[%s4686_s22 + $0x878] sm:$0xff] }
 0x12e   : > { %3480 = vst [vmem:[%s4703_s16 + $0x708] sm:$0xff] %v2447_v46  ;;  %v1440_v46 = vadd.f32 2.0, %v408_v38  ;;  %v2470_v51 = vmul.f32 %v1438_v40, %v406_v32  ;;  %v430_v40 = vld [vmem:[%s4686_s22 + $0x880] sm:$0xff] }
 0x12f   : > { %3481 = vst [vmem:[%s4703_s16 + $0x710] sm:$0xff] %v2448_v49  ;;  %v1441_v49 = vadd.f32 2.0, %v409_v41  ;;  %v2471_v54 = vmul.f32 %v1439_v43, %v407_v35  ;;  %v431_v43 = vld [vmem:[%s4686_s22 + $0x888] sm:$0xff] }
 0x130   : > { %3482 = vst [vmem:[%s4703_s16 + $0x718] sm:$0xff] %v2449_v52  ;;  %v1442_v52 = vadd.f32 2.0, %v410_v44  ;;  %v2472_v57 = vmul.f32 %v1440_v46, %v408_v38  ;;  %v432_v46 = vld [vmem:[%s4686_s22 + $0x890] sm:$0xff] }
 0x131   : > { %3483 = vst [vmem:[%s4703_s16 + $0x720] sm:$0xff] %v2450_v55  ;;  %v1443_v55 = vadd.f32 2.0, %v411_v47  ;;  %v2473_v60 = vmul.f32 %v1441_v49, %v409_v41  ;;  %v433_v49 = vld [vmem:[%s4686_s22 + $0x898] sm:$0xff] }
 0x132   : > { %3484 = vst [vmem:[%s4703_s16 + $0x728] sm:$0xff] %v2451_v58  ;;  %v1444_v58 = vadd.f32 2.0, %v412_v50  ;;  %v2474_v63 = vmul.f32 %v1442_v52, %v410_v44  ;;  %v434_v52 = vld [vmem:[%s4686_s22 + $0x8a0] sm:$0xff] }
 0x133   : > { %3485 = vst [vmem:[%s4703_s16 + $0x730] sm:$0xff] %v2452_v61  ;;  %v1445_v61 = vadd.f32 2.0, %v413_v53  ;;  %v2475_v2 = vmul.f32 %v1443_v55, %v411_v47  ;;  %v435_v55 = vld [vmem:[%s4686_s22 + $0x8a8] sm:$0xff] }
 0x134   : > { %3486 = vst [vmem:[%s4703_s16 + $0x738] sm:$0xff] %v2453_v0  ;;  %v1446_v0 = vadd.f32 2.0, %v414_v56  ;;  %v2476_v5 = vmul.f32 %v1444_v58, %v412_v50  ;;  %v436_v58 = vld [vmem:[%s4686_s22 + $0x8b0] sm:$0xff] }
 0x135   : > { %3487 = vst [vmem:[%s4703_s16 + $0x740] sm:$0xff] %v2454_v3  ;;  %v1447_v3 = vadd.f32 2.0, %v415_v59  ;;  %v2477_v8 = vmul.f32 %v1445_v61, %v413_v53  ;;  %v437_v61 = vld [vmem:[%s4686_s22 + $0x8b8] sm:$0xff] }
 0x136   : > { %3488 = vst [vmem:[%s4703_s16 + $0x748] sm:$0xff] %v2455_v6  ;;  %v1448_v6 = vadd.f32 2.0, %v416_v62  ;;  %v2478_v11 = vmul.f32 %v1446_v0, %v414_v56  ;;  %v438_v0 = vld [vmem:[%s4686_s22 + $0x8c0] sm:$0xff] }
 0x137   : > { %3489 = vst [vmem:[%s4703_s16 + $0x750] sm:$0xff] %v2456_v9  ;;  %v1449_v9 = vadd.f32 2.0, %v417_v1  ;;  %v2479_v14 = vmul.f32 %v1447_v3, %v415_v59  ;;  %v439_v3 = vld [vmem:[%s4686_s22 + $0x8c8] sm:$0xff] }
 0x138   : > { %3490 = vst [vmem:[%s4703_s16 + $0x758] sm:$0xff] %v2457_v12  ;;  %v1450_v12 = vadd.f32 2.0, %v418_v4  ;;  %v2480_v17 = vmul.f32 %v1448_v6, %v416_v62  ;;  %v440_v6 = vld [vmem:[%s4686_s22 + $0x8d0] sm:$0xff] }
 0x139   : > { %3491 = vst [vmem:[%s4703_s16 + $0x760] sm:$0xff] %v2458_v15  ;;  %v1451_v15 = vadd.f32 2.0, %v419_v7  ;;  %v2481_v20 = vmul.f32 %v1449_v9, %v417_v1  ;;  %v441_v9 = vld [vmem:[%s4686_s22 + $0x8d8] sm:$0xff] }
 0x13a   : > { %3492 = vst [vmem:[%s4703_s16 + $0x768] sm:$0xff] %v2459_v18  ;;  %v1452_v18 = vadd.f32 2.0, %v420_v10  ;;  %v2482_v23 = vmul.f32 %v1450_v12, %v418_v4  ;;  %v442_v12 = vld [vmem:[%s4686_s22 + $0x8e0] sm:$0xff] }
 0x13b   : > { %3493 = vst [vmem:[%s4703_s16 + $0x770] sm:$0xff] %v2460_v21  ;;  %v1453_v21 = vadd.f32 2.0, %v421_v13  ;;  %v2483_v26 = vmul.f32 %v1451_v15, %v419_v7  ;;  %v443_v15 = vld [vmem:[%s4686_s22 + $0x8e8] sm:$0xff] }
 0x13c   : > { %3494 = vst.msk [vmem:[%s4703_s16 + $0x778] sm:$0xff] %vm3277_vm0, %v2461_v24  ;;  %v1454_v24 = vadd.f32 2.0, %v422_v16  ;;  %v2484_v29 = vmul.f32 %v1452_v18, %v420_v10  ;;  %v444_v18 = vld [vmem:[%s4686_s22 + $0x8f0] sm:$0xff] }
 0x13d   : > { %3495 = vst [vmem:[%s4703_s16 + $0x780] sm:$0xff] %v2462_v27  ;;  %v1455_v27 = vadd.f32 2.0, %v423_v19  ;;  %v2485_v32 = vmul.f32 %v1453_v21, %v421_v13  ;;  %v445_v21 = vld [vmem:[%s4686_s22 + $0x8f8] sm:$0xff] }
 0x13e   : > { %3496 = vst [vmem:[%s4703_s16 + $0x788] sm:$0xff] %v2463_v30  ;;  %v1456_v30 = vadd.f32 2.0, %v424_v22  ;;  %v2486_v35 = vmul.f32 %v1454_v24, %v422_v16  ;;  %v446_v24 = vld [vmem:[%s4686_s22 + $0x900] sm:$0xff] }
 0x13f   : > { %3497 = vst [vmem:[%s4703_s16 + $0x790] sm:$0xff] %v2464_v33  ;;  %v1457_v33 = vadd.f32 2.0, %v425_v25  ;;  %v2487_v38 = vmul.f32 %v1455_v27, %v423_v19  ;;  %v447_v27 = vld [vmem:[%s4686_s22 + $0x908] sm:$0xff] }
 0x140   : > { %3498 = vst [vmem:[%s4703_s16 + $0x798] sm:$0xff] %v2465_v36  ;;  %v1458_v36 = vadd.f32 2.0, %v426_v28  ;;  %v2488_v41 = vmul.f32 %v1456_v30, %v424_v22  ;;  %v448_v30 = vld [vmem:[%s4686_s22 + $0x910] sm:$0xff] }
 0x141   : > { %3499 = vst [vmem:[%s4703_s16 + $0x7a0] sm:$0xff] %v2466_v39  ;;  %v1459_v39 = vadd.f32 2.0, %v427_v31  ;;  %v2489_v44 = vmul.f32 %v1457_v33, %v425_v25  ;;  %v449_v33 = vld [vmem:[%s4686_s22 + $0x918] sm:$0xff] }
 0x142   : > { %3500 = vst [vmem:[%s4703_s16 + $0x7a8] sm:$0xff] %v2467_v42  ;;  %v1460_v42 = vadd.f32 2.0, %v428_v34  ;;  %v2490_v47 = vmul.f32 %v1458_v36, %v426_v28  ;;  %v450_v36 = vld [vmem:[%s4686_s22 + $0x920] sm:$0xff] }
 0x143   : > { %3501 = vst [vmem:[%s4703_s16 + $0x7b0] sm:$0xff] %v2468_v45  ;;  %v1461_v45 = vadd.f32 2.0, %v429_v37  ;;  %v2491_v50 = vmul.f32 %v1459_v39, %v427_v31  ;;  %v451_v39 = vld [vmem:[%s4686_s22 + $0x928] sm:$0xff] }
 0x144   : > { %3502 = vst [vmem:[%s4703_s16 + $0x7b8] sm:$0xff] %v2469_v48  ;;  %v1462_v48 = vadd.f32 2.0, %v430_v40  ;;  %v2492_v53 = vmul.f32 %v1460_v42, %v428_v34  ;;  %v452_v42 = vld [vmem:[%s4686_s22 + $0x930] sm:$0xff] }
 0x145   : > { %3503 = vst [vmem:[%s4703_s16 + $0x7c0] sm:$0xff] %v2470_v51  ;;  %v1463_v51 = vadd.f32 2.0, %v431_v43  ;;  %v2493_v56 = vmul.f32 %v1461_v45, %v429_v37  ;;  %v453_v45 = vld [vmem:[%s4686_s22 + $0x938] sm:$0xff] }
 0x146   : > { %3504 = vst [vmem:[%s4703_s16 + $0x7c8] sm:$0xff] %v2471_v54  ;;  %v1464_v54 = vadd.f32 2.0, %v432_v46  ;;  %v2494_v59 = vmul.f32 %v1462_v48, %v430_v40  ;;  %v454_v48 = vld [vmem:[%s4686_s22 + $0x940] sm:$0xff] }
 0x147   : > { %3505 = vst [vmem:[%s4703_s16 + $0x7d0] sm:$0xff] %v2472_v57  ;;  %v1465_v57 = vadd.f32 2.0, %v433_v49  ;;  %v2495_v62 = vmul.f32 %v1463_v51, %v431_v43  ;;  %v455_v51 = vld [vmem:[%s4686_s22 + $0x948] sm:$0xff] }
 0x148   : > { %3506 = vst [vmem:[%s4703_s16 + $0x7d8] sm:$0xff] %v2473_v60  ;;  %v1466_v60 = vadd.f32 2.0, %v434_v52  ;;  %v2496_v1 = vmul.f32 %v1464_v54, %v432_v46  ;;  %v456_v54 = vld [vmem:[%s4686_s22 + $0x950] sm:$0xff] }
 0x149   : > { %3507 = vst [vmem:[%s4703_s16 + $0x7e0] sm:$0xff] %v2474_v63  ;;  %v1467_v63 = vadd.f32 2.0, %v435_v55  ;;  %v2497_v4 = vmul.f32 %v1465_v57, %v433_v49  ;;  %v457_v57 = vld [vmem:[%s4686_s22 + $0x958] sm:$0xff] }
 0x14a   : > { %3508 = vst [vmem:[%s4703_s16 + $0x7e8] sm:$0xff] %v2475_v2  ;;  %v1468_v2 = vadd.f32 2.0, %v436_v58  ;;  %v2498_v7 = vmul.f32 %v1466_v60, %v434_v52  ;;  %v458_v60 = vld [vmem:[%s4686_s22 + $0x960] sm:$0xff] }
 0x14b   : > { %3509 = vst [vmem:[%s4703_s16 + $0x7f0] sm:$0xff] %v2476_v5  ;;  %v1469_v5 = vadd.f32 2.0, %v437_v61  ;;  %v2499_v10 = vmul.f32 %v1467_v63, %v435_v55  ;;  %v459_v63 = vld [vmem:[%s4686_s22 + $0x968] sm:$0xff] }
 0x14c   : > { %3510 = vst [vmem:[%s4703_s16 + $0x7f8] sm:$0xff] %v2477_v8  ;;  %v1470_v8 = vadd.f32 2.0, %v438_v0  ;;  %v2500_v13 = vmul.f32 %v1468_v2, %v436_v58  ;;  %v460_v2 = vld [vmem:[%s4686_s22 + $0x970] sm:$0xff] }
 0x14d   : > { %3511 = vst [vmem:[%s4703_s16 + $0x800] sm:$0xff] %v2478_v11  ;;  %v1471_v11 = vadd.f32 2.0, %v439_v3  ;;  %v2501_v16 = vmul.f32 %v1469_v5, %v437_v61  ;;  %v461_v5 = vld [vmem:[%s4686_s22 + $0x978] sm:$0xff] }
 0x14e   : > { %3512 = vst [vmem:[%s4703_s16 + $0x808] sm:$0xff] %v2479_v14  ;;  %v1472_v14 = vadd.f32 2.0, %v440_v6  ;;  %v2502_v19 = vmul.f32 %v1470_v8, %v438_v0  ;;  %v462_v8 = vld [vmem:[%s4686_s22 + $0x980] sm:$0xff] }
 0x14f   : > { %3513 = vst [vmem:[%s4703_s16 + $0x810] sm:$0xff] %v2480_v17  ;;  %v1473_v17 = vadd.f32 2.0, %v441_v9  ;;  %v2503_v22 = vmul.f32 %v1471_v11, %v439_v3  ;;  %v463_v11 = vld [vmem:[%s4686_s22 + $0x988] sm:$0xff] }
 0x150   : > { %3514 = vst [vmem:[%s4703_s16 + $0x818] sm:$0xff] %v2481_v20  ;;  %v1474_v20 = vadd.f32 2.0, %v442_v12  ;;  %v2504_v25 = vmul.f32 %v1472_v14, %v440_v6  ;;  %v464_v14 = vld [vmem:[%s4686_s22 + $0x990] sm:$0xff] }
 0x151   : > { %3515 = vst [vmem:[%s4703_s16 + $0x820] sm:$0xff] %v2482_v23  ;;  %v1475_v23 = vadd.f32 2.0, %v443_v15  ;;  %v2505_v28 = vmul.f32 %v1473_v17, %v441_v9  ;;  %v465_v17 = vld [vmem:[%s4686_s22 + $0x998] sm:$0xff] }
 0x152   : > { %3516 = vst [vmem:[%s4703_s16 + $0x828] sm:$0xff] %v2483_v26  ;;  %v1476_v26 = vadd.f32 2.0, %v444_v18  ;;  %v2506_v31 = vmul.f32 %v1474_v20, %v442_v12  ;;  %v466_v20 = vld [vmem:[%s4686_s22 + $0x9a0] sm:$0xff] }
 0x153   : > { %3517 = vst [vmem:[%s4703_s16 + $0x830] sm:$0xff] %v2484_v29  ;;  %v1477_v29 = vadd.f32 2.0, %v445_v21  ;;  %v2507_v34 = vmul.f32 %v1475_v23, %v443_v15  ;;  %v467_v23 = vld [vmem:[%s4686_s22 + $0x9a8] sm:$0xff] }
 0x154   : > { %3518 = vst.msk [vmem:[%s4703_s16 + $0x838] sm:$0xff] %vm3277_vm0, %v2485_v32  ;;  %v1478_v32 = vadd.f32 2.0, %v446_v24  ;;  %v2508_v37 = vmul.f32 %v1476_v26, %v444_v18  ;;  %v468_v26 = vld [vmem:[%s4686_s22 + $0x9b0] sm:$0xff] }
 0x155   : > { %3519 = vst [vmem:[%s4703_s16 + $0x840] sm:$0xff] %v2486_v35  ;;  %v1479_v35 = vadd.f32 2.0, %v447_v27  ;;  %v2509_v40 = vmul.f32 %v1477_v29, %v445_v21  ;;  %v469_v29 = vld [vmem:[%s4686_s22 + $0x9b8] sm:$0xff] }
 0x156   : > { %3520 = vst [vmem:[%s4703_s16 + $0x848] sm:$0xff] %v2487_v38  ;;  %v1480_v38 = vadd.f32 2.0, %v448_v30  ;;  %v2510_v43 = vmul.f32 %v1478_v32, %v446_v24  ;;  %v470_v32 = vld [vmem:[%s4686_s22 + $0x9c0] sm:$0xff] }
 0x157   : > { %3521 = vst [vmem:[%s4703_s16 + $0x850] sm:$0xff] %v2488_v41  ;;  %v1481_v41 = vadd.f32 2.0, %v449_v33  ;;  %v2511_v46 = vmul.f32 %v1479_v35, %v447_v27  ;;  %v471_v35 = vld [vmem:[%s4686_s22 + $0x9c8] sm:$0xff] }
 0x158   : > { %3522 = vst [vmem:[%s4703_s16 + $0x858] sm:$0xff] %v2489_v44  ;;  %v1482_v44 = vadd.f32 2.0, %v450_v36  ;;  %v2512_v49 = vmul.f32 %v1480_v38, %v448_v30  ;;  %v472_v38 = vld [vmem:[%s4686_s22 + $0x9d0] sm:$0xff] }
 0x159   : > { %3523 = vst [vmem:[%s4703_s16 + $0x860] sm:$0xff] %v2490_v47  ;;  %v1483_v47 = vadd.f32 2.0, %v451_v39  ;;  %v2513_v52 = vmul.f32 %v1481_v41, %v449_v33  ;;  %v473_v41 = vld [vmem:[%s4686_s22 + $0x9d8] sm:$0xff] }
 0x15a   : > { %3524 = vst [vmem:[%s4703_s16 + $0x868] sm:$0xff] %v2491_v50  ;;  %v1484_v50 = vadd.f32 2.0, %v452_v42  ;;  %v2514_v55 = vmul.f32 %v1482_v44, %v450_v36  ;;  %v474_v44 = vld [vmem:[%s4686_s22 + $0x9e0] sm:$0xff] }
 0x15b   : > { %3525 = vst [vmem:[%s4703_s16 + $0x870] sm:$0xff] %v2492_v53  ;;  %v1485_v53 = vadd.f32 2.0, %v453_v45  ;;  %v2515_v58 = vmul.f32 %v1483_v47, %v451_v39  ;;  %v475_v47 = vld [vmem:[%s4686_s22 + $0x9e8] sm:$0xff] }
 0x15c   : > { %3526 = vst [vmem:[%s4703_s16 + $0x878] sm:$0xff] %v2493_v56  ;;  %v1486_v56 = vadd.f32 2.0, %v454_v48  ;;  %v2516_v61 = vmul.f32 %v1484_v50, %v452_v42  ;;  %v476_v50 = vld [vmem:[%s4686_s22 + $0x9f0] sm:$0xff] }
 0x15d   : > { %3527 = vst [vmem:[%s4703_s16 + $0x880] sm:$0xff] %v2494_v59  ;;  %v1487_v59 = vadd.f32 2.0, %v455_v51  ;;  %v2517_v0 = vmul.f32 %v1485_v53, %v453_v45  ;;  %v477_v53 = vld [vmem:[%s4686_s22 + $0x9f8] sm:$0xff] }
 0x15e   : > { %3528 = vst [vmem:[%s4703_s16 + $0x888] sm:$0xff] %v2495_v62  ;;  %v1488_v62 = vadd.f32 2.0, %v456_v54  ;;  %v2518_v3 = vmul.f32 %v1486_v56, %v454_v48  ;;  %v478_v56 = vld [vmem:[%s4686_s22 + $0xa00] sm:$0xff] }
 0x15f   : > { %3529 = vst [vmem:[%s4703_s16 + $0x890] sm:$0xff] %v2496_v1  ;;  %v1489_v1 = vadd.f32 2.0, %v457_v57  ;;  %v2519_v6 = vmul.f32 %v1487_v59, %v455_v51  ;;  %v479_v59 = vld [vmem:[%s4686_s22 + $0xa08] sm:$0xff] }
 0x160   : > { %3530 = vst [vmem:[%s4703_s16 + $0x898] sm:$0xff] %v2497_v4  ;;  %v1490_v4 = vadd.f32 2.0, %v458_v60  ;;  %v2520_v9 = vmul.f32 %v1488_v62, %v456_v54  ;;  %v480_v62 = vld [vmem:[%s4686_s22 + $0xa10] sm:$0xff] }
 0x161   : > { %3531 = vst [vmem:[%s4703_s16 + $0x8a0] sm:$0xff] %v2498_v7  ;;  %v1491_v7 = vadd.f32 2.0, %v459_v63  ;;  %v2521_v12 = vmul.f32 %v1489_v1, %v457_v57  ;;  %v481_v1 = vld [vmem:[%s4686_s22 + $0xa18] sm:$0xff] }
 0x162   : > { %3532 = vst [vmem:[%s4703_s16 + $0x8a8] sm:$0xff] %v2499_v10  ;;  %v1492_v10 = vadd.f32 2.0, %v460_v2  ;;  %v2522_v15 = vmul.f32 %v1490_v4, %v458_v60  ;;  %v482_v4 = vld [vmem:[%s4686_s22 + $0xa20] sm:$0xff] }
 0x163   : > { %3533 = vst [vmem:[%s4703_s16 + $0x8b0] sm:$0xff] %v2500_v13  ;;  %v1493_v13 = vadd.f32 2.0, %v461_v5  ;;  %v2523_v18 = vmul.f32 %v1491_v7, %v459_v63  ;;  %v483_v7 = vld [vmem:[%s4686_s22 + $0xa28] sm:$0xff] }
 0x164   : > { %3534 = vst [vmem:[%s4703_s16 + $0x8b8] sm:$0xff] %v2501_v16  ;;  %v1494_v16 = vadd.f32 2.0, %v462_v8  ;;  %v2524_v21 = vmul.f32 %v1492_v10, %v460_v2  ;;  %v484_v10 = vld [vmem:[%s4686_s22 + $0xa30] sm:$0xff] }
 0x165   : > { %3535 = vst [vmem:[%s4703_s16 + $0x8c0] sm:$0xff] %v2502_v19  ;;  %v1495_v19 = vadd.f32 2.0, %v463_v11  ;;  %v2525_v24 = vmul.f32 %v1493_v13, %v461_v5  ;;  %v485_v13 = vld [vmem:[%s4686_s22 + $0xa38] sm:$0xff] }
 0x166   : > { %3536 = vst [vmem:[%s4703_s16 + $0x8c8] sm:$0xff] %v2503_v22  ;;  %v1496_v22 = vadd.f32 2.0, %v464_v14  ;;  %v2526_v27 = vmul.f32 %v1494_v16, %v462_v8  ;;  %v486_v16 = vld [vmem:[%s4686_s22 + $0xa40] sm:$0xff] }
 0x167   : > { %3537 = vst [vmem:[%s4703_s16 + $0x8d0] sm:$0xff] %v2504_v25  ;;  %v1497_v25 = vadd.f32 2.0, %v465_v17  ;;  %v2527_v30 = vmul.f32 %v1495_v19, %v463_v11  ;;  %v487_v19 = vld [vmem:[%s4686_s22 + $0xa48] sm:$0xff] }
 0x168   : > { %3538 = vst [vmem:[%s4703_s16 + $0x8d8] sm:$0xff] %v2505_v28  ;;  %v1498_v28 = vadd.f32 2.0, %v466_v20  ;;  %v2528_v33 = vmul.f32 %v1496_v22, %v464_v14  ;;  %v488_v22 = vld [vmem:[%s4686_s22 + $0xa50] sm:$0xff] }
 0x169   : > { %3539 = vst [vmem:[%s4703_s16 + $0x8e0] sm:$0xff] %v2506_v31  ;;  %v1499_v31 = vadd.f32 2.0, %v467_v23  ;;  %v2529_v36 = vmul.f32 %v1497_v25, %v465_v17  ;;  %v489_v25 = vld [vmem:[%s4686_s22 + $0xa58] sm:$0xff] }
 0x16a   : > { %3540 = vst [vmem:[%s4703_s16 + $0x8e8] sm:$0xff] %v2507_v34  ;;  %v1500_v34 = vadd.f32 2.0, %v468_v26  ;;  %v2530_v39 = vmul.f32 %v1498_v28, %v466_v20  ;;  %v490_v28 = vld [vmem:[%s4686_s22 + $0xa60] sm:$0xff] }
 0x16b   : > { %3541 = vst [vmem:[%s4703_s16 + $0x8f0] sm:$0xff] %v2508_v37  ;;  %v1501_v37 = vadd.f32 2.0, %v469_v29  ;;  %v2531_v42 = vmul.f32 %v1499_v31, %v467_v23  ;;  %v491_v31 = vld [vmem:[%s4686_s22 + $0xa68] sm:$0xff] }
 0x16c   : > { %3542 = vst.msk [vmem:[%s4703_s16 + $0x8f8] sm:$0xff] %vm3277_vm0, %v2509_v40  ;;  %v1502_v40 = vadd.f32 2.0, %v470_v32  ;;  %v2532_v45 = vmul.f32 %v1500_v34, %v468_v26  ;;  %v492_v34 = vld [vmem:[%s4686_s22 + $0xa70] sm:$0xff] }
 0x16d   : > { %3543 = vst [vmem:[%s4703_s16 + $0x900] sm:$0xff] %v2510_v43  ;;  %v1503_v43 = vadd.f32 2.0, %v471_v35  ;;  %v2533_v48 = vmul.f32 %v1501_v37, %v469_v29  ;;  %v493_v37 = vld [vmem:[%s4686_s22 + $0xa78] sm:$0xff] }
 0x16e   : > { %3544 = vst [vmem:[%s4703_s16 + $0x908] sm:$0xff] %v2511_v46  ;;  %v1504_v46 = vadd.f32 2.0, %v472_v38  ;;  %v2534_v51 = vmul.f32 %v1502_v40, %v470_v32  ;;  %v494_v40 = vld [vmem:[%s4686_s22 + $0xa80] sm:$0xff] }
 0x16f   : > { %3545 = vst [vmem:[%s4703_s16 + $0x910] sm:$0xff] %v2512_v49  ;;  %v1505_v49 = vadd.f32 2.0, %v473_v41  ;;  %v2535_v54 = vmul.f32 %v1503_v43, %v471_v35  ;;  %v495_v43 = vld [vmem:[%s4686_s22 + $0xa88] sm:$0xff] }
 0x170   : > { %3546 = vst [vmem:[%s4703_s16 + $0x918] sm:$0xff] %v2513_v52  ;;  %v1506_v52 = vadd.f32 2.0, %v474_v44  ;;  %v2536_v57 = vmul.f32 %v1504_v46, %v472_v38  ;;  %v496_v46 = vld [vmem:[%s4686_s22 + $0xa90] sm:$0xff] }
 0x171   : > { %3547 = vst [vmem:[%s4703_s16 + $0x920] sm:$0xff] %v2514_v55  ;;  %v1507_v55 = vadd.f32 2.0, %v475_v47  ;;  %v2537_v60 = vmul.f32 %v1505_v49, %v473_v41  ;;  %v497_v49 = vld [vmem:[%s4686_s22 + $0xa98] sm:$0xff] }
 0x172   : > { %3548 = vst [vmem:[%s4703_s16 + $0x928] sm:$0xff] %v2515_v58  ;;  %v1508_v58 = vadd.f32 2.0, %v476_v50  ;;  %v2538_v63 = vmul.f32 %v1506_v52, %v474_v44  ;;  %v498_v52 = vld [vmem:[%s4686_s22 + $0xaa0] sm:$0xff] }
 0x173   : > { %3549 = vst [vmem:[%s4703_s16 + $0x930] sm:$0xff] %v2516_v61  ;;  %v1509_v61 = vadd.f32 2.0, %v477_v53  ;;  %v2539_v2 = vmul.f32 %v1507_v55, %v475_v47  ;;  %v499_v55 = vld [vmem:[%s4686_s22 + $0xaa8] sm:$0xff] }
 0x174   : > { %3550 = vst [vmem:[%s4703_s16 + $0x938] sm:$0xff] %v2517_v0  ;;  %v1510_v0 = vadd.f32 2.0, %v478_v56  ;;  %v2540_v5 = vmul.f32 %v1508_v58, %v476_v50  ;;  %v500_v58 = vld [vmem:[%s4686_s22 + $0xab0] sm:$0xff] }
 0x175   : > { %3551 = vst [vmem:[%s4703_s16 + $0x940] sm:$0xff] %v2518_v3  ;;  %v1511_v3 = vadd.f32 2.0, %v479_v59  ;;  %v2541_v8 = vmul.f32 %v1509_v61, %v477_v53  ;;  %v501_v61 = vld [vmem:[%s4686_s22 + $0xab8] sm:$0xff] }
 0x176   : > { %3552 = vst [vmem:[%s4703_s16 + $0x948] sm:$0xff] %v2519_v6  ;;  %v1512_v6 = vadd.f32 2.0, %v480_v62  ;;  %v2542_v11 = vmul.f32 %v1510_v0, %v478_v56  ;;  %v502_v0 = vld [vmem:[%s4686_s22 + $0xac0] sm:$0xff] }
 0x177   : > { %3553 = vst [vmem:[%s4703_s16 + $0x950] sm:$0xff] %v2520_v9  ;;  %v1513_v9 = vadd.f32 2.0, %v481_v1  ;;  %v2543_v14 = vmul.f32 %v1511_v3, %v479_v59  ;;  %v503_v3 = vld [vmem:[%s4686_s22 + $0xac8] sm:$0xff] }
 0x178   : > { %3554 = vst [vmem:[%s4703_s16 + $0x958] sm:$0xff] %v2521_v12  ;;  %v1514_v12 = vadd.f32 2.0, %v482_v4  ;;  %v2544_v17 = vmul.f32 %v1512_v6, %v480_v62  ;;  %v504_v6 = vld [vmem:[%s4686_s22 + $0xad0] sm:$0xff] }
 0x179   : > { %3555 = vst [vmem:[%s4703_s16 + $0x960] sm:$0xff] %v2522_v15  ;;  %v1515_v15 = vadd.f32 2.0, %v483_v7  ;;  %v2545_v20 = vmul.f32 %v1513_v9, %v481_v1  ;;  %v505_v9 = vld [vmem:[%s4686_s22 + $0xad8] sm:$0xff] }
 0x17a   : > { %3556 = vst [vmem:[%s4703_s16 + $0x968] sm:$0xff] %v2523_v18  ;;  %v1516_v18 = vadd.f32 2.0, %v484_v10  ;;  %v2546_v23 = vmul.f32 %v1514_v12, %v482_v4  ;;  %v506_v12 = vld [vmem:[%s4686_s22 + $0xae0] sm:$0xff] }
 0x17b   : > { %3557 = vst [vmem:[%s4703_s16 + $0x970] sm:$0xff] %v2524_v21  ;;  %v1517_v21 = vadd.f32 2.0, %v485_v13  ;;  %v2547_v26 = vmul.f32 %v1515_v15, %v483_v7  ;;  %v507_v15 = vld [vmem:[%s4686_s22 + $0xae8] sm:$0xff] }
 0x17c   : > { %3558 = vst [vmem:[%s4703_s16 + $0x978] sm:$0xff] %v2525_v24  ;;  %v1518_v24 = vadd.f32 2.0, %v486_v16  ;;  %v2548_v29 = vmul.f32 %v1516_v18, %v484_v10  ;;  %v508_v18 = vld [vmem:[%s4686_s22 + $0xaf0] sm:$0xff] }
 0x17d   : > { %3559 = vst [vmem:[%s4703_s16 + $0x980] sm:$0xff] %v2526_v27  ;;  %v1519_v27 = vadd.f32 2.0, %v487_v19  ;;  %v2549_v32 = vmul.f32 %v1517_v21, %v485_v13  ;;  %v509_v21 = vld [vmem:[%s4686_s22 + $0xaf8] sm:$0xff] }
 0x17e   : > { %3560 = vst [vmem:[%s4703_s16 + $0x988] sm:$0xff] %v2527_v30  ;;  %v1520_v30 = vadd.f32 2.0, %v488_v22  ;;  %v2550_v35 = vmul.f32 %v1518_v24, %v486_v16  ;;  %v510_v24 = vld [vmem:[%s4686_s22 + $0xb00] sm:$0xff] }
 0x17f   : > { %3561 = vst [vmem:[%s4703_s16 + $0x990] sm:$0xff] %v2528_v33  ;;  %v1521_v33 = vadd.f32 2.0, %v489_v25  ;;  %v2551_v38 = vmul.f32 %v1519_v27, %v487_v19  ;;  %v511_v27 = vld [vmem:[%s4686_s22 + $0xb08] sm:$0xff] }
 0x180   : > { %3562 = vst [vmem:[%s4703_s16 + $0x998] sm:$0xff] %v2529_v36  ;;  %v1522_v36 = vadd.f32 2.0, %v490_v28  ;;  %v2552_v41 = vmul.f32 %v1520_v30, %v488_v22  ;;  %v512_v30 = vld [vmem:[%s4686_s22 + $0xb10] sm:$0xff] }
 0x181   : > { %3563 = vst [vmem:[%s4703_s16 + $0x9a0] sm:$0xff] %v2530_v39  ;;  %v1523_v39 = vadd.f32 2.0, %v491_v31  ;;  %v2553_v44 = vmul.f32 %v1521_v33, %v489_v25  ;;  %v513_v33 = vld [vmem:[%s4686_s22 + $0xb18] sm:$0xff] }
 0x182   : > { %3564 = vst [vmem:[%s4703_s16 + $0x9a8] sm:$0xff] %v2531_v42  ;;  %v1524_v42 = vadd.f32 2.0, %v492_v34  ;;  %v2554_v47 = vmul.f32 %v1522_v36, %v490_v28  ;;  %v514_v36 = vld [vmem:[%s4686_s22 + $0xb20] sm:$0xff] }
 0x183   : > { %3565 = vst [vmem:[%s4703_s16 + $0x9b0] sm:$0xff] %v2532_v45  ;;  %v1525_v45 = vadd.f32 2.0, %v493_v37  ;;  %v2555_v50 = vmul.f32 %v1523_v39, %v491_v31  ;;  %v515_v39 = vld [vmem:[%s4686_s22 + $0xb28] sm:$0xff] }
 0x184   : > { %3566 = vst.msk [vmem:[%s4703_s16 + $0x9b8] sm:$0xff] %vm3277_vm0, %v2533_v48  ;;  %v1526_v48 = vadd.f32 2.0, %v494_v40  ;;  %v2556_v53 = vmul.f32 %v1524_v42, %v492_v34  ;;  %v516_v42 = vld [vmem:[%s4686_s22 + $0xb30] sm:$0xff] }
 0x185   : > { %3567 = vst [vmem:[%s4703_s16 + $0x9c0] sm:$0xff] %v2534_v51  ;;  %v1527_v51 = vadd.f32 2.0, %v495_v43  ;;  %v2557_v56 = vmul.f32 %v1525_v45, %v493_v37  ;;  %v517_v45 = vld [vmem:[%s4686_s22 + $0xb38] sm:$0xff] }
 0x186   : > { %3568 = vst [vmem:[%s4703_s16 + $0x9c8] sm:$0xff] %v2535_v54  ;;  %v1528_v54 = vadd.f32 2.0, %v496_v46  ;;  %v2558_v59 = vmul.f32 %v1526_v48, %v494_v40  ;;  %v518_v48 = vld [vmem:[%s4686_s22 + $0xb40] sm:$0xff] }
 0x187   : > { %3569 = vst [vmem:[%s4703_s16 + $0x9d0] sm:$0xff] %v2536_v57  ;;  %v1529_v57 = vadd.f32 2.0, %v497_v49  ;;  %v2559_v62 = vmul.f32 %v1527_v51, %v495_v43  ;;  %v519_v51 = vld [vmem:[%s4686_s22 + $0xb48] sm:$0xff] }
 0x188   : > { %3570 = vst [vmem:[%s4703_s16 + $0x9d8] sm:$0xff] %v2537_v60  ;;  %v1530_v60 = vadd.f32 2.0, %v498_v52  ;;  %v2560_v1 = vmul.f32 %v1528_v54, %v496_v46  ;;  %v520_v54 = vld [vmem:[%s4686_s22 + $0xb50] sm:$0xff] }
 0x189   : > { %3571 = vst [vmem:[%s4703_s16 + $0x9e0] sm:$0xff] %v2538_v63  ;;  %v1531_v63 = vadd.f32 2.0, %v499_v55  ;;  %v2561_v4 = vmul.f32 %v1529_v57, %v497_v49  ;;  %v521_v57 = vld [vmem:[%s4686_s22 + $0xb58] sm:$0xff] }
 0x18a   : > { %3572 = vst [vmem:[%s4703_s16 + $0x9e8] sm:$0xff] %v2539_v2  ;;  %v1532_v2 = vadd.f32 2.0, %v500_v58  ;;  %v2562_v7 = vmul.f32 %v1530_v60, %v498_v52  ;;  %v522_v60 = vld [vmem:[%s4686_s22 + $0xb60] sm:$0xff] }
 0x18b   : > { %3573 = vst [vmem:[%s4703_s16 + $0x9f0] sm:$0xff] %v2540_v5  ;;  %v1533_v5 = vadd.f32 2.0, %v501_v61  ;;  %v2563_v10 = vmul.f32 %v1531_v63, %v499_v55  ;;  %v523_v63 = vld [vmem:[%s4686_s22 + $0xb68] sm:$0xff] }
 0x18c   : > { %3574 = vst [vmem:[%s4703_s16 + $0x9f8] sm:$0xff] %v2541_v8  ;;  %v1534_v8 = vadd.f32 2.0, %v502_v0  ;;  %v2564_v13 = vmul.f32 %v1532_v2, %v500_v58  ;;  %v524_v2 = vld [vmem:[%s4686_s22 + $0xb70] sm:$0xff] }
 0x18d   : > { %3575 = vst [vmem:[%s4703_s16 + $0xa00] sm:$0xff] %v2542_v11  ;;  %v1535_v11 = vadd.f32 2.0, %v503_v3  ;;  %v2565_v16 = vmul.f32 %v1533_v5, %v501_v61  ;;  %v525_v5 = vld [vmem:[%s4686_s22 + $0xb78] sm:$0xff] }
 0x18e   : > { %3576 = vst [vmem:[%s4703_s16 + $0xa08] sm:$0xff] %v2543_v14  ;;  %v1536_v14 = vadd.f32 2.0, %v504_v6  ;;  %v2566_v19 = vmul.f32 %v1534_v8, %v502_v0  ;;  %v526_v8 = vld [vmem:[%s4686_s22 + $0xb80] sm:$0xff] }
 0x18f   : > { %3577 = vst [vmem:[%s4703_s16 + $0xa10] sm:$0xff] %v2544_v17  ;;  %v1537_v17 = vadd.f32 2.0, %v505_v9  ;;  %v2567_v22 = vmul.f32 %v1535_v11, %v503_v3  ;;  %v527_v11 = vld [vmem:[%s4686_s22 + $0xb88] sm:$0xff] }
 0x190   : > { %3578 = vst [vmem:[%s4703_s16 + $0xa18] sm:$0xff] %v2545_v20  ;;  %v1538_v20 = vadd.f32 2.0, %v506_v12  ;;  %v2568_v25 = vmul.f32 %v1536_v14, %v504_v6  ;;  %v528_v14 = vld [vmem:[%s4686_s22 + $0xb90] sm:$0xff] }
 0x191   : > { %3579 = vst [vmem:[%s4703_s16 + $0xa20] sm:$0xff] %v2546_v23  ;;  %v1539_v23 = vadd.f32 2.0, %v507_v15  ;;  %v2569_v28 = vmul.f32 %v1537_v17, %v505_v9  ;;  %v529_v17 = vld [vmem:[%s4686_s22 + $0xb98] sm:$0xff] }
 0x192   : > { %3580 = vst [vmem:[%s4703_s16 + $0xa28] sm:$0xff] %v2547_v26  ;;  %v1540_v26 = vadd.f32 2.0, %v508_v18  ;;  %v2570_v31 = vmul.f32 %v1538_v20, %v506_v12  ;;  %v530_v20 = vld [vmem:[%s4686_s22 + $0xba0] sm:$0xff] }
 0x193   : > { %3581 = vst [vmem:[%s4703_s16 + $0xa30] sm:$0xff] %v2548_v29  ;;  %v1541_v29 = vadd.f32 2.0, %v509_v21  ;;  %v2571_v34 = vmul.f32 %v1539_v23, %v507_v15  ;;  %v531_v23 = vld [vmem:[%s4686_s22 + $0xba8] sm:$0xff] }
 0x194   : > { %3582 = vst [vmem:[%s4703_s16 + $0xa38] sm:$0xff] %v2549_v32  ;;  %v1542_v32 = vadd.f32 2.0, %v510_v24  ;;  %v2572_v37 = vmul.f32 %v1540_v26, %v508_v18  ;;  %v532_v26 = vld [vmem:[%s4686_s22 + $0xbb0] sm:$0xff] }
 0x195   : > { %3583 = vst [vmem:[%s4703_s16 + $0xa40] sm:$0xff] %v2550_v35  ;;  %v1543_v35 = vadd.f32 2.0, %v511_v27  ;;  %v2573_v40 = vmul.f32 %v1541_v29, %v509_v21  ;;  %v533_v29 = vld [vmem:[%s4686_s22 + $0xbb8] sm:$0xff] }
 0x196   : > { %3584 = vst [vmem:[%s4703_s16 + $0xa48] sm:$0xff] %v2551_v38  ;;  %v1544_v38 = vadd.f32 2.0, %v512_v30  ;;  %v2574_v43 = vmul.f32 %v1542_v32, %v510_v24  ;;  %v534_v32 = vld [vmem:[%s4686_s22 + $0xbc0] sm:$0xff] }
 0x197   : > { %3585 = vst [vmem:[%s4703_s16 + $0xa50] sm:$0xff] %v2552_v41  ;;  %v1545_v41 = vadd.f32 2.0, %v513_v33  ;;  %v2575_v46 = vmul.f32 %v1543_v35, %v511_v27  ;;  %v535_v35 = vld [vmem:[%s4686_s22 + $0xbc8] sm:$0xff] }
 0x198   : > { %3586 = vst [vmem:[%s4703_s16 + $0xa58] sm:$0xff] %v2553_v44  ;;  %v1546_v44 = vadd.f32 2.0, %v514_v36  ;;  %v2576_v49 = vmul.f32 %v1544_v38, %v512_v30  ;;  %v536_v38 = vld [vmem:[%s4686_s22 + $0xbd0] sm:$0xff] }
 0x199   : > { %3587 = vst [vmem:[%s4703_s16 + $0xa60] sm:$0xff] %v2554_v47  ;;  %v1547_v47 = vadd.f32 2.0, %v515_v39  ;;  %v2577_v52 = vmul.f32 %v1545_v41, %v513_v33  ;;  %v537_v41 = vld [vmem:[%s4686_s22 + $0xbd8] sm:$0xff] }
 0x19a   : > { %3588 = vst [vmem:[%s4703_s16 + $0xa68] sm:$0xff] %v2555_v50  ;;  %v1548_v50 = vadd.f32 2.0, %v516_v42  ;;  %v2578_v55 = vmul.f32 %v1546_v44, %v514_v36  ;;  %v538_v44 = vld [vmem:[%s4686_s22 + $0xbe0] sm:$0xff] }
 0x19b   : > { %3589 = vst [vmem:[%s4703_s16 + $0xa70] sm:$0xff] %v2556_v53  ;;  %v1549_v53 = vadd.f32 2.0, %v517_v45  ;;  %v2579_v58 = vmul.f32 %v1547_v47, %v515_v39  ;;  %v539_v47 = vld [vmem:[%s4686_s22 + $0xbe8] sm:$0xff] }
 0x19c   : > { %3590 = vst.msk [vmem:[%s4703_s16 + $0xa78] sm:$0xff] %vm3277_vm0, %v2557_v56  ;;  %v1550_v56 = vadd.f32 2.0, %v518_v48  ;;  %v2580_v61 = vmul.f32 %v1548_v50, %v516_v42  ;;  %v540_v50 = vld [vmem:[%s4686_s22 + $0xbf0] sm:$0xff] }
 0x19d   : > { %3591 = vst [vmem:[%s4703_s16 + $0xa80] sm:$0xff] %v2558_v59  ;;  %v1551_v59 = vadd.f32 2.0, %v519_v51  ;;  %v2581_v0 = vmul.f32 %v1549_v53, %v517_v45  ;;  %v541_v53 = vld [vmem:[%s4686_s22 + $0xbf8] sm:$0xff] }
 0x19e   : > { %3592 = vst [vmem:[%s4703_s16 + $0xa88] sm:$0xff] %v2559_v62  ;;  %v1552_v62 = vadd.f32 2.0, %v520_v54  ;;  %v2582_v3 = vmul.f32 %v1550_v56, %v518_v48  ;;  %v542_v56 = vld [vmem:[%s4686_s22 + $0xc00] sm:$0xff] }
 0x19f   : > { %3593 = vst [vmem:[%s4703_s16 + $0xa90] sm:$0xff] %v2560_v1  ;;  %v1553_v1 = vadd.f32 2.0, %v521_v57  ;;  %v2583_v6 = vmul.f32 %v1551_v59, %v519_v51  ;;  %v543_v59 = vld [vmem:[%s4686_s22 + $0xc08] sm:$0xff] }
 0x1a0   : > { %3594 = vst [vmem:[%s4703_s16 + $0xa98] sm:$0xff] %v2561_v4  ;;  %v1554_v4 = vadd.f32 2.0, %v522_v60  ;;  %v2584_v9 = vmul.f32 %v1552_v62, %v520_v54  ;;  %v544_v62 = vld [vmem:[%s4686_s22 + $0xc10] sm:$0xff] }
 0x1a1   : > { %3595 = vst [vmem:[%s4703_s16 + $0xaa0] sm:$0xff] %v2562_v7  ;;  %v1555_v7 = vadd.f32 2.0, %v523_v63  ;;  %v2585_v12 = vmul.f32 %v1553_v1, %v521_v57  ;;  %v545_v1 = vld [vmem:[%s4686_s22 + $0xc18] sm:$0xff] }
 0x1a2   : > { %3596 = vst [vmem:[%s4703_s16 + $0xaa8] sm:$0xff] %v2563_v10  ;;  %v1556_v10 = vadd.f32 2.0, %v524_v2  ;;  %v2586_v15 = vmul.f32 %v1554_v4, %v522_v60  ;;  %v546_v4 = vld [vmem:[%s4686_s22 + $0xc20] sm:$0xff] }
 0x1a3   : > { %3597 = vst [vmem:[%s4703_s16 + $0xab0] sm:$0xff] %v2564_v13  ;;  %v1557_v13 = vadd.f32 2.0, %v525_v5  ;;  %v2587_v18 = vmul.f32 %v1555_v7, %v523_v63  ;;  %v547_v7 = vld [vmem:[%s4686_s22 + $0xc28] sm:$0xff] }
 0x1a4   : > { %3598 = vst [vmem:[%s4703_s16 + $0xab8] sm:$0xff] %v2565_v16  ;;  %v1558_v16 = vadd.f32 2.0, %v526_v8  ;;  %v2588_v21 = vmul.f32 %v1556_v10, %v524_v2  ;;  %v548_v10 = vld [vmem:[%s4686_s22 + $0xc30] sm:$0xff] }
 0x1a5   : > { %3599 = vst [vmem:[%s4703_s16 + $0xac0] sm:$0xff] %v2566_v19  ;;  %v1559_v19 = vadd.f32 2.0, %v527_v11  ;;  %v2589_v24 = vmul.f32 %v1557_v13, %v525_v5  ;;  %v549_v13 = vld [vmem:[%s4686_s22 + $0xc38] sm:$0xff] }
 0x1a6   : > { %3600 = vst [vmem:[%s4703_s16 + $0xac8] sm:$0xff] %v2567_v22  ;;  %v1560_v22 = vadd.f32 2.0, %v528_v14  ;;  %v2590_v27 = vmul.f32 %v1558_v16, %v526_v8  ;;  %v550_v16 = vld [vmem:[%s4686_s22 + $0xc40] sm:$0xff] }
 0x1a7   : > { %3601 = vst [vmem:[%s4703_s16 + $0xad0] sm:$0xff] %v2568_v25  ;;  %v1561_v25 = vadd.f32 2.0, %v529_v17  ;;  %v2591_v30 = vmul.f32 %v1559_v19, %v527_v11  ;;  %v551_v19 = vld [vmem:[%s4686_s22 + $0xc48] sm:$0xff] }
 0x1a8   : > { %3602 = vst [vmem:[%s4703_s16 + $0xad8] sm:$0xff] %v2569_v28  ;;  %v1562_v28 = vadd.f32 2.0, %v530_v20  ;;  %v2592_v33 = vmul.f32 %v1560_v22, %v528_v14  ;;  %v552_v22 = vld [vmem:[%s4686_s22 + $0xc50] sm:$0xff] }
 0x1a9   : > { %3603 = vst [vmem:[%s4703_s16 + $0xae0] sm:$0xff] %v2570_v31  ;;  %v1563_v31 = vadd.f32 2.0, %v531_v23  ;;  %v2593_v36 = vmul.f32 %v1561_v25, %v529_v17  ;;  %v553_v25 = vld [vmem:[%s4686_s22 + $0xc58] sm:$0xff] }
 0x1aa   : > { %3604 = vst [vmem:[%s4703_s16 + $0xae8] sm:$0xff] %v2571_v34  ;;  %v1564_v34 = vadd.f32 2.0, %v532_v26  ;;  %v2594_v39 = vmul.f32 %v1562_v28, %v530_v20  ;;  %v554_v28 = vld [vmem:[%s4686_s22 + $0xc60] sm:$0xff] }
 0x1ab   : > { %3605 = vst [vmem:[%s4703_s16 + $0xaf0] sm:$0xff] %v2572_v37  ;;  %v1565_v37 = vadd.f32 2.0, %v533_v29  ;;  %v2595_v42 = vmul.f32 %v1563_v31, %v531_v23  ;;  %v555_v31 = vld [vmem:[%s4686_s22 + $0xc68] sm:$0xff] }
 0x1ac   : > { %3606 = vst [vmem:[%s4703_s16 + $0xaf8] sm:$0xff] %v2573_v40  ;;  %v1566_v40 = vadd.f32 2.0, %v534_v32  ;;  %v2596_v45 = vmul.f32 %v1564_v34, %v532_v26  ;;  %v556_v34 = vld [vmem:[%s4686_s22 + $0xc70] sm:$0xff] }
 0x1ad   : > { %3607 = vst [vmem:[%s4703_s16 + $0xb00] sm:$0xff] %v2574_v43  ;;  %v1567_v43 = vadd.f32 2.0, %v535_v35  ;;  %v2597_v48 = vmul.f32 %v1565_v37, %v533_v29  ;;  %v557_v37 = vld [vmem:[%s4686_s22 + $0xc78] sm:$0xff] }
 0x1ae   : > { %3608 = vst [vmem:[%s4703_s16 + $0xb08] sm:$0xff] %v2575_v46  ;;  %v1568_v46 = vadd.f32 2.0, %v536_v38  ;;  %v2598_v51 = vmul.f32 %v1566_v40, %v534_v32  ;;  %v558_v40 = vld [vmem:[%s4686_s22 + $0xc80] sm:$0xff] }
 0x1af   : > { %3609 = vst [vmem:[%s4703_s16 + $0xb10] sm:$0xff] %v2576_v49  ;;  %v1569_v49 = vadd.f32 2.0, %v537_v41  ;;  %v2599_v54 = vmul.f32 %v1567_v43, %v535_v35  ;;  %v559_v43 = vld [vmem:[%s4686_s22 + $0xc88] sm:$0xff] }
 0x1b0   : > { %3610 = vst [vmem:[%s4703_s16 + $0xb18] sm:$0xff] %v2577_v52  ;;  %v1570_v52 = vadd.f32 2.0, %v538_v44  ;;  %v2600_v57 = vmul.f32 %v1568_v46, %v536_v38  ;;  %v560_v46 = vld [vmem:[%s4686_s22 + $0xc90] sm:$0xff] }
 0x1b1   : > { %3611 = vst [vmem:[%s4703_s16 + $0xb20] sm:$0xff] %v2578_v55  ;;  %v1571_v55 = vadd.f32 2.0, %v539_v47  ;;  %v2601_v60 = vmul.f32 %v1569_v49, %v537_v41  ;;  %v561_v49 = vld [vmem:[%s4686_s22 + $0xc98] sm:$0xff] }
 0x1b2   : > { %3612 = vst [vmem:[%s4703_s16 + $0xb28] sm:$0xff] %v2579_v58  ;;  %v1572_v58 = vadd.f32 2.0, %v540_v50  ;;  %v2602_v63 = vmul.f32 %v1570_v52, %v538_v44  ;;  %v562_v52 = vld [vmem:[%s4686_s22 + $0xca0] sm:$0xff] }
 0x1b3   : > { %3613 = vst [vmem:[%s4703_s16 + $0xb30] sm:$0xff] %v2580_v61  ;;  %v1573_v61 = vadd.f32 2.0, %v541_v53  ;;  %v2603_v2 = vmul.f32 %v1571_v55, %v539_v47  ;;  %v563_v55 = vld [vmem:[%s4686_s22 + $0xca8] sm:$0xff] }
 0x1b4   : > { %3614 = vst.msk [vmem:[%s4703_s16 + $0xb38] sm:$0xff] %vm3277_vm0, %v2581_v0  ;;  %v1574_v0 = vadd.f32 2.0, %v542_v56  ;;  %v2604_v5 = vmul.f32 %v1572_v58, %v540_v50  ;;  %v564_v58 = vld [vmem:[%s4686_s22 + $0xcb0] sm:$0xff] }
 0x1b5   : > { %3615 = vst [vmem:[%s4703_s16 + $0xb40] sm:$0xff] %v2582_v3  ;;  %v1575_v3 = vadd.f32 2.0, %v543_v59  ;;  %v2605_v8 = vmul.f32 %v1573_v61, %v541_v53  ;;  %v565_v61 = vld [vmem:[%s4686_s22 + $0xcb8] sm:$0xff] }
 0x1b6   : > { %3616 = vst [vmem:[%s4703_s16 + $0xb48] sm:$0xff] %v2583_v6  ;;  %v1576_v6 = vadd.f32 2.0, %v544_v62  ;;  %v2606_v11 = vmul.f32 %v1574_v0, %v542_v56  ;;  %v566_v0 = vld [vmem:[%s4686_s22 + $0xcc0] sm:$0xff] }
 0x1b7   : > { %3617 = vst [vmem:[%s4703_s16 + $0xb50] sm:$0xff] %v2584_v9  ;;  %v1577_v9 = vadd.f32 2.0, %v545_v1  ;;  %v2607_v14 = vmul.f32 %v1575_v3, %v543_v59  ;;  %v567_v3 = vld [vmem:[%s4686_s22 + $0xcc8] sm:$0xff] }
 0x1b8   : > { %3618 = vst [vmem:[%s4703_s16 + $0xb58] sm:$0xff] %v2585_v12  ;;  %v1578_v12 = vadd.f32 2.0, %v546_v4  ;;  %v2608_v17 = vmul.f32 %v1576_v6, %v544_v62  ;;  %v568_v6 = vld [vmem:[%s4686_s22 + $0xcd0] sm:$0xff] }
 0x1b9   : > { %3619 = vst [vmem:[%s4703_s16 + $0xb60] sm:$0xff] %v2586_v15  ;;  %v1579_v15 = vadd.f32 2.0, %v547_v7  ;;  %v2609_v20 = vmul.f32 %v1577_v9, %v545_v1  ;;  %v569_v9 = vld [vmem:[%s4686_s22 + $0xcd8] sm:$0xff] }
 0x1ba   : > { %3620 = vst [vmem:[%s4703_s16 + $0xb68] sm:$0xff] %v2587_v18  ;;  %v1580_v18 = vadd.f32 2.0, %v548_v10  ;;  %v2610_v23 = vmul.f32 %v1578_v12, %v546_v4  ;;  %v570_v12 = vld [vmem:[%s4686_s22 + $0xce0] sm:$0xff] }
 0x1bb   : > { %3621 = vst [vmem:[%s4703_s16 + $0xb70] sm:$0xff] %v2588_v21  ;;  %v1581_v21 = vadd.f32 2.0, %v549_v13  ;;  %v2611_v26 = vmul.f32 %v1579_v15, %v547_v7  ;;  %v571_v15 = vld [vmem:[%s4686_s22 + $0xce8] sm:$0xff] }
 0x1bc   : > { %3622 = vst [vmem:[%s4703_s16 + $0xb78] sm:$0xff] %v2589_v24  ;;  %v1582_v24 = vadd.f32 2.0, %v550_v16  ;;  %v2612_v29 = vmul.f32 %v1580_v18, %v548_v10  ;;  %v572_v18 = vld [vmem:[%s4686_s22 + $0xcf0] sm:$0xff] }
 0x1bd   : > { %3623 = vst [vmem:[%s4703_s16 + $0xb80] sm:$0xff] %v2590_v27  ;;  %v1583_v27 = vadd.f32 2.0, %v551_v19  ;;  %v2613_v32 = vmul.f32 %v1581_v21, %v549_v13  ;;  %v573_v21 = vld [vmem:[%s4686_s22 + $0xcf8] sm:$0xff] }
 0x1be   : > { %3624 = vst [vmem:[%s4703_s16 + $0xb88] sm:$0xff] %v2591_v30  ;;  %v1584_v30 = vadd.f32 2.0, %v552_v22  ;;  %v2614_v35 = vmul.f32 %v1582_v24, %v550_v16  ;;  %v574_v24 = vld [vmem:[%s4686_s22 + $0xd00] sm:$0xff] }
 0x1bf   : > { %3625 = vst [vmem:[%s4703_s16 + $0xb90] sm:$0xff] %v2592_v33  ;;  %v1585_v33 = vadd.f32 2.0, %v553_v25  ;;  %v2615_v38 = vmul.f32 %v1583_v27, %v551_v19  ;;  %v575_v27 = vld [vmem:[%s4686_s22 + $0xd08] sm:$0xff] }
 0x1c0   : > { %3626 = vst [vmem:[%s4703_s16 + $0xb98] sm:$0xff] %v2593_v36  ;;  %v1586_v36 = vadd.f32 2.0, %v554_v28  ;;  %v2616_v41 = vmul.f32 %v1584_v30, %v552_v22  ;;  %v576_v30 = vld [vmem:[%s4686_s22 + $0xd10] sm:$0xff] }
 0x1c1   : > { %3627 = vst [vmem:[%s4703_s16 + $0xba0] sm:$0xff] %v2594_v39  ;;  %v1587_v39 = vadd.f32 2.0, %v555_v31  ;;  %v2617_v44 = vmul.f32 %v1585_v33, %v553_v25  ;;  %v577_v33 = vld [vmem:[%s4686_s22 + $0xd18] sm:$0xff] }
 0x1c2   : > { %3628 = vst [vmem:[%s4703_s16 + $0xba8] sm:$0xff] %v2595_v42  ;;  %v1588_v42 = vadd.f32 2.0, %v556_v34  ;;  %v2618_v47 = vmul.f32 %v1586_v36, %v554_v28  ;;  %v578_v36 = vld [vmem:[%s4686_s22 + $0xd20] sm:$0xff] }
 0x1c3   : > { %3629 = vst [vmem:[%s4703_s16 + $0xbb0] sm:$0xff] %v2596_v45  ;;  %v1589_v45 = vadd.f32 2.0, %v557_v37  ;;  %v2619_v50 = vmul.f32 %v1587_v39, %v555_v31  ;;  %v579_v39 = vld [vmem:[%s4686_s22 + $0xd28] sm:$0xff] }
 0x1c4   : > { %3630 = vst [vmem:[%s4703_s16 + $0xbb8] sm:$0xff] %v2597_v48  ;;  %v1590_v48 = vadd.f32 2.0, %v558_v40  ;;  %v2620_v53 = vmul.f32 %v1588_v42, %v556_v34  ;;  %v580_v42 = vld [vmem:[%s4686_s22 + $0xd30] sm:$0xff] }
 0x1c5   : > { %3631 = vst [vmem:[%s4703_s16 + $0xbc0] sm:$0xff] %v2598_v51  ;;  %v1591_v51 = vadd.f32 2.0, %v559_v43  ;;  %v2621_v56 = vmul.f32 %v1589_v45, %v557_v37  ;;  %v581_v45 = vld [vmem:[%s4686_s22 + $0xd38] sm:$0xff] }
 0x1c6   : > { %3632 = vst [vmem:[%s4703_s16 + $0xbc8] sm:$0xff] %v2599_v54  ;;  %v1592_v54 = vadd.f32 2.0, %v560_v46  ;;  %v2622_v59 = vmul.f32 %v1590_v48, %v558_v40  ;;  %v582_v48 = vld [vmem:[%s4686_s22 + $0xd40] sm:$0xff] }
 0x1c7   : > { %3633 = vst [vmem:[%s4703_s16 + $0xbd0] sm:$0xff] %v2600_v57  ;;  %v1593_v57 = vadd.f32 2.0, %v561_v49  ;;  %v2623_v62 = vmul.f32 %v1591_v51, %v559_v43  ;;  %v583_v51 = vld [vmem:[%s4686_s22 + $0xd48] sm:$0xff] }
 0x1c8   : > { %3634 = vst [vmem:[%s4703_s16 + $0xbd8] sm:$0xff] %v2601_v60  ;;  %v1594_v60 = vadd.f32 2.0, %v562_v52  ;;  %v2624_v1 = vmul.f32 %v1592_v54, %v560_v46  ;;  %v584_v54 = vld [vmem:[%s4686_s22 + $0xd50] sm:$0xff] }
 0x1c9   : > { %3635 = vst [vmem:[%s4703_s16 + $0xbe0] sm:$0xff] %v2602_v63  ;;  %v1595_v63 = vadd.f32 2.0, %v563_v55  ;;  %v2625_v4 = vmul.f32 %v1593_v57, %v561_v49  ;;  %v585_v57 = vld [vmem:[%s4686_s22 + $0xd58] sm:$0xff] }
 0x1ca   : > { %3636 = vst [vmem:[%s4703_s16 + $0xbe8] sm:$0xff] %v2603_v2  ;;  %v1596_v2 = vadd.f32 2.0, %v564_v58  ;;  %v2626_v7 = vmul.f32 %v1594_v60, %v562_v52  ;;  %v586_v60 = vld [vmem:[%s4686_s22 + $0xd60] sm:$0xff] }
 0x1cb   : > { %3637 = vst [vmem:[%s4703_s16 + $0xbf0] sm:$0xff] %v2604_v5  ;;  %v1597_v5 = vadd.f32 2.0, %v565_v61  ;;  %v2627_v10 = vmul.f32 %v1595_v63, %v563_v55  ;;  %v587_v63 = vld [vmem:[%s4686_s22 + $0xd68] sm:$0xff] }
 0x1cc   : > { %3638 = vst.msk [vmem:[%s4703_s16 + $0xbf8] sm:$0xff] %vm3277_vm0, %v2605_v8  ;;  %v1598_v8 = vadd.f32 2.0, %v566_v0  ;;  %v2628_v13 = vmul.f32 %v1596_v2, %v564_v58  ;;  %v588_v2 = vld [vmem:[%s4686_s22 + $0xd70] sm:$0xff] }
 0x1cd   : > { %3639 = vst [vmem:[%s4703_s16 + $0xc00] sm:$0xff] %v2606_v11  ;;  %v1599_v11 = vadd.f32 2.0, %v567_v3  ;;  %v2629_v16 = vmul.f32 %v1597_v5, %v565_v61  ;;  %v589_v5 = vld [vmem:[%s4686_s22 + $0xd78] sm:$0xff] }
 0x1ce   : > { %3640 = vst [vmem:[%s4703_s16 + $0xc08] sm:$0xff] %v2607_v14  ;;  %v1600_v14 = vadd.f32 2.0, %v568_v6  ;;  %v2630_v19 = vmul.f32 %v1598_v8, %v566_v0  ;;  %v590_v8 = vld [vmem:[%s4686_s22 + $0xd80] sm:$0xff] }
 0x1cf   : > { %3641 = vst [vmem:[%s4703_s16 + $0xc10] sm:$0xff] %v2608_v17  ;;  %v1601_v17 = vadd.f32 2.0, %v569_v9  ;;  %v2631_v22 = vmul.f32 %v1599_v11, %v567_v3  ;;  %v591_v11 = vld [vmem:[%s4686_s22 + $0xd88] sm:$0xff] }
 0x1d0   : > { %3642 = vst [vmem:[%s4703_s16 + $0xc18] sm:$0xff] %v2609_v20  ;;  %v1602_v20 = vadd.f32 2.0, %v570_v12  ;;  %v2632_v25 = vmul.f32 %v1600_v14, %v568_v6  ;;  %v592_v14 = vld [vmem:[%s4686_s22 + $0xd90] sm:$0xff] }
 0x1d1   : > { %3643 = vst [vmem:[%s4703_s16 + $0xc20] sm:$0xff] %v2610_v23  ;;  %v1603_v23 = vadd.f32 2.0, %v571_v15  ;;  %v2633_v28 = vmul.f32 %v1601_v17, %v569_v9  ;;  %v593_v17 = vld [vmem:[%s4686_s22 + $0xd98] sm:$0xff] }
 0x1d2   : > { %3644 = vst [vmem:[%s4703_s16 + $0xc28] sm:$0xff] %v2611_v26  ;;  %v1604_v26 = vadd.f32 2.0, %v572_v18  ;;  %v2634_v31 = vmul.f32 %v1602_v20, %v570_v12  ;;  %v594_v20 = vld [vmem:[%s4686_s22 + $0xda0] sm:$0xff] }
 0x1d3   : > { %3645 = vst [vmem:[%s4703_s16 + $0xc30] sm:$0xff] %v2612_v29  ;;  %v1605_v29 = vadd.f32 2.0, %v573_v21  ;;  %v2635_v34 = vmul.f32 %v1603_v23, %v571_v15  ;;  %v595_v23 = vld [vmem:[%s4686_s22 + $0xda8] sm:$0xff] }
 0x1d4   : > { %3646 = vst [vmem:[%s4703_s16 + $0xc38] sm:$0xff] %v2613_v32  ;;  %v1606_v32 = vadd.f32 2.0, %v574_v24  ;;  %v2636_v37 = vmul.f32 %v1604_v26, %v572_v18  ;;  %v596_v26 = vld [vmem:[%s4686_s22 + $0xdb0] sm:$0xff] }
 0x1d5   : > { %3647 = vst [vmem:[%s4703_s16 + $0xc40] sm:$0xff] %v2614_v35  ;;  %v1607_v35 = vadd.f32 2.0, %v575_v27  ;;  %v2637_v40 = vmul.f32 %v1605_v29, %v573_v21  ;;  %v597_v29 = vld [vmem:[%s4686_s22 + $0xdb8] sm:$0xff] }
 0x1d6   : > { %3648 = vst [vmem:[%s4703_s16 + $0xc48] sm:$0xff] %v2615_v38  ;;  %v1608_v38 = vadd.f32 2.0, %v576_v30  ;;  %v2638_v43 = vmul.f32 %v1606_v32, %v574_v24  ;;  %v598_v32 = vld [vmem:[%s4686_s22 + $0xdc0] sm:$0xff] }
 0x1d7   : > { %3649 = vst [vmem:[%s4703_s16 + $0xc50] sm:$0xff] %v2616_v41  ;;  %v1609_v41 = vadd.f32 2.0, %v577_v33  ;;  %v2639_v46 = vmul.f32 %v1607_v35, %v575_v27  ;;  %v599_v35 = vld [vmem:[%s4686_s22 + $0xdc8] sm:$0xff] }
 0x1d8   : > { %3650 = vst [vmem:[%s4703_s16 + $0xc58] sm:$0xff] %v2617_v44  ;;  %v1610_v44 = vadd.f32 2.0, %v578_v36  ;;  %v2640_v49 = vmul.f32 %v1608_v38, %v576_v30  ;;  %v600_v38 = vld [vmem:[%s4686_s22 + $0xdd0] sm:$0xff] }
 0x1d9   : > { %3651 = vst [vmem:[%s4703_s16 + $0xc60] sm:$0xff] %v2618_v47  ;;  %v1611_v47 = vadd.f32 2.0, %v579_v39  ;;  %v2641_v52 = vmul.f32 %v1609_v41, %v577_v33  ;;  %v601_v41 = vld [vmem:[%s4686_s22 + $0xdd8] sm:$0xff] }
 0x1da   : > { %3652 = vst [vmem:[%s4703_s16 + $0xc68] sm:$0xff] %v2619_v50  ;;  %v1612_v50 = vadd.f32 2.0, %v580_v42  ;;  %v2642_v55 = vmul.f32 %v1610_v44, %v578_v36  ;;  %v602_v44 = vld [vmem:[%s4686_s22 + $0xde0] sm:$0xff] }
 0x1db   : > { %3653 = vst [vmem:[%s4703_s16 + $0xc70] sm:$0xff] %v2620_v53  ;;  %v1613_v53 = vadd.f32 2.0, %v581_v45  ;;  %v2643_v58 = vmul.f32 %v1611_v47, %v579_v39  ;;  %v603_v47 = vld [vmem:[%s4686_s22 + $0xde8] sm:$0xff] }
 0x1dc   : > { %3654 = vst [vmem:[%s4703_s16 + $0xc78] sm:$0xff] %v2621_v56  ;;  %v1614_v56 = vadd.f32 2.0, %v582_v48  ;;  %v2644_v61 = vmul.f32 %v1612_v50, %v580_v42  ;;  %v604_v50 = vld [vmem:[%s4686_s22 + $0xdf0] sm:$0xff] }
 0x1dd   : > { %3655 = vst [vmem:[%s4703_s16 + $0xc80] sm:$0xff] %v2622_v59  ;;  %v1615_v59 = vadd.f32 2.0, %v583_v51  ;;  %v2645_v0 = vmul.f32 %v1613_v53, %v581_v45  ;;  %v605_v53 = vld [vmem:[%s4686_s22 + $0xdf8] sm:$0xff] }
 0x1de   : > { %3656 = vst [vmem:[%s4703_s16 + $0xc88] sm:$0xff] %v2623_v62  ;;  %v1616_v62 = vadd.f32 2.0, %v584_v54  ;;  %v2646_v3 = vmul.f32 %v1614_v56, %v582_v48  ;;  %v606_v56 = vld [vmem:[%s4686_s22 + $0xe00] sm:$0xff] }
 0x1df   : > { %3657 = vst [vmem:[%s4703_s16 + $0xc90] sm:$0xff] %v2624_v1  ;;  %v1617_v1 = vadd.f32 2.0, %v585_v57  ;;  %v2647_v6 = vmul.f32 %v1615_v59, %v583_v51  ;;  %v607_v59 = vld [vmem:[%s4686_s22 + $0xe08] sm:$0xff] }
 0x1e0   : > { %3658 = vst [vmem:[%s4703_s16 + $0xc98] sm:$0xff] %v2625_v4  ;;  %v1618_v4 = vadd.f32 2.0, %v586_v60  ;;  %v2648_v9 = vmul.f32 %v1616_v62, %v584_v54  ;;  %v608_v62 = vld [vmem:[%s4686_s22 + $0xe10] sm:$0xff] }
 0x1e1   : > { %3659 = vst [vmem:[%s4703_s16 + $0xca0] sm:$0xff] %v2626_v7  ;;  %v1619_v7 = vadd.f32 2.0, %v587_v63  ;;  %v2649_v12 = vmul.f32 %v1617_v1, %v585_v57  ;;  %v609_v1 = vld [vmem:[%s4686_s22 + $0xe18] sm:$0xff] }
 0x1e2   : > { %3660 = vst [vmem:[%s4703_s16 + $0xca8] sm:$0xff] %v2627_v10  ;;  %v1620_v10 = vadd.f32 2.0, %v588_v2  ;;  %v2650_v15 = vmul.f32 %v1618_v4, %v586_v60  ;;  %v610_v4 = vld [vmem:[%s4686_s22 + $0xe20] sm:$0xff] }
 0x1e3   : > { %3661 = vst [vmem:[%s4703_s16 + $0xcb0] sm:$0xff] %v2628_v13  ;;  %v1621_v13 = vadd.f32 2.0, %v589_v5  ;;  %v2651_v18 = vmul.f32 %v1619_v7, %v587_v63  ;;  %v611_v7 = vld [vmem:[%s4686_s22 + $0xe28] sm:$0xff] }
 0x1e4   : > { %3662 = vst.msk [vmem:[%s4703_s16 + $0xcb8] sm:$0xff] %vm3277_vm0, %v2629_v16  ;;  %v1622_v16 = vadd.f32 2.0, %v590_v8  ;;  %v2652_v21 = vmul.f32 %v1620_v10, %v588_v2  ;;  %v612_v10 = vld [vmem:[%s4686_s22 + $0xe30] sm:$0xff] }
 0x1e5   : > { %3663 = vst [vmem:[%s4703_s16 + $0xcc0] sm:$0xff] %v2630_v19  ;;  %v1623_v19 = vadd.f32 2.0, %v591_v11  ;;  %v2653_v24 = vmul.f32 %v1621_v13, %v589_v5  ;;  %v613_v13 = vld [vmem:[%s4686_s22 + $0xe38] sm:$0xff] }
 0x1e6   : > { %3664 = vst [vmem:[%s4703_s16 + $0xcc8] sm:$0xff] %v2631_v22  ;;  %v1624_v22 = vadd.f32 2.0, %v592_v14  ;;  %v2654_v27 = vmul.f32 %v1622_v16, %v590_v8  ;;  %v614_v16 = vld [vmem:[%s4686_s22 + $0xe40] sm:$0xff] }
 0x1e7   : > { %3665 = vst [vmem:[%s4703_s16 + $0xcd0] sm:$0xff] %v2632_v25  ;;  %v1625_v25 = vadd.f32 2.0, %v593_v17  ;;  %v2655_v30 = vmul.f32 %v1623_v19, %v591_v11  ;;  %v615_v19 = vld [vmem:[%s4686_s22 + $0xe48] sm:$0xff] }
 0x1e8   : > { %3666 = vst [vmem:[%s4703_s16 + $0xcd8] sm:$0xff] %v2633_v28  ;;  %v1626_v28 = vadd.f32 2.0, %v594_v20  ;;  %v2656_v33 = vmul.f32 %v1624_v22, %v592_v14  ;;  %v616_v22 = vld [vmem:[%s4686_s22 + $0xe50] sm:$0xff] }
 0x1e9   : > { %3667 = vst [vmem:[%s4703_s16 + $0xce0] sm:$0xff] %v2634_v31  ;;  %v1627_v31 = vadd.f32 2.0, %v595_v23  ;;  %v2657_v36 = vmul.f32 %v1625_v25, %v593_v17  ;;  %v617_v25 = vld [vmem:[%s4686_s22 + $0xe58] sm:$0xff] }
 0x1ea   : > { %3668 = vst [vmem:[%s4703_s16 + $0xce8] sm:$0xff] %v2635_v34  ;;  %v1628_v34 = vadd.f32 2.0, %v596_v26  ;;  %v2658_v39 = vmul.f32 %v1626_v28, %v594_v20  ;;  %v618_v28 = vld [vmem:[%s4686_s22 + $0xe60] sm:$0xff] }
 0x1eb   : > { %3669 = vst [vmem:[%s4703_s16 + $0xcf0] sm:$0xff] %v2636_v37  ;;  %v1629_v37 = vadd.f32 2.0, %v597_v29  ;;  %v2659_v42 = vmul.f32 %v1627_v31, %v595_v23  ;;  %v619_v31 = vld [vmem:[%s4686_s22 + $0xe68] sm:$0xff] }
 0x1ec   : > { %3670 = vst [vmem:[%s4703_s16 + $0xcf8] sm:$0xff] %v2637_v40  ;;  %v1630_v40 = vadd.f32 2.0, %v598_v32  ;;  %v2660_v45 = vmul.f32 %v1628_v34, %v596_v26  ;;  %v620_v34 = vld [vmem:[%s4686_s22 + $0xe70] sm:$0xff] }
 0x1ed   : > { %3671 = vst [vmem:[%s4703_s16 + $0xd00] sm:$0xff] %v2638_v43  ;;  %v1631_v43 = vadd.f32 2.0, %v599_v35  ;;  %v2661_v48 = vmul.f32 %v1629_v37, %v597_v29  ;;  %v621_v37 = vld [vmem:[%s4686_s22 + $0xe78] sm:$0xff] }
 0x1ee   : > { %3672 = vst [vmem:[%s4703_s16 + $0xd08] sm:$0xff] %v2639_v46  ;;  %v1632_v46 = vadd.f32 2.0, %v600_v38  ;;  %v2662_v51 = vmul.f32 %v1630_v40, %v598_v32  ;;  %v622_v40 = vld [vmem:[%s4686_s22 + $0xe80] sm:$0xff] }
 0x1ef   : > { %3673 = vst [vmem:[%s4703_s16 + $0xd10] sm:$0xff] %v2640_v49  ;;  %v1633_v49 = vadd.f32 2.0, %v601_v41  ;;  %v2663_v54 = vmul.f32 %v1631_v43, %v599_v35  ;;  %v623_v43 = vld [vmem:[%s4686_s22 + $0xe88] sm:$0xff] }
 0x1f0   : > { %3674 = vst [vmem:[%s4703_s16 + $0xd18] sm:$0xff] %v2641_v52  ;;  %v1634_v52 = vadd.f32 2.0, %v602_v44  ;;  %v2664_v57 = vmul.f32 %v1632_v46, %v600_v38  ;;  %v624_v46 = vld [vmem:[%s4686_s22 + $0xe90] sm:$0xff] }
 0x1f1   : > { %3675 = vst [vmem:[%s4703_s16 + $0xd20] sm:$0xff] %v2642_v55  ;;  %v1635_v55 = vadd.f32 2.0, %v603_v47  ;;  %v2665_v60 = vmul.f32 %v1633_v49, %v601_v41  ;;  %v625_v49 = vld [vmem:[%s4686_s22 + $0xe98] sm:$0xff] }
 0x1f2   : > { %3676 = vst [vmem:[%s4703_s16 + $0xd28] sm:$0xff] %v2643_v58  ;;  %v1636_v58 = vadd.f32 2.0, %v604_v50  ;;  %v2666_v63 = vmul.f32 %v1634_v52, %v602_v44  ;;  %v626_v52 = vld [vmem:[%s4686_s22 + $0xea0] sm:$0xff] }
 0x1f3   : > { %3677 = vst [vmem:[%s4703_s16 + $0xd30] sm:$0xff] %v2644_v61  ;;  %v1637_v61 = vadd.f32 2.0, %v605_v53  ;;  %v2667_v2 = vmul.f32 %v1635_v55, %v603_v47  ;;  %v627_v55 = vld [vmem:[%s4686_s22 + $0xea8] sm:$0xff] }
 0x1f4   : > { %3678 = vst [vmem:[%s4703_s16 + $0xd38] sm:$0xff] %v2645_v0  ;;  %v1638_v0 = vadd.f32 2.0, %v606_v56  ;;  %v2668_v5 = vmul.f32 %v1636_v58, %v604_v50  ;;  %v628_v58 = vld [vmem:[%s4686_s22 + $0xeb0] sm:$0xff] }
 0x1f5   : > { %3679 = vst [vmem:[%s4703_s16 + $0xd40] sm:$0xff] %v2646_v3  ;;  %v1639_v3 = vadd.f32 2.0, %v607_v59  ;;  %v2669_v8 = vmul.f32 %v1637_v61, %v605_v53  ;;  %v629_v61 = vld [vmem:[%s4686_s22 + $0xeb8] sm:$0xff] }
 0x1f6   : > { %3680 = vst [vmem:[%s4703_s16 + $0xd48] sm:$0xff] %v2647_v6  ;;  %v1640_v6 = vadd.f32 2.0, %v608_v62  ;;  %v2670_v11 = vmul.f32 %v1638_v0, %v606_v56  ;;  %v630_v0 = vld [vmem:[%s4686_s22 + $0xec0] sm:$0xff] }
 0x1f7   : > { %3681 = vst [vmem:[%s4703_s16 + $0xd50] sm:$0xff] %v2648_v9  ;;  %v1641_v9 = vadd.f32 2.0, %v609_v1  ;;  %v2671_v14 = vmul.f32 %v1639_v3, %v607_v59  ;;  %v631_v3 = vld [vmem:[%s4686_s22 + $0xec8] sm:$0xff] }
 0x1f8   : > { %3682 = vst [vmem:[%s4703_s16 + $0xd58] sm:$0xff] %v2649_v12  ;;  %v1642_v12 = vadd.f32 2.0, %v610_v4  ;;  %v2672_v17 = vmul.f32 %v1640_v6, %v608_v62  ;;  %v632_v6 = vld [vmem:[%s4686_s22 + $0xed0] sm:$0xff] }
 0x1f9   : > { %3683 = vst [vmem:[%s4703_s16 + $0xd60] sm:$0xff] %v2650_v15  ;;  %v1643_v15 = vadd.f32 2.0, %v611_v7  ;;  %v2673_v20 = vmul.f32 %v1641_v9, %v609_v1  ;;  %v633_v9 = vld [vmem:[%s4686_s22 + $0xed8] sm:$0xff] }
 0x1fa   : > { %3684 = vst [vmem:[%s4703_s16 + $0xd68] sm:$0xff] %v2651_v18  ;;  %v1644_v18 = vadd.f32 2.0, %v612_v10  ;;  %v2674_v23 = vmul.f32 %v1642_v12, %v610_v4  ;;  %v634_v12 = vld [vmem:[%s4686_s22 + $0xee0] sm:$0xff] }
 0x1fb   : > { %3685 = vst [vmem:[%s4703_s16 + $0xd70] sm:$0xff] %v2652_v21  ;;  %v1645_v21 = vadd.f32 2.0, %v613_v13  ;;  %v2675_v26 = vmul.f32 %v1643_v15, %v611_v7  ;;  %v635_v15 = vld [vmem:[%s4686_s22 + $0xee8] sm:$0xff] }
 0x1fc   : > { %3686 = vst.msk [vmem:[%s4703_s16 + $0xd78] sm:$0xff] %vm3277_vm0, %v2653_v24  ;;  %v1646_v24 = vadd.f32 2.0, %v614_v16  ;;  %v2676_v29 = vmul.f32 %v1644_v18, %v612_v10  ;;  %v636_v18 = vld [vmem:[%s4686_s22 + $0xef0] sm:$0xff] }
 0x1fd   : > { %3687 = vst [vmem:[%s4703_s16 + $0xd80] sm:$0xff] %v2654_v27  ;;  %v1647_v27 = vadd.f32 2.0, %v615_v19  ;;  %v2677_v32 = vmul.f32 %v1645_v21, %v613_v13  ;;  %v637_v21 = vld [vmem:[%s4686_s22 + $0xef8] sm:$0xff] }
 0x1fe   : > { %3688 = vst [vmem:[%s4703_s16 + $0xd88] sm:$0xff] %v2655_v30  ;;  %v1648_v30 = vadd.f32 2.0, %v616_v22  ;;  %v2678_v35 = vmul.f32 %v1646_v24, %v614_v16  ;;  %v638_v24 = vld [vmem:[%s4686_s22 + $0xf00] sm:$0xff] }
 0x1ff   : > { %3689 = vst [vmem:[%s4703_s16 + $0xd90] sm:$0xff] %v2656_v33  ;;  %v1649_v33 = vadd.f32 2.0, %v617_v25  ;;  %v2679_v38 = vmul.f32 %v1647_v27, %v615_v19  ;;  %v639_v27 = vld [vmem:[%s4686_s22 + $0xf08] sm:$0xff] }
 0x200   : > { %3690 = vst [vmem:[%s4703_s16 + $0xd98] sm:$0xff] %v2657_v36  ;;  %v1650_v36 = vadd.f32 2.0, %v618_v28  ;;  %v2680_v41 = vmul.f32 %v1648_v30, %v616_v22  ;;  %v640_v30 = vld [vmem:[%s4686_s22 + $0xf10] sm:$0xff] }
 0x201   : > { %3691 = vst [vmem:[%s4703_s16 + $0xda0] sm:$0xff] %v2658_v39  ;;  %v1651_v39 = vadd.f32 2.0, %v619_v31  ;;  %v2681_v44 = vmul.f32 %v1649_v33, %v617_v25  ;;  %v641_v33 = vld [vmem:[%s4686_s22 + $0xf18] sm:$0xff] }
 0x202   : > { %3692 = vst [vmem:[%s4703_s16 + $0xda8] sm:$0xff] %v2659_v42  ;;  %v1652_v42 = vadd.f32 2.0, %v620_v34  ;;  %v2682_v47 = vmul.f32 %v1650_v36, %v618_v28  ;;  %v642_v36 = vld [vmem:[%s4686_s22 + $0xf20] sm:$0xff] }
 0x203   : > { %3693 = vst [vmem:[%s4703_s16 + $0xdb0] sm:$0xff] %v2660_v45  ;;  %v1653_v45 = vadd.f32 2.0, %v621_v37  ;;  %v2683_v50 = vmul.f32 %v1651_v39, %v619_v31  ;;  %v643_v39 = vld [vmem:[%s4686_s22 + $0xf28] sm:$0xff] }
 0x204   : > { %3694 = vst [vmem:[%s4703_s16 + $0xdb8] sm:$0xff] %v2661_v48  ;;  %v1654_v48 = vadd.f32 2.0, %v622_v40  ;;  %v2684_v53 = vmul.f32 %v1652_v42, %v620_v34  ;;  %v644_v42 = vld [vmem:[%s4686_s22 + $0xf30] sm:$0xff] }
 0x205   : > { %3695 = vst [vmem:[%s4703_s16 + $0xdc0] sm:$0xff] %v2662_v51  ;;  %v1655_v51 = vadd.f32 2.0, %v623_v43  ;;  %v2685_v56 = vmul.f32 %v1653_v45, %v621_v37  ;;  %v645_v45 = vld [vmem:[%s4686_s22 + $0xf38] sm:$0xff] }
 0x206   : > { %3696 = vst [vmem:[%s4703_s16 + $0xdc8] sm:$0xff] %v2663_v54  ;;  %v1656_v54 = vadd.f32 2.0, %v624_v46  ;;  %v2686_v59 = vmul.f32 %v1654_v48, %v622_v40  ;;  %v646_v48 = vld [vmem:[%s4686_s22 + $0xf40] sm:$0xff] }
 0x207   : > { %3697 = vst [vmem:[%s4703_s16 + $0xdd0] sm:$0xff] %v2664_v57  ;;  %v1657_v57 = vadd.f32 2.0, %v625_v49  ;;  %v2687_v62 = vmul.f32 %v1655_v51, %v623_v43  ;;  %v647_v51 = vld [vmem:[%s4686_s22 + $0xf48] sm:$0xff] }
 0x208   : > { %3698 = vst [vmem:[%s4703_s16 + $0xdd8] sm:$0xff] %v2665_v60  ;;  %v1658_v60 = vadd.f32 2.0, %v626_v52  ;;  %v2688_v1 = vmul.f32 %v1656_v54, %v624_v46  ;;  %v648_v54 = vld [vmem:[%s4686_s22 + $0xf50] sm:$0xff] }
 0x209   : > { %3699 = vst [vmem:[%s4703_s16 + $0xde0] sm:$0xff] %v2666_v63  ;;  %v1659_v63 = vadd.f32 2.0, %v627_v55  ;;  %v2689_v4 = vmul.f32 %v1657_v57, %v625_v49  ;;  %v649_v57 = vld [vmem:[%s4686_s22 + $0xf58] sm:$0xff] }
 0x20a   : > { %3700 = vst [vmem:[%s4703_s16 + $0xde8] sm:$0xff] %v2667_v2  ;;  %v1660_v2 = vadd.f32 2.0, %v628_v58  ;;  %v2690_v7 = vmul.f32 %v1658_v60, %v626_v52  ;;  %v650_v60 = vld [vmem:[%s4686_s22 + $0xf60] sm:$0xff] }
 0x20b   : > { %3701 = vst [vmem:[%s4703_s16 + $0xdf0] sm:$0xff] %v2668_v5  ;;  %v1661_v5 = vadd.f32 2.0, %v629_v61  ;;  %v2691_v10 = vmul.f32 %v1659_v63, %v627_v55  ;;  %v651_v63 = vld [vmem:[%s4686_s22 + $0xf68] sm:$0xff] }
 0x20c   : > { %3702 = vst [vmem:[%s4703_s16 + $0xdf8] sm:$0xff] %v2669_v8  ;;  %v1662_v8 = vadd.f32 2.0, %v630_v0  ;;  %v2692_v13 = vmul.f32 %v1660_v2, %v628_v58  ;;  %v652_v2 = vld [vmem:[%s4686_s22 + $0xf70] sm:$0xff] }
 0x20d   : > { %3703 = vst [vmem:[%s4703_s16 + $0xe00] sm:$0xff] %v2670_v11  ;;  %v1663_v11 = vadd.f32 2.0, %v631_v3  ;;  %v2693_v16 = vmul.f32 %v1661_v5, %v629_v61  ;;  %v653_v5 = vld [vmem:[%s4686_s22 + $0xf78] sm:$0xff] }
 0x20e   : > { %3704 = vst [vmem:[%s4703_s16 + $0xe08] sm:$0xff] %v2671_v14  ;;  %v1664_v14 = vadd.f32 2.0, %v632_v6  ;;  %v2694_v19 = vmul.f32 %v1662_v8, %v630_v0  ;;  %v654_v8 = vld [vmem:[%s4686_s22 + $0xf80] sm:$0xff] }
 0x20f   : > { %3705 = vst [vmem:[%s4703_s16 + $0xe10] sm:$0xff] %v2672_v17  ;;  %v1665_v17 = vadd.f32 2.0, %v633_v9  ;;  %v2695_v22 = vmul.f32 %v1663_v11, %v631_v3  ;;  %v655_v11 = vld [vmem:[%s4686_s22 + $0xf88] sm:$0xff] }
 0x210   : > { %3706 = vst [vmem:[%s4703_s16 + $0xe18] sm:$0xff] %v2673_v20  ;;  %v1666_v20 = vadd.f32 2.0, %v634_v12  ;;  %v2696_v25 = vmul.f32 %v1664_v14, %v632_v6  ;;  %v656_v14 = vld [vmem:[%s4686_s22 + $0xf90] sm:$0xff] }
 0x211   : > { %3707 = vst [vmem:[%s4703_s16 + $0xe20] sm:$0xff] %v2674_v23  ;;  %v1667_v23 = vadd.f32 2.0, %v635_v15  ;;  %v2697_v28 = vmul.f32 %v1665_v17, %v633_v9  ;;  %v657_v17 = vld [vmem:[%s4686_s22 + $0xf98] sm:$0xff] }
 0x212   : > { %3708 = vst [vmem:[%s4703_s16 + $0xe28] sm:$0xff] %v2675_v26  ;;  %v1668_v26 = vadd.f32 2.0, %v636_v18  ;;  %v2698_v31 = vmul.f32 %v1666_v20, %v634_v12  ;;  %v658_v20 = vld [vmem:[%s4686_s22 + $0xfa0] sm:$0xff] }
 0x213   : > { %3709 = vst [vmem:[%s4703_s16 + $0xe30] sm:$0xff] %v2676_v29  ;;  %v1669_v29 = vadd.f32 2.0, %v637_v21  ;;  %v2699_v34 = vmul.f32 %v1667_v23, %v635_v15  ;;  %v659_v23 = vld [vmem:[%s4686_s22 + $0xfa8] sm:$0xff] }
 0x214   : > { %3710 = vst.msk [vmem:[%s4703_s16 + $0xe38] sm:$0xff] %vm3277_vm0, %v2677_v32  ;;  %v1670_v32 = vadd.f32 2.0, %v638_v24  ;;  %v2700_v37 = vmul.f32 %v1668_v26, %v636_v18  ;;  %v660_v26 = vld [vmem:[%s4686_s22 + $0xfb0] sm:$0xff] }
 0x215   : > { %3711 = vst [vmem:[%s4703_s16 + $0xe40] sm:$0xff] %v2678_v35  ;;  %v1671_v35 = vadd.f32 2.0, %v639_v27  ;;  %v2701_v40 = vmul.f32 %v1669_v29, %v637_v21  ;;  %v661_v29 = vld [vmem:[%s4686_s22 + $0xfb8] sm:$0xff] }
 0x216   : > { %3712 = vst [vmem:[%s4703_s16 + $0xe48] sm:$0xff] %v2679_v38  ;;  %v1672_v38 = vadd.f32 2.0, %v640_v30  ;;  %v2702_v43 = vmul.f32 %v1670_v32, %v638_v24  ;;  %v662_v32 = vld [vmem:[%s4686_s22 + $0xfc0] sm:$0xff] }
 0x217   : > { %3713 = vst [vmem:[%s4703_s16 + $0xe50] sm:$0xff] %v2680_v41  ;;  %v1673_v41 = vadd.f32 2.0, %v641_v33  ;;  %v2703_v46 = vmul.f32 %v1671_v35, %v639_v27  ;;  %v663_v35 = vld [vmem:[%s4686_s22 + $0xfc8] sm:$0xff] }
 0x218   : > { %3714 = vst [vmem:[%s4703_s16 + $0xe58] sm:$0xff] %v2681_v44  ;;  %v1674_v44 = vadd.f32 2.0, %v642_v36  ;;  %v2704_v49 = vmul.f32 %v1672_v38, %v640_v30  ;;  %v664_v38 = vld [vmem:[%s4686_s22 + $0xfd0] sm:$0xff] }
 0x219   : > { %3715 = vst [vmem:[%s4703_s16 + $0xe60] sm:$0xff] %v2682_v47  ;;  %v1675_v47 = vadd.f32 2.0, %v643_v39  ;;  %v2705_v52 = vmul.f32 %v1673_v41, %v641_v33  ;;  %v665_v41 = vld [vmem:[%s4686_s22 + $0xfd8] sm:$0xff] }
 0x21a   : > { %3716 = vst [vmem:[%s4703_s16 + $0xe68] sm:$0xff] %v2683_v50  ;;  %v1676_v50 = vadd.f32 2.0, %v644_v42  ;;  %v2706_v55 = vmul.f32 %v1674_v44, %v642_v36  ;;  %v666_v44 = vld [vmem:[%s4686_s22 + $0xfe0] sm:$0xff] }
 0x21b   : > { %3717 = vst [vmem:[%s4703_s16 + $0xe70] sm:$0xff] %v2684_v53  ;;  %v1677_v53 = vadd.f32 2.0, %v645_v45  ;;  %v2707_v58 = vmul.f32 %v1675_v47, %v643_v39  ;;  %v667_v47 = vld [vmem:[%s4686_s22 + $0xfe8] sm:$0xff] }
 0x21c   : > { %3718 = vst [vmem:[%s4703_s16 + $0xe78] sm:$0xff] %v2685_v56  ;;  %v1678_v56 = vadd.f32 2.0, %v646_v48  ;;  %v2708_v61 = vmul.f32 %v1676_v50, %v644_v42  ;;  %v668_v50 = vld [vmem:[%s4686_s22 + $0xff0] sm:$0xff] }
 0x21d   : > { %3719 = vst [vmem:[%s4703_s16 + $0xe80] sm:$0xff] %v2686_v59  ;;  %v1679_v59 = vadd.f32 2.0, %v647_v51  ;;  %v2709_v0 = vmul.f32 %v1677_v53, %v645_v45  ;;  %v669_v53 = vld [vmem:[%s4686_s22 + $0xff8] sm:$0xff] }
 0x21e   : > { %3720 = vst [vmem:[%s4703_s16 + $0xe88] sm:$0xff] %v2687_v62  ;;  %v1680_v62 = vadd.f32 2.0, %v648_v54  ;;  %v2710_v3 = vmul.f32 %v1678_v56, %v646_v48  ;;  %v670_v56 = vld [vmem:[%s4686_s22 + $0x1000] sm:$0xff] }
 0x21f   : > { %3721 = vst [vmem:[%s4703_s16 + $0xe90] sm:$0xff] %v2688_v1  ;;  %v1681_v1 = vadd.f32 2.0, %v649_v57  ;;  %v2711_v6 = vmul.f32 %v1679_v59, %v647_v51  ;;  %v671_v59 = vld [vmem:[%s4686_s22 + $0x1008] sm:$0xff] }
 0x220   : > { %3722 = vst [vmem:[%s4703_s16 + $0xe98] sm:$0xff] %v2689_v4  ;;  %v1682_v4 = vadd.f32 2.0, %v650_v60  ;;  %v2712_v9 = vmul.f32 %v1680_v62, %v648_v54  ;;  %v672_v62 = vld [vmem:[%s4686_s22 + $0x1010] sm:$0xff] }
 0x221   : > { %3723 = vst [vmem:[%s4703_s16 + $0xea0] sm:$0xff] %v2690_v7  ;;  %v1683_v7 = vadd.f32 2.0, %v651_v63  ;;  %v2713_v12 = vmul.f32 %v1681_v1, %v649_v57  ;;  %v673_v1 = vld [vmem:[%s4686_s22 + $0x1018] sm:$0xff] }
 0x222   : > { %3724 = vst [vmem:[%s4703_s16 + $0xea8] sm:$0xff] %v2691_v10  ;;  %v1684_v10 = vadd.f32 2.0, %v652_v2  ;;  %v2714_v15 = vmul.f32 %v1682_v4, %v650_v60  ;;  %v674_v4 = vld [vmem:[%s4686_s22 + $0x1020] sm:$0xff] }
 0x223   : > { %3725 = vst [vmem:[%s4703_s16 + $0xeb0] sm:$0xff] %v2692_v13  ;;  %v1685_v13 = vadd.f32 2.0, %v653_v5  ;;  %v2715_v18 = vmul.f32 %v1683_v7, %v651_v63  ;;  %v675_v7 = vld [vmem:[%s4686_s22 + $0x1028] sm:$0xff] }
 0x224   : > { %3726 = vst [vmem:[%s4703_s16 + $0xeb8] sm:$0xff] %v2693_v16  ;;  %v1686_v16 = vadd.f32 2.0, %v654_v8  ;;  %v2716_v21 = vmul.f32 %v1684_v10, %v652_v2  ;;  %v676_v10 = vld [vmem:[%s4686_s22 + $0x1030] sm:$0xff] }
 0x225   : > { %3727 = vst [vmem:[%s4703_s16 + $0xec0] sm:$0xff] %v2694_v19  ;;  %v1687_v19 = vadd.f32 2.0, %v655_v11  ;;  %v2717_v24 = vmul.f32 %v1685_v13, %v653_v5  ;;  %v677_v13 = vld [vmem:[%s4686_s22 + $0x1038] sm:$0xff] }
 0x226   : > { %3728 = vst [vmem:[%s4703_s16 + $0xec8] sm:$0xff] %v2695_v22  ;;  %v1688_v22 = vadd.f32 2.0, %v656_v14  ;;  %v2718_v27 = vmul.f32 %v1686_v16, %v654_v8  ;;  %v678_v16 = vld [vmem:[%s4686_s22 + $0x1040] sm:$0xff] }
 0x227   : > { %3729 = vst [vmem:[%s4703_s16 + $0xed0] sm:$0xff] %v2696_v25  ;;  %v1689_v25 = vadd.f32 2.0, %v657_v17  ;;  %v2719_v30 = vmul.f32 %v1687_v19, %v655_v11  ;;  %v679_v19 = vld [vmem:[%s4686_s22 + $0x1048] sm:$0xff] }
 0x228   : > { %3730 = vst [vmem:[%s4703_s16 + $0xed8] sm:$0xff] %v2697_v28  ;;  %v1690_v28 = vadd.f32 2.0, %v658_v20  ;;  %v2720_v33 = vmul.f32 %v1688_v22, %v656_v14  ;;  %v680_v22 = vld [vmem:[%s4686_s22 + $0x1050] sm:$0xff] }
 0x229   : > { %3731 = vst [vmem:[%s4703_s16 + $0xee0] sm:$0xff] %v2698_v31  ;;  %v1691_v31 = vadd.f32 2.0, %v659_v23  ;;  %v2721_v36 = vmul.f32 %v1689_v25, %v657_v17  ;;  %v681_v25 = vld [vmem:[%s4686_s22 + $0x1058] sm:$0xff] }
 0x22a   : > { %3732 = vst [vmem:[%s4703_s16 + $0xee8] sm:$0xff] %v2699_v34  ;;  %v1692_v34 = vadd.f32 2.0, %v660_v26  ;;  %v2722_v39 = vmul.f32 %v1690_v28, %v658_v20  ;;  %v682_v28 = vld [vmem:[%s4686_s22 + $0x1060] sm:$0xff] }
 0x22b   : > { %3733 = vst [vmem:[%s4703_s16 + $0xef0] sm:$0xff] %v2700_v37  ;;  %v1693_v37 = vadd.f32 2.0, %v661_v29  ;;  %v2723_v42 = vmul.f32 %v1691_v31, %v659_v23  ;;  %v683_v31 = vld [vmem:[%s4686_s22 + $0x1068] sm:$0xff] }
 0x22c   : > { %3734 = vst.msk [vmem:[%s4703_s16 + $0xef8] sm:$0xff] %vm3277_vm0, %v2701_v40  ;;  %v1694_v40 = vadd.f32 2.0, %v662_v32  ;;  %v2724_v45 = vmul.f32 %v1692_v34, %v660_v26  ;;  %v684_v34 = vld [vmem:[%s4686_s22 + $0x1070] sm:$0xff] }
 0x22d   : > { %3735 = vst [vmem:[%s4703_s16 + $0xf00] sm:$0xff] %v2702_v43  ;;  %v1695_v43 = vadd.f32 2.0, %v663_v35  ;;  %v2725_v48 = vmul.f32 %v1693_v37, %v661_v29  ;;  %v685_v37 = vld [vmem:[%s4686_s22 + $0x1078] sm:$0xff] }
 0x22e   : > { %3736 = vst [vmem:[%s4703_s16 + $0xf08] sm:$0xff] %v2703_v46  ;;  %v1696_v46 = vadd.f32 2.0, %v664_v38  ;;  %v2726_v51 = vmul.f32 %v1694_v40, %v662_v32  ;;  %v686_v40 = vld [vmem:[%s4686_s22 + $0x1080] sm:$0xff] }
 0x22f   : > { %3737 = vst [vmem:[%s4703_s16 + $0xf10] sm:$0xff] %v2704_v49  ;;  %v1697_v49 = vadd.f32 2.0, %v665_v41  ;;  %v2727_v54 = vmul.f32 %v1695_v43, %v663_v35  ;;  %v687_v43 = vld [vmem:[%s4686_s22 + $0x1088] sm:$0xff] }
 0x230   : > { %3738 = vst [vmem:[%s4703_s16 + $0xf18] sm:$0xff] %v2705_v52  ;;  %v1698_v52 = vadd.f32 2.0, %v666_v44  ;;  %v2728_v57 = vmul.f32 %v1696_v46, %v664_v38  ;;  %v688_v46 = vld [vmem:[%s4686_s22 + $0x1090] sm:$0xff] }
 0x231   : > { %3739 = vst [vmem:[%s4703_s16 + $0xf20] sm:$0xff] %v2706_v55  ;;  %v1699_v55 = vadd.f32 2.0, %v667_v47  ;;  %v2729_v60 = vmul.f32 %v1697_v49, %v665_v41  ;;  %v689_v49 = vld [vmem:[%s4686_s22 + $0x1098] sm:$0xff] }
 0x232   : > { %3740 = vst [vmem:[%s4703_s16 + $0xf28] sm:$0xff] %v2707_v58  ;;  %v1700_v58 = vadd.f32 2.0, %v668_v50  ;;  %v2730_v63 = vmul.f32 %v1698_v52, %v666_v44  ;;  %v690_v52 = vld [vmem:[%s4686_s22 + $0x10a0] sm:$0xff] }
 0x233   : > { %3741 = vst [vmem:[%s4703_s16 + $0xf30] sm:$0xff] %v2708_v61  ;;  %v1701_v61 = vadd.f32 2.0, %v669_v53  ;;  %v2731_v2 = vmul.f32 %v1699_v55, %v667_v47  ;;  %v691_v55 = vld [vmem:[%s4686_s22 + $0x10a8] sm:$0xff] }
 0x234   : > { %3742 = vst [vmem:[%s4703_s16 + $0xf38] sm:$0xff] %v2709_v0  ;;  %v1702_v0 = vadd.f32 2.0, %v670_v56  ;;  %v2732_v5 = vmul.f32 %v1700_v58, %v668_v50  ;;  %v692_v58 = vld [vmem:[%s4686_s22 + $0x10b0] sm:$0xff] }
 0x235   : > { %3743 = vst [vmem:[%s4703_s16 + $0xf40] sm:$0xff] %v2710_v3  ;;  %v1703_v3 = vadd.f32 2.0, %v671_v59  ;;  %v2733_v8 = vmul.f32 %v1701_v61, %v669_v53  ;;  %v693_v61 = vld [vmem:[%s4686_s22 + $0x10b8] sm:$0xff] }
 0x236   : > { %3744 = vst [vmem:[%s4703_s16 + $0xf48] sm:$0xff] %v2711_v6  ;;  %v1704_v6 = vadd.f32 2.0, %v672_v62  ;;  %v2734_v11 = vmul.f32 %v1702_v0, %v670_v56  ;;  %v694_v0 = vld [vmem:[%s4686_s22 + $0x10c0] sm:$0xff] }
 0x237   : > { %3745 = vst [vmem:[%s4703_s16 + $0xf50] sm:$0xff] %v2712_v9  ;;  %v1705_v9 = vadd.f32 2.0, %v673_v1  ;;  %v2735_v14 = vmul.f32 %v1703_v3, %v671_v59  ;;  %v695_v3 = vld [vmem:[%s4686_s22 + $0x10c8] sm:$0xff] }
 0x238   : > { %3746 = vst [vmem:[%s4703_s16 + $0xf58] sm:$0xff] %v2713_v12  ;;  %v1706_v12 = vadd.f32 2.0, %v674_v4  ;;  %v2736_v17 = vmul.f32 %v1704_v6, %v672_v62  ;;  %v696_v6 = vld [vmem:[%s4686_s22 + $0x10d0] sm:$0xff] }
 0x239   : > { %3747 = vst [vmem:[%s4703_s16 + $0xf60] sm:$0xff] %v2714_v15  ;;  %v1707_v15 = vadd.f32 2.0, %v675_v7  ;;  %v2737_v20 = vmul.f32 %v1705_v9, %v673_v1  ;;  %v697_v9 = vld [vmem:[%s4686_s22 + $0x10d8] sm:$0xff] }
 0x23a   : > { %3748 = vst [vmem:[%s4703_s16 + $0xf68] sm:$0xff] %v2715_v18  ;;  %v1708_v18 = vadd.f32 2.0, %v676_v10  ;;  %v2738_v23 = vmul.f32 %v1706_v12, %v674_v4  ;;  %v698_v12 = vld [vmem:[%s4686_s22 + $0x10e0] sm:$0xff] }
 0x23b   : > { %3749 = vst [vmem:[%s4703_s16 + $0xf70] sm:$0xff] %v2716_v21  ;;  %v1709_v21 = vadd.f32 2.0, %v677_v13  ;;  %v2739_v26 = vmul.f32 %v1707_v15, %v675_v7  ;;  %v699_v15 = vld [vmem:[%s4686_s22 + $0x10e8] sm:$0xff] }
 0x23c   : > { %3750 = vst [vmem:[%s4703_s16 + $0xf78] sm:$0xff] %v2717_v24  ;;  %v1710_v24 = vadd.f32 2.0, %v678_v16  ;;  %v2740_v29 = vmul.f32 %v1708_v18, %v676_v10  ;;  %v700_v18 = vld [vmem:[%s4686_s22 + $0x10f0] sm:$0xff] }
 0x23d   : > { %3751 = vst [vmem:[%s4703_s16 + $0xf80] sm:$0xff] %v2718_v27  ;;  %v1711_v27 = vadd.f32 2.0, %v679_v19  ;;  %v2741_v32 = vmul.f32 %v1709_v21, %v677_v13  ;;  %v701_v21 = vld [vmem:[%s4686_s22 + $0x10f8] sm:$0xff] }
 0x23e   : > { %3752 = vst [vmem:[%s4703_s16 + $0xf88] sm:$0xff] %v2719_v30  ;;  %v1712_v30 = vadd.f32 2.0, %v680_v22  ;;  %v2742_v35 = vmul.f32 %v1710_v24, %v678_v16  ;;  %v702_v24 = vld [vmem:[%s4686_s22 + $0x1100] sm:$0xff] }
 0x23f   : > { %3753 = vst [vmem:[%s4703_s16 + $0xf90] sm:$0xff] %v2720_v33  ;;  %v1713_v33 = vadd.f32 2.0, %v681_v25  ;;  %v2743_v38 = vmul.f32 %v1711_v27, %v679_v19  ;;  %v703_v27 = vld [vmem:[%s4686_s22 + $0x1108] sm:$0xff] }
 0x240   : > { %3754 = vst [vmem:[%s4703_s16 + $0xf98] sm:$0xff] %v2721_v36  ;;  %v1714_v36 = vadd.f32 2.0, %v682_v28  ;;  %v2744_v41 = vmul.f32 %v1712_v30, %v680_v22  ;;  %v704_v30 = vld [vmem:[%s4686_s22 + $0x1110] sm:$0xff] }
 0x241   : > { %3755 = vst [vmem:[%s4703_s16 + $0xfa0] sm:$0xff] %v2722_v39  ;;  %v1715_v39 = vadd.f32 2.0, %v683_v31  ;;  %v2745_v44 = vmul.f32 %v1713_v33, %v681_v25  ;;  %v705_v33 = vld [vmem:[%s4686_s22 + $0x1118] sm:$0xff] }
 0x242   : > { %3756 = vst [vmem:[%s4703_s16 + $0xfa8] sm:$0xff] %v2723_v42  ;;  %v1716_v42 = vadd.f32 2.0, %v684_v34  ;;  %v2746_v47 = vmul.f32 %v1714_v36, %v682_v28  ;;  %v706_v36 = vld [vmem:[%s4686_s22 + $0x1120] sm:$0xff] }
 0x243   : > { %3757 = vst [vmem:[%s4703_s16 + $0xfb0] sm:$0xff] %v2724_v45  ;;  %v1717_v45 = vadd.f32 2.0, %v685_v37  ;;  %v2747_v50 = vmul.f32 %v1715_v39, %v683_v31  ;;  %v707_v39 = vld [vmem:[%s4686_s22 + $0x1128] sm:$0xff] }
 0x244   : > { %3758 = vst.msk [vmem:[%s4703_s16 + $0xfb8] sm:$0xff] %vm3277_vm0, %v2725_v48  ;;  %v1718_v48 = vadd.f32 2.0, %v686_v40  ;;  %v2748_v53 = vmul.f32 %v1716_v42, %v684_v34  ;;  %v708_v42 = vld [vmem:[%s4686_s22 + $0x1130] sm:$0xff] }
 0x245   : > { %3759 = vst [vmem:[%s4703_s16 + $0xfc0] sm:$0xff] %v2726_v51  ;;  %v1719_v51 = vadd.f32 2.0, %v687_v43  ;;  %v2749_v56 = vmul.f32 %v1717_v45, %v685_v37  ;;  %v709_v45 = vld [vmem:[%s4686_s22 + $0x1138] sm:$0xff] }
 0x246   : > { %3760 = vst [vmem:[%s4703_s16 + $0xfc8] sm:$0xff] %v2727_v54  ;;  %v1720_v54 = vadd.f32 2.0, %v688_v46  ;;  %v2750_v59 = vmul.f32 %v1718_v48, %v686_v40  ;;  %v710_v48 = vld [vmem:[%s4686_s22 + $0x1140] sm:$0xff] }
 0x247   : > { %3761 = vst [vmem:[%s4703_s16 + $0xfd0] sm:$0xff] %v2728_v57  ;;  %v1721_v57 = vadd.f32 2.0, %v689_v49  ;;  %v2751_v62 = vmul.f32 %v1719_v51, %v687_v43  ;;  %v711_v51 = vld [vmem:[%s4686_s22 + $0x1148] sm:$0xff] }
 0x248   : > { %3762 = vst [vmem:[%s4703_s16 + $0xfd8] sm:$0xff] %v2729_v60  ;;  %v1722_v60 = vadd.f32 2.0, %v690_v52  ;;  %v2752_v1 = vmul.f32 %v1720_v54, %v688_v46  ;;  %v712_v54 = vld [vmem:[%s4686_s22 + $0x1150] sm:$0xff] }
 0x249   : > { %3763 = vst [vmem:[%s4703_s16 + $0xfe0] sm:$0xff] %v2730_v63  ;;  %v1723_v63 = vadd.f32 2.0, %v691_v55  ;;  %v2753_v4 = vmul.f32 %v1721_v57, %v689_v49  ;;  %v713_v57 = vld [vmem:[%s4686_s22 + $0x1158] sm:$0xff] }
 0x24a   : > { %3764 = vst [vmem:[%s4703_s16 + $0xfe8] sm:$0xff] %v2731_v2  ;;  %v1724_v2 = vadd.f32 2.0, %v692_v58  ;;  %v2754_v7 = vmul.f32 %v1722_v60, %v690_v52  ;;  %v714_v60 = vld [vmem:[%s4686_s22 + $0x1160] sm:$0xff] }
 0x24b   : > { %3765 = vst [vmem:[%s4703_s16 + $0xff0] sm:$0xff] %v2732_v5  ;;  %v1725_v5 = vadd.f32 2.0, %v693_v61  ;;  %v2755_v10 = vmul.f32 %v1723_v63, %v691_v55  ;;  %v715_v63 = vld [vmem:[%s4686_s22 + $0x1168] sm:$0xff] }
 0x24c   : > { %3766 = vst [vmem:[%s4703_s16 + $0xff8] sm:$0xff] %v2733_v8  ;;  %v1726_v8 = vadd.f32 2.0, %v694_v0  ;;  %v2756_v13 = vmul.f32 %v1724_v2, %v692_v58  ;;  %v716_v2 = vld [vmem:[%s4686_s22 + $0x1170] sm:$0xff] }
 0x24d   : > { %3767 = vst [vmem:[%s4703_s16 + $0x1000] sm:$0xff] %v2734_v11  ;;  %v1727_v11 = vadd.f32 2.0, %v695_v3  ;;  %v2757_v16 = vmul.f32 %v1725_v5, %v693_v61  ;;  %v717_v5 = vld [vmem:[%s4686_s22 + $0x1178] sm:$0xff] }
 0x24e   : > { %3768 = vst [vmem:[%s4703_s16 + $0x1008] sm:$0xff] %v2735_v14  ;;  %v1728_v14 = vadd.f32 2.0, %v696_v6  ;;  %v2758_v19 = vmul.f32 %v1726_v8, %v694_v0  ;;  %v718_v8 = vld [vmem:[%s4686_s22 + $0x1180] sm:$0xff] }
 0x24f   : > { %3769 = vst [vmem:[%s4703_s16 + $0x1010] sm:$0xff] %v2736_v17  ;;  %v1729_v17 = vadd.f32 2.0, %v697_v9  ;;  %v2759_v22 = vmul.f32 %v1727_v11, %v695_v3  ;;  %v719_v11 = vld [vmem:[%s4686_s22 + $0x1188] sm:$0xff] }
 0x250   : > { %3770 = vst [vmem:[%s4703_s16 + $0x1018] sm:$0xff] %v2737_v20  ;;  %v1730_v20 = vadd.f32 2.0, %v698_v12  ;;  %v2760_v25 = vmul.f32 %v1728_v14, %v696_v6  ;;  %v720_v14 = vld [vmem:[%s4686_s22 + $0x1190] sm:$0xff] }
 0x251   : > { %3771 = vst [vmem:[%s4703_s16 + $0x1020] sm:$0xff] %v2738_v23  ;;  %v1731_v23 = vadd.f32 2.0, %v699_v15  ;;  %v2761_v28 = vmul.f32 %v1729_v17, %v697_v9  ;;  %v721_v17 = vld [vmem:[%s4686_s22 + $0x1198] sm:$0xff] }
 0x252   : > { %3772 = vst [vmem:[%s4703_s16 + $0x1028] sm:$0xff] %v2739_v26  ;;  %v1732_v26 = vadd.f32 2.0, %v700_v18  ;;  %v2762_v31 = vmul.f32 %v1730_v20, %v698_v12  ;;  %v722_v20 = vld [vmem:[%s4686_s22 + $0x11a0] sm:$0xff] }
 0x253   : > { %3773 = vst [vmem:[%s4703_s16 + $0x1030] sm:$0xff] %v2740_v29  ;;  %v1733_v29 = vadd.f32 2.0, %v701_v21  ;;  %v2763_v34 = vmul.f32 %v1731_v23, %v699_v15  ;;  %v723_v23 = vld [vmem:[%s4686_s22 + $0x11a8] sm:$0xff] }
 0x254   : > { %3774 = vst [vmem:[%s4703_s16 + $0x1038] sm:$0xff] %v2741_v32  ;;  %v1734_v32 = vadd.f32 2.0, %v702_v24  ;;  %v2764_v37 = vmul.f32 %v1732_v26, %v700_v18  ;;  %v724_v26 = vld [vmem:[%s4686_s22 + $0x11b0] sm:$0xff] }
 0x255   : > { %3775 = vst [vmem:[%s4703_s16 + $0x1040] sm:$0xff] %v2742_v35  ;;  %v1735_v35 = vadd.f32 2.0, %v703_v27  ;;  %v2765_v40 = vmul.f32 %v1733_v29, %v701_v21  ;;  %v725_v29 = vld [vmem:[%s4686_s22 + $0x11b8] sm:$0xff] }
 0x256   : > { %3776 = vst [vmem:[%s4703_s16 + $0x1048] sm:$0xff] %v2743_v38  ;;  %v1736_v38 = vadd.f32 2.0, %v704_v30  ;;  %v2766_v43 = vmul.f32 %v1734_v32, %v702_v24  ;;  %v726_v32 = vld [vmem:[%s4686_s22 + $0x11c0] sm:$0xff] }
 0x257   : > { %3777 = vst [vmem:[%s4703_s16 + $0x1050] sm:$0xff] %v2744_v41  ;;  %v1737_v41 = vadd.f32 2.0, %v705_v33  ;;  %v2767_v46 = vmul.f32 %v1735_v35, %v703_v27  ;;  %v727_v35 = vld [vmem:[%s4686_s22 + $0x11c8] sm:$0xff] }
 0x258   : > { %3778 = vst [vmem:[%s4703_s16 + $0x1058] sm:$0xff] %v2745_v44  ;;  %v1738_v44 = vadd.f32 2.0, %v706_v36  ;;  %v2768_v49 = vmul.f32 %v1736_v38, %v704_v30  ;;  %v728_v38 = vld [vmem:[%s4686_s22 + $0x11d0] sm:$0xff] }
 0x259   : > { %3779 = vst [vmem:[%s4703_s16 + $0x1060] sm:$0xff] %v2746_v47  ;;  %v1739_v47 = vadd.f32 2.0, %v707_v39  ;;  %v2769_v52 = vmul.f32 %v1737_v41, %v705_v33  ;;  %v729_v41 = vld [vmem:[%s4686_s22 + $0x11d8] sm:$0xff] }
 0x25a   : > { %3780 = vst [vmem:[%s4703_s16 + $0x1068] sm:$0xff] %v2747_v50  ;;  %v1740_v50 = vadd.f32 2.0, %v708_v42  ;;  %v2770_v55 = vmul.f32 %v1738_v44, %v706_v36  ;;  %v730_v44 = vld [vmem:[%s4686_s22 + $0x11e0] sm:$0xff] }
 0x25b   : > { %3781 = vst [vmem:[%s4703_s16 + $0x1070] sm:$0xff] %v2748_v53  ;;  %v1741_v53 = vadd.f32 2.0, %v709_v45  ;;  %v2771_v58 = vmul.f32 %v1739_v47, %v707_v39  ;;  %v731_v47 = vld [vmem:[%s4686_s22 + $0x11e8] sm:$0xff] }
 0x25c   : > { %3782 = vst.msk [vmem:[%s4703_s16 + $0x1078] sm:$0xff] %vm3277_vm0, %v2749_v56  ;;  %v1742_v56 = vadd.f32 2.0, %v710_v48  ;;  %v2772_v61 = vmul.f32 %v1740_v50, %v708_v42  ;;  %v732_v50 = vld [vmem:[%s4686_s22 + $0x11f0] sm:$0xff] }
 0x25d   : > { %3783 = vst [vmem:[%s4703_s16 + $0x1080] sm:$0xff] %v2750_v59  ;;  %v1743_v59 = vadd.f32 2.0, %v711_v51  ;;  %v2773_v0 = vmul.f32 %v1741_v53, %v709_v45  ;;  %v733_v53 = vld [vmem:[%s4686_s22 + $0x11f8] sm:$0xff] }
 0x25e   : > { %3784 = vst [vmem:[%s4703_s16 + $0x1088] sm:$0xff] %v2751_v62  ;;  %v1744_v62 = vadd.f32 2.0, %v712_v54  ;;  %v2774_v3 = vmul.f32 %v1742_v56, %v710_v48  ;;  %v734_v56 = vld [vmem:[%s4686_s22 + $0x1200] sm:$0xff] }
 0x25f   : > { %3785 = vst [vmem:[%s4703_s16 + $0x1090] sm:$0xff] %v2752_v1  ;;  %v1745_v1 = vadd.f32 2.0, %v713_v57  ;;  %v2775_v6 = vmul.f32 %v1743_v59, %v711_v51  ;;  %v735_v59 = vld [vmem:[%s4686_s22 + $0x1208] sm:$0xff] }
 0x260   : > { %3786 = vst [vmem:[%s4703_s16 + $0x1098] sm:$0xff] %v2753_v4  ;;  %v1746_v4 = vadd.f32 2.0, %v714_v60  ;;  %v2776_v9 = vmul.f32 %v1744_v62, %v712_v54  ;;  %v736_v62 = vld [vmem:[%s4686_s22 + $0x1210] sm:$0xff] }
 0x261   : > { %3787 = vst [vmem:[%s4703_s16 + $0x10a0] sm:$0xff] %v2754_v7  ;;  %v1747_v7 = vadd.f32 2.0, %v715_v63  ;;  %v2777_v12 = vmul.f32 %v1745_v1, %v713_v57  ;;  %v737_v1 = vld [vmem:[%s4686_s22 + $0x1218] sm:$0xff] }
 0x262   : > { %3788 = vst [vmem:[%s4703_s16 + $0x10a8] sm:$0xff] %v2755_v10  ;;  %v1748_v10 = vadd.f32 2.0, %v716_v2  ;;  %v2778_v15 = vmul.f32 %v1746_v4, %v714_v60  ;;  %v738_v4 = vld [vmem:[%s4686_s22 + $0x1220] sm:$0xff] }
 0x263   : > { %3789 = vst [vmem:[%s4703_s16 + $0x10b0] sm:$0xff] %v2756_v13  ;;  %v1749_v13 = vadd.f32 2.0, %v717_v5  ;;  %v2779_v18 = vmul.f32 %v1747_v7, %v715_v63  ;;  %v739_v7 = vld [vmem:[%s4686_s22 + $0x1228] sm:$0xff] }
 0x264   : > { %3790 = vst [vmem:[%s4703_s16 + $0x10b8] sm:$0xff] %v2757_v16  ;;  %v1750_v16 = vadd.f32 2.0, %v718_v8  ;;  %v2780_v21 = vmul.f32 %v1748_v10, %v716_v2  ;;  %v740_v10 = vld [vmem:[%s4686_s22 + $0x1230] sm:$0xff] }
 0x265   : > { %3791 = vst [vmem:[%s4703_s16 + $0x10c0] sm:$0xff] %v2758_v19  ;;  %v1751_v19 = vadd.f32 2.0, %v719_v11  ;;  %v2781_v24 = vmul.f32 %v1749_v13, %v717_v5  ;;  %v741_v13 = vld [vmem:[%s4686_s22 + $0x1238] sm:$0xff] }
 0x266   : > { %3792 = vst [vmem:[%s4703_s16 + $0x10c8] sm:$0xff] %v2759_v22  ;;  %v1752_v22 = vadd.f32 2.0, %v720_v14  ;;  %v2782_v27 = vmul.f32 %v1750_v16, %v718_v8  ;;  %v742_v16 = vld [vmem:[%s4686_s22 + $0x1240] sm:$0xff] }
 0x267   : > { %3793 = vst [vmem:[%s4703_s16 + $0x10d0] sm:$0xff] %v2760_v25  ;;  %v1753_v25 = vadd.f32 2.0, %v721_v17  ;;  %v2783_v30 = vmul.f32 %v1751_v19, %v719_v11  ;;  %v743_v19 = vld [vmem:[%s4686_s22 + $0x1248] sm:$0xff] }
 0x268   : > { %3794 = vst [vmem:[%s4703_s16 + $0x10d8] sm:$0xff] %v2761_v28  ;;  %v1754_v28 = vadd.f32 2.0, %v722_v20  ;;  %v2784_v33 = vmul.f32 %v1752_v22, %v720_v14  ;;  %v744_v22 = vld [vmem:[%s4686_s22 + $0x1250] sm:$0xff] }
 0x269   : > { %3795 = vst [vmem:[%s4703_s16 + $0x10e0] sm:$0xff] %v2762_v31  ;;  %v1755_v31 = vadd.f32 2.0, %v723_v23  ;;  %v2785_v36 = vmul.f32 %v1753_v25, %v721_v17  ;;  %v745_v25 = vld [vmem:[%s4686_s22 + $0x1258] sm:$0xff] }
 0x26a   : > { %3796 = vst [vmem:[%s4703_s16 + $0x10e8] sm:$0xff] %v2763_v34  ;;  %v1756_v34 = vadd.f32 2.0, %v724_v26  ;;  %v2786_v39 = vmul.f32 %v1754_v28, %v722_v20  ;;  %v746_v28 = vld [vmem:[%s4686_s22 + $0x1260] sm:$0xff] }
 0x26b   : > { %3797 = vst [vmem:[%s4703_s16 + $0x10f0] sm:$0xff] %v2764_v37  ;;  %v1757_v37 = vadd.f32 2.0, %v725_v29  ;;  %v2787_v42 = vmul.f32 %v1755_v31, %v723_v23  ;;  %v747_v31 = vld [vmem:[%s4686_s22 + $0x1268] sm:$0xff] }
 0x26c   : > { %3798 = vst [vmem:[%s4703_s16 + $0x10f8] sm:$0xff] %v2765_v40  ;;  %v1758_v40 = vadd.f32 2.0, %v726_v32  ;;  %v2788_v45 = vmul.f32 %v1756_v34, %v724_v26  ;;  %v748_v34 = vld [vmem:[%s4686_s22 + $0x1270] sm:$0xff] }
 0x26d   : > { %3799 = vst [vmem:[%s4703_s16 + $0x1100] sm:$0xff] %v2766_v43  ;;  %v1759_v43 = vadd.f32 2.0, %v727_v35  ;;  %v2789_v48 = vmul.f32 %v1757_v37, %v725_v29  ;;  %v749_v37 = vld [vmem:[%s4686_s22 + $0x1278] sm:$0xff] }
 0x26e   : > { %3800 = vst [vmem:[%s4703_s16 + $0x1108] sm:$0xff] %v2767_v46  ;;  %v1760_v46 = vadd.f32 2.0, %v728_v38  ;;  %v2790_v51 = vmul.f32 %v1758_v40, %v726_v32  ;;  %v750_v40 = vld [vmem:[%s4686_s22 + $0x1280] sm:$0xff] }
 0x26f   : > { %3801 = vst [vmem:[%s4703_s16 + $0x1110] sm:$0xff] %v2768_v49  ;;  %v1761_v49 = vadd.f32 2.0, %v729_v41  ;;  %v2791_v54 = vmul.f32 %v1759_v43, %v727_v35  ;;  %v751_v43 = vld [vmem:[%s4686_s22 + $0x1288] sm:$0xff] }
 0x270   : > { %3802 = vst [vmem:[%s4703_s16 + $0x1118] sm:$0xff] %v2769_v52  ;;  %v1762_v52 = vadd.f32 2.0, %v730_v44  ;;  %v2792_v57 = vmul.f32 %v1760_v46, %v728_v38  ;;  %v752_v46 = vld [vmem:[%s4686_s22 + $0x1290] sm:$0xff] }
 0x271   : > { %3803 = vst [vmem:[%s4703_s16 + $0x1120] sm:$0xff] %v2770_v55  ;;  %v1763_v55 = vadd.f32 2.0, %v731_v47  ;;  %v2793_v60 = vmul.f32 %v1761_v49, %v729_v41  ;;  %v753_v49 = vld [vmem:[%s4686_s22 + $0x1298] sm:$0xff] }
 0x272   : > { %3804 = vst [vmem:[%s4703_s16 + $0x1128] sm:$0xff] %v2771_v58  ;;  %v1764_v58 = vadd.f32 2.0, %v732_v50  ;;  %v2794_v63 = vmul.f32 %v1762_v52, %v730_v44  ;;  %v754_v52 = vld [vmem:[%s4686_s22 + $0x12a0] sm:$0xff] }
 0x273   : > { %3805 = vst [vmem:[%s4703_s16 + $0x1130] sm:$0xff] %v2772_v61  ;;  %v1765_v61 = vadd.f32 2.0, %v733_v53  ;;  %v2795_v2 = vmul.f32 %v1763_v55, %v731_v47  ;;  %v755_v55 = vld [vmem:[%s4686_s22 + $0x12a8] sm:$0xff] }
 0x274   : > { %3806 = vst.msk [vmem:[%s4703_s16 + $0x1138] sm:$0xff] %vm3277_vm0, %v2773_v0  ;;  %v1766_v0 = vadd.f32 2.0, %v734_v56  ;;  %v2796_v5 = vmul.f32 %v1764_v58, %v732_v50  ;;  %v756_v58 = vld [vmem:[%s4686_s22 + $0x12b0] sm:$0xff] }
 0x275   : > { %3807 = vst [vmem:[%s4703_s16 + $0x1140] sm:$0xff] %v2774_v3  ;;  %v1767_v3 = vadd.f32 2.0, %v735_v59  ;;  %v2797_v8 = vmul.f32 %v1765_v61, %v733_v53  ;;  %v757_v61 = vld [vmem:[%s4686_s22 + $0x12b8] sm:$0xff] }
 0x276   : > { %3808 = vst [vmem:[%s4703_s16 + $0x1148] sm:$0xff] %v2775_v6  ;;  %v1768_v6 = vadd.f32 2.0, %v736_v62  ;;  %v2798_v11 = vmul.f32 %v1766_v0, %v734_v56  ;;  %v758_v0 = vld [vmem:[%s4686_s22 + $0x12c0] sm:$0xff] }
 0x277   : > { %3809 = vst [vmem:[%s4703_s16 + $0x1150] sm:$0xff] %v2776_v9  ;;  %v1769_v9 = vadd.f32 2.0, %v737_v1  ;;  %v2799_v14 = vmul.f32 %v1767_v3, %v735_v59  ;;  %v759_v3 = vld [vmem:[%s4686_s22 + $0x12c8] sm:$0xff] }
 0x278   : > { %3810 = vst [vmem:[%s4703_s16 + $0x1158] sm:$0xff] %v2777_v12  ;;  %v1770_v12 = vadd.f32 2.0, %v738_v4  ;;  %v2800_v17 = vmul.f32 %v1768_v6, %v736_v62  ;;  %v760_v6 = vld [vmem:[%s4686_s22 + $0x12d0] sm:$0xff] }
 0x279   : > { %3811 = vst [vmem:[%s4703_s16 + $0x1160] sm:$0xff] %v2778_v15  ;;  %v1771_v15 = vadd.f32 2.0, %v739_v7  ;;  %v2801_v20 = vmul.f32 %v1769_v9, %v737_v1  ;;  %v761_v9 = vld [vmem:[%s4686_s22 + $0x12d8] sm:$0xff] }
 0x27a   : > { %3812 = vst [vmem:[%s4703_s16 + $0x1168] sm:$0xff] %v2779_v18  ;;  %v1772_v18 = vadd.f32 2.0, %v740_v10  ;;  %v2802_v23 = vmul.f32 %v1770_v12, %v738_v4  ;;  %v762_v12 = vld [vmem:[%s4686_s22 + $0x12e0] sm:$0xff] }
 0x27b   : > { %3813 = vst [vmem:[%s4703_s16 + $0x1170] sm:$0xff] %v2780_v21  ;;  %v1773_v21 = vadd.f32 2.0, %v741_v13  ;;  %v2803_v26 = vmul.f32 %v1771_v15, %v739_v7  ;;  %v763_v15 = vld [vmem:[%s4686_s22 + $0x12e8] sm:$0xff] }
 0x27c   : > { %3814 = vst [vmem:[%s4703_s16 + $0x1178] sm:$0xff] %v2781_v24  ;;  %v1774_v24 = vadd.f32 2.0, %v742_v16  ;;  %v2804_v29 = vmul.f32 %v1772_v18, %v740_v10  ;;  %v764_v18 = vld [vmem:[%s4686_s22 + $0x12f0] sm:$0xff] }
 0x27d   : > { %3815 = vst [vmem:[%s4703_s16 + $0x1180] sm:$0xff] %v2782_v27  ;;  %v1775_v27 = vadd.f32 2.0, %v743_v19  ;;  %v2805_v32 = vmul.f32 %v1773_v21, %v741_v13  ;;  %v765_v21 = vld [vmem:[%s4686_s22 + $0x12f8] sm:$0xff] }
 0x27e   : > { %3816 = vst [vmem:[%s4703_s16 + $0x1188] sm:$0xff] %v2783_v30  ;;  %v1776_v30 = vadd.f32 2.0, %v744_v22  ;;  %v2806_v35 = vmul.f32 %v1774_v24, %v742_v16  ;;  %v766_v24 = vld [vmem:[%s4686_s22 + $0x1300] sm:$0xff] }
 0x27f   : > { %3817 = vst [vmem:[%s4703_s16 + $0x1190] sm:$0xff] %v2784_v33  ;;  %v1777_v33 = vadd.f32 2.0, %v745_v25  ;;  %v2807_v38 = vmul.f32 %v1775_v27, %v743_v19  ;;  %v767_v27 = vld [vmem:[%s4686_s22 + $0x1308] sm:$0xff] }
 0x280   : > { %3818 = vst [vmem:[%s4703_s16 + $0x1198] sm:$0xff] %v2785_v36  ;;  %v1778_v36 = vadd.f32 2.0, %v746_v28  ;;  %v2808_v41 = vmul.f32 %v1776_v30, %v744_v22  ;;  %v768_v30 = vld [vmem:[%s4686_s22 + $0x1310] sm:$0xff] }
 0x281   : > { %3819 = vst [vmem:[%s4703_s16 + $0x11a0] sm:$0xff] %v2786_v39  ;;  %v1779_v39 = vadd.f32 2.0, %v747_v31  ;;  %v2809_v44 = vmul.f32 %v1777_v33, %v745_v25  ;;  %v769_v33 = vld [vmem:[%s4686_s22 + $0x1318] sm:$0xff] }
 0x282   : > { %3820 = vst [vmem:[%s4703_s16 + $0x11a8] sm:$0xff] %v2787_v42  ;;  %v1780_v42 = vadd.f32 2.0, %v748_v34  ;;  %v2810_v47 = vmul.f32 %v1778_v36, %v746_v28  ;;  %v770_v36 = vld [vmem:[%s4686_s22 + $0x1320] sm:$0xff] }
 0x283   : > { %3821 = vst [vmem:[%s4703_s16 + $0x11b0] sm:$0xff] %v2788_v45  ;;  %v1781_v45 = vadd.f32 2.0, %v749_v37  ;;  %v2811_v50 = vmul.f32 %v1779_v39, %v747_v31  ;;  %v771_v39 = vld [vmem:[%s4686_s22 + $0x1328] sm:$0xff] }
 0x284   : > { %3822 = vst [vmem:[%s4703_s16 + $0x11b8] sm:$0xff] %v2789_v48  ;;  %v1782_v48 = vadd.f32 2.0, %v750_v40  ;;  %v2812_v53 = vmul.f32 %v1780_v42, %v748_v34  ;;  %v772_v42 = vld [vmem:[%s4686_s22 + $0x1330] sm:$0xff] }
 0x285   : > { %3823 = vst [vmem:[%s4703_s16 + $0x11c0] sm:$0xff] %v2790_v51  ;;  %v1783_v51 = vadd.f32 2.0, %v751_v43  ;;  %v2813_v56 = vmul.f32 %v1781_v45, %v749_v37  ;;  %v773_v45 = vld [vmem:[%s4686_s22 + $0x1338] sm:$0xff] }
 0x286   : > { %3824 = vst [vmem:[%s4703_s16 + $0x11c8] sm:$0xff] %v2791_v54  ;;  %v1784_v54 = vadd.f32 2.0, %v752_v46  ;;  %v2814_v59 = vmul.f32 %v1782_v48, %v750_v40  ;;  %v774_v48 = vld [vmem:[%s4686_s22 + $0x1340] sm:$0xff] }
 0x287   : > { %3825 = vst [vmem:[%s4703_s16 + $0x11d0] sm:$0xff] %v2792_v57  ;;  %v1785_v57 = vadd.f32 2.0, %v753_v49  ;;  %v2815_v62 = vmul.f32 %v1783_v51, %v751_v43  ;;  %v775_v51 = vld [vmem:[%s4686_s22 + $0x1348] sm:$0xff] }
 0x288   : > { %3826 = vst [vmem:[%s4703_s16 + $0x11d8] sm:$0xff] %v2793_v60  ;;  %v1786_v60 = vadd.f32 2.0, %v754_v52  ;;  %v2816_v1 = vmul.f32 %v1784_v54, %v752_v46  ;;  %v776_v54 = vld [vmem:[%s4686_s22 + $0x1350] sm:$0xff] }
 0x289   : > { %3827 = vst [vmem:[%s4703_s16 + $0x11e0] sm:$0xff] %v2794_v63  ;;  %v1787_v63 = vadd.f32 2.0, %v755_v55  ;;  %v2817_v4 = vmul.f32 %v1785_v57, %v753_v49  ;;  %v777_v57 = vld [vmem:[%s4686_s22 + $0x1358] sm:$0xff] }
 0x28a   : > { %3828 = vst [vmem:[%s4703_s16 + $0x11e8] sm:$0xff] %v2795_v2  ;;  %v1788_v2 = vadd.f32 2.0, %v756_v58  ;;  %v2818_v7 = vmul.f32 %v1786_v60, %v754_v52  ;;  %v778_v60 = vld [vmem:[%s4686_s22 + $0x1360] sm:$0xff] }
 0x28b   : > { %3829 = vst [vmem:[%s4703_s16 + $0x11f0] sm:$0xff] %v2796_v5  ;;  %v1789_v5 = vadd.f32 2.0, %v757_v61  ;;  %v2819_v10 = vmul.f32 %v1787_v63, %v755_v55  ;;  %v779_v63 = vld [vmem:[%s4686_s22 + $0x1368] sm:$0xff] }
 0x28c   : > { %3830 = vst.msk [vmem:[%s4703_s16 + $0x11f8] sm:$0xff] %vm3277_vm0, %v2797_v8  ;;  %v1790_v8 = vadd.f32 2.0, %v758_v0  ;;  %v2820_v13 = vmul.f32 %v1788_v2, %v756_v58  ;;  %v780_v2 = vld [vmem:[%s4686_s22 + $0x1370] sm:$0xff] }
 0x28d   : > { %3831 = vst [vmem:[%s4703_s16 + $0x1200] sm:$0xff] %v2798_v11  ;;  %v1791_v11 = vadd.f32 2.0, %v759_v3  ;;  %v2821_v16 = vmul.f32 %v1789_v5, %v757_v61  ;;  %v781_v5 = vld [vmem:[%s4686_s22 + $0x1378] sm:$0xff] }
 0x28e   : > { %3832 = vst [vmem:[%s4703_s16 + $0x1208] sm:$0xff] %v2799_v14  ;;  %v1792_v14 = vadd.f32 2.0, %v760_v6  ;;  %v2822_v19 = vmul.f32 %v1790_v8, %v758_v0  ;;  %v782_v8 = vld [vmem:[%s4686_s22 + $0x1380] sm:$0xff] }
 0x28f   : > { %3833 = vst [vmem:[%s4703_s16 + $0x1210] sm:$0xff] %v2800_v17  ;;  %v1793_v17 = vadd.f32 2.0, %v761_v9  ;;  %v2823_v22 = vmul.f32 %v1791_v11, %v759_v3  ;;  %v783_v11 = vld [vmem:[%s4686_s22 + $0x1388] sm:$0xff] }
 0x290   : > { %3834 = vst [vmem:[%s4703_s16 + $0x1218] sm:$0xff] %v2801_v20  ;;  %v1794_v20 = vadd.f32 2.0, %v762_v12  ;;  %v2824_v25 = vmul.f32 %v1792_v14, %v760_v6  ;;  %v784_v14 = vld [vmem:[%s4686_s22 + $0x1390] sm:$0xff] }
 0x291   : > { %3835 = vst [vmem:[%s4703_s16 + $0x1220] sm:$0xff] %v2802_v23  ;;  %v1795_v23 = vadd.f32 2.0, %v763_v15  ;;  %v2825_v28 = vmul.f32 %v1793_v17, %v761_v9  ;;  %v785_v17 = vld [vmem:[%s4686_s22 + $0x1398] sm:$0xff] }
 0x292   : > { %3836 = vst [vmem:[%s4703_s16 + $0x1228] sm:$0xff] %v2803_v26  ;;  %v1796_v26 = vadd.f32 2.0, %v764_v18  ;;  %v2826_v31 = vmul.f32 %v1794_v20, %v762_v12  ;;  %v786_v20 = vld [vmem:[%s4686_s22 + $0x13a0] sm:$0xff] }
 0x293   : > { %3837 = vst [vmem:[%s4703_s16 + $0x1230] sm:$0xff] %v2804_v29  ;;  %v1797_v29 = vadd.f32 2.0, %v765_v21  ;;  %v2827_v34 = vmul.f32 %v1795_v23, %v763_v15  ;;  %v787_v23 = vld [vmem:[%s4686_s22 + $0x13a8] sm:$0xff] }
 0x294   : > { %3838 = vst [vmem:[%s4703_s16 + $0x1238] sm:$0xff] %v2805_v32  ;;  %v1798_v32 = vadd.f32 2.0, %v766_v24  ;;  %v2828_v37 = vmul.f32 %v1796_v26, %v764_v18  ;;  %v788_v26 = vld [vmem:[%s4686_s22 + $0x13b0] sm:$0xff] }
 0x295   : > { %3839 = vst [vmem:[%s4703_s16 + $0x1240] sm:$0xff] %v2806_v35  ;;  %v1799_v35 = vadd.f32 2.0, %v767_v27  ;;  %v2829_v40 = vmul.f32 %v1797_v29, %v765_v21  ;;  %v789_v29 = vld [vmem:[%s4686_s22 + $0x13b8] sm:$0xff] }
 0x296   : > { %3840 = vst [vmem:[%s4703_s16 + $0x1248] sm:$0xff] %v2807_v38  ;;  %v1800_v38 = vadd.f32 2.0, %v768_v30  ;;  %v2830_v43 = vmul.f32 %v1798_v32, %v766_v24  ;;  %v790_v32 = vld [vmem:[%s4686_s22 + $0x13c0] sm:$0xff] }
 0x297   : > { %3841 = vst [vmem:[%s4703_s16 + $0x1250] sm:$0xff] %v2808_v41  ;;  %v1801_v41 = vadd.f32 2.0, %v769_v33  ;;  %v2831_v46 = vmul.f32 %v1799_v35, %v767_v27  ;;  %v791_v35 = vld [vmem:[%s4686_s22 + $0x13c8] sm:$0xff] }
 0x298   : > { %3842 = vst [vmem:[%s4703_s16 + $0x1258] sm:$0xff] %v2809_v44  ;;  %v1802_v44 = vadd.f32 2.0, %v770_v36  ;;  %v2832_v49 = vmul.f32 %v1800_v38, %v768_v30  ;;  %v792_v38 = vld [vmem:[%s4686_s22 + $0x13d0] sm:$0xff] }
 0x299   : > { %3843 = vst [vmem:[%s4703_s16 + $0x1260] sm:$0xff] %v2810_v47  ;;  %v1803_v47 = vadd.f32 2.0, %v771_v39  ;;  %v2833_v52 = vmul.f32 %v1801_v41, %v769_v33  ;;  %v793_v41 = vld [vmem:[%s4686_s22 + $0x13d8] sm:$0xff] }
 0x29a   : > { %3844 = vst [vmem:[%s4703_s16 + $0x1268] sm:$0xff] %v2811_v50  ;;  %v1804_v50 = vadd.f32 2.0, %v772_v42  ;;  %v2834_v55 = vmul.f32 %v1802_v44, %v770_v36  ;;  %v794_v44 = vld [vmem:[%s4686_s22 + $0x13e0] sm:$0xff] }
 0x29b   : > { %3845 = vst [vmem:[%s4703_s16 + $0x1270] sm:$0xff] %v2812_v53  ;;  %v1805_v53 = vadd.f32 2.0, %v773_v45  ;;  %v2835_v58 = vmul.f32 %v1803_v47, %v771_v39  ;;  %v795_v47 = vld [vmem:[%s4686_s22 + $0x13e8] sm:$0xff] }
 0x29c   : > { %3846 = vst [vmem:[%s4703_s16 + $0x1278] sm:$0xff] %v2813_v56  ;;  %v1806_v56 = vadd.f32 2.0, %v774_v48  ;;  %v2836_v61 = vmul.f32 %v1804_v50, %v772_v42  ;;  %v796_v50 = vld [vmem:[%s4686_s22 + $0x13f0] sm:$0xff] }
 0x29d   : > { %3847 = vst [vmem:[%s4703_s16 + $0x1280] sm:$0xff] %v2814_v59  ;;  %v1807_v59 = vadd.f32 2.0, %v775_v51  ;;  %v2837_v0 = vmul.f32 %v1805_v53, %v773_v45  ;;  %v797_v53 = vld [vmem:[%s4686_s22 + $0x13f8] sm:$0xff] }
 0x29e   : > { %3848 = vst [vmem:[%s4703_s16 + $0x1288] sm:$0xff] %v2815_v62  ;;  %v1808_v62 = vadd.f32 2.0, %v776_v54  ;;  %v2838_v3 = vmul.f32 %v1806_v56, %v774_v48  ;;  %v798_v56 = vld [vmem:[%s4686_s22 + $0x1400] sm:$0xff] }
 0x29f   : > { %3849 = vst [vmem:[%s4703_s16 + $0x1290] sm:$0xff] %v2816_v1  ;;  %v1809_v1 = vadd.f32 2.0, %v777_v57  ;;  %v2839_v6 = vmul.f32 %v1807_v59, %v775_v51  ;;  %v799_v59 = vld [vmem:[%s4686_s22 + $0x1408] sm:$0xff] }
 0x2a0   : > { %3850 = vst [vmem:[%s4703_s16 + $0x1298] sm:$0xff] %v2817_v4  ;;  %v1810_v4 = vadd.f32 2.0, %v778_v60  ;;  %v2840_v9 = vmul.f32 %v1808_v62, %v776_v54  ;;  %v800_v62 = vld [vmem:[%s4686_s22 + $0x1410] sm:$0xff] }
 0x2a1   : > { %3851 = vst [vmem:[%s4703_s16 + $0x12a0] sm:$0xff] %v2818_v7  ;;  %v1811_v7 = vadd.f32 2.0, %v779_v63  ;;  %v2841_v12 = vmul.f32 %v1809_v1, %v777_v57  ;;  %v801_v1 = vld [vmem:[%s4686_s22 + $0x1418] sm:$0xff] }
 0x2a2   : > { %3852 = vst [vmem:[%s4703_s16 + $0x12a8] sm:$0xff] %v2819_v10  ;;  %v1812_v10 = vadd.f32 2.0, %v780_v2  ;;  %v2842_v15 = vmul.f32 %v1810_v4, %v778_v60  ;;  %v802_v4 = vld [vmem:[%s4686_s22 + $0x1420] sm:$0xff] }
 0x2a3   : > { %3853 = vst [vmem:[%s4703_s16 + $0x12b0] sm:$0xff] %v2820_v13  ;;  %v1813_v13 = vadd.f32 2.0, %v781_v5  ;;  %v2843_v18 = vmul.f32 %v1811_v7, %v779_v63  ;;  %v803_v7 = vld [vmem:[%s4686_s22 + $0x1428] sm:$0xff] }
 0x2a4   : > { %3854 = vst.msk [vmem:[%s4703_s16 + $0x12b8] sm:$0xff] %vm3277_vm0, %v2821_v16  ;;  %v1814_v16 = vadd.f32 2.0, %v782_v8  ;;  %v2844_v21 = vmul.f32 %v1812_v10, %v780_v2  ;;  %v804_v10 = vld [vmem:[%s4686_s22 + $0x1430] sm:$0xff] }
 0x2a5   : > { %3855 = vst [vmem:[%s4703_s16 + $0x12c0] sm:$0xff] %v2822_v19  ;;  %v1815_v19 = vadd.f32 2.0, %v783_v11  ;;  %v2845_v24 = vmul.f32 %v1813_v13, %v781_v5  ;;  %v805_v13 = vld [vmem:[%s4686_s22 + $0x1438] sm:$0xff] }
 0x2a6   : > { %3856 = vst [vmem:[%s4703_s16 + $0x12c8] sm:$0xff] %v2823_v22  ;;  %v1816_v22 = vadd.f32 2.0, %v784_v14  ;;  %v2846_v27 = vmul.f32 %v1814_v16, %v782_v8  ;;  %v806_v16 = vld [vmem:[%s4686_s22 + $0x1440] sm:$0xff] }
 0x2a7   : > { %3857 = vst [vmem:[%s4703_s16 + $0x12d0] sm:$0xff] %v2824_v25  ;;  %v1817_v25 = vadd.f32 2.0, %v785_v17  ;;  %v2847_v30 = vmul.f32 %v1815_v19, %v783_v11  ;;  %v807_v19 = vld [vmem:[%s4686_s22 + $0x1448] sm:$0xff] }
 0x2a8   : > { %3858 = vst [vmem:[%s4703_s16 + $0x12d8] sm:$0xff] %v2825_v28  ;;  %v1818_v28 = vadd.f32 2.0, %v786_v20  ;;  %v2848_v33 = vmul.f32 %v1816_v22, %v784_v14  ;;  %v808_v22 = vld [vmem:[%s4686_s22 + $0x1450] sm:$0xff] }
 0x2a9   : > { %3859 = vst [vmem:[%s4703_s16 + $0x12e0] sm:$0xff] %v2826_v31  ;;  %v1819_v31 = vadd.f32 2.0, %v787_v23  ;;  %v2849_v36 = vmul.f32 %v1817_v25, %v785_v17  ;;  %v809_v25 = vld [vmem:[%s4686_s22 + $0x1458] sm:$0xff] }
 0x2aa   : > { %3860 = vst [vmem:[%s4703_s16 + $0x12e8] sm:$0xff] %v2827_v34  ;;  %v1820_v34 = vadd.f32 2.0, %v788_v26  ;;  %v2850_v39 = vmul.f32 %v1818_v28, %v786_v20  ;;  %v810_v28 = vld [vmem:[%s4686_s22 + $0x1460] sm:$0xff] }
 0x2ab   : > { %3861 = vst [vmem:[%s4703_s16 + $0x12f0] sm:$0xff] %v2828_v37  ;;  %v1821_v37 = vadd.f32 2.0, %v789_v29  ;;  %v2851_v42 = vmul.f32 %v1819_v31, %v787_v23  ;;  %v811_v31 = vld [vmem:[%s4686_s22 + $0x1468] sm:$0xff] }
 0x2ac   : > { %3862 = vst [vmem:[%s4703_s16 + $0x12f8] sm:$0xff] %v2829_v40  ;;  %v1822_v40 = vadd.f32 2.0, %v790_v32  ;;  %v2852_v45 = vmul.f32 %v1820_v34, %v788_v26  ;;  %v812_v34 = vld [vmem:[%s4686_s22 + $0x1470] sm:$0xff] }
 0x2ad   : > { %3863 = vst [vmem:[%s4703_s16 + $0x1300] sm:$0xff] %v2830_v43  ;;  %v1823_v43 = vadd.f32 2.0, %v791_v35  ;;  %v2853_v48 = vmul.f32 %v1821_v37, %v789_v29  ;;  %v813_v37 = vld [vmem:[%s4686_s22 + $0x1478] sm:$0xff] }
 0x2ae   : > { %3864 = vst [vmem:[%s4703_s16 + $0x1308] sm:$0xff] %v2831_v46  ;;  %v1824_v46 = vadd.f32 2.0, %v792_v38  ;;  %v2854_v51 = vmul.f32 %v1822_v40, %v790_v32  ;;  %v814_v40 = vld [vmem:[%s4686_s22 + $0x1480] sm:$0xff] }
 0x2af   : > { %3865 = vst [vmem:[%s4703_s16 + $0x1310] sm:$0xff] %v2832_v49  ;;  %v1825_v49 = vadd.f32 2.0, %v793_v41  ;;  %v2855_v54 = vmul.f32 %v1823_v43, %v791_v35  ;;  %v815_v43 = vld [vmem:[%s4686_s22 + $0x1488] sm:$0xff] }
 0x2b0   : > { %3866 = vst [vmem:[%s4703_s16 + $0x1318] sm:$0xff] %v2833_v52  ;;  %v1826_v52 = vadd.f32 2.0, %v794_v44  ;;  %v2856_v57 = vmul.f32 %v1824_v46, %v792_v38  ;;  %v816_v46 = vld [vmem:[%s4686_s22 + $0x1490] sm:$0xff] }
 0x2b1   : > { %3867 = vst [vmem:[%s4703_s16 + $0x1320] sm:$0xff] %v2834_v55  ;;  %v1827_v55 = vadd.f32 2.0, %v795_v47  ;;  %v2857_v60 = vmul.f32 %v1825_v49, %v793_v41  ;;  %v817_v49 = vld [vmem:[%s4686_s22 + $0x1498] sm:$0xff] }
 0x2b2   : > { %3868 = vst [vmem:[%s4703_s16 + $0x1328] sm:$0xff] %v2835_v58  ;;  %v1828_v58 = vadd.f32 2.0, %v796_v50  ;;  %v2858_v63 = vmul.f32 %v1826_v52, %v794_v44  ;;  %v818_v52 = vld [vmem:[%s4686_s22 + $0x14a0] sm:$0xff] }
 0x2b3   : > { %3869 = vst [vmem:[%s4703_s16 + $0x1330] sm:$0xff] %v2836_v61  ;;  %v1829_v61 = vadd.f32 2.0, %v797_v53  ;;  %v2859_v2 = vmul.f32 %v1827_v55, %v795_v47  ;;  %v819_v55 = vld [vmem:[%s4686_s22 + $0x14a8] sm:$0xff] }
 0x2b4   : > { %3870 = vst [vmem:[%s4703_s16 + $0x1338] sm:$0xff] %v2837_v0  ;;  %v1830_v0 = vadd.f32 2.0, %v798_v56  ;;  %v2860_v5 = vmul.f32 %v1828_v58, %v796_v50  ;;  %v820_v58 = vld [vmem:[%s4686_s22 + $0x14b0] sm:$0xff] }
 0x2b5   : > { %3871 = vst [vmem:[%s4703_s16 + $0x1340] sm:$0xff] %v2838_v3  ;;  %v1831_v3 = vadd.f32 2.0, %v799_v59  ;;  %v2861_v8 = vmul.f32 %v1829_v61, %v797_v53  ;;  %v821_v61 = vld [vmem:[%s4686_s22 + $0x14b8] sm:$0xff] }
 0x2b6   : > { %3872 = vst [vmem:[%s4703_s16 + $0x1348] sm:$0xff] %v2839_v6  ;;  %v1832_v6 = vadd.f32 2.0, %v800_v62  ;;  %v2862_v11 = vmul.f32 %v1830_v0, %v798_v56  ;;  %v822_v0 = vld [vmem:[%s4686_s22 + $0x14c0] sm:$0xff] }
 0x2b7   : > { %3873 = vst [vmem:[%s4703_s16 + $0x1350] sm:$0xff] %v2840_v9  ;;  %v1833_v9 = vadd.f32 2.0, %v801_v1  ;;  %v2863_v14 = vmul.f32 %v1831_v3, %v799_v59  ;;  %v823_v3 = vld [vmem:[%s4686_s22 + $0x14c8] sm:$0xff] }
 0x2b8   : > { %3874 = vst [vmem:[%s4703_s16 + $0x1358] sm:$0xff] %v2841_v12  ;;  %v1834_v12 = vadd.f32 2.0, %v802_v4  ;;  %v2864_v17 = vmul.f32 %v1832_v6, %v800_v62  ;;  %v824_v6 = vld [vmem:[%s4686_s22 + $0x14d0] sm:$0xff] }
 0x2b9   : > { %3875 = vst [vmem:[%s4703_s16 + $0x1360] sm:$0xff] %v2842_v15  ;;  %v1835_v15 = vadd.f32 2.0, %v803_v7  ;;  %v2865_v20 = vmul.f32 %v1833_v9, %v801_v1  ;;  %v825_v9 = vld [vmem:[%s4686_s22 + $0x14d8] sm:$0xff] }
 0x2ba   : > { %3876 = vst [vmem:[%s4703_s16 + $0x1368] sm:$0xff] %v2843_v18  ;;  %v1836_v18 = vadd.f32 2.0, %v804_v10  ;;  %v2866_v23 = vmul.f32 %v1834_v12, %v802_v4  ;;  %v826_v12 = vld [vmem:[%s4686_s22 + $0x14e0] sm:$0xff] }
 0x2bb   : > { %3877 = vst [vmem:[%s4703_s16 + $0x1370] sm:$0xff] %v2844_v21  ;;  %v1837_v21 = vadd.f32 2.0, %v805_v13  ;;  %v2867_v26 = vmul.f32 %v1835_v15, %v803_v7  ;;  %v827_v15 = vld [vmem:[%s4686_s22 + $0x14e8] sm:$0xff] }
 0x2bc   : > { %3878 = vst.msk [vmem:[%s4703_s16 + $0x1378] sm:$0xff] %vm3277_vm0, %v2845_v24  ;;  %v1838_v24 = vadd.f32 2.0, %v806_v16  ;;  %v2868_v29 = vmul.f32 %v1836_v18, %v804_v10  ;;  %v828_v18 = vld [vmem:[%s4686_s22 + $0x14f0] sm:$0xff] }
 0x2bd   : > { %3879 = vst [vmem:[%s4703_s16 + $0x1380] sm:$0xff] %v2846_v27  ;;  %v1839_v27 = vadd.f32 2.0, %v807_v19  ;;  %v2869_v32 = vmul.f32 %v1837_v21, %v805_v13  ;;  %v829_v21 = vld [vmem:[%s4686_s22 + $0x14f8] sm:$0xff] }
 0x2be   : > { %3880 = vst [vmem:[%s4703_s16 + $0x1388] sm:$0xff] %v2847_v30  ;;  %v1840_v30 = vadd.f32 2.0, %v808_v22  ;;  %v2870_v35 = vmul.f32 %v1838_v24, %v806_v16  ;;  %v830_v24 = vld [vmem:[%s4686_s22 + $0x1500] sm:$0xff] }
 0x2bf   : > { %3881 = vst [vmem:[%s4703_s16 + $0x1390] sm:$0xff] %v2848_v33  ;;  %v1841_v33 = vadd.f32 2.0, %v809_v25  ;;  %v2871_v38 = vmul.f32 %v1839_v27, %v807_v19  ;;  %v831_v27 = vld [vmem:[%s4686_s22 + $0x1508] sm:$0xff] }
 0x2c0   : > { %3882 = vst [vmem:[%s4703_s16 + $0x1398] sm:$0xff] %v2849_v36  ;;  %v1842_v36 = vadd.f32 2.0, %v810_v28  ;;  %v2872_v41 = vmul.f32 %v1840_v30, %v808_v22  ;;  %v832_v30 = vld [vmem:[%s4686_s22 + $0x1510] sm:$0xff] }
 0x2c1   : > { %3883 = vst [vmem:[%s4703_s16 + $0x13a0] sm:$0xff] %v2850_v39  ;;  %v1843_v39 = vadd.f32 2.0, %v811_v31  ;;  %v2873_v44 = vmul.f32 %v1841_v33, %v809_v25  ;;  %v833_v33 = vld [vmem:[%s4686_s22 + $0x1518] sm:$0xff] }
 0x2c2   : > { %3884 = vst [vmem:[%s4703_s16 + $0x13a8] sm:$0xff] %v2851_v42  ;;  %v1844_v42 = vadd.f32 2.0, %v812_v34  ;;  %v2874_v47 = vmul.f32 %v1842_v36, %v810_v28  ;;  %v834_v36 = vld [vmem:[%s4686_s22 + $0x1520] sm:$0xff] }
 0x2c3   : > { %3885 = vst [vmem:[%s4703_s16 + $0x13b0] sm:$0xff] %v2852_v45  ;;  %v1845_v45 = vadd.f32 2.0, %v813_v37  ;;  %v2875_v50 = vmul.f32 %v1843_v39, %v811_v31  ;;  %v835_v39 = vld [vmem:[%s4686_s22 + $0x1528] sm:$0xff] }
 0x2c4   : > { %3886 = vst [vmem:[%s4703_s16 + $0x13b8] sm:$0xff] %v2853_v48  ;;  %v1846_v48 = vadd.f32 2.0, %v814_v40  ;;  %v2876_v53 = vmul.f32 %v1844_v42, %v812_v34  ;;  %v836_v42 = vld [vmem:[%s4686_s22 + $0x1530] sm:$0xff] }
 0x2c5   : > { %3887 = vst [vmem:[%s4703_s16 + $0x13c0] sm:$0xff] %v2854_v51  ;;  %v1847_v51 = vadd.f32 2.0, %v815_v43  ;;  %v2877_v56 = vmul.f32 %v1845_v45, %v813_v37  ;;  %v837_v45 = vld [vmem:[%s4686_s22 + $0x1538] sm:$0xff] }
 0x2c6   : > { %3888 = vst [vmem:[%s4703_s16 + $0x13c8] sm:$0xff] %v2855_v54  ;;  %v1848_v54 = vadd.f32 2.0, %v816_v46  ;;  %v2878_v59 = vmul.f32 %v1846_v48, %v814_v40  ;;  %v838_v48 = vld [vmem:[%s4686_s22 + $0x1540] sm:$0xff] }
 0x2c7   : > { %3889 = vst [vmem:[%s4703_s16 + $0x13d0] sm:$0xff] %v2856_v57  ;;  %v1849_v57 = vadd.f32 2.0, %v817_v49  ;;  %v2879_v62 = vmul.f32 %v1847_v51, %v815_v43  ;;  %v839_v51 = vld [vmem:[%s4686_s22 + $0x1548] sm:$0xff] }
 0x2c8   : > { %3890 = vst [vmem:[%s4703_s16 + $0x13d8] sm:$0xff] %v2857_v60  ;;  %v1850_v60 = vadd.f32 2.0, %v818_v52  ;;  %v2880_v1 = vmul.f32 %v1848_v54, %v816_v46  ;;  %v840_v54 = vld [vmem:[%s4686_s22 + $0x1550] sm:$0xff] }
 0x2c9   : > { %3891 = vst [vmem:[%s4703_s16 + $0x13e0] sm:$0xff] %v2858_v63  ;;  %v1851_v63 = vadd.f32 2.0, %v819_v55  ;;  %v2881_v4 = vmul.f32 %v1849_v57, %v817_v49  ;;  %v841_v57 = vld [vmem:[%s4686_s22 + $0x1558] sm:$0xff] }
 0x2ca   : > { %3892 = vst [vmem:[%s4703_s16 + $0x13e8] sm:$0xff] %v2859_v2  ;;  %v1852_v2 = vadd.f32 2.0, %v820_v58  ;;  %v2882_v7 = vmul.f32 %v1850_v60, %v818_v52  ;;  %v842_v60 = vld [vmem:[%s4686_s22 + $0x1560] sm:$0xff] }
 0x2cb   : > { %3893 = vst [vmem:[%s4703_s16 + $0x13f0] sm:$0xff] %v2860_v5  ;;  %v1853_v5 = vadd.f32 2.0, %v821_v61  ;;  %v2883_v10 = vmul.f32 %v1851_v63, %v819_v55  ;;  %v843_v63 = vld [vmem:[%s4686_s22 + $0x1568] sm:$0xff] }
 0x2cc   : > { %3894 = vst [vmem:[%s4703_s16 + $0x13f8] sm:$0xff] %v2861_v8  ;;  %v1854_v8 = vadd.f32 2.0, %v822_v0  ;;  %v2884_v13 = vmul.f32 %v1852_v2, %v820_v58  ;;  %v844_v2 = vld [vmem:[%s4686_s22 + $0x1570] sm:$0xff] }
 0x2cd   : > { %3895 = vst [vmem:[%s4703_s16 + $0x1400] sm:$0xff] %v2862_v11  ;;  %v1855_v11 = vadd.f32 2.0, %v823_v3  ;;  %v2885_v16 = vmul.f32 %v1853_v5, %v821_v61  ;;  %v845_v5 = vld [vmem:[%s4686_s22 + $0x1578] sm:$0xff] }
 0x2ce   : > { %3896 = vst [vmem:[%s4703_s16 + $0x1408] sm:$0xff] %v2863_v14  ;;  %v1856_v14 = vadd.f32 2.0, %v824_v6  ;;  %v2886_v19 = vmul.f32 %v1854_v8, %v822_v0  ;;  %v846_v8 = vld [vmem:[%s4686_s22 + $0x1580] sm:$0xff] }
 0x2cf   : > { %3897 = vst [vmem:[%s4703_s16 + $0x1410] sm:$0xff] %v2864_v17  ;;  %v1857_v17 = vadd.f32 2.0, %v825_v9  ;;  %v2887_v22 = vmul.f32 %v1855_v11, %v823_v3  ;;  %v847_v11 = vld [vmem:[%s4686_s22 + $0x1588] sm:$0xff] }
 0x2d0   : > { %3898 = vst [vmem:[%s4703_s16 + $0x1418] sm:$0xff] %v2865_v20  ;;  %v1858_v20 = vadd.f32 2.0, %v826_v12  ;;  %v2888_v25 = vmul.f32 %v1856_v14, %v824_v6  ;;  %v848_v14 = vld [vmem:[%s4686_s22 + $0x1590] sm:$0xff] }
 0x2d1   : > { %3899 = vst [vmem:[%s4703_s16 + $0x1420] sm:$0xff] %v2866_v23  ;;  %v1859_v23 = vadd.f32 2.0, %v827_v15  ;;  %v2889_v28 = vmul.f32 %v1857_v17, %v825_v9  ;;  %v849_v17 = vld [vmem:[%s4686_s22 + $0x1598] sm:$0xff] }
 0x2d2   : > { %3900 = vst [vmem:[%s4703_s16 + $0x1428] sm:$0xff] %v2867_v26  ;;  %v1860_v26 = vadd.f32 2.0, %v828_v18  ;;  %v2890_v31 = vmul.f32 %v1858_v20, %v826_v12  ;;  %v850_v20 = vld [vmem:[%s4686_s22 + $0x15a0] sm:$0xff] }
 0x2d3   : > { %3901 = vst [vmem:[%s4703_s16 + $0x1430] sm:$0xff] %v2868_v29  ;;  %v1861_v29 = vadd.f32 2.0, %v829_v21  ;;  %v2891_v34 = vmul.f32 %v1859_v23, %v827_v15  ;;  %v851_v23 = vld [vmem:[%s4686_s22 + $0x15a8] sm:$0xff] }
 0x2d4   : > { %3902 = vst.msk [vmem:[%s4703_s16 + $0x1438] sm:$0xff] %vm3277_vm0, %v2869_v32  ;;  %v1862_v32 = vadd.f32 2.0, %v830_v24  ;;  %v2892_v37 = vmul.f32 %v1860_v26, %v828_v18  ;;  %v852_v26 = vld [vmem:[%s4686_s22 + $0x15b0] sm:$0xff] }
 0x2d5   : > { %3903 = vst [vmem:[%s4703_s16 + $0x1440] sm:$0xff] %v2870_v35  ;;  %v1863_v35 = vadd.f32 2.0, %v831_v27  ;;  %v2893_v40 = vmul.f32 %v1861_v29, %v829_v21  ;;  %v853_v29 = vld [vmem:[%s4686_s22 + $0x15b8] sm:$0xff] }
 0x2d6   : > { %3904 = vst [vmem:[%s4703_s16 + $0x1448] sm:$0xff] %v2871_v38  ;;  %v1864_v38 = vadd.f32 2.0, %v832_v30  ;;  %v2894_v43 = vmul.f32 %v1862_v32, %v830_v24  ;;  %v854_v32 = vld [vmem:[%s4686_s22 + $0x15c0] sm:$0xff] }
 0x2d7   : > { %3905 = vst [vmem:[%s4703_s16 + $0x1450] sm:$0xff] %v2872_v41  ;;  %v1865_v41 = vadd.f32 2.0, %v833_v33  ;;  %v2895_v46 = vmul.f32 %v1863_v35, %v831_v27  ;;  %v855_v35 = vld [vmem:[%s4686_s22 + $0x15c8] sm:$0xff] }
 0x2d8   : > { %3906 = vst [vmem:[%s4703_s16 + $0x1458] sm:$0xff] %v2873_v44  ;;  %v1866_v44 = vadd.f32 2.0, %v834_v36  ;;  %v2896_v49 = vmul.f32 %v1864_v38, %v832_v30  ;;  %v856_v38 = vld [vmem:[%s4686_s22 + $0x15d0] sm:$0xff] }
 0x2d9   : > { %3907 = vst [vmem:[%s4703_s16 + $0x1460] sm:$0xff] %v2874_v47  ;;  %v1867_v47 = vadd.f32 2.0, %v835_v39  ;;  %v2897_v52 = vmul.f32 %v1865_v41, %v833_v33  ;;  %v857_v41 = vld [vmem:[%s4686_s22 + $0x15d8] sm:$0xff] }
 0x2da   : > { %3908 = vst [vmem:[%s4703_s16 + $0x1468] sm:$0xff] %v2875_v50  ;;  %v1868_v50 = vadd.f32 2.0, %v836_v42  ;;  %v2898_v55 = vmul.f32 %v1866_v44, %v834_v36  ;;  %v858_v44 = vld [vmem:[%s4686_s22 + $0x15e0] sm:$0xff] }
 0x2db   : > { %3909 = vst [vmem:[%s4703_s16 + $0x1470] sm:$0xff] %v2876_v53  ;;  %v1869_v53 = vadd.f32 2.0, %v837_v45  ;;  %v2899_v58 = vmul.f32 %v1867_v47, %v835_v39  ;;  %v859_v47 = vld [vmem:[%s4686_s22 + $0x15e8] sm:$0xff] }
 0x2dc   : > { %3910 = vst [vmem:[%s4703_s16 + $0x1478] sm:$0xff] %v2877_v56  ;;  %v1870_v56 = vadd.f32 2.0, %v838_v48  ;;  %v2900_v61 = vmul.f32 %v1868_v50, %v836_v42  ;;  %v860_v50 = vld [vmem:[%s4686_s22 + $0x15f0] sm:$0xff] }
 0x2dd   : > { %3911 = vst [vmem:[%s4703_s16 + $0x1480] sm:$0xff] %v2878_v59  ;;  %v1871_v59 = vadd.f32 2.0, %v839_v51  ;;  %v2901_v0 = vmul.f32 %v1869_v53, %v837_v45  ;;  %v861_v53 = vld [vmem:[%s4686_s22 + $0x15f8] sm:$0xff] }
 0x2de   : > { %3912 = vst [vmem:[%s4703_s16 + $0x1488] sm:$0xff] %v2879_v62  ;;  %v1872_v62 = vadd.f32 2.0, %v840_v54  ;;  %v2902_v3 = vmul.f32 %v1870_v56, %v838_v48  ;;  %v862_v56 = vld [vmem:[%s4686_s22 + $0x1600] sm:$0xff] }
 0x2df   : > { %3913 = vst [vmem:[%s4703_s16 + $0x1490] sm:$0xff] %v2880_v1  ;;  %v1873_v1 = vadd.f32 2.0, %v841_v57  ;;  %v2903_v6 = vmul.f32 %v1871_v59, %v839_v51  ;;  %v863_v59 = vld [vmem:[%s4686_s22 + $0x1608] sm:$0xff] }
 0x2e0   : > { %3914 = vst [vmem:[%s4703_s16 + $0x1498] sm:$0xff] %v2881_v4  ;;  %v1874_v4 = vadd.f32 2.0, %v842_v60  ;;  %v2904_v9 = vmul.f32 %v1872_v62, %v840_v54  ;;  %v864_v62 = vld [vmem:[%s4686_s22 + $0x1610] sm:$0xff] }
 0x2e1   : > { %3915 = vst [vmem:[%s4703_s16 + $0x14a0] sm:$0xff] %v2882_v7  ;;  %v1875_v7 = vadd.f32 2.0, %v843_v63  ;;  %v2905_v12 = vmul.f32 %v1873_v1, %v841_v57  ;;  %v865_v1 = vld [vmem:[%s4686_s22 + $0x1618] sm:$0xff] }
 0x2e2   : > { %3916 = vst [vmem:[%s4703_s16 + $0x14a8] sm:$0xff] %v2883_v10  ;;  %v1876_v10 = vadd.f32 2.0, %v844_v2  ;;  %v2906_v15 = vmul.f32 %v1874_v4, %v842_v60  ;;  %v866_v4 = vld [vmem:[%s4686_s22 + $0x1620] sm:$0xff] }
 0x2e3   : > { %3917 = vst [vmem:[%s4703_s16 + $0x14b0] sm:$0xff] %v2884_v13  ;;  %v1877_v13 = vadd.f32 2.0, %v845_v5  ;;  %v2907_v18 = vmul.f32 %v1875_v7, %v843_v63  ;;  %v867_v7 = vld [vmem:[%s4686_s22 + $0x1628] sm:$0xff] }
 0x2e4   : > { %3918 = vst [vmem:[%s4703_s16 + $0x14b8] sm:$0xff] %v2885_v16  ;;  %v1878_v16 = vadd.f32 2.0, %v846_v8  ;;  %v2908_v21 = vmul.f32 %v1876_v10, %v844_v2  ;;  %v868_v10 = vld [vmem:[%s4686_s22 + $0x1630] sm:$0xff] }
 0x2e5   : > { %3919 = vst [vmem:[%s4703_s16 + $0x14c0] sm:$0xff] %v2886_v19  ;;  %v1879_v19 = vadd.f32 2.0, %v847_v11  ;;  %v2909_v24 = vmul.f32 %v1877_v13, %v845_v5  ;;  %v869_v13 = vld [vmem:[%s4686_s22 + $0x1638] sm:$0xff] }
 0x2e6   : > { %3920 = vst [vmem:[%s4703_s16 + $0x14c8] sm:$0xff] %v2887_v22  ;;  %v1880_v22 = vadd.f32 2.0, %v848_v14  ;;  %v2910_v27 = vmul.f32 %v1878_v16, %v846_v8  ;;  %v870_v16 = vld [vmem:[%s4686_s22 + $0x1640] sm:$0xff] }
 0x2e7   : > { %3921 = vst [vmem:[%s4703_s16 + $0x14d0] sm:$0xff] %v2888_v25  ;;  %v1881_v25 = vadd.f32 2.0, %v849_v17  ;;  %v2911_v30 = vmul.f32 %v1879_v19, %v847_v11  ;;  %v871_v19 = vld [vmem:[%s4686_s22 + $0x1648] sm:$0xff] }
 0x2e8   : > { %3922 = vst [vmem:[%s4703_s16 + $0x14d8] sm:$0xff] %v2889_v28  ;;  %v1882_v28 = vadd.f32 2.0, %v850_v20  ;;  %v2912_v33 = vmul.f32 %v1880_v22, %v848_v14  ;;  %v872_v22 = vld [vmem:[%s4686_s22 + $0x1650] sm:$0xff] }
 0x2e9   : > { %3923 = vst [vmem:[%s4703_s16 + $0x14e0] sm:$0xff] %v2890_v31  ;;  %v1883_v31 = vadd.f32 2.0, %v851_v23  ;;  %v2913_v36 = vmul.f32 %v1881_v25, %v849_v17  ;;  %v873_v25 = vld [vmem:[%s4686_s22 + $0x1658] sm:$0xff] }
 0x2ea   : > { %3924 = vst [vmem:[%s4703_s16 + $0x14e8] sm:$0xff] %v2891_v34  ;;  %v1884_v34 = vadd.f32 2.0, %v852_v26  ;;  %v2914_v39 = vmul.f32 %v1882_v28, %v850_v20  ;;  %v874_v28 = vld [vmem:[%s4686_s22 + $0x1660] sm:$0xff] }
 0x2eb   : > { %3925 = vst [vmem:[%s4703_s16 + $0x14f0] sm:$0xff] %v2892_v37  ;;  %v1885_v37 = vadd.f32 2.0, %v853_v29  ;;  %v2915_v42 = vmul.f32 %v1883_v31, %v851_v23  ;;  %v875_v31 = vld [vmem:[%s4686_s22 + $0x1668] sm:$0xff] }
 0x2ec   : > { %3926 = vst.msk [vmem:[%s4703_s16 + $0x14f8] sm:$0xff] %vm3277_vm0, %v2893_v40  ;;  %v1886_v40 = vadd.f32 2.0, %v854_v32  ;;  %v2916_v45 = vmul.f32 %v1884_v34, %v852_v26  ;;  %v876_v34 = vld [vmem:[%s4686_s22 + $0x1670] sm:$0xff] }
 0x2ed   : > { %3927 = vst [vmem:[%s4703_s16 + $0x1500] sm:$0xff] %v2894_v43  ;;  %v1887_v43 = vadd.f32 2.0, %v855_v35  ;;  %v2917_v48 = vmul.f32 %v1885_v37, %v853_v29  ;;  %v877_v37 = vld [vmem:[%s4686_s22 + $0x1678] sm:$0xff] }
 0x2ee   : > { %3928 = vst [vmem:[%s4703_s16 + $0x1508] sm:$0xff] %v2895_v46  ;;  %v1888_v46 = vadd.f32 2.0, %v856_v38  ;;  %v2918_v51 = vmul.f32 %v1886_v40, %v854_v32  ;;  %v878_v40 = vld [vmem:[%s4686_s22 + $0x1680] sm:$0xff] }
 0x2ef   : > { %3929 = vst [vmem:[%s4703_s16 + $0x1510] sm:$0xff] %v2896_v49  ;;  %v1889_v49 = vadd.f32 2.0, %v857_v41  ;;  %v2919_v54 = vmul.f32 %v1887_v43, %v855_v35  ;;  %v879_v43 = vld [vmem:[%s4686_s22 + $0x1688] sm:$0xff] }
 0x2f0   : > { %3930 = vst [vmem:[%s4703_s16 + $0x1518] sm:$0xff] %v2897_v52  ;;  %v1890_v52 = vadd.f32 2.0, %v858_v44  ;;  %v2920_v57 = vmul.f32 %v1888_v46, %v856_v38  ;;  %v880_v46 = vld [vmem:[%s4686_s22 + $0x1690] sm:$0xff] }
 0x2f1   : > { %3931 = vst [vmem:[%s4703_s16 + $0x1520] sm:$0xff] %v2898_v55  ;;  %v1891_v55 = vadd.f32 2.0, %v859_v47  ;;  %v2921_v60 = vmul.f32 %v1889_v49, %v857_v41  ;;  %v881_v49 = vld [vmem:[%s4686_s22 + $0x1698] sm:$0xff] }
 0x2f2   : > { %3932 = vst [vmem:[%s4703_s16 + $0x1528] sm:$0xff] %v2899_v58  ;;  %v1892_v58 = vadd.f32 2.0, %v860_v50  ;;  %v2922_v63 = vmul.f32 %v1890_v52, %v858_v44  ;;  %v882_v52 = vld [vmem:[%s4686_s22 + $0x16a0] sm:$0xff] }
 0x2f3   : > { %3933 = vst [vmem:[%s4703_s16 + $0x1530] sm:$0xff] %v2900_v61  ;;  %v1893_v61 = vadd.f32 2.0, %v861_v53  ;;  %v2923_v2 = vmul.f32 %v1891_v55, %v859_v47  ;;  %v883_v55 = vld [vmem:[%s4686_s22 + $0x16a8] sm:$0xff] }
 0x2f4   : > { %3934 = vst [vmem:[%s4703_s16 + $0x1538] sm:$0xff] %v2901_v0  ;;  %v1894_v0 = vadd.f32 2.0, %v862_v56  ;;  %v2924_v5 = vmul.f32 %v1892_v58, %v860_v50  ;;  %v884_v58 = vld [vmem:[%s4686_s22 + $0x16b0] sm:$0xff] }
 0x2f5   : > { %3935 = vst [vmem:[%s4703_s16 + $0x1540] sm:$0xff] %v2902_v3  ;;  %v1895_v3 = vadd.f32 2.0, %v863_v59  ;;  %v2925_v8 = vmul.f32 %v1893_v61, %v861_v53  ;;  %v885_v61 = vld [vmem:[%s4686_s22 + $0x16b8] sm:$0xff] }
 0x2f6   : > { %3936 = vst [vmem:[%s4703_s16 + $0x1548] sm:$0xff] %v2903_v6  ;;  %v1896_v6 = vadd.f32 2.0, %v864_v62  ;;  %v2926_v11 = vmul.f32 %v1894_v0, %v862_v56  ;;  %v886_v0 = vld [vmem:[%s4686_s22 + $0x16c0] sm:$0xff] }
 0x2f7   : > { %3937 = vst [vmem:[%s4703_s16 + $0x1550] sm:$0xff] %v2904_v9  ;;  %v1897_v9 = vadd.f32 2.0, %v865_v1  ;;  %v2927_v14 = vmul.f32 %v1895_v3, %v863_v59  ;;  %v887_v3 = vld [vmem:[%s4686_s22 + $0x16c8] sm:$0xff] }
 0x2f8   : > { %3938 = vst [vmem:[%s4703_s16 + $0x1558] sm:$0xff] %v2905_v12  ;;  %v1898_v12 = vadd.f32 2.0, %v866_v4  ;;  %v2928_v17 = vmul.f32 %v1896_v6, %v864_v62  ;;  %v888_v6 = vld [vmem:[%s4686_s22 + $0x16d0] sm:$0xff] }
 0x2f9   : > { %3939 = vst [vmem:[%s4703_s16 + $0x1560] sm:$0xff] %v2906_v15  ;;  %v1899_v15 = vadd.f32 2.0, %v867_v7  ;;  %v2929_v20 = vmul.f32 %v1897_v9, %v865_v1  ;;  %v889_v9 = vld [vmem:[%s4686_s22 + $0x16d8] sm:$0xff] }
 0x2fa   : > { %3940 = vst [vmem:[%s4703_s16 + $0x1568] sm:$0xff] %v2907_v18  ;;  %v1900_v18 = vadd.f32 2.0, %v868_v10  ;;  %v2930_v23 = vmul.f32 %v1898_v12, %v866_v4  ;;  %v890_v12 = vld [vmem:[%s4686_s22 + $0x16e0] sm:$0xff] }
 0x2fb   : > { %3941 = vst [vmem:[%s4703_s16 + $0x1570] sm:$0xff] %v2908_v21  ;;  %v1901_v21 = vadd.f32 2.0, %v869_v13  ;;  %v2931_v26 = vmul.f32 %v1899_v15, %v867_v7  ;;  %v891_v15 = vld [vmem:[%s4686_s22 + $0x16e8] sm:$0xff] }
 0x2fc   : > { %3942 = vst [vmem:[%s4703_s16 + $0x1578] sm:$0xff] %v2909_v24  ;;  %v1902_v24 = vadd.f32 2.0, %v870_v16  ;;  %v2932_v29 = vmul.f32 %v1900_v18, %v868_v10  ;;  %v892_v18 = vld [vmem:[%s4686_s22 + $0x16f0] sm:$0xff] }
 0x2fd   : > { %3943 = vst [vmem:[%s4703_s16 + $0x1580] sm:$0xff] %v2910_v27  ;;  %v1903_v27 = vadd.f32 2.0, %v871_v19  ;;  %v2933_v32 = vmul.f32 %v1901_v21, %v869_v13  ;;  %v893_v21 = vld [vmem:[%s4686_s22 + $0x16f8] sm:$0xff] }
 0x2fe   : > { %3944 = vst [vmem:[%s4703_s16 + $0x1588] sm:$0xff] %v2911_v30  ;;  %v1904_v30 = vadd.f32 2.0, %v872_v22  ;;  %v2934_v35 = vmul.f32 %v1902_v24, %v870_v16  ;;  %v894_v24 = vld [vmem:[%s4686_s22 + $0x1700] sm:$0xff] }
 0x2ff   : > { %3945 = vst [vmem:[%s4703_s16 + $0x1590] sm:$0xff] %v2912_v33  ;;  %v1905_v33 = vadd.f32 2.0, %v873_v25  ;;  %v2935_v38 = vmul.f32 %v1903_v27, %v871_v19  ;;  %v895_v27 = vld [vmem:[%s4686_s22 + $0x1708] sm:$0xff] }
 0x300   : > { %3946 = vst [vmem:[%s4703_s16 + $0x1598] sm:$0xff] %v2913_v36  ;;  %v1906_v36 = vadd.f32 2.0, %v874_v28  ;;  %v2936_v41 = vmul.f32 %v1904_v30, %v872_v22  ;;  %v896_v30 = vld [vmem:[%s4686_s22 + $0x1710] sm:$0xff] }
 0x301   : > { %3947 = vst [vmem:[%s4703_s16 + $0x15a0] sm:$0xff] %v2914_v39  ;;  %v1907_v39 = vadd.f32 2.0, %v875_v31  ;;  %v2937_v44 = vmul.f32 %v1905_v33, %v873_v25  ;;  %v897_v33 = vld [vmem:[%s4686_s22 + $0x1718] sm:$0xff] }
 0x302   : > { %3948 = vst [vmem:[%s4703_s16 + $0x15a8] sm:$0xff] %v2915_v42  ;;  %v1908_v42 = vadd.f32 2.0, %v876_v34  ;;  %v2938_v47 = vmul.f32 %v1906_v36, %v874_v28  ;;  %v898_v36 = vld [vmem:[%s4686_s22 + $0x1720] sm:$0xff] }
 0x303   : > { %3949 = vst [vmem:[%s4703_s16 + $0x15b0] sm:$0xff] %v2916_v45  ;;  %v1909_v45 = vadd.f32 2.0, %v877_v37  ;;  %v2939_v50 = vmul.f32 %v1907_v39, %v875_v31  ;;  %v899_v39 = vld [vmem:[%s4686_s22 + $0x1728] sm:$0xff] }
 0x304   : > { %3950 = vst.msk [vmem:[%s4703_s16 + $0x15b8] sm:$0xff] %vm3277_vm0, %v2917_v48  ;;  %v1910_v48 = vadd.f32 2.0, %v878_v40  ;;  %v2940_v53 = vmul.f32 %v1908_v42, %v876_v34  ;;  %v900_v42 = vld [vmem:[%s4686_s22 + $0x1730] sm:$0xff] }
 0x305   : > { %3951 = vst [vmem:[%s4703_s16 + $0x15c0] sm:$0xff] %v2918_v51  ;;  %v1911_v51 = vadd.f32 2.0, %v879_v43  ;;  %v2941_v56 = vmul.f32 %v1909_v45, %v877_v37  ;;  %v901_v45 = vld [vmem:[%s4686_s22 + $0x1738] sm:$0xff] }
 0x306   : > { %3952 = vst [vmem:[%s4703_s16 + $0x15c8] sm:$0xff] %v2919_v54  ;;  %v1912_v54 = vadd.f32 2.0, %v880_v46  ;;  %v2942_v59 = vmul.f32 %v1910_v48, %v878_v40  ;;  %v902_v48 = vld [vmem:[%s4686_s22 + $0x1740] sm:$0xff] }
 0x307   : > { %3953 = vst [vmem:[%s4703_s16 + $0x15d0] sm:$0xff] %v2920_v57  ;;  %v1913_v57 = vadd.f32 2.0, %v881_v49  ;;  %v2943_v62 = vmul.f32 %v1911_v51, %v879_v43  ;;  %v903_v51 = vld [vmem:[%s4686_s22 + $0x1748] sm:$0xff] }
 0x308   : > { %3954 = vst [vmem:[%s4703_s16 + $0x15d8] sm:$0xff] %v2921_v60  ;;  %v1914_v60 = vadd.f32 2.0, %v882_v52  ;;  %v2944_v1 = vmul.f32 %v1912_v54, %v880_v46  ;;  %v904_v54 = vld [vmem:[%s4686_s22 + $0x1750] sm:$0xff] }
 0x309   : > { %3955 = vst [vmem:[%s4703_s16 + $0x15e0] sm:$0xff] %v2922_v63  ;;  %v1915_v63 = vadd.f32 2.0, %v883_v55  ;;  %v2945_v4 = vmul.f32 %v1913_v57, %v881_v49  ;;  %v905_v57 = vld [vmem:[%s4686_s22 + $0x1758] sm:$0xff] }
 0x30a   : > { %3956 = vst [vmem:[%s4703_s16 + $0x15e8] sm:$0xff] %v2923_v2  ;;  %v1916_v2 = vadd.f32 2.0, %v884_v58  ;;  %v2946_v7 = vmul.f32 %v1914_v60, %v882_v52  ;;  %v906_v60 = vld [vmem:[%s4686_s22 + $0x1760] sm:$0xff] }
 0x30b   : > { %3957 = vst [vmem:[%s4703_s16 + $0x15f0] sm:$0xff] %v2924_v5  ;;  %v1917_v5 = vadd.f32 2.0, %v885_v61  ;;  %v2947_v10 = vmul.f32 %v1915_v63, %v883_v55  ;;  %v907_v63 = vld [vmem:[%s4686_s22 + $0x1768] sm:$0xff] }
 0x30c   : > { %3958 = vst [vmem:[%s4703_s16 + $0x15f8] sm:$0xff] %v2925_v8  ;;  %v1918_v8 = vadd.f32 2.0, %v886_v0  ;;  %v2948_v13 = vmul.f32 %v1916_v2, %v884_v58  ;;  %v908_v2 = vld [vmem:[%s4686_s22 + $0x1770] sm:$0xff] }
 0x30d   : > { %3959 = vst [vmem:[%s4703_s16 + $0x1600] sm:$0xff] %v2926_v11  ;;  %v1919_v11 = vadd.f32 2.0, %v887_v3  ;;  %v2949_v16 = vmul.f32 %v1917_v5, %v885_v61  ;;  %v909_v5 = vld [vmem:[%s4686_s22 + $0x1778] sm:$0xff] }
 0x30e   : > { %3960 = vst [vmem:[%s4703_s16 + $0x1608] sm:$0xff] %v2927_v14  ;;  %v1920_v14 = vadd.f32 2.0, %v888_v6  ;;  %v2950_v19 = vmul.f32 %v1918_v8, %v886_v0  ;;  %v910_v8 = vld [vmem:[%s4686_s22 + $0x1780] sm:$0xff] }
 0x30f   : > { %3961 = vst [vmem:[%s4703_s16 + $0x1610] sm:$0xff] %v2928_v17  ;;  %v1921_v17 = vadd.f32 2.0, %v889_v9  ;;  %v2951_v22 = vmul.f32 %v1919_v11, %v887_v3  ;;  %v911_v11 = vld [vmem:[%s4686_s22 + $0x1788] sm:$0xff] }
 0x310   : > { %3962 = vst [vmem:[%s4703_s16 + $0x1618] sm:$0xff] %v2929_v20  ;;  %v1922_v20 = vadd.f32 2.0, %v890_v12  ;;  %v2952_v25 = vmul.f32 %v1920_v14, %v888_v6  ;;  %v912_v14 = vld [vmem:[%s4686_s22 + $0x1790] sm:$0xff] }
 0x311   : > { %3963 = vst [vmem:[%s4703_s16 + $0x1620] sm:$0xff] %v2930_v23  ;;  %v1923_v23 = vadd.f32 2.0, %v891_v15  ;;  %v2953_v28 = vmul.f32 %v1921_v17, %v889_v9  ;;  %v913_v17 = vld [vmem:[%s4686_s22 + $0x1798] sm:$0xff] }
 0x312   : > { %3964 = vst [vmem:[%s4703_s16 + $0x1628] sm:$0xff] %v2931_v26  ;;  %v1924_v26 = vadd.f32 2.0, %v892_v18  ;;  %v2954_v31 = vmul.f32 %v1922_v20, %v890_v12  ;;  %v914_v20 = vld [vmem:[%s4686_s22 + $0x17a0] sm:$0xff] }
 0x313   : > { %3965 = vst [vmem:[%s4703_s16 + $0x1630] sm:$0xff] %v2932_v29  ;;  %v1925_v29 = vadd.f32 2.0, %v893_v21  ;;  %v2955_v34 = vmul.f32 %v1923_v23, %v891_v15  ;;  %v915_v23 = vld [vmem:[%s4686_s22 + $0x17a8] sm:$0xff] }
 0x314   : > { %3966 = vst [vmem:[%s4703_s16 + $0x1638] sm:$0xff] %v2933_v32  ;;  %v1926_v32 = vadd.f32 2.0, %v894_v24  ;;  %v2956_v37 = vmul.f32 %v1924_v26, %v892_v18  ;;  %v916_v26 = vld [vmem:[%s4686_s22 + $0x17b0] sm:$0xff] }
 0x315   : > { %3967 = vst [vmem:[%s4703_s16 + $0x1640] sm:$0xff] %v2934_v35  ;;  %v1927_v35 = vadd.f32 2.0, %v895_v27  ;;  %v2957_v40 = vmul.f32 %v1925_v29, %v893_v21  ;;  %v917_v29 = vld [vmem:[%s4686_s22 + $0x17b8] sm:$0xff] }
 0x316   : > { %3968 = vst [vmem:[%s4703_s16 + $0x1648] sm:$0xff] %v2935_v38  ;;  %v1928_v38 = vadd.f32 2.0, %v896_v30  ;;  %v2958_v43 = vmul.f32 %v1926_v32, %v894_v24  ;;  %v918_v32 = vld [vmem:[%s4686_s22 + $0x17c0] sm:$0xff] }
 0x317   : > { %3969 = vst [vmem:[%s4703_s16 + $0x1650] sm:$0xff] %v2936_v41  ;;  %v1929_v41 = vadd.f32 2.0, %v897_v33  ;;  %v2959_v46 = vmul.f32 %v1927_v35, %v895_v27  ;;  %v919_v35 = vld [vmem:[%s4686_s22 + $0x17c8] sm:$0xff] }
 0x318   : > { %3970 = vst [vmem:[%s4703_s16 + $0x1658] sm:$0xff] %v2937_v44  ;;  %v1930_v44 = vadd.f32 2.0, %v898_v36  ;;  %v2960_v49 = vmul.f32 %v1928_v38, %v896_v30  ;;  %v920_v38 = vld [vmem:[%s4686_s22 + $0x17d0] sm:$0xff] }
 0x319   : > { %3971 = vst [vmem:[%s4703_s16 + $0x1660] sm:$0xff] %v2938_v47  ;;  %v1931_v47 = vadd.f32 2.0, %v899_v39  ;;  %v2961_v52 = vmul.f32 %v1929_v41, %v897_v33  ;;  %v921_v41 = vld [vmem:[%s4686_s22 + $0x17d8] sm:$0xff] }
 0x31a   : > { %3972 = vst [vmem:[%s4703_s16 + $0x1668] sm:$0xff] %v2939_v50  ;;  %v1932_v50 = vadd.f32 2.0, %v900_v42  ;;  %v2962_v55 = vmul.f32 %v1930_v44, %v898_v36  ;;  %v922_v44 = vld [vmem:[%s4686_s22 + $0x17e0] sm:$0xff] }
 0x31b   : > { %3973 = vst [vmem:[%s4703_s16 + $0x1670] sm:$0xff] %v2940_v53  ;;  %v1933_v53 = vadd.f32 2.0, %v901_v45  ;;  %v2963_v58 = vmul.f32 %v1931_v47, %v899_v39  ;;  %v923_v47 = vld [vmem:[%s4686_s22 + $0x17e8] sm:$0xff] }
 0x31c   : > { %3974 = vst.msk [vmem:[%s4703_s16 + $0x1678] sm:$0xff] %vm3277_vm0, %v2941_v56  ;;  %v1934_v56 = vadd.f32 2.0, %v902_v48  ;;  %v2964_v61 = vmul.f32 %v1932_v50, %v900_v42  ;;  %v924_v50 = vld [vmem:[%s4686_s22 + $0x17f0] sm:$0xff] }
 0x31d   : > { %3975 = vst [vmem:[%s4703_s16 + $0x1680] sm:$0xff] %v2942_v59  ;;  %v1935_v59 = vadd.f32 2.0, %v903_v51  ;;  %v2965_v0 = vmul.f32 %v1933_v53, %v901_v45  ;;  %v925_v53 = vld [vmem:[%s4686_s22 + $0x17f8] sm:$0xff] }
 0x31e   : > { %3976 = vst [vmem:[%s4703_s16 + $0x1688] sm:$0xff] %v2943_v62  ;;  %v1936_v62 = vadd.f32 2.0, %v904_v54  ;;  %v2966_v3 = vmul.f32 %v1934_v56, %v902_v48  ;;  %v926_v56 = vld [vmem:[%s4686_s22 + $0x1800] sm:$0xff] }
 0x31f   : > { %3977 = vst [vmem:[%s4703_s16 + $0x1690] sm:$0xff] %v2944_v1  ;;  %v1937_v1 = vadd.f32 2.0, %v905_v57  ;;  %v2967_v6 = vmul.f32 %v1935_v59, %v903_v51  ;;  %v927_v59 = vld [vmem:[%s4686_s22 + $0x1808] sm:$0xff] }
 0x320   : > { %3978 = vst [vmem:[%s4703_s16 + $0x1698] sm:$0xff] %v2945_v4  ;;  %v1938_v4 = vadd.f32 2.0, %v906_v60  ;;  %v2968_v9 = vmul.f32 %v1936_v62, %v904_v54  ;;  %v928_v62 = vld [vmem:[%s4686_s22 + $0x1810] sm:$0xff] }
 0x321   : > { %3979 = vst [vmem:[%s4703_s16 + $0x16a0] sm:$0xff] %v2946_v7  ;;  %v1939_v7 = vadd.f32 2.0, %v907_v63  ;;  %v2969_v12 = vmul.f32 %v1937_v1, %v905_v57  ;;  %v929_v1 = vld [vmem:[%s4686_s22 + $0x1818] sm:$0xff] }
 0x322   : > { %3980 = vst [vmem:[%s4703_s16 + $0x16a8] sm:$0xff] %v2947_v10  ;;  %v1940_v10 = vadd.f32 2.0, %v908_v2  ;;  %v2970_v15 = vmul.f32 %v1938_v4, %v906_v60  ;;  %v930_v4 = vld [vmem:[%s4686_s22 + $0x1820] sm:$0xff] }
 0x323   : > { %3981 = vst [vmem:[%s4703_s16 + $0x16b0] sm:$0xff] %v2948_v13  ;;  %v1941_v13 = vadd.f32 2.0, %v909_v5  ;;  %v2971_v18 = vmul.f32 %v1939_v7, %v907_v63  ;;  %v931_v7 = vld [vmem:[%s4686_s22 + $0x1828] sm:$0xff] }
 0x324   : > { %3982 = vst [vmem:[%s4703_s16 + $0x16b8] sm:$0xff] %v2949_v16  ;;  %v1942_v16 = vadd.f32 2.0, %v910_v8  ;;  %v2972_v21 = vmul.f32 %v1940_v10, %v908_v2  ;;  %v932_v10 = vld [vmem:[%s4686_s22 + $0x1830] sm:$0xff] }
 0x325   : > { %3983 = vst [vmem:[%s4703_s16 + $0x16c0] sm:$0xff] %v2950_v19  ;;  %v1943_v19 = vadd.f32 2.0, %v911_v11  ;;  %v2973_v24 = vmul.f32 %v1941_v13, %v909_v5  ;;  %v933_v13 = vld [vmem:[%s4686_s22 + $0x1838] sm:$0xff] }
 0x326   : > { %3984 = vst [vmem:[%s4703_s16 + $0x16c8] sm:$0xff] %v2951_v22  ;;  %v1944_v22 = vadd.f32 2.0, %v912_v14  ;;  %v2974_v27 = vmul.f32 %v1942_v16, %v910_v8  ;;  %v934_v16 = vld [vmem:[%s4686_s22 + $0x1840] sm:$0xff] }
 0x327   : > { %3985 = vst [vmem:[%s4703_s16 + $0x16d0] sm:$0xff] %v2952_v25  ;;  %v1945_v25 = vadd.f32 2.0, %v913_v17  ;;  %v2975_v30 = vmul.f32 %v1943_v19, %v911_v11  ;;  %v935_v19 = vld [vmem:[%s4686_s22 + $0x1848] sm:$0xff] }
 0x328   : > { %3986 = vst [vmem:[%s4703_s16 + $0x16d8] sm:$0xff] %v2953_v28  ;;  %v1946_v28 = vadd.f32 2.0, %v914_v20  ;;  %v2976_v33 = vmul.f32 %v1944_v22, %v912_v14  ;;  %v936_v22 = vld [vmem:[%s4686_s22 + $0x1850] sm:$0xff] }
 0x329   : > { %3987 = vst [vmem:[%s4703_s16 + $0x16e0] sm:$0xff] %v2954_v31  ;;  %v1947_v31 = vadd.f32 2.0, %v915_v23  ;;  %v2977_v36 = vmul.f32 %v1945_v25, %v913_v17  ;;  %v937_v25 = vld [vmem:[%s4686_s22 + $0x1858] sm:$0xff] }
 0x32a   : > { %3988 = vst [vmem:[%s4703_s16 + $0x16e8] sm:$0xff] %v2955_v34  ;;  %v1948_v34 = vadd.f32 2.0, %v916_v26  ;;  %v2978_v39 = vmul.f32 %v1946_v28, %v914_v20  ;;  %v938_v28 = vld [vmem:[%s4686_s22 + $0x1860] sm:$0xff] }
 0x32b   : > { %3989 = vst [vmem:[%s4703_s16 + $0x16f0] sm:$0xff] %v2956_v37  ;;  %v1949_v37 = vadd.f32 2.0, %v917_v29  ;;  %v2979_v42 = vmul.f32 %v1947_v31, %v915_v23  ;;  %v939_v31 = vld [vmem:[%s4686_s22 + $0x1868] sm:$0xff] }
 0x32c   : > { %3990 = vst [vmem:[%s4703_s16 + $0x16f8] sm:$0xff] %v2957_v40  ;;  %v1950_v40 = vadd.f32 2.0, %v918_v32  ;;  %v2980_v45 = vmul.f32 %v1948_v34, %v916_v26  ;;  %v940_v34 = vld [vmem:[%s4686_s22 + $0x1870] sm:$0xff] }
 0x32d   : > { %3991 = vst [vmem:[%s4703_s16 + $0x1700] sm:$0xff] %v2958_v43  ;;  %v1951_v43 = vadd.f32 2.0, %v919_v35  ;;  %v2981_v48 = vmul.f32 %v1949_v37, %v917_v29  ;;  %v941_v37 = vld [vmem:[%s4686_s22 + $0x1878] sm:$0xff] }
 0x32e   : > { %3992 = vst [vmem:[%s4703_s16 + $0x1708] sm:$0xff] %v2959_v46  ;;  %v1952_v46 = vadd.f32 2.0, %v920_v38  ;;  %v2982_v51 = vmul.f32 %v1950_v40, %v918_v32  ;;  %v942_v40 = vld [vmem:[%s4686_s22 + $0x1880] sm:$0xff] }
 0x32f   : > { %3993 = vst [vmem:[%s4703_s16 + $0x1710] sm:$0xff] %v2960_v49  ;;  %v1953_v49 = vadd.f32 2.0, %v921_v41  ;;  %v2983_v54 = vmul.f32 %v1951_v43, %v919_v35  ;;  %v943_v43 = vld [vmem:[%s4686_s22 + $0x1888] sm:$0xff] }
 0x330   : > { %3994 = vst [vmem:[%s4703_s16 + $0x1718] sm:$0xff] %v2961_v52  ;;  %v1954_v52 = vadd.f32 2.0, %v922_v44  ;;  %v2984_v57 = vmul.f32 %v1952_v46, %v920_v38  ;;  %v944_v46 = vld [vmem:[%s4686_s22 + $0x1890] sm:$0xff] }
 0x331   : > { %3995 = vst [vmem:[%s4703_s16 + $0x1720] sm:$0xff] %v2962_v55  ;;  %v1955_v55 = vadd.f32 2.0, %v923_v47  ;;  %v2985_v60 = vmul.f32 %v1953_v49, %v921_v41  ;;  %v945_v49 = vld [vmem:[%s4686_s22 + $0x1898] sm:$0xff] }
 0x332   : > { %3996 = vst [vmem:[%s4703_s16 + $0x1728] sm:$0xff] %v2963_v58  ;;  %v1956_v58 = vadd.f32 2.0, %v924_v50  ;;  %v2986_v63 = vmul.f32 %v1954_v52, %v922_v44  ;;  %v946_v52 = vld [vmem:[%s4686_s22 + $0x18a0] sm:$0xff] }
 0x333   : > { %3997 = vst [vmem:[%s4703_s16 + $0x1730] sm:$0xff] %v2964_v61  ;;  %v1957_v61 = vadd.f32 2.0, %v925_v53  ;;  %v2987_v2 = vmul.f32 %v1955_v55, %v923_v47  ;;  %v947_v55 = vld [vmem:[%s4686_s22 + $0x18a8] sm:$0xff] }
 0x334   : > { %3998 = vst.msk [vmem:[%s4703_s16 + $0x1738] sm:$0xff] %vm3277_vm0, %v2965_v0  ;;  %v1958_v0 = vadd.f32 2.0, %v926_v56  ;;  %v2988_v5 = vmul.f32 %v1956_v58, %v924_v50  ;;  %v948_v58 = vld [vmem:[%s4686_s22 + $0x18b0] sm:$0xff] }
 0x335   : > { %3999 = vst [vmem:[%s4703_s16 + $0x1740] sm:$0xff] %v2966_v3  ;;  %v1959_v3 = vadd.f32 2.0, %v927_v59  ;;  %v2989_v8 = vmul.f32 %v1957_v61, %v925_v53  ;;  %v949_v61 = vld [vmem:[%s4686_s22 + $0x18b8] sm:$0xff] }
 0x336   : > { %4000 = vst [vmem:[%s4703_s16 + $0x1748] sm:$0xff] %v2967_v6  ;;  %v1960_v6 = vadd.f32 2.0, %v928_v62  ;;  %v2990_v11 = vmul.f32 %v1958_v0, %v926_v56  ;;  %v950_v0 = vld [vmem:[%s4686_s22 + $0x18c0] sm:$0xff] }
 0x337   : > { %4001 = vst [vmem:[%s4703_s16 + $0x1750] sm:$0xff] %v2968_v9  ;;  %v1961_v9 = vadd.f32 2.0, %v929_v1  ;;  %v2991_v14 = vmul.f32 %v1959_v3, %v927_v59  ;;  %v951_v3 = vld [vmem:[%s4686_s22 + $0x18c8] sm:$0xff] }
 0x338   : > { %4002 = vst [vmem:[%s4703_s16 + $0x1758] sm:$0xff] %v2969_v12  ;;  %v1962_v12 = vadd.f32 2.0, %v930_v4  ;;  %v2992_v17 = vmul.f32 %v1960_v6, %v928_v62  ;;  %v952_v6 = vld [vmem:[%s4686_s22 + $0x18d0] sm:$0xff] }
 0x339   : > { %4003 = vst [vmem:[%s4703_s16 + $0x1760] sm:$0xff] %v2970_v15  ;;  %v1963_v15 = vadd.f32 2.0, %v931_v7  ;;  %v2993_v20 = vmul.f32 %v1961_v9, %v929_v1  ;;  %v953_v9 = vld [vmem:[%s4686_s22 + $0x18d8] sm:$0xff] }
 0x33a   : > { %4004 = vst [vmem:[%s4703_s16 + $0x1768] sm:$0xff] %v2971_v18  ;;  %v1964_v18 = vadd.f32 2.0, %v932_v10  ;;  %v2994_v23 = vmul.f32 %v1962_v12, %v930_v4  ;;  %v954_v12 = vld [vmem:[%s4686_s22 + $0x18e0] sm:$0xff] }
 0x33b   : > { %4005 = vst [vmem:[%s4703_s16 + $0x1770] sm:$0xff] %v2972_v21  ;;  %v1965_v21 = vadd.f32 2.0, %v933_v13  ;;  %v2995_v26 = vmul.f32 %v1963_v15, %v931_v7  ;;  %v955_v15 = vld [vmem:[%s4686_s22 + $0x18e8] sm:$0xff] }
 0x33c   : > { %4006 = vst [vmem:[%s4703_s16 + $0x1778] sm:$0xff] %v2973_v24  ;;  %v1966_v24 = vadd.f32 2.0, %v934_v16  ;;  %v2996_v29 = vmul.f32 %v1964_v18, %v932_v10  ;;  %v956_v18 = vld [vmem:[%s4686_s22 + $0x18f0] sm:$0xff] }
 0x33d   : > { %4007 = vst [vmem:[%s4703_s16 + $0x1780] sm:$0xff] %v2974_v27  ;;  %v1967_v27 = vadd.f32 2.0, %v935_v19  ;;  %v2997_v32 = vmul.f32 %v1965_v21, %v933_v13  ;;  %v957_v21 = vld [vmem:[%s4686_s22 + $0x18f8] sm:$0xff] }
 0x33e   : > { %4008 = vst [vmem:[%s4703_s16 + $0x1788] sm:$0xff] %v2975_v30  ;;  %v1968_v30 = vadd.f32 2.0, %v936_v22  ;;  %v2998_v35 = vmul.f32 %v1966_v24, %v934_v16  ;;  %v958_v24 = vld [vmem:[%s4686_s22 + $0x1900] sm:$0xff] }
 0x33f   : > { %4009 = vst [vmem:[%s4703_s16 + $0x1790] sm:$0xff] %v2976_v33  ;;  %v1969_v33 = vadd.f32 2.0, %v937_v25  ;;  %v2999_v38 = vmul.f32 %v1967_v27, %v935_v19  ;;  %v959_v27 = vld [vmem:[%s4686_s22 + $0x1908] sm:$0xff] }
 0x340   : > { %4010 = vst [vmem:[%s4703_s16 + $0x1798] sm:$0xff] %v2977_v36  ;;  %v1970_v36 = vadd.f32 2.0, %v938_v28  ;;  %v3000_v41 = vmul.f32 %v1968_v30, %v936_v22  ;;  %v960_v30 = vld [vmem:[%s4686_s22 + $0x1910] sm:$0xff] }
 0x341   : > { %4011 = vst [vmem:[%s4703_s16 + $0x17a0] sm:$0xff] %v2978_v39  ;;  %v1971_v39 = vadd.f32 2.0, %v939_v31  ;;  %v3001_v44 = vmul.f32 %v1969_v33, %v937_v25  ;;  %v961_v33 = vld [vmem:[%s4686_s22 + $0x1918] sm:$0xff] }
 0x342   : > { %4012 = vst [vmem:[%s4703_s16 + $0x17a8] sm:$0xff] %v2979_v42  ;;  %v1972_v42 = vadd.f32 2.0, %v940_v34  ;;  %v3002_v47 = vmul.f32 %v1970_v36, %v938_v28  ;;  %v962_v36 = vld [vmem:[%s4686_s22 + $0x1920] sm:$0xff] }
 0x343   : > { %4013 = vst [vmem:[%s4703_s16 + $0x17b0] sm:$0xff] %v2980_v45  ;;  %v1973_v45 = vadd.f32 2.0, %v941_v37  ;;  %v3003_v50 = vmul.f32 %v1971_v39, %v939_v31  ;;  %v963_v39 = vld [vmem:[%s4686_s22 + $0x1928] sm:$0xff] }
 0x344   : > { %4014 = vst [vmem:[%s4703_s16 + $0x17b8] sm:$0xff] %v2981_v48  ;;  %v1974_v48 = vadd.f32 2.0, %v942_v40  ;;  %v3004_v53 = vmul.f32 %v1972_v42, %v940_v34  ;;  %v964_v42 = vld [vmem:[%s4686_s22 + $0x1930] sm:$0xff] }
 0x345   : > { %4015 = vst [vmem:[%s4703_s16 + $0x17c0] sm:$0xff] %v2982_v51  ;;  %v1975_v51 = vadd.f32 2.0, %v943_v43  ;;  %v3005_v56 = vmul.f32 %v1973_v45, %v941_v37  ;;  %v965_v45 = vld [vmem:[%s4686_s22 + $0x1938] sm:$0xff] }
 0x346   : > { %4016 = vst [vmem:[%s4703_s16 + $0x17c8] sm:$0xff] %v2983_v54  ;;  %v1976_v54 = vadd.f32 2.0, %v944_v46  ;;  %v3006_v59 = vmul.f32 %v1974_v48, %v942_v40  ;;  %v966_v48 = vld [vmem:[%s4686_s22 + $0x1940] sm:$0xff] }
 0x347   : > { %4017 = vst [vmem:[%s4703_s16 + $0x17d0] sm:$0xff] %v2984_v57  ;;  %v1977_v57 = vadd.f32 2.0, %v945_v49  ;;  %v3007_v62 = vmul.f32 %v1975_v51, %v943_v43  ;;  %v967_v51 = vld [vmem:[%s4686_s22 + $0x1948] sm:$0xff] }
 0x348   : > { %4018 = vst [vmem:[%s4703_s16 + $0x17d8] sm:$0xff] %v2985_v60  ;;  %v1978_v60 = vadd.f32 2.0, %v946_v52  ;;  %v3008_v1 = vmul.f32 %v1976_v54, %v944_v46  ;;  %v968_v54 = vld [vmem:[%s4686_s22 + $0x1950] sm:$0xff] }
 0x349   : > { %4019 = vst [vmem:[%s4703_s16 + $0x17e0] sm:$0xff] %v2986_v63  ;;  %v1979_v63 = vadd.f32 2.0, %v947_v55  ;;  %v3009_v4 = vmul.f32 %v1977_v57, %v945_v49  ;;  %v969_v57 = vld [vmem:[%s4686_s22 + $0x1958] sm:$0xff] }
 0x34a   : > { %4020 = vst [vmem:[%s4703_s16 + $0x17e8] sm:$0xff] %v2987_v2  ;;  %v1980_v2 = vadd.f32 2.0, %v948_v58  ;;  %v3010_v7 = vmul.f32 %v1978_v60, %v946_v52  ;;  %v970_v60 = vld [vmem:[%s4686_s22 + $0x1960] sm:$0xff] }
 0x34b   : > { %4021 = vst [vmem:[%s4703_s16 + $0x17f0] sm:$0xff] %v2988_v5  ;;  %v1981_v5 = vadd.f32 2.0, %v949_v61  ;;  %v3011_v10 = vmul.f32 %v1979_v63, %v947_v55  ;;  %v971_v63 = vld [vmem:[%s4686_s22 + $0x1968] sm:$0xff] }
 0x34c   : > { %4022 = vst.msk [vmem:[%s4703_s16 + $0x17f8] sm:$0xff] %vm3277_vm0, %v2989_v8  ;;  %v1982_v8 = vadd.f32 2.0, %v950_v0  ;;  %v3012_v13 = vmul.f32 %v1980_v2, %v948_v58  ;;  %v972_v2 = vld [vmem:[%s4686_s22 + $0x1970] sm:$0xff] }
 0x34d   : > { %4023 = vst [vmem:[%s4703_s16 + $0x1800] sm:$0xff] %v2990_v11  ;;  %v1983_v11 = vadd.f32 2.0, %v951_v3  ;;  %v3013_v16 = vmul.f32 %v1981_v5, %v949_v61  ;;  %v973_v5 = vld [vmem:[%s4686_s22 + $0x1978] sm:$0xff] }
 0x34e   : > { %4024 = vst [vmem:[%s4703_s16 + $0x1808] sm:$0xff] %v2991_v14  ;;  %v1984_v14 = vadd.f32 2.0, %v952_v6  ;;  %v3014_v19 = vmul.f32 %v1982_v8, %v950_v0  ;;  %v974_v8 = vld [vmem:[%s4686_s22 + $0x1980] sm:$0xff] }
 0x34f   : > { %4025 = vst [vmem:[%s4703_s16 + $0x1810] sm:$0xff] %v2992_v17  ;;  %v1985_v17 = vadd.f32 2.0, %v953_v9  ;;  %v3015_v22 = vmul.f32 %v1983_v11, %v951_v3  ;;  %v975_v11 = vld [vmem:[%s4686_s22 + $0x1988] sm:$0xff] }
 0x350   : > { %4026 = vst [vmem:[%s4703_s16 + $0x1818] sm:$0xff] %v2993_v20  ;;  %v1986_v20 = vadd.f32 2.0, %v954_v12  ;;  %v3016_v25 = vmul.f32 %v1984_v14, %v952_v6  ;;  %v976_v14 = vld [vmem:[%s4686_s22 + $0x1990] sm:$0xff] }
 0x351   : > { %4027 = vst [vmem:[%s4703_s16 + $0x1820] sm:$0xff] %v2994_v23  ;;  %v1987_v23 = vadd.f32 2.0, %v955_v15  ;;  %v3017_v28 = vmul.f32 %v1985_v17, %v953_v9  ;;  %v977_v17 = vld [vmem:[%s4686_s22 + $0x1998] sm:$0xff] }
 0x352   : > { %4028 = vst [vmem:[%s4703_s16 + $0x1828] sm:$0xff] %v2995_v26  ;;  %v1988_v26 = vadd.f32 2.0, %v956_v18  ;;  %v3018_v31 = vmul.f32 %v1986_v20, %v954_v12  ;;  %v978_v20 = vld [vmem:[%s4686_s22 + $0x19a0] sm:$0xff] }
 0x353   : > { %4029 = vst [vmem:[%s4703_s16 + $0x1830] sm:$0xff] %v2996_v29  ;;  %v1989_v29 = vadd.f32 2.0, %v957_v21  ;;  %v3019_v34 = vmul.f32 %v1987_v23, %v955_v15  ;;  %v979_v23 = vld [vmem:[%s4686_s22 + $0x19a8] sm:$0xff] }
 0x354   : > { %4030 = vst [vmem:[%s4703_s16 + $0x1838] sm:$0xff] %v2997_v32  ;;  %v1990_v32 = vadd.f32 2.0, %v958_v24  ;;  %v3020_v37 = vmul.f32 %v1988_v26, %v956_v18  ;;  %v980_v26 = vld [vmem:[%s4686_s22 + $0x19b0] sm:$0xff] }
 0x355   : > { %4031 = vst [vmem:[%s4703_s16 + $0x1840] sm:$0xff] %v2998_v35  ;;  %v1991_v35 = vadd.f32 2.0, %v959_v27  ;;  %v3021_v40 = vmul.f32 %v1989_v29, %v957_v21  ;;  %v981_v29 = vld [vmem:[%s4686_s22 + $0x19b8] sm:$0xff] }
 0x356   : > { %4032 = vst [vmem:[%s4703_s16 + $0x1848] sm:$0xff] %v2999_v38  ;;  %v1992_v38 = vadd.f32 2.0, %v960_v30  ;;  %v3022_v43 = vmul.f32 %v1990_v32, %v958_v24  ;;  %v982_v32 = vld [vmem:[%s4686_s22 + $0x19c0] sm:$0xff] }
 0x357   : > { %4033 = vst [vmem:[%s4703_s16 + $0x1850] sm:$0xff] %v3000_v41  ;;  %v1993_v41 = vadd.f32 2.0, %v961_v33  ;;  %v3023_v46 = vmul.f32 %v1991_v35, %v959_v27  ;;  %v983_v35 = vld [vmem:[%s4686_s22 + $0x19c8] sm:$0xff] }
 0x358   : > { %4034 = vst [vmem:[%s4703_s16 + $0x1858] sm:$0xff] %v3001_v44  ;;  %v1994_v44 = vadd.f32 2.0, %v962_v36  ;;  %v3024_v49 = vmul.f32 %v1992_v38, %v960_v30  ;;  %v984_v38 = vld [vmem:[%s4686_s22 + $0x19d0] sm:$0xff] }
 0x359   : > { %4035 = vst [vmem:[%s4703_s16 + $0x1860] sm:$0xff] %v3002_v47  ;;  %v1995_v47 = vadd.f32 2.0, %v963_v39  ;;  %v3025_v52 = vmul.f32 %v1993_v41, %v961_v33  ;;  %v985_v41 = vld [vmem:[%s4686_s22 + $0x19d8] sm:$0xff] }
 0x35a   : > { %4036 = vst [vmem:[%s4703_s16 + $0x1868] sm:$0xff] %v3003_v50  ;;  %v1996_v50 = vadd.f32 2.0, %v964_v42  ;;  %v3026_v55 = vmul.f32 %v1994_v44, %v962_v36  ;;  %v986_v44 = vld [vmem:[%s4686_s22 + $0x19e0] sm:$0xff] }
 0x35b   : > { %4037 = vst [vmem:[%s4703_s16 + $0x1870] sm:$0xff] %v3004_v53  ;;  %v1997_v53 = vadd.f32 2.0, %v965_v45  ;;  %v3027_v58 = vmul.f32 %v1995_v47, %v963_v39  ;;  %v987_v47 = vld [vmem:[%s4686_s22 + $0x19e8] sm:$0xff] }
 0x35c   : > { %4038 = vst [vmem:[%s4703_s16 + $0x1878] sm:$0xff] %v3005_v56  ;;  %v1998_v56 = vadd.f32 2.0, %v966_v48  ;;  %v3028_v61 = vmul.f32 %v1996_v50, %v964_v42  ;;  %v988_v50 = vld [vmem:[%s4686_s22 + $0x19f0] sm:$0xff] }
 0x35d   : > { %4039 = vst [vmem:[%s4703_s16 + $0x1880] sm:$0xff] %v3006_v59  ;;  %v1999_v59 = vadd.f32 2.0, %v967_v51  ;;  %v3029_v0 = vmul.f32 %v1997_v53, %v965_v45  ;;  %v989_v53 = vld [vmem:[%s4686_s22 + $0x19f8] sm:$0xff] }
 0x35e   : > { %4040 = vst [vmem:[%s4703_s16 + $0x1888] sm:$0xff] %v3007_v62  ;;  %v2000_v62 = vadd.f32 2.0, %v968_v54  ;;  %v3030_v3 = vmul.f32 %v1998_v56, %v966_v48  ;;  %v990_v56 = vld [vmem:[%s4686_s22 + $0x1a00] sm:$0xff] }
 0x35f   : > { %4041 = vst [vmem:[%s4703_s16 + $0x1890] sm:$0xff] %v3008_v1  ;;  %v2001_v1 = vadd.f32 2.0, %v969_v57  ;;  %v3031_v6 = vmul.f32 %v1999_v59, %v967_v51  ;;  %v991_v59 = vld [vmem:[%s4686_s22 + $0x1a08] sm:$0xff] }
 0x360   : > { %4042 = vst [vmem:[%s4703_s16 + $0x1898] sm:$0xff] %v3009_v4  ;;  %v2002_v4 = vadd.f32 2.0, %v970_v60  ;;  %v3032_v9 = vmul.f32 %v2000_v62, %v968_v54  ;;  %v992_v62 = vld [vmem:[%s4686_s22 + $0x1a10] sm:$0xff] }
 0x361   : > { %4043 = vst [vmem:[%s4703_s16 + $0x18a0] sm:$0xff] %v3010_v7  ;;  %v2003_v7 = vadd.f32 2.0, %v971_v63  ;;  %v3033_v12 = vmul.f32 %v2001_v1, %v969_v57  ;;  %v993_v1 = vld [vmem:[%s4686_s22 + $0x1a18] sm:$0xff] }
 0x362   : > { %4044 = vst [vmem:[%s4703_s16 + $0x18a8] sm:$0xff] %v3011_v10  ;;  %v2004_v10 = vadd.f32 2.0, %v972_v2  ;;  %v3034_v15 = vmul.f32 %v2002_v4, %v970_v60  ;;  %v994_v4 = vld [vmem:[%s4686_s22 + $0x1a20] sm:$0xff] }
 0x363   : > { %4045 = vst [vmem:[%s4703_s16 + $0x18b0] sm:$0xff] %v3012_v13  ;;  %v2005_v13 = vadd.f32 2.0, %v973_v5  ;;  %v3035_v18 = vmul.f32 %v2003_v7, %v971_v63  ;;  %v995_v7 = vld [vmem:[%s4686_s22 + $0x1a28] sm:$0xff] }
 0x364   : > { %4046 = vst.msk [vmem:[%s4703_s16 + $0x18b8] sm:$0xff] %vm3277_vm0, %v3013_v16  ;;  %v2006_v16 = vadd.f32 2.0, %v974_v8  ;;  %v3036_v21 = vmul.f32 %v2004_v10, %v972_v2  ;;  %v996_v10 = vld [vmem:[%s4686_s22 + $0x1a30] sm:$0xff] }
 0x365   : > { %4047 = vst [vmem:[%s4703_s16 + $0x18c0] sm:$0xff] %v3014_v19  ;;  %v2007_v19 = vadd.f32 2.0, %v975_v11  ;;  %v3037_v24 = vmul.f32 %v2005_v13, %v973_v5  ;;  %v997_v13 = vld [vmem:[%s4686_s22 + $0x1a38] sm:$0xff] }
 0x366   : > { %4048 = vst [vmem:[%s4703_s16 + $0x18c8] sm:$0xff] %v3015_v22  ;;  %v2008_v22 = vadd.f32 2.0, %v976_v14  ;;  %v3038_v27 = vmul.f32 %v2006_v16, %v974_v8  ;;  %v998_v16 = vld [vmem:[%s4686_s22 + $0x1a40] sm:$0xff] }
 0x367   : > { %4049 = vst [vmem:[%s4703_s16 + $0x18d0] sm:$0xff] %v3016_v25  ;;  %v2009_v25 = vadd.f32 2.0, %v977_v17  ;;  %v3039_v30 = vmul.f32 %v2007_v19, %v975_v11  ;;  %v999_v19 = vld [vmem:[%s4686_s22 + $0x1a48] sm:$0xff] }
 0x368   : > { %4050 = vst [vmem:[%s4703_s16 + $0x18d8] sm:$0xff] %v3017_v28  ;;  %v2010_v28 = vadd.f32 2.0, %v978_v20  ;;  %v3040_v33 = vmul.f32 %v2008_v22, %v976_v14  ;;  %v1000_v22 = vld [vmem:[%s4686_s22 + $0x1a50] sm:$0xff] }
 0x369   : > { %4051 = vst [vmem:[%s4703_s16 + $0x18e0] sm:$0xff] %v3018_v31  ;;  %v2011_v31 = vadd.f32 2.0, %v979_v23  ;;  %v3041_v36 = vmul.f32 %v2009_v25, %v977_v17  ;;  %v1001_v25 = vld [vmem:[%s4686_s22 + $0x1a58] sm:$0xff] }
 0x36a   : > { %4052 = vst [vmem:[%s4703_s16 + $0x18e8] sm:$0xff] %v3019_v34  ;;  %v2012_v34 = vadd.f32 2.0, %v980_v26  ;;  %v3042_v39 = vmul.f32 %v2010_v28, %v978_v20  ;;  %v1002_v28 = vld [vmem:[%s4686_s22 + $0x1a60] sm:$0xff] }
 0x36b   : > { %4053 = vst [vmem:[%s4703_s16 + $0x18f0] sm:$0xff] %v3020_v37  ;;  %v2013_v37 = vadd.f32 2.0, %v981_v29  ;;  %v3043_v42 = vmul.f32 %v2011_v31, %v979_v23  ;;  %v1003_v31 = vld [vmem:[%s4686_s22 + $0x1a68] sm:$0xff] }
 0x36c   : > { %4054 = vst [vmem:[%s4703_s16 + $0x18f8] sm:$0xff] %v3021_v40  ;;  %v2014_v40 = vadd.f32 2.0, %v982_v32  ;;  %v3044_v45 = vmul.f32 %v2012_v34, %v980_v26  ;;  %v1004_v34 = vld [vmem:[%s4686_s22 + $0x1a70] sm:$0xff] }
 0x36d   : > { %4055 = vst [vmem:[%s4703_s16 + $0x1900] sm:$0xff] %v3022_v43  ;;  %v2015_v43 = vadd.f32 2.0, %v983_v35  ;;  %v3045_v48 = vmul.f32 %v2013_v37, %v981_v29  ;;  %v1005_v37 = vld [vmem:[%s4686_s22 + $0x1a78] sm:$0xff] }
 0x36e   : > { %4056 = vst [vmem:[%s4703_s16 + $0x1908] sm:$0xff] %v3023_v46  ;;  %v2016_v46 = vadd.f32 2.0, %v984_v38  ;;  %v3046_v51 = vmul.f32 %v2014_v40, %v982_v32  ;;  %v1006_v40 = vld [vmem:[%s4686_s22 + $0x1a80] sm:$0xff] }
 0x36f   : > { %4057 = vst [vmem:[%s4703_s16 + $0x1910] sm:$0xff] %v3024_v49  ;;  %v2017_v49 = vadd.f32 2.0, %v985_v41  ;;  %v3047_v54 = vmul.f32 %v2015_v43, %v983_v35  ;;  %v1007_v43 = vld [vmem:[%s4686_s22 + $0x1a88] sm:$0xff] }
 0x370   : > { %4058 = vst [vmem:[%s4703_s16 + $0x1918] sm:$0xff] %v3025_v52  ;;  %v2018_v52 = vadd.f32 2.0, %v986_v44  ;;  %v3048_v57 = vmul.f32 %v2016_v46, %v984_v38  ;;  %v1008_v46 = vld [vmem:[%s4686_s22 + $0x1a90] sm:$0xff] }
 0x371   : > { %4059 = vst [vmem:[%s4703_s16 + $0x1920] sm:$0xff] %v3026_v55  ;;  %v2019_v55 = vadd.f32 2.0, %v987_v47  ;;  %v3049_v60 = vmul.f32 %v2017_v49, %v985_v41  ;;  %v1009_v49 = vld [vmem:[%s4686_s22 + $0x1a98] sm:$0xff] }
 0x372   : > { %4060 = vst [vmem:[%s4703_s16 + $0x1928] sm:$0xff] %v3027_v58  ;;  %v2020_v58 = vadd.f32 2.0, %v988_v50  ;;  %v3050_v63 = vmul.f32 %v2018_v52, %v986_v44  ;;  %v1010_v52 = vld [vmem:[%s4686_s22 + $0x1aa0] sm:$0xff] }
 0x373   : > { %4061 = vst [vmem:[%s4703_s16 + $0x1930] sm:$0xff] %v3028_v61  ;;  %v2021_v61 = vadd.f32 2.0, %v989_v53  ;;  %v3051_v2 = vmul.f32 %v2019_v55, %v987_v47  ;;  %v1011_v55 = vld [vmem:[%s4686_s22 + $0x1aa8] sm:$0xff] }
 0x374   : > { %4062 = vst [vmem:[%s4703_s16 + $0x1938] sm:$0xff] %v3029_v0  ;;  %v2022_v0 = vadd.f32 2.0, %v990_v56  ;;  %v3052_v5 = vmul.f32 %v2020_v58, %v988_v50  ;;  %v1012_v58 = vld [vmem:[%s4686_s22 + $0x1ab0] sm:$0xff] }
 0x375   : > { %4063 = vst [vmem:[%s4703_s16 + $0x1940] sm:$0xff] %v3030_v3  ;;  %v2023_v3 = vadd.f32 2.0, %v991_v59  ;;  %v3053_v8 = vmul.f32 %v2021_v61, %v989_v53  ;;  %v1013_v61 = vld [vmem:[%s4686_s22 + $0x1ab8] sm:$0xff] }
 0x376   : > { %4064 = vst [vmem:[%s4703_s16 + $0x1948] sm:$0xff] %v3031_v6  ;;  %v2024_v6 = vadd.f32 2.0, %v992_v62  ;;  %v3054_v11 = vmul.f32 %v2022_v0, %v990_v56  ;;  %v1014_v0 = vld [vmem:[%s4686_s22 + $0x1ac0] sm:$0xff] }
 0x377   : > { %4065 = vst [vmem:[%s4703_s16 + $0x1950] sm:$0xff] %v3032_v9  ;;  %v2025_v9 = vadd.f32 2.0, %v993_v1  ;;  %v3055_v14 = vmul.f32 %v2023_v3, %v991_v59  ;;  %v1015_v3 = vld [vmem:[%s4686_s22 + $0x1ac8] sm:$0xff] }
 0x378   : > { %4066 = vst [vmem:[%s4703_s16 + $0x1958] sm:$0xff] %v3033_v12  ;;  %v2026_v12 = vadd.f32 2.0, %v994_v4  ;;  %v3056_v17 = vmul.f32 %v2024_v6, %v992_v62  ;;  %v1016_v6 = vld [vmem:[%s4686_s22 + $0x1ad0] sm:$0xff] }
 0x379   : > { %4067 = vst [vmem:[%s4703_s16 + $0x1960] sm:$0xff] %v3034_v15  ;;  %v2027_v15 = vadd.f32 2.0, %v995_v7  ;;  %v3057_v20 = vmul.f32 %v2025_v9, %v993_v1  ;;  %v1017_v9 = vld [vmem:[%s4686_s22 + $0x1ad8] sm:$0xff] }
 0x37a   : > { %4068 = vst [vmem:[%s4703_s16 + $0x1968] sm:$0xff] %v3035_v18  ;;  %v2028_v18 = vadd.f32 2.0, %v996_v10  ;;  %v3058_v23 = vmul.f32 %v2026_v12, %v994_v4  ;;  %v1018_v12 = vld [vmem:[%s4686_s22 + $0x1ae0] sm:$0xff] }
 0x37b   : > { %4069 = vst [vmem:[%s4703_s16 + $0x1970] sm:$0xff] %v3036_v21  ;;  %v2029_v21 = vadd.f32 2.0, %v997_v13  ;;  %v3059_v26 = vmul.f32 %v2027_v15, %v995_v7  ;;  %v1019_v15 = vld [vmem:[%s4686_s22 + $0x1ae8] sm:$0xff] }
 0x37c   : > { %4070 = vst.msk [vmem:[%s4703_s16 + $0x1978] sm:$0xff] %vm3277_vm0, %v3037_v24  ;;  %v2030_v24 = vadd.f32 2.0, %v998_v16  ;;  %v3060_v29 = vmul.f32 %v2028_v18, %v996_v10  ;;  %v1020_v18 = vld [vmem:[%s4686_s22 + $0x1af0] sm:$0xff] }
 0x37d   : > { %4071 = vst [vmem:[%s4703_s16 + $0x1980] sm:$0xff] %v3038_v27  ;;  %v2031_v27 = vadd.f32 2.0, %v999_v19  ;;  %v3061_v32 = vmul.f32 %v2029_v21, %v997_v13  ;;  %v1021_v21 = vld [vmem:[%s4686_s22 + $0x1af8] sm:$0xff] }
 0x37e   : > { %4072 = vst [vmem:[%s4703_s16 + $0x1988] sm:$0xff] %v3039_v30  ;;  %v2032_v30 = vadd.f32 2.0, %v1000_v22  ;;  %v3062_v35 = vmul.f32 %v2030_v24, %v998_v16  ;;  %v1022_v24 = vld [vmem:[%s4686_s22 + $0x1b00] sm:$0xff] }
 0x37f   : > { %4073 = vst [vmem:[%s4703_s16 + $0x1990] sm:$0xff] %v3040_v33  ;;  %v2033_v33 = vadd.f32 2.0, %v1001_v25  ;;  %v3063_v38 = vmul.f32 %v2031_v27, %v999_v19  ;;  %v1023_v27 = vld [vmem:[%s4686_s22 + $0x1b08] sm:$0xff] }
 0x380   : > { %4074 = vst [vmem:[%s4703_s16 + $0x1998] sm:$0xff] %v3041_v36  ;;  %v2034_v36 = vadd.f32 2.0, %v1002_v28  ;;  %v3064_v41 = vmul.f32 %v2032_v30, %v1000_v22  ;;  %v1024_v30 = vld [vmem:[%s4686_s22 + $0x1b10] sm:$0xff] }
 0x381   : > { %4075 = vst [vmem:[%s4703_s16 + $0x19a0] sm:$0xff] %v3042_v39  ;;  %v2035_v39 = vadd.f32 2.0, %v1003_v31  ;;  %v3065_v44 = vmul.f32 %v2033_v33, %v1001_v25  ;;  %v1025_v33 = vld [vmem:[%s4686_s22 + $0x1b18] sm:$0xff] }
 0x382   : > { %4076 = vst [vmem:[%s4703_s16 + $0x19a8] sm:$0xff] %v3043_v42  ;;  %v2036_v42 = vadd.f32 2.0, %v1004_v34  ;;  %v3066_v47 = vmul.f32 %v2034_v36, %v1002_v28  ;;  %v1026_v36 = vld [vmem:[%s4686_s22 + $0x1b20] sm:$0xff] }
 0x383   : > { %4077 = vst [vmem:[%s4703_s16 + $0x19b0] sm:$0xff] %v3044_v45  ;;  %v2037_v45 = vadd.f32 2.0, %v1005_v37  ;;  %v3067_v50 = vmul.f32 %v2035_v39, %v1003_v31  ;;  %v1027_v39 = vld [vmem:[%s4686_s22 + $0x1b28] sm:$0xff] }
 0x384   : > { %4078 = vst [vmem:[%s4703_s16 + $0x19b8] sm:$0xff] %v3045_v48  ;;  %v2038_v48 = vadd.f32 2.0, %v1006_v40  ;;  %v3068_v53 = vmul.f32 %v2036_v42, %v1004_v34  ;;  %v1028_v42 = vld [vmem:[%s4686_s22 + $0x1b30] sm:$0xff] }
 0x385   : > { %4079 = vst [vmem:[%s4703_s16 + $0x19c0] sm:$0xff] %v3046_v51  ;;  %v2039_v51 = vadd.f32 2.0, %v1007_v43  ;;  %v3069_v56 = vmul.f32 %v2037_v45, %v1005_v37  ;;  %v1029_v45 = vld [vmem:[%s4686_s22 + $0x1b38] sm:$0xff] }
 0x386   : > { %4080 = vst [vmem:[%s4703_s16 + $0x19c8] sm:$0xff] %v3047_v54  ;;  %v2040_v54 = vadd.f32 2.0, %v1008_v46  ;;  %v3070_v59 = vmul.f32 %v2038_v48, %v1006_v40  ;;  %v1030_v48 = vld [vmem:[%s4686_s22 + $0x1b40] sm:$0xff] }
 0x387   : > { %4081 = vst [vmem:[%s4703_s16 + $0x19d0] sm:$0xff] %v3048_v57  ;;  %v2041_v57 = vadd.f32 2.0, %v1009_v49  ;;  %v3071_v62 = vmul.f32 %v2039_v51, %v1007_v43  ;;  %v1031_v51 = vld [vmem:[%s4686_s22 + $0x1b48] sm:$0xff] }
 0x388   : > { %4082 = vst [vmem:[%s4703_s16 + $0x19d8] sm:$0xff] %v3049_v60  ;;  %v2042_v60 = vadd.f32 2.0, %v1010_v52  ;;  %v3072_v1 = vmul.f32 %v2040_v54, %v1008_v46  ;;  %v1032_v54 = vld [vmem:[%s4686_s22 + $0x1b50] sm:$0xff] }
 0x389   : > { %4083 = vst [vmem:[%s4703_s16 + $0x19e0] sm:$0xff] %v3050_v63  ;;  %v2043_v63 = vadd.f32 2.0, %v1011_v55  ;;  %v3073_v4 = vmul.f32 %v2041_v57, %v1009_v49  ;;  %v1033_v57 = vld [vmem:[%s4686_s22 + $0x1b58] sm:$0xff] }
 0x38a   : > { %4084 = vst [vmem:[%s4703_s16 + $0x19e8] sm:$0xff] %v3051_v2  ;;  %v2044_v2 = vadd.f32 2.0, %v1012_v58  ;;  %v3074_v7 = vmul.f32 %v2042_v60, %v1010_v52  ;;  %v1034_v60 = vld [vmem:[%s4686_s22 + $0x1b60] sm:$0xff] }
 0x38b   : > { %4085 = vst [vmem:[%s4703_s16 + $0x19f0] sm:$0xff] %v3052_v5  ;;  %v2045_v5 = vadd.f32 2.0, %v1013_v61  ;;  %v3075_v10 = vmul.f32 %v2043_v63, %v1011_v55  ;;  %v1035_v63 = vld [vmem:[%s4686_s22 + $0x1b68] sm:$0xff] }
 0x38c   : > { %4086 = vst [vmem:[%s4703_s16 + $0x19f8] sm:$0xff] %v3053_v8  ;;  %v2046_v8 = vadd.f32 2.0, %v1014_v0  ;;  %v3076_v13 = vmul.f32 %v2044_v2, %v1012_v58  ;;  %v1036_v2 = vld [vmem:[%s4686_s22 + $0x1b70] sm:$0xff] }
 0x38d   : > { %4087 = vst [vmem:[%s4703_s16 + $0x1a00] sm:$0xff] %v3054_v11  ;;  %v2047_v11 = vadd.f32 2.0, %v1015_v3  ;;  %v3077_v16 = vmul.f32 %v2045_v5, %v1013_v61  ;;  %v1037_v5 = vld [vmem:[%s4686_s22 + $0x1b78] sm:$0xff] }
 0x38e   : > { %4088 = vst [vmem:[%s4703_s16 + $0x1a08] sm:$0xff] %v3055_v14  ;;  %v2048_v14 = vadd.f32 2.0, %v1016_v6  ;;  %v3078_v19 = vmul.f32 %v2046_v8, %v1014_v0  ;;  %v1038_v8 = vld [vmem:[%s4686_s22 + $0x1b80] sm:$0xff] }
 0x38f   : > { %4089 = vst [vmem:[%s4703_s16 + $0x1a10] sm:$0xff] %v3056_v17  ;;  %v2049_v17 = vadd.f32 2.0, %v1017_v9  ;;  %v3079_v22 = vmul.f32 %v2047_v11, %v1015_v3  ;;  %v1039_v11 = vld [vmem:[%s4686_s22 + $0x1b88] sm:$0xff] }
 0x390   : > { %4090 = vst [vmem:[%s4703_s16 + $0x1a18] sm:$0xff] %v3057_v20  ;;  %v2050_v20 = vadd.f32 2.0, %v1018_v12  ;;  %v3080_v25 = vmul.f32 %v2048_v14, %v1016_v6  ;;  %v1040_v14 = vld [vmem:[%s4686_s22 + $0x1b90] sm:$0xff] }
 0x391   : > { %4091 = vst [vmem:[%s4703_s16 + $0x1a20] sm:$0xff] %v3058_v23  ;;  %v2051_v23 = vadd.f32 2.0, %v1019_v15  ;;  %v3081_v28 = vmul.f32 %v2049_v17, %v1017_v9  ;;  %v1041_v17 = vld [vmem:[%s4686_s22 + $0x1b98] sm:$0xff] }
 0x392   : > { %4092 = vst [vmem:[%s4703_s16 + $0x1a28] sm:$0xff] %v3059_v26  ;;  %v2052_v26 = vadd.f32 2.0, %v1020_v18  ;;  %v3082_v31 = vmul.f32 %v2050_v20, %v1018_v12  ;;  %v1042_v20 = vld [vmem:[%s4686_s22 + $0x1ba0] sm:$0xff] }
 0x393   : > { %4093 = vst [vmem:[%s4703_s16 + $0x1a30] sm:$0xff] %v3060_v29  ;;  %v2053_v29 = vadd.f32 2.0, %v1021_v21  ;;  %v3083_v34 = vmul.f32 %v2051_v23, %v1019_v15  ;;  %v1043_v23 = vld [vmem:[%s4686_s22 + $0x1ba8] sm:$0xff] }
 0x394   : > { %4094 = vst.msk [vmem:[%s4703_s16 + $0x1a38] sm:$0xff] %vm3277_vm0, %v3061_v32  ;;  %v2054_v32 = vadd.f32 2.0, %v1022_v24  ;;  %v3084_v37 = vmul.f32 %v2052_v26, %v1020_v18  ;;  %v1044_v26 = vld [vmem:[%s4686_s22 + $0x1bb0] sm:$0xff] }
 0x395   : > { %4095 = vst [vmem:[%s4703_s16 + $0x1a40] sm:$0xff] %v3062_v35  ;;  %v2055_v35 = vadd.f32 2.0, %v1023_v27  ;;  %v3085_v40 = vmul.f32 %v2053_v29, %v1021_v21  ;;  %v1045_v29 = vld [vmem:[%s4686_s22 + $0x1bb8] sm:$0xff] }
 0x396   : > { %4096 = vst [vmem:[%s4703_s16 + $0x1a48] sm:$0xff] %v3063_v38  ;;  %v2056_v38 = vadd.f32 2.0, %v1024_v30  ;;  %v3086_v43 = vmul.f32 %v2054_v32, %v1022_v24  ;;  %v1046_v32 = vld [vmem:[%s4686_s22 + $0x1bc0] sm:$0xff] }
 0x397   : > { %4097 = vst [vmem:[%s4703_s16 + $0x1a50] sm:$0xff] %v3064_v41  ;;  %v2057_v41 = vadd.f32 2.0, %v1025_v33  ;;  %v3087_v46 = vmul.f32 %v2055_v35, %v1023_v27  ;;  %v1047_v35 = vld [vmem:[%s4686_s22 + $0x1bc8] sm:$0xff] }
 0x398   : > { %4098 = vst [vmem:[%s4703_s16 + $0x1a58] sm:$0xff] %v3065_v44  ;;  %v2058_v44 = vadd.f32 2.0, %v1026_v36  ;;  %v3088_v49 = vmul.f32 %v2056_v38, %v1024_v30  ;;  %v1048_v38 = vld [vmem:[%s4686_s22 + $0x1bd0] sm:$0xff] }
 0x399   : > { %4099 = vst [vmem:[%s4703_s16 + $0x1a60] sm:$0xff] %v3066_v47  ;;  %v2059_v47 = vadd.f32 2.0, %v1027_v39  ;;  %v3089_v52 = vmul.f32 %v2057_v41, %v1025_v33  ;;  %v1049_v41 = vld [vmem:[%s4686_s22 + $0x1bd8] sm:$0xff] }
 0x39a   : > { %4100 = vst [vmem:[%s4703_s16 + $0x1a68] sm:$0xff] %v3067_v50  ;;  %v2060_v50 = vadd.f32 2.0, %v1028_v42  ;;  %v3090_v55 = vmul.f32 %v2058_v44, %v1026_v36  ;;  %v1050_v44 = vld [vmem:[%s4686_s22 + $0x1be0] sm:$0xff] }
 0x39b   : > { %4101 = vst [vmem:[%s4703_s16 + $0x1a70] sm:$0xff] %v3068_v53  ;;  %v2061_v53 = vadd.f32 2.0, %v1029_v45  ;;  %v3091_v58 = vmul.f32 %v2059_v47, %v1027_v39  ;;  %v1051_v47 = vld [vmem:[%s4686_s22 + $0x1be8] sm:$0xff] }
 0x39c   : > { %4102 = vst [vmem:[%s4703_s16 + $0x1a78] sm:$0xff] %v3069_v56  ;;  %v2062_v56 = vadd.f32 2.0, %v1030_v48  ;;  %v3092_v61 = vmul.f32 %v2060_v50, %v1028_v42  ;;  %v1052_v50 = vld [vmem:[%s4686_s22 + $0x1bf0] sm:$0xff] }
 0x39d   : > { %4103 = vst [vmem:[%s4703_s16 + $0x1a80] sm:$0xff] %v3070_v59  ;;  %v2063_v59 = vadd.f32 2.0, %v1031_v51  ;;  %v3093_v0 = vmul.f32 %v2061_v53, %v1029_v45  ;;  %v1053_v53 = vld [vmem:[%s4686_s22 + $0x1bf8] sm:$0xff] }
 0x39e   : > { %4104 = vst [vmem:[%s4703_s16 + $0x1a88] sm:$0xff] %v3071_v62  ;;  %v2064_v62 = vadd.f32 2.0, %v1032_v54  ;;  %v3094_v3 = vmul.f32 %v2062_v56, %v1030_v48  ;;  %v1054_v56 = vld [vmem:[%s4686_s22 + $0x1c00] sm:$0xff] }
 0x39f   : > { %4105 = vst [vmem:[%s4703_s16 + $0x1a90] sm:$0xff] %v3072_v1  ;;  %v2065_v1 = vadd.f32 2.0, %v1033_v57  ;;  %v3095_v6 = vmul.f32 %v2063_v59, %v1031_v51  ;;  %v1055_v59 = vld [vmem:[%s4686_s22 + $0x1c08] sm:$0xff] }
 0x3a0   : > { %4106 = vst [vmem:[%s4703_s16 + $0x1a98] sm:$0xff] %v3073_v4  ;;  %v2066_v4 = vadd.f32 2.0, %v1034_v60  ;;  %v3096_v9 = vmul.f32 %v2064_v62, %v1032_v54  ;;  %v1056_v62 = vld [vmem:[%s4686_s22 + $0x1c10] sm:$0xff] }
 0x3a1   : > { %4107 = vst [vmem:[%s4703_s16 + $0x1aa0] sm:$0xff] %v3074_v7  ;;  %v2067_v7 = vadd.f32 2.0, %v1035_v63  ;;  %v3097_v12 = vmul.f32 %v2065_v1, %v1033_v57  ;;  %v1057_v1 = vld [vmem:[%s4686_s22 + $0x1c18] sm:$0xff] }
 0x3a2   : > { %4108 = vst [vmem:[%s4703_s16 + $0x1aa8] sm:$0xff] %v3075_v10  ;;  %v2068_v10 = vadd.f32 2.0, %v1036_v2  ;;  %v3098_v15 = vmul.f32 %v2066_v4, %v1034_v60  ;;  %v1058_v4 = vld [vmem:[%s4686_s22 + $0x1c20] sm:$0xff] }
 0x3a3   : > { %4109 = vst [vmem:[%s4703_s16 + $0x1ab0] sm:$0xff] %v3076_v13  ;;  %v2069_v13 = vadd.f32 2.0, %v1037_v5  ;;  %v3099_v18 = vmul.f32 %v2067_v7, %v1035_v63  ;;  %v1059_v7 = vld [vmem:[%s4686_s22 + $0x1c28] sm:$0xff] }
 0x3a4   : > { %4110 = vst [vmem:[%s4703_s16 + $0x1ab8] sm:$0xff] %v3077_v16  ;;  %v2070_v16 = vadd.f32 2.0, %v1038_v8  ;;  %v3100_v21 = vmul.f32 %v2068_v10, %v1036_v2  ;;  %v1060_v10 = vld [vmem:[%s4686_s22 + $0x1c30] sm:$0xff] }
 0x3a5   : > { %4111 = vst [vmem:[%s4703_s16 + $0x1ac0] sm:$0xff] %v3078_v19  ;;  %v2071_v19 = vadd.f32 2.0, %v1039_v11  ;;  %v3101_v24 = vmul.f32 %v2069_v13, %v1037_v5  ;;  %v1061_v13 = vld [vmem:[%s4686_s22 + $0x1c38] sm:$0xff] }
 0x3a6   : > { %4112 = vst [vmem:[%s4703_s16 + $0x1ac8] sm:$0xff] %v3079_v22  ;;  %v2072_v22 = vadd.f32 2.0, %v1040_v14  ;;  %v3102_v27 = vmul.f32 %v2070_v16, %v1038_v8  ;;  %v1062_v16 = vld [vmem:[%s4686_s22 + $0x1c40] sm:$0xff] }
 0x3a7   : > { %4113 = vst [vmem:[%s4703_s16 + $0x1ad0] sm:$0xff] %v3080_v25  ;;  %v2073_v25 = vadd.f32 2.0, %v1041_v17  ;;  %v3103_v30 = vmul.f32 %v2071_v19, %v1039_v11  ;;  %v1063_v19 = vld [vmem:[%s4686_s22 + $0x1c48] sm:$0xff] }
 0x3a8   : > { %4114 = vst [vmem:[%s4703_s16 + $0x1ad8] sm:$0xff] %v3081_v28  ;;  %v2074_v28 = vadd.f32 2.0, %v1042_v20  ;;  %v3104_v33 = vmul.f32 %v2072_v22, %v1040_v14  ;;  %v1064_v22 = vld [vmem:[%s4686_s22 + $0x1c50] sm:$0xff] }
 0x3a9   : > { %4115 = vst [vmem:[%s4703_s16 + $0x1ae0] sm:$0xff] %v3082_v31  ;;  %v2075_v31 = vadd.f32 2.0, %v1043_v23  ;;  %v3105_v36 = vmul.f32 %v2073_v25, %v1041_v17  ;;  %v1065_v25 = vld [vmem:[%s4686_s22 + $0x1c58] sm:$0xff] }
 0x3aa   : > { %4116 = vst [vmem:[%s4703_s16 + $0x1ae8] sm:$0xff] %v3083_v34  ;;  %v2076_v34 = vadd.f32 2.0, %v1044_v26  ;;  %v3106_v39 = vmul.f32 %v2074_v28, %v1042_v20  ;;  %v1066_v28 = vld [vmem:[%s4686_s22 + $0x1c60] sm:$0xff] }
 0x3ab   : > { %4117 = vst [vmem:[%s4703_s16 + $0x1af0] sm:$0xff] %v3084_v37  ;;  %v2077_v37 = vadd.f32 2.0, %v1045_v29  ;;  %v3107_v42 = vmul.f32 %v2075_v31, %v1043_v23  ;;  %v1067_v31 = vld [vmem:[%s4686_s22 + $0x1c68] sm:$0xff] }
 0x3ac   : > { %4118 = vst.msk [vmem:[%s4703_s16 + $0x1af8] sm:$0xff] %vm3277_vm0, %v3085_v40  ;;  %v2078_v40 = vadd.f32 2.0, %v1046_v32  ;;  %v3108_v45 = vmul.f32 %v2076_v34, %v1044_v26  ;;  %v1068_v34 = vld [vmem:[%s4686_s22 + $0x1c70] sm:$0xff] }
 0x3ad   : > { %4119 = vst [vmem:[%s4703_s16 + $0x1b00] sm:$0xff] %v3086_v43  ;;  %v2079_v43 = vadd.f32 2.0, %v1047_v35  ;;  %v3109_v48 = vmul.f32 %v2077_v37, %v1045_v29  ;;  %v1069_v37 = vld [vmem:[%s4686_s22 + $0x1c78] sm:$0xff] }
 0x3ae   : > { %4120 = vst [vmem:[%s4703_s16 + $0x1b08] sm:$0xff] %v3087_v46  ;;  %v2080_v46 = vadd.f32 2.0, %v1048_v38  ;;  %v3110_v51 = vmul.f32 %v2078_v40, %v1046_v32  ;;  %v1070_v40 = vld [vmem:[%s4686_s22 + $0x1c80] sm:$0xff] }
 0x3af   : > { %4121 = vst [vmem:[%s4703_s16 + $0x1b10] sm:$0xff] %v3088_v49  ;;  %v2081_v49 = vadd.f32 2.0, %v1049_v41  ;;  %v3111_v54 = vmul.f32 %v2079_v43, %v1047_v35  ;;  %v1071_v43 = vld [vmem:[%s4686_s22 + $0x1c88] sm:$0xff] }
 0x3b0   : > { %4122 = vst [vmem:[%s4703_s16 + $0x1b18] sm:$0xff] %v3089_v52  ;;  %v2082_v52 = vadd.f32 2.0, %v1050_v44  ;;  %v3112_v57 = vmul.f32 %v2080_v46, %v1048_v38  ;;  %v1072_v46 = vld [vmem:[%s4686_s22 + $0x1c90] sm:$0xff] }
 0x3b1   : > { %4123 = vst [vmem:[%s4703_s16 + $0x1b20] sm:$0xff] %v3090_v55  ;;  %v2083_v55 = vadd.f32 2.0, %v1051_v47  ;;  %v3113_v60 = vmul.f32 %v2081_v49, %v1049_v41  ;;  %v1073_v49 = vld [vmem:[%s4686_s22 + $0x1c98] sm:$0xff] }
 0x3b2   : > { %4124 = vst [vmem:[%s4703_s16 + $0x1b28] sm:$0xff] %v3091_v58  ;;  %v2084_v58 = vadd.f32 2.0, %v1052_v50  ;;  %v3114_v63 = vmul.f32 %v2082_v52, %v1050_v44  ;;  %v1074_v52 = vld [vmem:[%s4686_s22 + $0x1ca0] sm:$0xff] }
 0x3b3   : > { %4125 = vst [vmem:[%s4703_s16 + $0x1b30] sm:$0xff] %v3092_v61  ;;  %v2085_v61 = vadd.f32 2.0, %v1053_v53  ;;  %v3115_v2 = vmul.f32 %v2083_v55, %v1051_v47  ;;  %v1075_v55 = vld [vmem:[%s4686_s22 + $0x1ca8] sm:$0xff] }
 0x3b4   : > { %4126 = vst [vmem:[%s4703_s16 + $0x1b38] sm:$0xff] %v3093_v0  ;;  %v2086_v0 = vadd.f32 2.0, %v1054_v56  ;;  %v3116_v5 = vmul.f32 %v2084_v58, %v1052_v50  ;;  %v1076_v58 = vld [vmem:[%s4686_s22 + $0x1cb0] sm:$0xff] }
 0x3b5   : > { %4127 = vst [vmem:[%s4703_s16 + $0x1b40] sm:$0xff] %v3094_v3  ;;  %v2087_v3 = vadd.f32 2.0, %v1055_v59  ;;  %v3117_v8 = vmul.f32 %v2085_v61, %v1053_v53  ;;  %v1077_v61 = vld [vmem:[%s4686_s22 + $0x1cb8] sm:$0xff] }
 0x3b6   : > { %4128 = vst [vmem:[%s4703_s16 + $0x1b48] sm:$0xff] %v3095_v6  ;;  %v2088_v6 = vadd.f32 2.0, %v1056_v62  ;;  %v3118_v11 = vmul.f32 %v2086_v0, %v1054_v56  ;;  %v1078_v0 = vld [vmem:[%s4686_s22 + $0x1cc0] sm:$0xff] }
 0x3b7   : > { %4129 = vst [vmem:[%s4703_s16 + $0x1b50] sm:$0xff] %v3096_v9  ;;  %v2089_v9 = vadd.f32 2.0, %v1057_v1  ;;  %v3119_v14 = vmul.f32 %v2087_v3, %v1055_v59  ;;  %v1079_v3 = vld [vmem:[%s4686_s22 + $0x1cc8] sm:$0xff] }
 0x3b8   : > { %4130 = vst [vmem:[%s4703_s16 + $0x1b58] sm:$0xff] %v3097_v12  ;;  %v2090_v12 = vadd.f32 2.0, %v1058_v4  ;;  %v3120_v17 = vmul.f32 %v2088_v6, %v1056_v62  ;;  %v1080_v6 = vld [vmem:[%s4686_s22 + $0x1cd0] sm:$0xff] }
 0x3b9   : > { %4131 = vst [vmem:[%s4703_s16 + $0x1b60] sm:$0xff] %v3098_v15  ;;  %v2091_v15 = vadd.f32 2.0, %v1059_v7  ;;  %v3121_v20 = vmul.f32 %v2089_v9, %v1057_v1  ;;  %v1081_v9 = vld [vmem:[%s4686_s22 + $0x1cd8] sm:$0xff] }
 0x3ba   : > { %4132 = vst [vmem:[%s4703_s16 + $0x1b68] sm:$0xff] %v3099_v18  ;;  %v2092_v18 = vadd.f32 2.0, %v1060_v10  ;;  %v3122_v23 = vmul.f32 %v2090_v12, %v1058_v4  ;;  %v1082_v12 = vld [vmem:[%s4686_s22 + $0x1ce0] sm:$0xff] }
 0x3bb   : > { %4133 = vst [vmem:[%s4703_s16 + $0x1b70] sm:$0xff] %v3100_v21  ;;  %v2093_v21 = vadd.f32 2.0, %v1061_v13  ;;  %v3123_v26 = vmul.f32 %v2091_v15, %v1059_v7  ;;  %v1083_v15 = vld [vmem:[%s4686_s22 + $0x1ce8] sm:$0xff] }
 0x3bc   : > { %4134 = vst [vmem:[%s4703_s16 + $0x1b78] sm:$0xff] %v3101_v24  ;;  %v2094_v24 = vadd.f32 2.0, %v1062_v16  ;;  %v3124_v29 = vmul.f32 %v2092_v18, %v1060_v10  ;;  %v1084_v18 = vld [vmem:[%s4686_s22 + $0x1cf0] sm:$0xff] }
 0x3bd   : > { %4135 = vst [vmem:[%s4703_s16 + $0x1b80] sm:$0xff] %v3102_v27  ;;  %v2095_v27 = vadd.f32 2.0, %v1063_v19  ;;  %v3125_v32 = vmul.f32 %v2093_v21, %v1061_v13  ;;  %v1085_v21 = vld [vmem:[%s4686_s22 + $0x1cf8] sm:$0xff] }
 0x3be   : > { %4136 = vst [vmem:[%s4703_s16 + $0x1b88] sm:$0xff] %v3103_v30  ;;  %v2096_v30 = vadd.f32 2.0, %v1064_v22  ;;  %v3126_v35 = vmul.f32 %v2094_v24, %v1062_v16  ;;  %v1086_v24 = vld [vmem:[%s4686_s22 + $0x1d00] sm:$0xff] }
 0x3bf   : > { %4137 = vst [vmem:[%s4703_s16 + $0x1b90] sm:$0xff] %v3104_v33  ;;  %v2097_v33 = vadd.f32 2.0, %v1065_v25  ;;  %v3127_v38 = vmul.f32 %v2095_v27, %v1063_v19  ;;  %v1087_v27 = vld [vmem:[%s4686_s22 + $0x1d08] sm:$0xff] }
 0x3c0   : > { %4138 = vst [vmem:[%s4703_s16 + $0x1b98] sm:$0xff] %v3105_v36  ;;  %v2098_v36 = vadd.f32 2.0, %v1066_v28  ;;  %v3128_v41 = vmul.f32 %v2096_v30, %v1064_v22  ;;  %v1088_v30 = vld [vmem:[%s4686_s22 + $0x1d10] sm:$0xff] }
 0x3c1   : > { %4139 = vst [vmem:[%s4703_s16 + $0x1ba0] sm:$0xff] %v3106_v39  ;;  %v2099_v39 = vadd.f32 2.0, %v1067_v31  ;;  %v3129_v44 = vmul.f32 %v2097_v33, %v1065_v25  ;;  %v1089_v33 = vld [vmem:[%s4686_s22 + $0x1d18] sm:$0xff] }
 0x3c2   : > { %4140 = vst [vmem:[%s4703_s16 + $0x1ba8] sm:$0xff] %v3107_v42  ;;  %v2100_v42 = vadd.f32 2.0, %v1068_v34  ;;  %v3130_v47 = vmul.f32 %v2098_v36, %v1066_v28  ;;  %v1090_v36 = vld [vmem:[%s4686_s22 + $0x1d20] sm:$0xff] }
 0x3c3   : > { %4141 = vst [vmem:[%s4703_s16 + $0x1bb0] sm:$0xff] %v3108_v45  ;;  %v2101_v45 = vadd.f32 2.0, %v1069_v37  ;;  %v3131_v50 = vmul.f32 %v2099_v39, %v1067_v31  ;;  %v1091_v39 = vld [vmem:[%s4686_s22 + $0x1d28] sm:$0xff] }
 0x3c4   : > { %4142 = vst.msk [vmem:[%s4703_s16 + $0x1bb8] sm:$0xff] %vm3277_vm0, %v3109_v48  ;;  %v2102_v48 = vadd.f32 2.0, %v1070_v40  ;;  %v3132_v53 = vmul.f32 %v2100_v42, %v1068_v34  ;;  %v1092_v42 = vld [vmem:[%s4686_s22 + $0x1d30] sm:$0xff] }
 0x3c5   : > { %4143 = vst [vmem:[%s4703_s16 + $0x1bc0] sm:$0xff] %v3110_v51  ;;  %v2103_v51 = vadd.f32 2.0, %v1071_v43  ;;  %v3133_v56 = vmul.f32 %v2101_v45, %v1069_v37  ;;  %v1093_v45 = vld [vmem:[%s4686_s22 + $0x1d38] sm:$0xff] }
 0x3c6   : > { %4144 = vst [vmem:[%s4703_s16 + $0x1bc8] sm:$0xff] %v3111_v54  ;;  %v2104_v54 = vadd.f32 2.0, %v1072_v46  ;;  %v3134_v59 = vmul.f32 %v2102_v48, %v1070_v40  ;;  %v1094_v48 = vld [vmem:[%s4686_s22 + $0x1d40] sm:$0xff] }
 0x3c7   : > { %4145 = vst [vmem:[%s4703_s16 + $0x1bd0] sm:$0xff] %v3112_v57  ;;  %v2105_v57 = vadd.f32 2.0, %v1073_v49  ;;  %v3135_v62 = vmul.f32 %v2103_v51, %v1071_v43  ;;  %v1095_v51 = vld [vmem:[%s4686_s22 + $0x1d48] sm:$0xff] }
 0x3c8   : > { %4146 = vst [vmem:[%s4703_s16 + $0x1bd8] sm:$0xff] %v3113_v60  ;;  %v2106_v60 = vadd.f32 2.0, %v1074_v52  ;;  %v3136_v1 = vmul.f32 %v2104_v54, %v1072_v46  ;;  %v1096_v54 = vld [vmem:[%s4686_s22 + $0x1d50] sm:$0xff] }
 0x3c9   : > { %4147 = vst [vmem:[%s4703_s16 + $0x1be0] sm:$0xff] %v3114_v63  ;;  %v2107_v63 = vadd.f32 2.0, %v1075_v55  ;;  %v3137_v4 = vmul.f32 %v2105_v57, %v1073_v49  ;;  %v1097_v57 = vld [vmem:[%s4686_s22 + $0x1d58] sm:$0xff] }
 0x3ca   : > { %4148 = vst [vmem:[%s4703_s16 + $0x1be8] sm:$0xff] %v3115_v2  ;;  %v2108_v2 = vadd.f32 2.0, %v1076_v58  ;;  %v3138_v7 = vmul.f32 %v2106_v60, %v1074_v52  ;;  %v1098_v60 = vld [vmem:[%s4686_s22 + $0x1d60] sm:$0xff] }
 0x3cb   : > { %4149 = vst [vmem:[%s4703_s16 + $0x1bf0] sm:$0xff] %v3116_v5  ;;  %v2109_v5 = vadd.f32 2.0, %v1077_v61  ;;  %v3139_v10 = vmul.f32 %v2107_v63, %v1075_v55  ;;  %v1099_v63 = vld [vmem:[%s4686_s22 + $0x1d68] sm:$0xff] }
 0x3cc   : > { %4150 = vst [vmem:[%s4703_s16 + $0x1bf8] sm:$0xff] %v3117_v8  ;;  %v2110_v8 = vadd.f32 2.0, %v1078_v0  ;;  %v3140_v13 = vmul.f32 %v2108_v2, %v1076_v58  ;;  %v1100_v2 = vld [vmem:[%s4686_s22 + $0x1d70] sm:$0xff] }
 0x3cd   : > { %4151 = vst [vmem:[%s4703_s16 + $0x1c00] sm:$0xff] %v3118_v11  ;;  %v2111_v11 = vadd.f32 2.0, %v1079_v3  ;;  %v3141_v16 = vmul.f32 %v2109_v5, %v1077_v61  ;;  %v1101_v5 = vld [vmem:[%s4686_s22 + $0x1d78] sm:$0xff] }
 0x3ce   : > { %4152 = vst [vmem:[%s4703_s16 + $0x1c08] sm:$0xff] %v3119_v14  ;;  %v2112_v14 = vadd.f32 2.0, %v1080_v6  ;;  %v3142_v19 = vmul.f32 %v2110_v8, %v1078_v0  ;;  %v1102_v8 = vld [vmem:[%s4686_s22 + $0x1d80] sm:$0xff] }
 0x3cf   : > { %4153 = vst [vmem:[%s4703_s16 + $0x1c10] sm:$0xff] %v3120_v17  ;;  %v2113_v17 = vadd.f32 2.0, %v1081_v9  ;;  %v3143_v22 = vmul.f32 %v2111_v11, %v1079_v3  ;;  %v1103_v11 = vld [vmem:[%s4686_s22 + $0x1d88] sm:$0xff] }
 0x3d0   : > { %4154 = vst [vmem:[%s4703_s16 + $0x1c18] sm:$0xff] %v3121_v20  ;;  %v2114_v20 = vadd.f32 2.0, %v1082_v12  ;;  %v3144_v25 = vmul.f32 %v2112_v14, %v1080_v6  ;;  %v1104_v14 = vld [vmem:[%s4686_s22 + $0x1d90] sm:$0xff] }
 0x3d1   : > { %4155 = vst [vmem:[%s4703_s16 + $0x1c20] sm:$0xff] %v3122_v23  ;;  %v2115_v23 = vadd.f32 2.0, %v1083_v15  ;;  %v3145_v28 = vmul.f32 %v2113_v17, %v1081_v9  ;;  %v1105_v17 = vld [vmem:[%s4686_s22 + $0x1d98] sm:$0xff] }
 0x3d2   : > { %4156 = vst [vmem:[%s4703_s16 + $0x1c28] sm:$0xff] %v3123_v26  ;;  %v2116_v26 = vadd.f32 2.0, %v1084_v18  ;;  %v3146_v31 = vmul.f32 %v2114_v20, %v1082_v12  ;;  %v1106_v20 = vld [vmem:[%s4686_s22 + $0x1da0] sm:$0xff] }
 0x3d3   : > { %4157 = vst [vmem:[%s4703_s16 + $0x1c30] sm:$0xff] %v3124_v29  ;;  %v2117_v29 = vadd.f32 2.0, %v1085_v21  ;;  %v3147_v34 = vmul.f32 %v2115_v23, %v1083_v15  ;;  %v1107_v23 = vld [vmem:[%s4686_s22 + $0x1da8] sm:$0xff] }
 0x3d4   : > { %4158 = vst [vmem:[%s4703_s16 + $0x1c38] sm:$0xff] %v3125_v32  ;;  %v2118_v32 = vadd.f32 2.0, %v1086_v24  ;;  %v3148_v37 = vmul.f32 %v2116_v26, %v1084_v18  ;;  %v1108_v26 = vld [vmem:[%s4686_s22 + $0x1db0] sm:$0xff] }
 0x3d5   : > { %4159 = vst [vmem:[%s4703_s16 + $0x1c40] sm:$0xff] %v3126_v35  ;;  %v2119_v35 = vadd.f32 2.0, %v1087_v27  ;;  %v3149_v40 = vmul.f32 %v2117_v29, %v1085_v21  ;;  %v1109_v29 = vld [vmem:[%s4686_s22 + $0x1db8] sm:$0xff] }
 0x3d6   : > { %4160 = vst [vmem:[%s4703_s16 + $0x1c48] sm:$0xff] %v3127_v38  ;;  %v2120_v38 = vadd.f32 2.0, %v1088_v30  ;;  %v3150_v43 = vmul.f32 %v2118_v32, %v1086_v24  ;;  %v1110_v32 = vld [vmem:[%s4686_s22 + $0x1dc0] sm:$0xff] }
 0x3d7   : > { %4161 = vst [vmem:[%s4703_s16 + $0x1c50] sm:$0xff] %v3128_v41  ;;  %v2121_v41 = vadd.f32 2.0, %v1089_v33  ;;  %v3151_v46 = vmul.f32 %v2119_v35, %v1087_v27  ;;  %v1111_v35 = vld [vmem:[%s4686_s22 + $0x1dc8] sm:$0xff] }
 0x3d8   : > { %4162 = vst [vmem:[%s4703_s16 + $0x1c58] sm:$0xff] %v3129_v44  ;;  %v2122_v44 = vadd.f32 2.0, %v1090_v36  ;;  %v3152_v49 = vmul.f32 %v2120_v38, %v1088_v30  ;;  %v1112_v38 = vld [vmem:[%s4686_s22 + $0x1dd0] sm:$0xff] }
 0x3d9   : > { %4163 = vst [vmem:[%s4703_s16 + $0x1c60] sm:$0xff] %v3130_v47  ;;  %v2123_v47 = vadd.f32 2.0, %v1091_v39  ;;  %v3153_v52 = vmul.f32 %v2121_v41, %v1089_v33  ;;  %v1113_v41 = vld [vmem:[%s4686_s22 + $0x1dd8] sm:$0xff] }
 0x3da   : > { %4164 = vst [vmem:[%s4703_s16 + $0x1c68] sm:$0xff] %v3131_v50  ;;  %v2124_v50 = vadd.f32 2.0, %v1092_v42  ;;  %v3154_v55 = vmul.f32 %v2122_v44, %v1090_v36  ;;  %v1114_v44 = vld [vmem:[%s4686_s22 + $0x1de0] sm:$0xff] }
 0x3db   : > { %4165 = vst [vmem:[%s4703_s16 + $0x1c70] sm:$0xff] %v3132_v53  ;;  %v2125_v53 = vadd.f32 2.0, %v1093_v45  ;;  %v3155_v58 = vmul.f32 %v2123_v47, %v1091_v39  ;;  %v1115_v47 = vld [vmem:[%s4686_s22 + $0x1de8] sm:$0xff] }
 0x3dc   : > { %4166 = vst.msk [vmem:[%s4703_s16 + $0x1c78] sm:$0xff] %vm3277_vm0, %v3133_v56  ;;  %v2126_v56 = vadd.f32 2.0, %v1094_v48  ;;  %v3156_v61 = vmul.f32 %v2124_v50, %v1092_v42  ;;  %v1116_v50 = vld [vmem:[%s4686_s22 + $0x1df0] sm:$0xff] }
 0x3dd   : > { %4167 = vst [vmem:[%s4703_s16 + $0x1c80] sm:$0xff] %v3134_v59  ;;  %v2127_v59 = vadd.f32 2.0, %v1095_v51  ;;  %v3157_v0 = vmul.f32 %v2125_v53, %v1093_v45  ;;  %v1117_v53 = vld [vmem:[%s4686_s22 + $0x1df8] sm:$0xff] }
 0x3de   : > { %4168 = vst [vmem:[%s4703_s16 + $0x1c88] sm:$0xff] %v3135_v62  ;;  %v2128_v62 = vadd.f32 2.0, %v1096_v54  ;;  %v3158_v3 = vmul.f32 %v2126_v56, %v1094_v48  ;;  %v1118_v56 = vld [vmem:[%s4686_s22 + $0x1e00] sm:$0xff] }
 0x3df   : > { %4169 = vst [vmem:[%s4703_s16 + $0x1c90] sm:$0xff] %v3136_v1  ;;  %v2129_v1 = vadd.f32 2.0, %v1097_v57  ;;  %v3159_v6 = vmul.f32 %v2127_v59, %v1095_v51  ;;  %v1119_v59 = vld [vmem:[%s4686_s22 + $0x1e08] sm:$0xff] }
 0x3e0   : > { %4170 = vst [vmem:[%s4703_s16 + $0x1c98] sm:$0xff] %v3137_v4  ;;  %v2130_v4 = vadd.f32 2.0, %v1098_v60  ;;  %v3160_v9 = vmul.f32 %v2128_v62, %v1096_v54  ;;  %v1120_v62 = vld [vmem:[%s4686_s22 + $0x1e10] sm:$0xff] }
 0x3e1   : > { %4171 = vst [vmem:[%s4703_s16 + $0x1ca0] sm:$0xff] %v3138_v7  ;;  %v2131_v7 = vadd.f32 2.0, %v1099_v63  ;;  %v3161_v12 = vmul.f32 %v2129_v1, %v1097_v57  ;;  %v1121_v1 = vld [vmem:[%s4686_s22 + $0x1e18] sm:$0xff] }
 0x3e2   : > { %4172 = vst [vmem:[%s4703_s16 + $0x1ca8] sm:$0xff] %v3139_v10  ;;  %v2132_v10 = vadd.f32 2.0, %v1100_v2  ;;  %v3162_v15 = vmul.f32 %v2130_v4, %v1098_v60  ;;  %v1122_v4 = vld [vmem:[%s4686_s22 + $0x1e20] sm:$0xff] }
 0x3e3   : > { %4173 = vst [vmem:[%s4703_s16 + $0x1cb0] sm:$0xff] %v3140_v13  ;;  %v2133_v13 = vadd.f32 2.0, %v1101_v5  ;;  %v3163_v18 = vmul.f32 %v2131_v7, %v1099_v63  ;;  %v1123_v7 = vld [vmem:[%s4686_s22 + $0x1e28] sm:$0xff] }
 0x3e4   : > { %4174 = vst [vmem:[%s4703_s16 + $0x1cb8] sm:$0xff] %v3141_v16  ;;  %v2134_v16 = vadd.f32 2.0, %v1102_v8  ;;  %v3164_v21 = vmul.f32 %v2132_v10, %v1100_v2  ;;  %v1124_v10 = vld [vmem:[%s4686_s22 + $0x1e30] sm:$0xff] }
 0x3e5   : > { %4175 = vst [vmem:[%s4703_s16 + $0x1cc0] sm:$0xff] %v3142_v19  ;;  %v2135_v19 = vadd.f32 2.0, %v1103_v11  ;;  %v3165_v24 = vmul.f32 %v2133_v13, %v1101_v5  ;;  %v1125_v13 = vld [vmem:[%s4686_s22 + $0x1e38] sm:$0xff] }
 0x3e6   : > { %4176 = vst [vmem:[%s4703_s16 + $0x1cc8] sm:$0xff] %v3143_v22  ;;  %v2136_v22 = vadd.f32 2.0, %v1104_v14  ;;  %v3166_v27 = vmul.f32 %v2134_v16, %v1102_v8  ;;  %v1126_v16 = vld [vmem:[%s4686_s22 + $0x1e40] sm:$0xff] }
 0x3e7   : > { %4177 = vst [vmem:[%s4703_s16 + $0x1cd0] sm:$0xff] %v3144_v25  ;;  %v2137_v25 = vadd.f32 2.0, %v1105_v17  ;;  %v3167_v30 = vmul.f32 %v2135_v19, %v1103_v11  ;;  %v1127_v19 = vld [vmem:[%s4686_s22 + $0x1e48] sm:$0xff] }
 0x3e8   : > { %4178 = vst [vmem:[%s4703_s16 + $0x1cd8] sm:$0xff] %v3145_v28  ;;  %v2138_v28 = vadd.f32 2.0, %v1106_v20  ;;  %v3168_v33 = vmul.f32 %v2136_v22, %v1104_v14  ;;  %v1128_v22 = vld [vmem:[%s4686_s22 + $0x1e50] sm:$0xff] }
 0x3e9   : > { %4179 = vst [vmem:[%s4703_s16 + $0x1ce0] sm:$0xff] %v3146_v31  ;;  %v2139_v31 = vadd.f32 2.0, %v1107_v23  ;;  %v3169_v36 = vmul.f32 %v2137_v25, %v1105_v17  ;;  %v1129_v25 = vld [vmem:[%s4686_s22 + $0x1e58] sm:$0xff] }
 0x3ea   : > { %4180 = vst [vmem:[%s4703_s16 + $0x1ce8] sm:$0xff] %v3147_v34  ;;  %v2140_v34 = vadd.f32 2.0, %v1108_v26  ;;  %v3170_v39 = vmul.f32 %v2138_v28, %v1106_v20  ;;  %v1130_v28 = vld [vmem:[%s4686_s22 + $0x1e60] sm:$0xff] }
 0x3eb   : > { %4181 = vst [vmem:[%s4703_s16 + $0x1cf0] sm:$0xff] %v3148_v37  ;;  %v2141_v37 = vadd.f32 2.0, %v1109_v29  ;;  %v3171_v42 = vmul.f32 %v2139_v31, %v1107_v23  ;;  %v1131_v31 = vld [vmem:[%s4686_s22 + $0x1e68] sm:$0xff] }
 0x3ec   : > { %4182 = vst [vmem:[%s4703_s16 + $0x1cf8] sm:$0xff] %v3149_v40  ;;  %v2142_v40 = vadd.f32 2.0, %v1110_v32  ;;  %v3172_v45 = vmul.f32 %v2140_v34, %v1108_v26  ;;  %v1132_v34 = vld [vmem:[%s4686_s22 + $0x1e70] sm:$0xff] }
 0x3ed   : > { %4183 = vst [vmem:[%s4703_s16 + $0x1d00] sm:$0xff] %v3150_v43  ;;  %v2143_v43 = vadd.f32 2.0, %v1111_v35  ;;  %v3173_v48 = vmul.f32 %v2141_v37, %v1109_v29  ;;  %v1133_v37 = vld [vmem:[%s4686_s22 + $0x1e78] sm:$0xff] }
 0x3ee   : > { %4184 = vst [vmem:[%s4703_s16 + $0x1d08] sm:$0xff] %v3151_v46  ;;  %v2144_v46 = vadd.f32 2.0, %v1112_v38  ;;  %v3174_v51 = vmul.f32 %v2142_v40, %v1110_v32  ;;  %v1134_v40 = vld [vmem:[%s4686_s22 + $0x1e80] sm:$0xff] }
 0x3ef   : > { %4185 = vst [vmem:[%s4703_s16 + $0x1d10] sm:$0xff] %v3152_v49  ;;  %v2145_v49 = vadd.f32 2.0, %v1113_v41  ;;  %v3175_v54 = vmul.f32 %v2143_v43, %v1111_v35  ;;  %v1135_v43 = vld [vmem:[%s4686_s22 + $0x1e88] sm:$0xff] }
 0x3f0   : > { %4186 = vst [vmem:[%s4703_s16 + $0x1d18] sm:$0xff] %v3153_v52  ;;  %v2146_v52 = vadd.f32 2.0, %v1114_v44  ;;  %v3176_v57 = vmul.f32 %v2144_v46, %v1112_v38  ;;  %v1136_v46 = vld [vmem:[%s4686_s22 + $0x1e90] sm:$0xff] }
 0x3f1   : > { %4187 = vst [vmem:[%s4703_s16 + $0x1d20] sm:$0xff] %v3154_v55  ;;  %v2147_v55 = vadd.f32 2.0, %v1115_v47  ;;  %v3177_v60 = vmul.f32 %v2145_v49, %v1113_v41  ;;  %v1137_v49 = vld [vmem:[%s4686_s22 + $0x1e98] sm:$0xff] }
 0x3f2   : > { %4188 = vst [vmem:[%s4703_s16 + $0x1d28] sm:$0xff] %v3155_v58  ;;  %v2148_v58 = vadd.f32 2.0, %v1116_v50  ;;  %v3178_v63 = vmul.f32 %v2146_v52, %v1114_v44  ;;  %v1138_v52 = vld [vmem:[%s4686_s22 + $0x1ea0] sm:$0xff] }
 0x3f3   : > { %4189 = vst [vmem:[%s4703_s16 + $0x1d30] sm:$0xff] %v3156_v61  ;;  %v2149_v61 = vadd.f32 2.0, %v1117_v53  ;;  %v3179_v2 = vmul.f32 %v2147_v55, %v1115_v47  ;;  %v1139_v55 = vld [vmem:[%s4686_s22 + $0x1ea8] sm:$0xff] }
 0x3f4   : > { %4190 = vst.msk [vmem:[%s4703_s16 + $0x1d38] sm:$0xff] %vm3277_vm0, %v3157_v0  ;;  %v2150_v0 = vadd.f32 2.0, %v1118_v56  ;;  %v3180_v5 = vmul.f32 %v2148_v58, %v1116_v50  ;;  %v1140_v58 = vld [vmem:[%s4686_s22 + $0x1eb0] sm:$0xff] }
 0x3f5   : > { %4191 = vst [vmem:[%s4703_s16 + $0x1d40] sm:$0xff] %v3158_v3  ;;  %v2151_v3 = vadd.f32 2.0, %v1119_v59  ;;  %v3181_v8 = vmul.f32 %v2149_v61, %v1117_v53  ;;  %v1141_v61 = vld [vmem:[%s4686_s22 + $0x1eb8] sm:$0xff] }
 0x3f6   : > { %4192 = vst [vmem:[%s4703_s16 + $0x1d48] sm:$0xff] %v3159_v6  ;;  %v2152_v6 = vadd.f32 2.0, %v1120_v62  ;;  %v3182_v11 = vmul.f32 %v2150_v0, %v1118_v56  ;;  %v1142_v0 = vld [vmem:[%s4686_s22 + $0x1ec0] sm:$0xff] }
 0x3f7   : > { %4193 = vst [vmem:[%s4703_s16 + $0x1d50] sm:$0xff] %v3160_v9  ;;  %v2153_v9 = vadd.f32 2.0, %v1121_v1  ;;  %v3183_v14 = vmul.f32 %v2151_v3, %v1119_v59  ;;  %v1143_v3 = vld [vmem:[%s4686_s22 + $0x1ec8] sm:$0xff] }
 0x3f8   : > { %4194 = vst [vmem:[%s4703_s16 + $0x1d58] sm:$0xff] %v3161_v12  ;;  %v2154_v12 = vadd.f32 2.0, %v1122_v4  ;;  %v3184_v17 = vmul.f32 %v2152_v6, %v1120_v62  ;;  %v1144_v6 = vld [vmem:[%s4686_s22 + $0x1ed0] sm:$0xff] }
 0x3f9   : > { %4195 = vst [vmem:[%s4703_s16 + $0x1d60] sm:$0xff] %v3162_v15  ;;  %v2155_v15 = vadd.f32 2.0, %v1123_v7  ;;  %v3185_v20 = vmul.f32 %v2153_v9, %v1121_v1  ;;  %v1145_v9 = vld [vmem:[%s4686_s22 + $0x1ed8] sm:$0xff] }
 0x3fa   : > { %4196 = vst [vmem:[%s4703_s16 + $0x1d68] sm:$0xff] %v3163_v18  ;;  %v2156_v18 = vadd.f32 2.0, %v1124_v10  ;;  %v3186_v23 = vmul.f32 %v2154_v12, %v1122_v4  ;;  %v1146_v12 = vld [vmem:[%s4686_s22 + $0x1ee0] sm:$0xff] }
 0x3fb   : > { %4197 = vst [vmem:[%s4703_s16 + $0x1d70] sm:$0xff] %v3164_v21  ;;  %v2157_v21 = vadd.f32 2.0, %v1125_v13  ;;  %v3187_v26 = vmul.f32 %v2155_v15, %v1123_v7  ;;  %v1147_v15 = vld [vmem:[%s4686_s22 + $0x1ee8] sm:$0xff] }
 0x3fc   : > { %4198 = vst [vmem:[%s4703_s16 + $0x1d78] sm:$0xff] %v3165_v24  ;;  %v2158_v24 = vadd.f32 2.0, %v1126_v16  ;;  %v3188_v29 = vmul.f32 %v2156_v18, %v1124_v10  ;;  %v1148_v18 = vld [vmem:[%s4686_s22 + $0x1ef0] sm:$0xff] }
 0x3fd   : > { %4199 = vst [vmem:[%s4703_s16 + $0x1d80] sm:$0xff] %v3166_v27  ;;  %v2159_v27 = vadd.f32 2.0, %v1127_v19  ;;  %v3189_v32 = vmul.f32 %v2157_v21, %v1125_v13  ;;  %v1149_v21 = vld [vmem:[%s4686_s22 + $0x1ef8] sm:$0xff] }
 0x3fe   : > { %4200 = vst [vmem:[%s4703_s16 + $0x1d88] sm:$0xff] %v3167_v30  ;;  %v2160_v30 = vadd.f32 2.0, %v1128_v22  ;;  %v3190_v35 = vmul.f32 %v2158_v24, %v1126_v16  ;;  %v1150_v24 = vld [vmem:[%s4686_s22 + $0x1f00] sm:$0xff] }
 0x3ff   : > { %4201 = vst [vmem:[%s4703_s16 + $0x1d90] sm:$0xff] %v3168_v33  ;;  %v2161_v33 = vadd.f32 2.0, %v1129_v25  ;;  %v3191_v38 = vmul.f32 %v2159_v27, %v1127_v19  ;;  %v1151_v27 = vld [vmem:[%s4686_s22 + $0x1f08] sm:$0xff] }
 0x400   : > { %4202 = vst [vmem:[%s4703_s16 + $0x1d98] sm:$0xff] %v3169_v36  ;;  %v2162_v36 = vadd.f32 2.0, %v1130_v28  ;;  %v3192_v41 = vmul.f32 %v2160_v30, %v1128_v22  ;;  %v1152_v30 = vld [vmem:[%s4686_s22 + $0x1f10] sm:$0xff] }
 0x401   : > { %4203 = vst [vmem:[%s4703_s16 + $0x1da0] sm:$0xff] %v3170_v39  ;;  %v2163_v39 = vadd.f32 2.0, %v1131_v31  ;;  %v3193_v44 = vmul.f32 %v2161_v33, %v1129_v25  ;;  %v1153_v33 = vld [vmem:[%s4686_s22 + $0x1f18] sm:$0xff] }
 0x402   : > { %4204 = vst [vmem:[%s4703_s16 + $0x1da8] sm:$0xff] %v3171_v42  ;;  %v2164_v42 = vadd.f32 2.0, %v1132_v34  ;;  %v3194_v47 = vmul.f32 %v2162_v36, %v1130_v28  ;;  %v1154_v36 = vld [vmem:[%s4686_s22 + $0x1f20] sm:$0xff] }
 0x403   : > { %4205 = vst [vmem:[%s4703_s16 + $0x1db0] sm:$0xff] %v3172_v45  ;;  %v2165_v45 = vadd.f32 2.0, %v1133_v37  ;;  %v3195_v50 = vmul.f32 %v2163_v39, %v1131_v31  ;;  %v1155_v39 = vld [vmem:[%s4686_s22 + $0x1f28] sm:$0xff] }
 0x404   : > { %4206 = vst [vmem:[%s4703_s16 + $0x1db8] sm:$0xff] %v3173_v48  ;;  %v2166_v48 = vadd.f32 2.0, %v1134_v40  ;;  %v3196_v53 = vmul.f32 %v2164_v42, %v1132_v34  ;;  %v1156_v42 = vld [vmem:[%s4686_s22 + $0x1f30] sm:$0xff] }
 0x405   : > { %4207 = vst [vmem:[%s4703_s16 + $0x1dc0] sm:$0xff] %v3174_v51  ;;  %v2167_v51 = vadd.f32 2.0, %v1135_v43  ;;  %v3197_v56 = vmul.f32 %v2165_v45, %v1133_v37  ;;  %v1157_v45 = vld [vmem:[%s4686_s22 + $0x1f38] sm:$0xff] }
 0x406   : > { %4208 = vst [vmem:[%s4703_s16 + $0x1dc8] sm:$0xff] %v3175_v54  ;;  %v2168_v54 = vadd.f32 2.0, %v1136_v46  ;;  %v3198_v59 = vmul.f32 %v2166_v48, %v1134_v40  ;;  %v1158_v48 = vld [vmem:[%s4686_s22 + $0x1f40] sm:$0xff] }
 0x407   : > { %4209 = vst [vmem:[%s4703_s16 + $0x1dd0] sm:$0xff] %v3176_v57  ;;  %v2169_v57 = vadd.f32 2.0, %v1137_v49  ;;  %v3199_v62 = vmul.f32 %v2167_v51, %v1135_v43  ;;  %v1159_v51 = vld [vmem:[%s4686_s22 + $0x1f48] sm:$0xff] }
 0x408   : > { %4210 = vst [vmem:[%s4703_s16 + $0x1dd8] sm:$0xff] %v3177_v60  ;;  %v2170_v60 = vadd.f32 2.0, %v1138_v52  ;;  %v3200_v1 = vmul.f32 %v2168_v54, %v1136_v46  ;;  %v1160_v54 = vld [vmem:[%s4686_s22 + $0x1f50] sm:$0xff] }
 0x409   : > { %4211 = vst [vmem:[%s4703_s16 + $0x1de0] sm:$0xff] %v3178_v63  ;;  %v2171_v63 = vadd.f32 2.0, %v1139_v55  ;;  %v3201_v4 = vmul.f32 %v2169_v57, %v1137_v49  ;;  %v1161_v57 = vld [vmem:[%s4686_s22 + $0x1f58] sm:$0xff] }
 0x40a   : > { %4212 = vst [vmem:[%s4703_s16 + $0x1de8] sm:$0xff] %v3179_v2  ;;  %v2172_v2 = vadd.f32 2.0, %v1140_v58  ;;  %v3202_v7 = vmul.f32 %v2170_v60, %v1138_v52  ;;  %v1162_v60 = vld [vmem:[%s4686_s22 + $0x1f60] sm:$0xff] }
 0x40b   : > { %4213 = vst [vmem:[%s4703_s16 + $0x1df0] sm:$0xff] %v3180_v5  ;;  %v2173_v5 = vadd.f32 2.0, %v1141_v61  ;;  %v3203_v10 = vmul.f32 %v2171_v63, %v1139_v55  ;;  %v1163_v63 = vld [vmem:[%s4686_s22 + $0x1f68] sm:$0xff] }
 0x40c   : > { %4214 = vst.msk [vmem:[%s4703_s16 + $0x1df8] sm:$0xff] %vm3277_vm0, %v3181_v8  ;;  %v2174_v8 = vadd.f32 2.0, %v1142_v0  ;;  %v3204_v13 = vmul.f32 %v2172_v2, %v1140_v58  ;;  %v1164_v2 = vld [vmem:[%s4686_s22 + $0x1f70] sm:$0xff] }
 0x40d   : > { %4215 = vst [vmem:[%s4703_s16 + $0x1e00] sm:$0xff] %v3182_v11  ;;  %v2175_v11 = vadd.f32 2.0, %v1143_v3  ;;  %v3205_v16 = vmul.f32 %v2173_v5, %v1141_v61  ;;  %v1165_v5 = vld [vmem:[%s4686_s22 + $0x1f78] sm:$0xff] }
 0x40e   : > { %4216 = vst [vmem:[%s4703_s16 + $0x1e08] sm:$0xff] %v3183_v14  ;;  %v2176_v14 = vadd.f32 2.0, %v1144_v6  ;;  %v3206_v19 = vmul.f32 %v2174_v8, %v1142_v0  ;;  %v1166_v8 = vld [vmem:[%s4686_s22 + $0x1f80] sm:$0xff] }
 0x40f   : > { %4217 = vst [vmem:[%s4703_s16 + $0x1e10] sm:$0xff] %v3184_v17  ;;  %v2177_v17 = vadd.f32 2.0, %v1145_v9  ;;  %v3207_v22 = vmul.f32 %v2175_v11, %v1143_v3  ;;  %v1167_v11 = vld [vmem:[%s4686_s22 + $0x1f88] sm:$0xff] }
 0x410   : > { %4218 = vst [vmem:[%s4703_s16 + $0x1e18] sm:$0xff] %v3185_v20  ;;  %v2178_v20 = vadd.f32 2.0, %v1146_v12  ;;  %v3208_v25 = vmul.f32 %v2176_v14, %v1144_v6  ;;  %v1168_v14 = vld [vmem:[%s4686_s22 + $0x1f90] sm:$0xff] }
 0x411   : > { %4219 = vst [vmem:[%s4703_s16 + $0x1e20] sm:$0xff] %v3186_v23  ;;  %v2179_v23 = vadd.f32 2.0, %v1147_v15  ;;  %v3209_v28 = vmul.f32 %v2177_v17, %v1145_v9  ;;  %v1169_v17 = vld [vmem:[%s4686_s22 + $0x1f98] sm:$0xff] }
 0x412   : > { %4220 = vst [vmem:[%s4703_s16 + $0x1e28] sm:$0xff] %v3187_v26  ;;  %v2180_v26 = vadd.f32 2.0, %v1148_v18  ;;  %v3210_v31 = vmul.f32 %v2178_v20, %v1146_v12  ;;  %v1170_v20 = vld [vmem:[%s4686_s22 + $0x1fa0] sm:$0xff] }
 0x413   : > { %4221 = vst [vmem:[%s4703_s16 + $0x1e30] sm:$0xff] %v3188_v29  ;;  %v2181_v29 = vadd.f32 2.0, %v1149_v21  ;;  %v3211_v34 = vmul.f32 %v2179_v23, %v1147_v15  ;;  %v1171_v23 = vld [vmem:[%s4686_s22 + $0x1fa8] sm:$0xff] }
 0x414   : > { %4222 = vst [vmem:[%s4703_s16 + $0x1e38] sm:$0xff] %v3189_v32  ;;  %v2182_v32 = vadd.f32 2.0, %v1150_v24  ;;  %v3212_v37 = vmul.f32 %v2180_v26, %v1148_v18  ;;  %v1172_v26 = vld [vmem:[%s4686_s22 + $0x1fb0] sm:$0xff] }
 0x415   : > { %4223 = vst [vmem:[%s4703_s16 + $0x1e40] sm:$0xff] %v3190_v35  ;;  %v2183_v35 = vadd.f32 2.0, %v1151_v27  ;;  %v3213_v40 = vmul.f32 %v2181_v29, %v1149_v21  ;;  %v1173_v29 = vld [vmem:[%s4686_s22 + $0x1fb8] sm:$0xff] }
 0x416   : > { %4224 = vst [vmem:[%s4703_s16 + $0x1e48] sm:$0xff] %v3191_v38  ;;  %v2184_v38 = vadd.f32 2.0, %v1152_v30  ;;  %v3214_v43 = vmul.f32 %v2182_v32, %v1150_v24  ;;  %v1174_v32 = vld [vmem:[%s4686_s22 + $0x1fc0] sm:$0xff] }
 0x417   : > { %4225 = vst [vmem:[%s4703_s16 + $0x1e50] sm:$0xff] %v3192_v41  ;;  %v2185_v41 = vadd.f32 2.0, %v1153_v33  ;;  %v3215_v46 = vmul.f32 %v2183_v35, %v1151_v27  ;;  %v1175_v35 = vld [vmem:[%s4686_s22 + $0x1fc8] sm:$0xff] }
 0x418   : > { %4226 = vst [vmem:[%s4703_s16 + $0x1e58] sm:$0xff] %v3193_v44  ;;  %v2186_v44 = vadd.f32 2.0, %v1154_v36  ;;  %v3216_v49 = vmul.f32 %v2184_v38, %v1152_v30  ;;  %v1176_v38 = vld [vmem:[%s4686_s22 + $0x1fd0] sm:$0xff] }
 0x419   : > { %4227 = vst [vmem:[%s4703_s16 + $0x1e60] sm:$0xff] %v3194_v47  ;;  %v2187_v47 = vadd.f32 2.0, %v1155_v39  ;;  %v3217_v52 = vmul.f32 %v2185_v41, %v1153_v33  ;;  %v1177_v41 = vld [vmem:[%s4686_s22 + $0x1fd8] sm:$0xff] }
 0x41a   : > { %4228 = vst [vmem:[%s4703_s16 + $0x1e68] sm:$0xff] %v3195_v50  ;;  %v2188_v50 = vadd.f32 2.0, %v1156_v42  ;;  %v3218_v55 = vmul.f32 %v2186_v44, %v1154_v36  ;;  %v1178_v44 = vld [vmem:[%s4686_s22 + $0x1fe0] sm:$0xff] }
 0x41b   : > { %4229 = vst [vmem:[%s4703_s16 + $0x1e70] sm:$0xff] %v3196_v53  ;;  %v2189_v53 = vadd.f32 2.0, %v1157_v45  ;;  %v3219_v58 = vmul.f32 %v2187_v47, %v1155_v39  ;;  %v1179_v47 = vld [vmem:[%s4686_s22 + $0x1fe8] sm:$0xff] }
 0x41c   : > { %4230 = vst [vmem:[%s4703_s16 + $0x1e78] sm:$0xff] %v3197_v56  ;;  %v2190_v56 = vadd.f32 2.0, %v1158_v48  ;;  %v3220_v61 = vmul.f32 %v2188_v50, %v1156_v42  ;;  %v1180_v50 = vld [vmem:[%s4686_s22 + $0x1ff0] sm:$0xff] }
 0x41d   : > { %4231 = vst [vmem:[%s4703_s16 + $0x1e80] sm:$0xff] %v3198_v59  ;;  %v2191_v59 = vadd.f32 2.0, %v1159_v51  ;;  %v3221_v0 = vmul.f32 %v2189_v53, %v1157_v45  ;;  %v1181_v53 = vld [vmem:[%s4686_s22 + $0x1ff8] sm:$0xff] }
 0x41e   : > { %4232 = vst [vmem:[%s4703_s16 + $0x1e88] sm:$0xff] %v3199_v62  ;;  %v2192_v62 = vadd.f32 2.0, %v1160_v54  ;;  %v3222_v3 = vmul.f32 %v2190_v56, %v1158_v48  ;;  %v1182_v56 = vld [vmem:[%s4686_s22 + $0x2000] sm:$0xff] }
 0x41f   : > { %4233 = vst [vmem:[%s4703_s16 + $0x1e90] sm:$0xff] %v3200_v1  ;;  %v2193_v1 = vadd.f32 2.0, %v1161_v57  ;;  %v3223_v6 = vmul.f32 %v2191_v59, %v1159_v51  ;;  %v1183_v59 = vld [vmem:[%s4686_s22 + $0x2008] sm:$0xff] }
 0x420   : > { %4234 = vst [vmem:[%s4703_s16 + $0x1e98] sm:$0xff] %v3201_v4  ;;  %v2194_v4 = vadd.f32 2.0, %v1162_v60  ;;  %v3224_v9 = vmul.f32 %v2192_v62, %v1160_v54  ;;  %v1184_v62 = vld [vmem:[%s4686_s22 + $0x2010] sm:$0xff] }
 0x421   : > { %4235 = vst [vmem:[%s4703_s16 + $0x1ea0] sm:$0xff] %v3202_v7  ;;  %v2195_v7 = vadd.f32 2.0, %v1163_v63  ;;  %v3225_v12 = vmul.f32 %v2193_v1, %v1161_v57  ;;  %v1185_v1 = vld [vmem:[%s4686_s22 + $0x2018] sm:$0xff] }
 0x422   : > { %4236 = vst [vmem:[%s4703_s16 + $0x1ea8] sm:$0xff] %v3203_v10  ;;  %v2196_v10 = vadd.f32 2.0, %v1164_v2  ;;  %v3226_v15 = vmul.f32 %v2194_v4, %v1162_v60  ;;  %v1186_v4 = vld [vmem:[%s4686_s22 + $0x2020] sm:$0xff] }
 0x423   : > { %4237 = vst [vmem:[%s4703_s16 + $0x1eb0] sm:$0xff] %v3204_v13  ;;  %v2197_v13 = vadd.f32 2.0, %v1165_v5  ;;  %v3227_v18 = vmul.f32 %v2195_v7, %v1163_v63  ;;  %v1187_v7 = vld [vmem:[%s4686_s22 + $0x2028] sm:$0xff] }
 0x424   : > { %4238 = vst.msk [vmem:[%s4703_s16 + $0x1eb8] sm:$0xff] %vm3277_vm0, %v3205_v16  ;;  %v2198_v16 = vadd.f32 2.0, %v1166_v8  ;;  %v3228_v21 = vmul.f32 %v2196_v10, %v1164_v2  ;;  %v1188_v10 = vld [vmem:[%s4686_s22 + $0x2030] sm:$0xff] }
 0x425   : > { %4239 = vst [vmem:[%s4703_s16 + $0x1ec0] sm:$0xff] %v3206_v19  ;;  %v2199_v19 = vadd.f32 2.0, %v1167_v11  ;;  %v3229_v24 = vmul.f32 %v2197_v13, %v1165_v5  ;;  %v1189_v13 = vld [vmem:[%s4686_s22 + $0x2038] sm:$0xff] }
 0x426   : > { %4240 = vst [vmem:[%s4703_s16 + $0x1ec8] sm:$0xff] %v3207_v22  ;;  %v2200_v22 = vadd.f32 2.0, %v1168_v14  ;;  %v3230_v27 = vmul.f32 %v2198_v16, %v1166_v8 }
 0x427   : > { %4241 = vst [vmem:[%s4703_s16 + $0x1ed0] sm:$0xff] %v3208_v25  ;;  %v2201_v25 = vadd.f32 2.0, %v1169_v17  ;;  %v3231_v30 = vmul.f32 %v2199_v19, %v1167_v11  ;;  %v2221_v19 = vadd.f32 2.0, %v1189_v13 }
 0x428   : > { %4242 = vst [vmem:[%s4703_s16 + $0x1ed8] sm:$0xff] %v3209_v28  ;;  %v2202_v28 = vadd.f32 2.0, %v1170_v20  ;;  %v3232_v33 = vmul.f32 %v2200_v22, %v1168_v14 }
 0x429   : > { %4243 = vst [vmem:[%s4703_s16 + $0x1ee0] sm:$0xff] %v3210_v31  ;;  %v2203_v31 = vadd.f32 2.0, %v1171_v23  ;;  %v3233_v36 = vmul.f32 %v2201_v25, %v1169_v17  ;;  %v2220_v17 = vadd.f32 2.0, %v1188_v10 }
 0x42a   : > { %4244 = vst [vmem:[%s4703_s16 + $0x1ee8] sm:$0xff] %v3211_v34  ;;  %v2204_v34 = vadd.f32 2.0, %v1172_v26  ;;  %v3234_v39 = vmul.f32 %v2202_v28, %v1170_v20 }
 0x42b   : > { %4245 = vst [vmem:[%s4703_s16 + $0x1ef0] sm:$0xff] %v3212_v37  ;;  %v2205_v37 = vadd.f32 2.0, %v1173_v29  ;;  %v3235_v42 = vmul.f32 %v2203_v31, %v1171_v23  ;;  %v3252_v22 = vmul.f32 %v2220_v17, %v1188_v10  ;;  %v3253_v23 = vmul.f32 %v2221_v19, %v1189_v13 }
 0x42c   : > { %4246 = vst [vmem:[%s4703_s16 + $0x1ef8] sm:$0xff] %v3213_v40  ;;  %v2206_v40 = vadd.f32 2.0, %v1174_v32  ;;  %v3236_v45 = vmul.f32 %v2204_v34, %v1172_v26 }
 0x42d   : > { %4247 = vst [vmem:[%s4703_s16 + $0x1f00] sm:$0xff] %v3214_v43  ;;  %v2207_v43 = vadd.f32 2.0, %v1175_v35  ;;  %v3237_v48 = vmul.f32 %v2205_v37, %v1173_v29 }
 0x42e   : > { %4248 = vst [vmem:[%s4703_s16 + $0x1f08] sm:$0xff] %v3215_v46  ;;  %v2208_v46 = vadd.f32 2.0, %v1176_v38  ;;  %v3238_v51 = vmul.f32 %v2206_v40, %v1174_v32 }
 0x42f   : > { %4249 = vst [vmem:[%s4703_s16 + $0x1f10] sm:$0xff] %v3216_v49  ;;  %v2209_v49 = vadd.f32 2.0, %v1177_v41  ;;  %v3239_v54 = vmul.f32 %v2207_v43, %v1175_v35 }
 0x430   : > { %4250 = vst [vmem:[%s4703_s16 + $0x1f18] sm:$0xff] %v3217_v52  ;;  %v2210_v52 = vadd.f32 2.0, %v1178_v44  ;;  %v3240_v57 = vmul.f32 %v2208_v46, %v1176_v38 }
 0x431   : > { %4251 = vst [vmem:[%s4703_s16 + $0x1f20] sm:$0xff] %v3218_v55  ;;  %v2211_v55 = vadd.f32 2.0, %v1179_v47  ;;  %v3241_v60 = vmul.f32 %v2209_v49, %v1177_v41 }
 0x432   : > { %4252 = vst [vmem:[%s4703_s16 + $0x1f28] sm:$0xff] %v3219_v58  ;;  %v2212_v58 = vadd.f32 2.0, %v1180_v50  ;;  %v3242_v63 = vmul.f32 %v2210_v52, %v1178_v44 }
 0x433   : > { %4253 = vst [vmem:[%s4703_s16 + $0x1f30] sm:$0xff] %v3220_v61  ;;  %v2213_v61 = vadd.f32 2.0, %v1181_v53  ;;  %v3243_v2 = vmul.f32 %v2211_v55, %v1179_v47 }
 0x434   : > { %4254 = vst [vmem:[%s4703_s16 + $0x1f38] sm:$0xff] %v3221_v0  ;;  %v2214_v0 = vadd.f32 2.0, %v1182_v56  ;;  %v3244_v5 = vmul.f32 %v2212_v58, %v1180_v50 }
 0x435   : > { %4255 = vst [vmem:[%s4703_s16 + $0x1f40] sm:$0xff] %v3222_v3  ;;  %v2215_v3 = vadd.f32 2.0, %v1183_v59  ;;  %v3245_v8 = vmul.f32 %v2213_v61, %v1181_v53 }
 0x436   : > { %4256 = vst [vmem:[%s4703_s16 + $0x1f48] sm:$0xff] %v3223_v6  ;;  %v2216_v6 = vadd.f32 2.0, %v1184_v62  ;;  %v3246_v11 = vmul.f32 %v2214_v0, %v1182_v56 }
 0x437   : > { %4257 = vst [vmem:[%s4703_s16 + $0x1f50] sm:$0xff] %v3224_v9  ;;  %v2217_v9 = vadd.f32 2.0, %v1185_v1  ;;  %v3247_v14 = vmul.f32 %v2215_v3, %v1183_v59 }
 0x438   : > { %4258 = vst [vmem:[%s4703_s16 + $0x1f58] sm:$0xff] %v3225_v12  ;;  %v2218_v12 = vadd.f32 2.0, %v1186_v4  ;;  %v3248_v16 = vmul.f32 %v2216_v6, %v1184_v62 }
 0x439   : > { %4259 = vst [vmem:[%s4703_s16 + $0x1f60] sm:$0xff] %v3226_v15  ;;  %v2219_v15 = vadd.f32 2.0, %v1187_v7 }
 0x43a   : > { %4260 = vst [vmem:[%s4703_s16 + $0x1f68] sm:$0xff] %v3227_v18  ;;  %v3249_v18 = vmul.f32 %v2217_v9, %v1185_v1  ;;  %v3250_v20 = vmul.f32 %v2218_v12, %v1186_v4 }
 0x43b   : > { %4261 = vst [vmem:[%s4703_s16 + $0x1f70] sm:$0xff] %v3228_v21  ;;  %v3251_v21 = vmul.f32 %v2219_v15, %v1187_v7 }
 0x43c   : > { %4262 = vst.msk [vmem:[%s4703_s16 + $0x1f78] sm:$0xff] %vm3277_vm0, %v3229_v24 }
 0x43d   : > { %4263 = vst [vmem:[%s4703_s16 + $0x1f80] sm:$0xff] %v3230_v27 }
 0x43e   : > { %4264 = vst [vmem:[%s4703_s16 + $0x1f88] sm:$0xff] %v3231_v30 }
 0x43f   : > { %4265 = vst [vmem:[%s4703_s16 + $0x1f90] sm:$0xff] %v3232_v33 }
 0x440   : > { %4266 = vst [vmem:[%s4703_s16 + $0x1f98] sm:$0xff] %v3233_v36 }
 0x441   : > { %4267 = vst [vmem:[%s4703_s16 + $0x1fa0] sm:$0xff] %v3234_v39 }
 0x442   : > { %4268 = vst [vmem:[%s4703_s16 + $0x1fa8] sm:$0xff] %v3235_v42 }
 0x443   : > { %4269 = vst [vmem:[%s4703_s16 + $0x1fb0] sm:$0xff] %v3236_v45 }
 0x444   : > { %4270 = vst [vmem:[%s4703_s16 + $0x1fb8] sm:$0xff] %v3237_v48 }
 0x445   : > { %4271 = vst [vmem:[%s4703_s16 + $0x1fc0] sm:$0xff] %v3238_v51 }
 0x446   : > { %4272 = vst [vmem:[%s4703_s16 + $0x1fc8] sm:$0xff] %v3239_v54 }
 0x447   : > { %4273 = vst [vmem:[%s4703_s16 + $0x1fd0] sm:$0xff] %v3240_v57 }
 0x448   : > { %4274 = vst [vmem:[%s4703_s16 + $0x1fd8] sm:$0xff] %v3241_v60 }
 0x449   : > { %4275 = vst [vmem:[%s4703_s16 + $0x1fe0] sm:$0xff] %v3242_v63 }
 0x44a   : > { %4276 = vst [vmem:[%s4703_s16 + $0x1fe8] sm:$0xff] %v3243_v2 }
 0x44b   : > { %4277 = vst [vmem:[%s4703_s16 + $0x1ff0] sm:$0xff] %v3244_v5 }
 0x44c   : > { %4278 = vst [vmem:[%s4703_s16 + $0x1ff8] sm:$0xff] %v3245_v8 }
 0x44d   : > { %4279 = vst [vmem:[%s4703_s16 + $0x2000] sm:$0xff] %v3246_v11 }
 0x44e   : > { %4280 = vst [vmem:[%s4703_s16 + $0x2008] sm:$0xff] %v3247_v14 }
 0x44f   : > { %4281 = vst [vmem:[%s4703_s16 + $0x2010] sm:$0xff] %v3248_v16 }
 0x450   : > { %4282 = vst [vmem:[%s4703_s16 + $0x2018] sm:$0xff] %v3249_v18  ;;  %4294 = sbr.rel (!%p4628_p9) target bundleno = 1145 (0x479), region = 32 }
 0x451   : > { %4283 = vst [vmem:[%s4703_s16 + $0x2020] sm:$0xff] %v3250_v20 }
 0x452   : > { %4284 = vst [vmem:[%s4703_s16 + $0x2028] sm:$0xff] %v3251_v21 }
 0x453   : > { %4285 = vst [vmem:[%s4703_s16 + $0x2030] sm:$0xff] %v3252_v22 }
 0x454   : > { %4286 = vst.msk [vmem:[%s4703_s16 + $0x2038] sm:$0xff] %vm3277_vm0, %v3253_v23 }
 0x455   : > { %s6876_s30 = smov (!%p4297_p6, %s4296_s30), 43 }
 0x456   : > { %s4395_s2 = smul.u32 192, %s6876_s30 }
 0x458   : > { %s4301_s11 = ssub.s32 8256, %s4395_s2 }
 0x459   : > { %s4302_s23 = sshll.u32 %s4301_s11, 4 }
 0x45a   : > { %4303 = vsyncadd %s4288_s26, %s4302_s23  ;;  %p6807_p13 = scmp.ne.s32.totalorder %s4395_s2, 0  ;;  %s4412_s25 = smul.u32 8256, %s4605_s10 }
 0x45b   : > { %s4309_s17 = sshll.u32 %s4703_s16, 4  ;;  %s6813_s27 = smul.u32 3072, %s6876_s30  ;;  %s6818_s17 = int_to_ptr.vmem [resolvable:$true] %s4309_s17 }
 0x45c   : > { %s4307_s4 = scalar_lea.hbm %s6861_s1, %s4412_s25  ;;  %s4489_s13 = sshra.s32 %s6818_s17, 4  ;;  %s4490_s13 = int_to_ptr.vmem [resolvable:$true] %s4489_s13 }
 0x45d   : > { %s4311_s5 = sshll.u32 %s4307_s4, 4  ;;  %s4491_s14 = sshrl.u32 %s6813_s27, 4  ;;  %s6820_s5 = int_to_ptr.hbm [resolvable:$true] %s4311_s5 }
 0x45e   : > { %s4527_s10 = sshll.u32 %s4491_s14, 4  ;;  %s4494_s20 = sadd.s32 1, %s4491_s14 }
 0x45f   : > { %p4493_p9 = scmp.ne.s32.totalorder %s4527_s10, %s6813_s27  ;;  %s4571_s22 = smov [#allocation5]  }
 0x460   : > { %s4500_s16 = scalar_lea.vmem %s4571_s22, 16512 }
 0x461   : > { %s6878_s20 = smov (!%p4493_p9, %s4494_s20), %s4491_s14 }
 0x462   : > { %s4496_s21 = scalar_lea.vmem %s4490_s13, %s6878_s20 }
 0x463   : > { %p4497_p7 = scmp.ne.s32.totalorder %s4490_s13, %s4496_s21  ;;  %p4502_p12 = scmp.lt.s32.totalorder %s4500_s16, %s4496_s21 }
 0x465   : > { %p4498_p8 = pnand %p4497_p7, %p6807_p13 }
 0x467   : > { %p4499_p11 = pneg %p4498_p8 }
 0x469   : > { %p4504_p0 = pnand %p4502_p12, %p4499_p11 }
 0x46b   : > { %4507 = shalt.err (!%p4504_p0)
}
 0x46c   : > { %s4508_s28 = sshra.s32 %s6820_s5, 4  ;;  %s4519_s23 = scalar_lea.hbm %s6861_s1, 24000  ;;  %s4509_s28 = int_to_ptr.hbm [resolvable:$true] %s4508_s28 }
 0x46d   : > { %s4515_s30 = scalar_lea.hbm %s4509_s28, %s6878_s20  ;;  %p4520_p4 = scmp.lt.s32.totalorder %s4509_s28, %s6861_s1 }
 0x46e   : > { %p4516_p1 = scmp.ne.s32.totalorder %s4509_s28, %s4515_s30  ;;  %p4521_p5 = scmp.lt.s32.totalorder %s4519_s23, %s4515_s30 }
 0x470   : > { %p4517_p2 = pnand %p4516_p1, %p6807_p13  ;;  %p4522_p6 = por %p4521_p5, %p4520_p4 }
 0x472   : > { %p4518_p3 = pneg %p4517_p2 }
 0x474   : > { %p4523_p9 = pnand %p4522_p6, %p4518_p3 }
 0x476   : > { %4526 = shalt.err (!%p4523_p9)
}
 0x477   : > { %s4572_s3 = smov 3072   ;;  %s4573_s4 = smov 192  }
 0x478   : > { %4317 = dma.vmem_to_hbm [thread:$0]  (%p6807_p13), %s6818_s17, %s6813_s27, %s6820_s5, %s4288_s26, %s4572_s3, %s4572_s3, %s4573_s4  }
 0x479 PF: > { %p4413_p7 = scmp.ge.s32.totalorder %s4566_s9, 2  ;;  %s4326_s13 = sand.u32 1, %s4554_s6  }
 0x47a   : > { %s4327_s14 = scalar_lea.sflag [#allocation4], %s4326_s13 }
 0x47b   : > { %p4408_p8 = pnand %p4413_p7, %p4632_p10 }
 0x47d   : > { %p4409_p11 = pneg %p4408_p8 }
 0x47f   : > { %4549 = dma.done.wait (%p4409_p11), %s4327_s14, 132096  }
 0x480   : > { %4551 = vsyncadd (%p4409_p11), %s4327_s14, 4294835200  ;;  %p14_p12 = scmp.ge.s32.totalorder %s4609_s12, 5   ;;  %s6867_s6 = smov %s4558_s7 }
 0x481   : > { %s6868_s7 = smov %s4562_s8  ;;  %s6869_s8 = smov %s4621_s15 }
 0x482   : > { %s6870_s9 = smov %s4609_s12  ;;  %16 = sbr.rel (!%p14_p12) target bundleno = 5 (0x5), region = 69 }
 0x487   :  { %4333 = vsyncpa [#allocation3], 1 }
 0x488   :  { %4335 = vsyncpa [#allocation3 + $0x1], 1 }
 0x489   :  { %4336 = vsyncpa [#allocation4], 1 }
 0x48a   :  { %4338 = vsyncpa [#allocation4 + $0x1], 1 }

</bundles_post_ra>
